<compile_context>
chip_gen: v6e
topology: v6e:2x2x1
jax: 0.10.0
libtpu: 0.0.40
codegen_flags: <defaults>
</compile_context>

<pallas_src>
import functools
import math

import jax
import jax.numpy as jnp
from jax import lax
from jax.experimental import pallas as pl
from jax.experimental.pallas import tpu as pltpu

N_TILE = 128   # node rows per grid step
C_PAD = 128    # padded channel width (lane-dense)
HIDDEN = 128   # LocalMLP hidden size (already lane-dense)


# ----------------------------- BlockSpec helpers -----------------------------

def _row_spec(shape):
    """Tile the leading (node) axis by N_TILE, keep trailing dims whole."""
    nd = len(shape)
    return pl.BlockSpec((N_TILE,) + tuple(shape[1:]),
                        lambda i: (i,) + (0,) * (nd - 1))


def _full_spec(shape):
    """Whole-array block (weights / resident k,v); same block every grid step."""
    nd = len(shape)
    return pl.BlockSpec(tuple(shape), lambda i: (0,) * nd)


def _cparams():
    return pltpu.CompilerParams(dimension_semantics=("parallel",),
                                vmem_limit_bytes=32 * 1024 * 1024)


# --------------------------------- kernels -----------------------------------

def _weight_qkv_kernel(x_ref,
                       vw1, vb1, vw2, vb2, vw3, vb3,
                       ww1, wb1, ww2r, wb2,
                       wq, bq, wk, bk, wv, bv,
                       q_ref, k_ref, v_ref):
    """Fused LocalWeighting (value-MLP * gate-MLP) + q/k/v projections."""
    x = x_ref[...].astype(jnp.bfloat16)                                  # (TN, C_PAD)

    # value MLP (C -> H -> H -> C), ReLU after every layer (reference semantics)
    h = jnp.maximum(jnp.dot(x, vw1[...], preferred_element_type=jnp.float32) + vb1[...], 0.0)
    h = jnp.maximum(jnp.dot(h.astype(jnp.bfloat16), vw2[...],
                            preferred_element_type=jnp.float32) + vb2[...], 0.0)
    val = jnp.maximum(jnp.dot(h.astype(jnp.bfloat16), vw3[...],
                              preferred_element_type=jnp.float32) + vb3[...], 0.0)

    # gate MLP (C -> H -> 1); the 128->1 layer is a lane reduce, not a matmul
    g = jnp.maximum(jnp.dot(x, ww1[...], preferred_element_type=jnp.float32) + wb1[...], 0.0)
    gate = jnp.maximum(jnp.sum(g * ww2r[...], axis=-1, keepdims=True) + wb2[...], 0.0)

    wr = (val * gate).astype(jnp.bfloat16)                               # (TN, C_PAD)

    # q/k/v projections (wq/bq already carry the 1/sqrt(C) softmax scale)
    q_ref[...] = (jnp.dot(wr, wq[...], preferred_element_type=jnp.float32) + bq[...]).astype(q_ref.dtype)
    k_ref[...] = (jnp.dot(wr, wk[...], preferred_element_type=jnp.float32) + bk[...]).astype(k_ref.dtype)
    v_ref[...] = (jnp.dot(wr, wv[...], preferred_element_type=jnp.float32) + bv[...]).astype(v_ref.dtype)


def _neigh_attn_kernel(q_ref, struct_ref, res_ref, kall_ref, vall_ref, o_ref):
    """softmax(q.k_nb) over K neighbours gathered in-kernel from resident k/v, + residual."""
    q = q_ref[...]                                  # (TN, C_PAD) bf16, pre-scaled
    kall = kall_ref[...]                            # (NP, C_PAD) bf16 (VMEM resident)
    vall = vall_ref[...]                            # (NP, C_PAD) bf16
    idx = struct_ref[...]                           # (TN, K)     int32
    num_neigh = struct_ref.shape[-1]

    # scores of every query row against every node key (MXU, contraction on C)
    s = lax.dot_general(q, kall, (((1,), (1,)), ((), ())),
                        preferred_element_type=jnp.float32)              # (TN, NP)
    tn, np_ = s.shape
    col = lax.broadcasted_iota(jnp.int32, (tn, np_), 1)

    # per-neighbour logits: one-hot select from s (duplicates kept per slot)
    logits = []
    for j in range(num_neigh):
        hit = (idx[:, j:j + 1] == col).astype(jnp.float32)               # (TN, NP)
        logits.append(jnp.sum(hit * s, axis=-1, keepdims=True))          # (TN, 1)

    m = functools.reduce(jnp.maximum, logits)
    es = [jnp.exp(l - m) for l in logits]
    denom = functools.reduce(jnp.add, es)
    inv = pl.reciprocal(denom, approx=True)

    # scatter softmax weights back to a (TN, NP) matrix, contract with v on MXU
    w = jnp.zeros_like(s)
    for j in range(num_neigh):
        hit = (idx[:, j:j + 1] == col).astype(jnp.float32)
        w = w + hit * (es[j] * inv)
    out = jnp.dot(w.astype(jnp.bfloat16), vall, preferred_element_type=jnp.float32)  # (TN, C_PAD)

    o_ref[...] = (out + res_ref[...]).astype(o_ref.dtype)


def _mlp3_kernel(x_ref, w1, b1, w2, b2, w3, b3, o_ref):
    """LocalMLP depth 3, ReLU after every layer (output channels padded to 128)."""
    x = x_ref[...].astype(jnp.bfloat16)
    h = jnp.maximum(jnp.dot(x, w1[...], preferred_element_type=jnp.float32) + b1[...], 0.0)
    h = jnp.maximum(jnp.dot(h.astype(jnp.bfloat16), w2[...],
                            preferred_element_type=jnp.float32) + b2[...], 0.0)
    o = jnp.maximum(jnp.dot(h.astype(jnp.bfloat16), w3[...],
                            preferred_element_type=jnp.float32) + b3[...], 0.0)
    o_ref[...] = o.astype(o_ref.dtype)


# -------------------------------- wrappers ------------------------------------

def weight_qkv(x, p):
    n, cp = x.shape
    assert n % N_TILE == 0 and cp == C_PAD
    flat = [p["vw1"], p["vb1"], p["vw2"], p["vb2"], p["vw3"], p["vb3"],
            p["ww1"], p["wb1"], p["ww2r"], p["wb2"],
            p["wq"], p["bq"], p["wk"], p["bk"], p["wv"], p["bv"]]
    qkv_shape = jax.ShapeDtypeStruct((n, cp), jnp.bfloat16)
    return pl.pallas_call(
        _weight_qkv_kernel,
        out_shape=(qkv_shape, qkv_shape, qkv_shape),
        grid=(n // N_TILE,),
        in_specs=[_row_spec(x.shape)] + [_full_spec(a.shape) for a in flat],
        out_specs=(_row_spec((n, cp)),) * 3,
        compiler_params=_cparams(),
    )(x, *flat)


def neighbour_attention(q, structure, residual, k_all, v_all):
    n, cp = q.shape
    assert n % N_TILE == 0
    return pl.pallas_call(
        _neigh_attn_kernel,
        out_shape=jax.ShapeDtypeStruct((n, cp), residual.dtype),
        grid=(n // N_TILE,),
        in_specs=[_row_spec(q.shape),
                  _row_spec(structure.shape),
                  _row_spec(residual.shape),
                  _full_spec(k_all.shape),
                  _full_spec(v_all.shape)],
        out_specs=_row_spec((n, cp)),
        compiler_params=_cparams(),
    )(q, structure, residual, k_all, v_all)


def local_mlp3(x, p):
    n, cp = x.shape
    assert n % N_TILE == 0
    flat = [p["w1"], p["b1"], p["w2"], p["b2"], p["w3"], p["b3"]]
    return pl.pallas_call(
        _mlp3_kernel,
        out_shape=jax.ShapeDtypeStruct((n, C_PAD), jnp.float32),
        grid=(n // N_TILE,),
        in_specs=[_row_spec(x.shape)] + [_full_spec(a.shape) for a in flat],
        out_specs=_row_spec((n, C_PAD)),
        compiler_params=_cparams(),
    )(x, *flat)


def stacked_inverse_fold(inputs, structure, params):
    n, c = inputs.shape
    n_pad = pl.cdiv(n, N_TILE) * N_TILE
    # pad nodes to a tile multiple and channels to a full lane width (zeros are
    # exact: padded weight rows/cols are zero, so results match the logical op)
    x = jnp.zeros((n_pad, C_PAD), jnp.float32).at[:n, :c].set(inputs)
    st = jnp.zeros((n_pad, structure.shape[1]), jnp.int32).at[:n].set(structure)

    out = x
    for lw_p in params["layers"]:
        q, k_all, v_all = weight_qkv(out, lw_p)
        out = neighbour_attention(q, st, out, k_all, v_all)
    y = local_mlp3(out, params["mlp"])
    return y[:n, :params["out_size"]]


# ---------------------------- parameter init ----------------------------------

def init_linear(key, in_size, out_size):
    """Matches torch.nn.Linear default init: U(-1/sqrt(fan_in), 1/sqrt(fan_in))."""
    kw, kb = jax.random.split(key)
    scale = 1.0 / math.sqrt(in_size)
    w = jax.random.uniform(kw, (in_size, out_size), jnp.float32, -scale, scale)
    b = jax.random.uniform(kb, (1, out_size), jnp.float32, -scale, scale)
    return w, b


def _pad_w(w, rows, cols, dtype=jnp.bfloat16):
    out = jnp.zeros((rows, cols), jnp.float32).at[:w.shape[0], :w.shape[1]].set(w)
    return out.astype(dtype)


def _pad_b(b, cols):
    return jnp.zeros((1, cols), jnp.float32).at[:, :b.shape[1]].set(b)


def init_params(key, size, hidden=HIDDEN, outer_depth=3, out_size=20):
    assert hidden == HIDDEN, "gate reduce path assumes hidden == 128"
    inv_sqrt_c = 1.0 / math.sqrt(size)
    layers = []
    for _ in range(outer_depth):
        key, k1, k2, k3, k4, k5, kq, kk, kv = jax.random.split(key, 9)
        vw1, vb1 = init_linear(k1, size, hidden)
        vw2, vb2 = init_linear(k2, hidden, hidden)
        vw3, vb3 = init_linear(k3, hidden, size)
        ww1, wb1 = init_linear(k4, size, hidden)
        ww2, wb2 = init_linear(k5, hidden, 1)
        wq, bq = init_linear(kq, size, size)
        wk, bk = init_linear(kk, size, size)
        wv, bv = init_linear(kv, size, size)
        layers.append(dict(
            vw1=_pad_w(vw1, C_PAD, hidden), vb1=_pad_b(vb1, hidden),
            vw2=_pad_w(vw2, hidden, hidden), vb2=_pad_b(vb2, hidden),
            vw3=_pad_w(vw3, hidden, C_PAD), vb3=_pad_b(vb3, C_PAD),
            ww1=_pad_w(ww1, C_PAD, hidden), wb1=_pad_b(wb1, hidden),
            ww2r=ww2.T,            # (1, hidden) f32: gate handled as a lane reduce
            wb2=wb2,               # (1, 1) f32
            # fold the softmax 1/sqrt(C) scale into the q projection once
            wq=_pad_w(wq * inv_sqrt_c, C_PAD, C_PAD), bq=_pad_b(bq * inv_sqrt_c, C_PAD),
            wk=_pad_w(wk, C_PAD, C_PAD), bk=_pad_b(bk, C_PAD),
            wv=_pad_w(wv, C_PAD, C_PAD), bv=_pad_b(bv, C_PAD),
        ))
    key, km1, km2, km3 = jax.random.split(key, 4)
    w1, b1 = init_linear(km1, size, hidden)
    w2, b2 = init_linear(km2, hidden, hidden)
    w3, b3 = init_linear(km3, hidden, out_size)
    mlp = dict(w1=_pad_w(w1, C_PAD, hidden), b1=_pad_b(b1, hidden),
               w2=_pad_w(w2, hidden, hidden), b2=_pad_b(b2, hidden),
               w3=_pad_w(w3, hidden, C_PAD), b3=_pad_b(b3, C_PAD))
    return dict(layers=layers, mlp=mlp, out_size=out_size)


# ----------------------------------- main --------------------------------------

if __name__ == "__main__":
    N, SIZE, K = 256, 32, 8   # nodes, feature size, neighbours per node
    key = jax.random.PRNGKey(0)
    key, kx, ks, kp = jax.random.split(key, 4)

    inputs = jax.random.normal(kx, (N, SIZE), dtype=jnp.float32)
    structure = jax.random.randint(ks, (N, K), 0, N, dtype=jnp.int32)
    params = init_params(kp, SIZE)

    fwd = jax.jit(lambda x, s: stacked_inverse_fold(x, s, params))
    out = jax.block_until_ready(fwd(inputs, structure))

    assert out.shape == (N, 20), out.shape
    assert out.dtype == jnp.float32
    assert bool(jnp.all(jnp.isfinite(out)))
    print("KERNEL_OK")
</pallas_src>

<mosaic_0001>
module attributes {stable_mosaic.version = 11 : i64} {
  func.func @_mlp3_kernel(%arg0: i32, %arg1: memref<128x128xf32, #tpu.memory_space<vmem>>, %arg2: memref<128x128xbf16, #tpu.memory_space<vmem>>, %arg3: memref<1x128xf32, #tpu.memory_space<vmem>>, %arg4: memref<128x128xbf16, #tpu.memory_space<vmem>>, %arg5: memref<1x128xf32, #tpu.memory_space<vmem>>, %arg6: memref<128x128xbf16, #tpu.memory_space<vmem>>, %arg7: memref<1x128xf32, #tpu.memory_space<vmem>>, %arg8: memref<128x128xf32, #tpu.memory_space<vmem>>) attributes {dimension_semantics = [#tpu.dimension_semantics<parallel>], iteration_bounds = array<i64: 2>, scalar_prefetch = 0 : i64, scratch_operands = 0 : i64, tpu.core_type = #tpu.core_type<tc>, window_params = [{transform_indices = @transform_0, window_bounds = array<i64: 128, 128>}, {pipeline_mode = #tpu.pipeline_mode<synchronous>, transform_indices = @transform_1, window_bounds = array<i64: 128, 128>}, {pipeline_mode = #tpu.pipeline_mode<synchronous>, transform_indices = @transform_2, window_bounds = array<i64: 1, 128>}, {pipeline_mode = #tpu.pipeline_mode<synchronous>, transform_indices = @transform_3, window_bounds = array<i64: 128, 128>}, {pipeline_mode = #tpu.pipeline_mode<synchronous>, transform_indices = @transform_4, window_bounds = array<i64: 1, 128>}, {pipeline_mode = #tpu.pipeline_mode<synchronous>, transform_indices = @transform_5, window_bounds = array<i64: 128, 128>}, {pipeline_mode = #tpu.pipeline_mode<synchronous>, transform_indices = @transform_6, window_bounds = array<i64: 1, 128>}, {transform_indices = @transform_7, window_bounds = array<i64: 128, 128>}]} {
    %c0 = arith.constant 0 : index
    %c0_0 = arith.constant 0 : index
    %0 = vector.load %arg1[%c0, %c0_0] : memref<128x128xf32, #tpu.memory_space<vmem>>, vector<128x128xf32>
    %1 = arith.truncf %0 : vector<128x128xf32> to vector<128x128xbf16>
    %c0_1 = arith.constant 0 : index
    %c0_2 = arith.constant 0 : index
    %2 = vector.load %arg2[%c0_1, %c0_2] : memref<128x128xbf16, #tpu.memory_space<vmem>>, vector<128x128xbf16>
    %cst = arith.constant dense<0.000000e+00> : vector<128x128xf32>
    %3 = tpu.matmul %1, %2, %cst {dimension_numbers = #tpu.dot_dimension_numbers<[1], [0], [0], [1], [0, 0, 1, 1], [], []>} : vector<128x128xbf16>, vector<128x128xbf16>, vector<128x128xf32> -> vector<128x128xf32>
    %c0_3 = arith.constant 0 : index
    %c0_4 = arith.constant 0 : index
    %4 = vector.load %arg3[%c0_3, %c0_4] : memref<1x128xf32, #tpu.memory_space<vmem>>, vector<1x128xf32>
    %5 = vector.broadcast %4 : vector<1x128xf32> to vector<128x128xf32>
    %6 = arith.addf %3, %5 : vector<128x128xf32>
    %cst_5 = arith.constant 0.000000e+00 : f32
    %7 = vector.broadcast %cst_5 : f32 to vector<128x128xf32>
    %8 = arith.maximumf %6, %7 : vector<128x128xf32>
    %9 = arith.truncf %8 : vector<128x128xf32> to vector<128x128xbf16>
    %c0_6 = arith.constant 0 : index
    %c0_7 = arith.constant 0 : index
    %10 = vector.load %arg4[%c0_6, %c0_7] : memref<128x128xbf16, #tpu.memory_space<vmem>>, vector<128x128xbf16>
    %cst_8 = arith.constant dense<0.000000e+00> : vector<128x128xf32>
    %11 = tpu.matmul %9, %10, %cst_8 {dimension_numbers = #tpu.dot_dimension_numbers<[1], [0], [0], [1], [0, 0, 1, 1], [], []>} : vector<128x128xbf16>, vector<128x128xbf16>, vector<128x128xf32> -> vector<128x128xf32>
    %c0_9 = arith.constant 0 : index
    %c0_10 = arith.constant 0 : index
    %12 = vector.load %arg5[%c0_9, %c0_10] : memref<1x128xf32, #tpu.memory_space<vmem>>, vector<1x128xf32>
    %13 = vector.broadcast %12 : vector<1x128xf32> to vector<128x128xf32>
    %14 = arith.addf %11, %13 : vector<128x128xf32>
    %cst_11 = arith.constant 0.000000e+00 : f32
    %15 = vector.broadcast %cst_11 : f32 to vector<128x128xf32>
    %16 = arith.maximumf %14, %15 : vector<128x128xf32>
    %17 = arith.truncf %16 : vector<128x128xf32> to vector<128x128xbf16>
    %c0_12 = arith.constant 0 : index
    %c0_13 = arith.constant 0 : index
    %18 = vector.load %arg6[%c0_12, %c0_13] : memref<128x128xbf16, #tpu.memory_space<vmem>>, vector<128x128xbf16>
    %cst_14 = arith.constant dense<0.000000e+00> : vector<128x128xf32>
    %19 = tpu.matmul %17, %18, %cst_14 {dimension_numbers = #tpu.dot_dimension_numbers<[1], [0], [0], [1], [0, 0, 1, 1], [], []>} : vector<128x128xbf16>, vector<128x128xbf16>, vector<128x128xf32> -> vector<128x128xf32>
    %c0_15 = arith.constant 0 : index
    %c0_16 = arith.constant 0 : index
    %20 = vector.load %arg7[%c0_15, %c0_16] : memref<1x128xf32, #tpu.memory_space<vmem>>, vector<1x128xf32>
    %21 = vector.broadcast %20 : vector<1x128xf32> to vector<128x128xf32>
    %22 = arith.addf %19, %21 : vector<128x128xf32>
    %cst_17 = arith.constant 0.000000e+00 : f32
    %23 = vector.broadcast %cst_17 : f32 to vector<128x128xf32>
    %24 = arith.maximumf %22, %23 : vector<128x128xf32>
    %c0_18 = arith.constant 0 : index
    %c0_19 = arith.constant 0 : index
    %25 = vector.load %arg8[%c0_18, %c0_19] : memref<128x128xf32, #tpu.memory_space<vmem>>, vector<128x128xf32>
    tpu.vector_store %arg8[%c0_18, %c0_19], %24 {strides = array<i32>} : memref<128x128xf32, #tpu.memory_space<vmem>>, vector<128x128xf32>,
    return
  }
  func.func @transform_0(%arg0: i32) -> (i32, i32) {
    %c0_i32 = arith.constant 0 : i32
    %c0_i32_0 = arith.constant 0 : i32
    return %arg0, %c0_i32 : i32, i32
  }
  func.func @transform_1(%arg0: i32) -> (i32, i32) {
    %c0_i32 = arith.constant 0 : i32
    %c0_i32_0 = arith.constant 0 : i32
    %c0_i32_1 = arith.constant 0 : i32
    return %c0_i32, %c0_i32_0 : i32, i32
  }
  func.func @transform_2(%arg0: i32) -> (i32, i32) {
    %c0_i32 = arith.constant 0 : i32
    %c0_i32_0 = arith.constant 0 : i32
    %c0_i32_1 = arith.constant 0 : i32
    return %c0_i32, %c0_i32_0 : i32, i32
  }
  func.func @transform_3(%arg0: i32) -> (i32, i32) {
    %c0_i32 = arith.constant 0 : i32
    %c0_i32_0 = arith.constant 0 : i32
    %c0_i32_1 = arith.constant 0 : i32
    return %c0_i32, %c0_i32_0 : i32, i32
  }
  func.func @transform_4(%arg0: i32) -> (i32, i32) {
    %c0_i32 = arith.constant 0 : i32
    %c0_i32_0 = arith.constant 0 : i32
    %c0_i32_1 = arith.constant 0 : i32
    return %c0_i32, %c0_i32_0 : i32, i32
  }
  func.func @transform_5(%arg0: i32) -> (i32, i32) {
    %c0_i32 = arith.constant 0 : i32
    %c0_i32_0 = arith.constant 0 : i32
    %c0_i32_1 = arith.constant 0 : i32
    return %c0_i32, %c0_i32_0 : i32, i32
  }
  func.func @transform_6(%arg0: i32) -> (i32, i32) {
    %c0_i32 = arith.constant 0 : i32
    %c0_i32_0 = arith.constant 0 : i32
    %c0_i32_1 = arith.constant 0 : i32
    return %c0_i32, %c0_i32_0 : i32, i32
  }
  func.func @transform_7(%arg0: i32) -> (i32, i32) {
    %c0_i32 = arith.constant 0 : i32
    %c0_i32_0 = arith.constant 0 : i32
    return %arg0, %c0_i32 : i32, i32
  }
}

module attributes {stable_mosaic.version = 11 : i64} {
  func.func @_weight_qkv_kernel(%arg0: i32, %arg1: memref<128x128xf32, #tpu.memory_space<vmem>>, %arg2: memref<128x128xbf16, #tpu.memory_space<vmem>>, %arg3: memref<1x128xf32, #tpu.memory_space<vmem>>, %arg4: memref<128x128xbf16, #tpu.memory_space<vmem>>, %arg5: memref<1x128xf32, #tpu.memory_space<vmem>>, %arg6: memref<128x128xbf16, #tpu.memory_space<vmem>>, %arg7: memref<1x128xf32, #tpu.memory_space<vmem>>, %arg8: memref<128x128xbf16, #tpu.memory_space<vmem>>, %arg9: memref<1x128xf32, #tpu.memory_space<vmem>>, %arg10: memref<1x128xf32, #tpu.memory_space<vmem>>, %arg11: memref<1x1xf32, #tpu.memory_space<vmem>>, %arg12: memref<128x128xbf16, #tpu.memory_space<vmem>>, %arg13: memref<1x128xf32, #tpu.memory_space<vmem>>, %arg14: memref<128x128xbf16, #tpu.memory_space<vmem>>, %arg15: memref<1x128xf32, #tpu.memory_space<vmem>>, %arg16: memref<128x128xbf16, #tpu.memory_space<vmem>>, %arg17: memref<1x128xf32, #tpu.memory_space<vmem>>, %arg18: memref<128x128xbf16, #tpu.memory_space<vmem>>, %arg19: memref<128x128xbf16, #tpu.memory_space<vmem>>, %arg20: memref<128x128xbf16, #tpu.memory_space<vmem>>) attributes {dimension_semantics = [#tpu.dimension_semantics<parallel>], iteration_bounds = array<i64: 2>, scalar_prefetch = 0 : i64, scratch_operands = 0 : i64, tpu.core_type = #tpu.core_type<tc>, window_params = [{transform_indices = @transform_0, window_bounds = array<i64: 128, 128>}, {pipeline_mode = #tpu.pipeline_mode<synchronous>, transform_indices = @transform_1, window_bounds = array<i64: 128, 128>}, {pipeline_mode = #tpu.pipeline_mode<synchronous>, transform_indices = @transform_2, window_bounds = array<i64: 1, 128>}, {pipeline_mode = #tpu.pipeline_mode<synchronous>, transform_indices = @transform_3, window_bounds = array<i64: 128, 128>}, {pipeline_mode = #tpu.pipeline_mode<synchronous>, transform_indices = @transform_4, window_bounds = array<i64: 1, 128>}, {pipeline_mode = #tpu.pipeline_mode<synchronous>, transform_indices = @transform_5, window_bounds = array<i64: 128, 128>}, {pipeline_mode = #tpu.pipeline_mode<synchronous>, transform_indices = @transform_6, window_bounds = array<i64: 1, 128>}, {pipeline_mode = #tpu.pipeline_mode<synchronous>, transform_indices = @transform_7, window_bounds = array<i64: 128, 128>}, {pipeline_mode = #tpu.pipeline_mode<synchronous>, transform_indices = @transform_8, window_bounds = array<i64: 1, 128>}, {pipeline_mode = #tpu.pipeline_mode<synchronous>, transform_indices = @transform_9, window_bounds = array<i64: 1, 128>}, {pipeline_mode = #tpu.pipeline_mode<synchronous>, transform_indices = @transform_10, window_bounds = array<i64: 1, 1>}, {pipeline_mode = #tpu.pipeline_mode<synchronous>, transform_indices = @transform_11, window_bounds = array<i64: 128, 128>}, {pipeline_mode = #tpu.pipeline_mode<synchronous>, transform_indices = @transform_12, window_bounds = array<i64: 1, 128>}, {pipeline_mode = #tpu.pipeline_mode<synchronous>, transform_indices = @transform_13, window_bounds = array<i64: 128, 128>}, {pipeline_mode = #tpu.pipeline_mode<synchronous>, transform_indices = @transform_14, window_bounds = array<i64: 1, 128>}, {pipeline_mode = #tpu.pipeline_mode<synchronous>, transform_indices = @transform_15, window_bounds = array<i64: 128, 128>}, {pipeline_mode = #tpu.pipeline_mode<synchronous>, transform_indices = @transform_16, window_bounds = array<i64: 1, 128>}, {transform_indices = @transform_17, window_bounds = array<i64: 128, 128>}, {transform_indices = @transform_18, window_bounds = array<i64: 128, 128>}, {transform_indices = @transform_19, window_bounds = array<i64: 128, 128>}]} {
    %c0 = arith.constant 0 : index
    %c0_0 = arith.constant 0 : index
    %0 = vector.load %arg1[%c0, %c0_0] : memref<128x128xf32, #tpu.memory_space<vmem>>, vector<128x128xf32>
    %1 = arith.truncf %0 : vector<128x128xf32> to vector<128x128xbf16>
    %c0_1 = arith.constant 0 : index
    %c0_2 = arith.constant 0 : index
    %2 = vector.load %arg2[%c0_1, %c0_2] : memref<128x128xbf16, #tpu.memory_space<vmem>>, vector<128x128xbf16>
    %cst = arith.constant dense<0.000000e+00> : vector<128x128xf32>
    %3 = tpu.matmul %1, %2, %cst {dimension_numbers = #tpu.dot_dimension_numbers<[1], [0], [0], [1], [0, 0, 1, 1], [], []>} : vector<128x128xbf16>, vector<128x128xbf16>, vector<128x128xf32> -> vector<128x128xf32>
    %c0_3 = arith.constant 0 : index
    %c0_4 = arith.constant 0 : index
    %4 = vector.load %arg3[%c0_3, %c0_4] : memref<1x128xf32, #tpu.memory_space<vmem>>, vector<1x128xf32>
    %5 = vector.broadcast %4 : vector<1x128xf32> to vector<128x128xf32>
    %6 = arith.addf %3, %5 : vector<128x128xf32>
    %cst_5 = arith.constant 0.000000e+00 : f32
    %7 = vector.broadcast %cst_5 : f32 to vector<128x128xf32>
    %8 = arith.maximumf %6, %7 : vector<128x128xf32>
    %9 = arith.truncf %8 : vector<128x128xf32> to vector<128x128xbf16>
    %c0_6 = arith.constant 0 : index
    %c0_7 = arith.constant 0 : index
    %10 = vector.load %arg4[%c0_6, %c0_7] : memref<128x128xbf16, #tpu.memory_space<vmem>>, vector<128x128xbf16>
    %cst_8 = arith.constant dense<0.000000e+00> : vector<128x128xf32>
    %11 = tpu.matmul %9, %10, %cst_8 {dimension_numbers = #tpu.dot_dimension_numbers<[1], [0], [0], [1], [0, 0, 1, 1], [], []>} : vector<128x128xbf16>, vector<128x128xbf16>, vector<128x128xf32> -> vector<128x128xf32>
    %c0_9 = arith.constant 0 : index
    %c0_10 = arith.constant 0 : index
    %12 = vector.load %arg5[%c0_9, %c0_10] : memref<1x128xf32, #tpu.memory_space<vmem>>, vector<1x128xf32>
    %13 = vector.broadcast %12 : vector<1x128xf32> to vector<128x128xf32>
    %14 = arith.addf %11, %13 : vector<128x128xf32>
    %cst_11 = arith.constant 0.000000e+00 : f32
    %15 = vector.broadcast %cst_11 : f32 to vector<128x128xf32>
    %16 = arith.maximumf %14, %15 : vector<128x128xf32>
    %17 = arith.truncf %16 : vector<128x128xf32> to vector<128x128xbf16>
    %c0_12 = arith.constant 0 : index
    %c0_13 = arith.constant 0 : index
    %18 = vector.load %arg6[%c0_12, %c0_13] : memref<128x128xbf16, #tpu.memory_space<vmem>>, vector<128x128xbf16>
    %cst_14 = arith.constant dense<0.000000e+00> : vector<128x128xf32>
    %19 = tpu.matmul %17, %18, %cst_14 {dimension_numbers = #tpu.dot_dimension_numbers<[1], [0], [0], [1], [0, 0, 1, 1], [], []>} : vector<128x128xbf16>, vector<128x128xbf16>, vector<128x128xf32> -> vector<128x128xf32>
    %c0_15 = arith.constant 0 : index
    %c0_16 = arith.constant 0 : index
    %20 = vector.load %arg7[%c0_15, %c0_16] : memref<1x128xf32, #tpu.memory_space<vmem>>, vector<1x128xf32>
    %21 = vector.broadcast %20 : vector<1x128xf32> to vector<128x128xf32>
    %22 = arith.addf %19, %21 : vector<128x128xf32>
    %cst_17 = arith.constant 0.000000e+00 : f32
    %23 = vector.broadcast %cst_17 : f32 to vector<128x128xf32>
    %24 = arith.maximumf %22, %23 : vector<128x128xf32>
    %c0_18 = arith.constant 0 : index
    %c0_19 = arith.constant 0 : index
    %25 = vector.load %arg8[%c0_18, %c0_19] : memref<128x128xbf16, #tpu.memory_space<vmem>>, vector<128x128xbf16>
    %cst_20 = arith.constant dense<0.000000e+00> : vector<128x128xf32>
    %26 = tpu.matmul %1, %25, %cst_20 {dimension_numbers = #tpu.dot_dimension_numbers<[1], [0], [0], [1], [0, 0, 1, 1], [], []>} : vector<128x128xbf16>, vector<128x128xbf16>, vector<128x128xf32> -> vector<128x128xf32>
    %c0_21 = arith.constant 0 : index
    %c0_22 = arith.constant 0 : index
    %27 = vector.load %arg9[%c0_21, %c0_22] : memref<1x128xf32, #tpu.memory_space<vmem>>, vector<1x128xf32>
    %28 = vector.broadcast %27 : vector<1x128xf32> to vector<128x128xf32>
    %29 = arith.addf %26, %28 : vector<128x128xf32>
    %cst_23 = arith.constant 0.000000e+00 : f32
    %30 = vector.broadcast %cst_23 : f32 to vector<128x128xf32>
    %31 = arith.maximumf %29, %30 : vector<128x128xf32>
    %c0_24 = arith.constant 0 : index
    %c0_25 = arith.constant 0 : index
    %32 = vector.load %arg10[%c0_24, %c0_25] : memref<1x128xf32, #tpu.memory_space<vmem>>, vector<1x128xf32>
    %33 = vector.broadcast %32 : vector<1x128xf32> to vector<128x128xf32>
    %34 = arith.mulf %31, %33 : vector<128x128xf32>
    %cst_26 = arith.constant dense<0.000000e+00> : vector<128xf32>
    %35 = vector.multi_reduction <add>, %34, %cst_26 [1] : vector<128x128xf32> to vector<128xf32>
    %36 = vector.shape_cast %35 : vector<128xf32> to vector<128x1xf32>
    %c0_27 = arith.constant 0 : index
    %c0_28 = arith.constant 0 : index
    %37 = vector.load %arg11[%c0_27, %c0_28] : memref<1x1xf32, #tpu.memory_space<vmem>>, vector<1x1xf32>
    %38 = vector.broadcast %37 : vector<1x1xf32> to vector<128x1xf32>
    %39 = arith.addf %36, %38 : vector<128x1xf32>
    %cst_29 = arith.constant 0.000000e+00 : f32
    %40 = vector.broadcast %cst_29 : f32 to vector<128x1xf32>
    %41 = arith.maximumf %39, %40 : vector<128x1xf32>
    %42 = vector.broadcast %41 : vector<128x1xf32> to vector<128x128xf32>
    %43 = arith.mulf %24, %42 : vector<128x128xf32>
    %44 = arith.truncf %43 : vector<128x128xf32> to vector<128x128xbf16>
    %c0_30 = arith.constant 0 : index
    %c0_31 = arith.constant 0 : index
    %45 = vector.load %arg12[%c0_30, %c0_31] : memref<128x128xbf16, #tpu.memory_space<vmem>>, vector<128x128xbf16>
    %cst_32 = arith.constant dense<0.000000e+00> : vector<128x128xf32>
    %46 = tpu.matmul %44, %45, %cst_32 {dimension_numbers = #tpu.dot_dimension_numbers<[1], [0], [0], [1], [0, 0, 1, 1], [], []>} : vector<128x128xbf16>, vector<128x128xbf16>, vector<128x128xf32> -> vector<128x128xf32>
    %c0_33 = arith.constant 0 : index
    %c0_34 = arith.constant 0 : index
    %47 = vector.load %arg13[%c0_33, %c0_34] : memref<1x128xf32, #tpu.memory_space<vmem>>, vector<1x128xf32>
    %48 = vector.broadcast %47 : vector<1x128xf32> to vector<128x128xf32>
    %49 = arith.addf %46, %48 : vector<128x128xf32>
    %50 = arith.truncf %49 : vector<128x128xf32> to vector<128x128xbf16>
    %c0_35 = arith.constant 0 : index
    %c0_36 = arith.constant 0 : index
    %51 = vector.load %arg18[%c0_35, %c0_36] : memref<128x128xbf16, #tpu.memory_space<vmem>>, vector<128x128xbf16>
    tpu.vector_store %arg18[%c0_35, %c0_36], %50 {strides = array<i32>} : memref<128x128xbf16, #tpu.memory_space<vmem>>, vector<128x128xbf16>,
    %c0_37 = arith.constant 0 : index
    %c0_38 = arith.constant 0 : index
    %52 = vector.load %arg14[%c0_37, %c0_38] : memref<128x128xbf16, #tpu.memory_space<vmem>>, vector<128x128xbf16>
    %cst_39 = arith.constant dense<0.000000e+00> : vector<128x128xf32>
    %53 = tpu.matmul %44, %52, %cst_39 {dimension_numbers = #tpu.dot_dimension_numbers<[1], [0], [0], [1], [0, 0, 1, 1], [], []>} : vector<128x128xbf16>, vector<128x128xbf16>, vector<128x128xf32> -> vector<128x128xf32>
    %c0_40 = arith.constant 0 : index
    %c0_41 = arith.constant 0 : index
    %54 = vector.load %arg15[%c0_40, %c0_41] : memref<1x128xf32, #tpu.memory_space<vmem>>, vector<1x128xf32>
    %55 = vector.broadcast %54 : vector<1x128xf32> to vector<128x128xf32>
    %56 = arith.addf %53, %55 : vector<128x128xf32>
    %57 = arith.truncf %56 : vector<128x128xf32> to vector<128x128xbf16>
    %c0_42 = arith.constant 0 : index
    %c0_43 = arith.constant 0 : index
    %58 = vector.load %arg19[%c0_42, %c0_43] : memref<128x128xbf16, #tpu.memory_space<vmem>>, vector<128x128xbf16>
    tpu.vector_store %arg19[%c0_42, %c0_43], %57 {strides = array<i32>} : memref<128x128xbf16, #tpu.memory_space<vmem>>, vector<128x128xbf16>,
    %c0_44 = arith.constant 0 : index
    %c0_45 = arith.constant 0 : index
    %59 = vector.load %arg16[%c0_44, %c0_45] : memref<128x128xbf16, #tpu.memory_space<vmem>>, vector<128x128xbf16>
    %cst_46 = arith.constant dense<0.000000e+00> : vector<128x128xf32>
    %60 = tpu.matmul %44, %59, %cst_46 {dimension_numbers = #tpu.dot_dimension_numbers<[1], [0], [0], [1], [0, 0, 1, 1], [], []>} : vector<128x128xbf16>, vector<128x128xbf16>, vector<128x128xf32> -> vector<128x128xf32>
    %c0_47 = arith.constant 0 : index
    %c0_48 = arith.constant 0 : index
    %61 = vector.load %arg17[%c0_47, %c0_48] : memref<1x128xf32, #tpu.memory_space<vmem>>, vector<1x128xf32>
    %62 = vector.broadcast %61 : vector<1x128xf32> to vector<128x128xf32>
    %63 = arith.addf %60, %62 : vector<128x128xf32>
    %64 = arith.truncf %63 : vector<128x128xf32> to vector<128x128xbf16>
    %c0_49 = arith.constant 0 : index
    %c0_50 = arith.constant 0 : index
    %65 = vector.load %arg20[%c0_49, %c0_50] : memref<128x128xbf16, #tpu.memory_space<vmem>>, vector<128x128xbf16>
    tpu.vector_store %arg20[%c0_49, %c0_50], %64 {strides = array<i32>} : memref<128x128xbf16, #tpu.memory_space<vmem>>, vector<128x128xbf16>,
    return
  }
  func.func @transform_0(%arg0: i32) -> (i32, i32) {
    %c0_i32 = arith.constant 0 : i32
    %c0_i32_0 = arith.constant 0 : i32
    return %arg0, %c0_i32 : i32, i32
  }
  func.func @transform_1(%arg0: i32) -> (i32, i32) {
    %c0_i32 = arith.constant 0 : i32
    %c0_i32_0 = arith.constant 0 : i32
    %c0_i32_1 = arith.constant 0 : i32
    return %c0_i32, %c0_i32_0 : i32, i32
  }
  func.func @transform_2(%arg0: i32) -> (i32, i32) {
    %c0_i32 = arith.constant 0 : i32
    %c0_i32_0 = arith.constant 0 : i32
    %c0_i32_1 = arith.constant 0 : i32
    return %c0_i32, %c0_i32_0 : i32, i32
  }
  func.func @transform_3(%arg0: i32) -> (i32, i32) {
    %c0_i32 = arith.constant 0 : i32
    %c0_i32_0 = arith.constant 0 : i32
    %c0_i32_1 = arith.constant 0 : i32
    return %c0_i32, %c0_i32_0 : i32, i32
  }
  func.func @transform_4(%arg0: i32) -> (i32, i32) {
    %c0_i32 = arith.constant 0 : i32
    %c0_i32_0 = arith.constant 0 : i32
    %c0_i32_1 = arith.constant 0 : i32
    return %c0_i32, %c0_i32_0 : i32, i32
  }
  func.func @transform_5(%arg0: i32) -> (i32, i32) {
    %c0_i32 = arith.constant 0 : i32
    %c0_i32_0 = arith.constant 0 : i32
    %c0_i32_1 = arith.constant 0 : i32
    return %c0_i32, %c0_i32_0 : i32, i32
  }
  func.func @transform_6(%arg0: i32) -> (i32, i32) {
    %c0_i32 = arith.constant 0 : i32
    %c0_i32_0 = arith.constant 0 : i32
    %c0_i32_1 = arith.constant 0 : i32
    return %c0_i32, %c0_i32_0 : i32, i32
  }
  func.func @transform_7(%arg0: i32) -> (i32, i32) {
    %c0_i32 = arith.constant 0 : i32
    %c0_i32_0 = arith.constant 0 : i32
    %c0_i32_1 = arith.constant 0 : i32
    return %c0_i32, %c0_i32_0 : i32, i32
  }
  func.func @transform_8(%arg0: i32) -> (i32, i32) {
    %c0_i32 = arith.constant 0 : i32
    %c0_i32_0 = arith.constant 0 : i32
    %c0_i32_1 = arith.constant 0 : i32
    return %c0_i32, %c0_i32_0 : i32, i32
  }
  func.func @transform_9(%arg0: i32) -> (i32, i32) {
    %c0_i32 = arith.constant 0 : i32
    %c0_i32_0 = arith.constant 0 : i32
    %c0_i32_1 = arith.constant 0 : i32
    return %c0_i32, %c0_i32_0 : i32, i32
  }
  func.func @transform_10(%arg0: i32) -> (i32, i32) {
    %c0_i32 = arith.constant 0 : i32
    %c0_i32_0 = arith.constant 0 : i32
    %c0_i32_1 = arith.constant 0 : i32
    return %c0_i32, %c0_i32_0 : i32, i32
  }
  func.func @transform_11(%arg0: i32) -> (i32, i32) {
    %c0_i32 = arith.constant 0 : i32
    %c0_i32_0 = arith.constant 0 : i32
    %c0_i32_1 = arith.constant 0 : i32
    return %c0_i32, %c0_i32_0 : i32, i32
  }
  func.func @transform_12(%arg0: i32) -> (i32, i32) {
    %c0_i32 = arith.constant 0 : i32
    %c0_i32_0 = arith.constant 0 : i32
    %c0_i32_1 = arith.constant 0 : i32
    return %c0_i32, %c0_i32_0 : i32, i32
  }
  func.func @transform_13(%arg0: i32) -> (i32, i32) {
    %c0_i32 = arith.constant 0 : i32
    %c0_i32_0 = arith.constant 0 : i32
    %c0_i32_1 = arith.constant 0 : i32
    return %c0_i32, %c0_i32_0 : i32, i32
  }
  func.func @transform_14(%arg0: i32) -> (i32, i32) {
    %c0_i32 = arith.constant 0 : i32
    %c0_i32_0 = arith.constant 0 : i32
    %c0_i32_1 = arith.constant 0 : i32
    return %c0_i32, %c0_i32_0 : i32, i32
  }
  func.func @transform_15(%arg0: i32) -> (i32, i32) {
    %c0_i32 = arith.constant 0 : i32
    %c0_i32_0 = arith.constant 0 : i32
    %c0_i32_1 = arith.constant 0 : i32
    return %c0_i32, %c0_i32_0 : i32, i32
  }
  func.func @transform_16(%arg0: i32) -> (i32, i32) {
    %c0_i32 = arith.constant 0 : i32
    %c0_i32_0 = arith.constant 0 : i32
    %c0_i32_1 = arith.constant 0 : i32
    return %c0_i32, %c0_i32_0 : i32, i32
  }
  func.func @transform_17(%arg0: i32) -> (i32, i32) {
    %c0_i32 = arith.constant 0 : i32
    %c0_i32_0 = arith.constant 0 : i32
    return %arg0, %c0_i32 : i32, i32
  }
  func.func @transform_18(%arg0: i32) -> (i32, i32) {
    %c0_i32 = arith.constant 0 : i32
    %c0_i32_0 = arith.constant 0 : i32
    return %arg0, %c0_i32 : i32, i32
  }
  func.func @transform_19(%arg0: i32) -> (i32, i32) {
    %c0_i32 = arith.constant 0 : i32
    %c0_i32_0 = arith.constant 0 : i32
    return %arg0, %c0_i32 : i32, i32
  }
}

module attributes {stable_mosaic.version = 11 : i64} {
  func.func @_neigh_attn_kernel(%arg0: i32, %arg1: memref<128x128xbf16, #tpu.memory_space<vmem>>, %arg2: memref<128x8xi32, #tpu.memory_space<vmem>>, %arg3: memref<128x128xf32, #tpu.memory_space<vmem>>, %arg4: memref<256x128xbf16, #tpu.memory_space<vmem>>, %arg5: memref<256x128xbf16, #tpu.memory_space<vmem>>, %arg6: memref<128x128xf32, #tpu.memory_space<vmem>>) attributes {dimension_semantics = [#tpu.dimension_semantics<parallel>], iteration_bounds = array<i64: 2>, scalar_prefetch = 0 : i64, scratch_operands = 0 : i64, tpu.core_type = #tpu.core_type<tc>, window_params = [{transform_indices = @transform_0, window_bounds = array<i64: 128, 128>}, {transform_indices = @transform_1, window_bounds = array<i64: 128, 8>}, {transform_indices = @transform_2, window_bounds = array<i64: 128, 128>}, {pipeline_mode = #tpu.pipeline_mode<synchronous>, transform_indices = @transform_3, window_bounds = array<i64: 256, 128>}, {pipeline_mode = #tpu.pipeline_mode<synchronous>, transform_indices = @transform_4, window_bounds = array<i64: 256, 128>}, {transform_indices = @transform_5, window_bounds = array<i64: 128, 128>}]} {
    %c0 = arith.constant 0 : index
    %c0_0 = arith.constant 0 : index
    %0 = vector.load %arg1[%c0, %c0_0] : memref<128x128xbf16, #tpu.memory_space<vmem>>, vector<128x128xbf16>
    %c0_1 = arith.constant 0 : index
    %c0_2 = arith.constant 0 : index
    %1 = vector.load %arg4[%c0_1, %c0_2] : memref<256x128xbf16, #tpu.memory_space<vmem>>, vector<256x128xbf16>
    %c0_3 = arith.constant 0 : index
    %c0_4 = arith.constant 0 : index
    %2 = vector.load %arg5[%c0_3, %c0_4] : memref<256x128xbf16, #tpu.memory_space<vmem>>, vector<256x128xbf16>
    %c0_5 = arith.constant 0 : index
    %c0_6 = arith.constant 0 : index
    %3 = vector.load %arg2[%c0_5, %c0_6] : memref<128x8xi32, #tpu.memory_space<vmem>>, vector<128x8xi32>
    %cst = arith.constant dense<0.000000e+00> : vector<128x256xf32>
    %4 = tpu.matmul %0, %1, %cst {dimension_numbers = #tpu.dot_dimension_numbers<[1], [1], [0], [0], [0, 0, 1, 0], [], []>} : vector<128x128xbf16>, vector<256x128xbf16>, vector<128x256xf32> -> vector<128x256xf32>
    %5 = tpu.iota {dimensions = array<i32: 1>} : vector<128x256xi32>
    %6 = vector.extract_strided_slice %3 {offsets = [0, 0], sizes = [128, 1], strides = [1, 1]} : vector<128x8xi32> to vector<128x1xi32>
    %7 = vector.broadcast %6 : vector<128x1xi32> to vector<128x256xi32>
    %8 = arith.cmpi eq, %7, %5 : vector<128x256xi32>
    %9 = arith.extui %8 : vector<128x256xi1> to vector<128x256xi32>
    %10 = arith.sitofp %9 : vector<128x256xi32> to vector<128x256xf32>
    %11 = arith.mulf %10, %4 : vector<128x256xf32>
    %cst_7 = arith.constant dense<0.000000e+00> : vector<128xf32>
    %12 = vector.multi_reduction <add>, %11, %cst_7 [1] : vector<128x256xf32> to vector<128xf32>
    %13 = vector.shape_cast %12 : vector<128xf32> to vector<128x1xf32>
    %14 = vector.extract_strided_slice %3 {offsets = [0, 1], sizes = [128, 1], strides = [1, 1]} : vector<128x8xi32> to vector<128x1xi32>
    %15 = vector.broadcast %14 : vector<128x1xi32> to vector<128x256xi32>
    %16 = arith.cmpi eq, %15, %5 : vector<128x256xi32>
    %17 = arith.extui %16 : vector<128x256xi1> to vector<128x256xi32>
    %18 = arith.sitofp %17 : vector<128x256xi32> to vector<128x256xf32>
    %19 = arith.mulf %18, %4 : vector<128x256xf32>
    %cst_8 = arith.constant dense<0.000000e+00> : vector<128xf32>
    %20 = vector.multi_reduction <add>, %19, %cst_8 [1] : vector<128x256xf32> to vector<128xf32>
    %21 = vector.shape_cast %20 : vector<128xf32> to vector<128x1xf32>
    %22 = vector.extract_strided_slice %3 {offsets = [0, 2], sizes = [128, 1], strides = [1, 1]} : vector<128x8xi32> to vector<128x1xi32>
    %23 = vector.broadcast %22 : vector<128x1xi32> to vector<128x256xi32>
    %24 = arith.cmpi eq, %23, %5 : vector<128x256xi32>
    %25 = arith.extui %24 : vector<128x256xi1> to vector<128x256xi32>
    %26 = arith.sitofp %25 : vector<128x256xi32> to vector<128x256xf32>
    %27 = arith.mulf %26, %4 : vector<128x256xf32>
    %cst_9 = arith.constant dense<0.000000e+00> : vector<128xf32>
    %28 = vector.multi_reduction <add>, %27, %cst_9 [1] : vector<128x256xf32> to vector<128xf32>
    %29 = vector.shape_cast %28 : vector<128xf32> to vector<128x1xf32>
    %30 = vector.extract_strided_slice %3 {offsets = [0, 3], sizes = [128, 1], strides = [1, 1]} : vector<128x8xi32> to vector<128x1xi32>
    %31 = vector.broadcast %30 : vector<128x1xi32> to vector<128x256xi32>
    %32 = arith.cmpi eq, %31, %5 : vector<128x256xi32>
    %33 = arith.extui %32 : vector<128x256xi1> to vector<128x256xi32>
    %34 = arith.sitofp %33 : vector<128x256xi32> to vector<128x256xf32>
    %35 = arith.mulf %34, %4 : vector<128x256xf32>
    %cst_10 = arith.constant dense<0.000000e+00> : vector<128xf32>
    %36 = vector.multi_reduction <add>, %35, %cst_10 [1] : vector<128x256xf32> to vector<128xf32>
    %37 = vector.shape_cast %36 : vector<128xf32> to vector<128x1xf32>
    %38 = vector.extract_strided_slice %3 {offsets = [0, 4], sizes = [128, 1], strides = [1, 1]} : vector<128x8xi32> to vector<128x1xi32>
    %39 = vector.broadcast %38 : vector<128x1xi32> to vector<128x256xi32>
    %40 = arith.cmpi eq, %39, %5 : vector<128x256xi32>
    %41 = arith.extui %40 : vector<128x256xi1> to vector<128x256xi32>
    %42 = arith.sitofp %41 : vector<128x256xi32> to vector<128x256xf32>
    %43 = arith.mulf %42, %4 : vector<128x256xf32>
    %cst_11 = arith.constant dense<0.000000e+00> : vector<128xf32>
    %44 = vector.multi_reduction <add>, %43, %cst_11 [1] : vector<128x256xf32> to vector<128xf32>
    %45 = vector.shape_cast %44 : vector<128xf32> to vector<128x1xf32>
    %46 = vector.extract_strided_slice %3 {offsets = [0, 5], sizes = [128, 1], strides = [1, 1]} : vector<128x8xi32> to vector<128x1xi32>
    %47 = vector.broadcast %46 : vector<128x1xi32> to vector<128x256xi32>
    %48 = arith.cmpi eq, %47, %5 : vector<128x256xi32>
    %49 = arith.extui %48 : vector<128x256xi1> to vector<128x256xi32>
    %50 = arith.sitofp %49 : vector<128x256xi32> to vector<128x256xf32>
    %51 = arith.mulf %50, %4 : vector<128x256xf32>
    %cst_12 = arith.constant dense<0.000000e+00> : vector<128xf32>
    %52 = vector.multi_reduction <add>, %51, %cst_12 [1] : vector<128x256xf32> to vector<128xf32>
    %53 = vector.shape_cast %52 : vector<128xf32> to vector<128x1xf32>
    %54 = vector.extract_strided_slice %3 {offsets = [0, 6], sizes = [128, 1], strides = [1, 1]} : vector<128x8xi32> to vector<128x1xi32>
    %55 = vector.broadcast %54 : vector<128x1xi32> to vector<128x256xi32>
    %56 = arith.cmpi eq, %55, %5 : vector<128x256xi32>
    %57 = arith.extui %56 : vector<128x256xi1> to vector<128x256xi32>
    %58 = arith.sitofp %57 : vector<128x256xi32> to vector<128x256xf32>
    %59 = arith.mulf %58, %4 : vector<128x256xf32>
    %cst_13 = arith.constant dense<0.000000e+00> : vector<128xf32>
    %60 = vector.multi_reduction <add>, %59, %cst_13 [1] : vector<128x256xf32> to vector<128xf32>
    %61 = vector.shape_cast %60 : vector<128xf32> to vector<128x1xf32>
    %62 = vector.extract_strided_slice %3 {offsets = [0, 7], sizes = [128, 1], strides = [1, 1]} : vector<128x8xi32> to vector<128x1xi32>
    %63 = vector.broadcast %62 : vector<128x1xi32> to vector<128x256xi32>
    %64 = arith.cmpi eq, %63, %5 : vector<128x256xi32>
    %65 = arith.extui %64 : vector<128x256xi1> to vector<128x256xi32>
    %66 = arith.sitofp %65 : vector<128x256xi32> to vector<128x256xf32>
    %67 = arith.mulf %66, %4 : vector<128x256xf32>
    %cst_14 = arith.constant dense<0.000000e+00> : vector<128xf32>
    %68 = vector.multi_reduction <add>, %67, %cst_14 [1] : vector<128x256xf32> to vector<128xf32>
    %69 = vector.shape_cast %68 : vector<128xf32> to vector<128x1xf32>
    %70 = arith.maximumf %13, %21 : vector<128x1xf32>
    %71 = arith.maximumf %70, %29 : vector<128x1xf32>
    %72 = arith.maximumf %71, %37 : vector<128x1xf32>
    %73 = arith.maximumf %72, %45 : vector<128x1xf32>
    %74 = arith.maximumf %73, %53 : vector<128x1xf32>
    %75 = arith.maximumf %74, %61 : vector<128x1xf32>
    %76 = arith.maximumf %75, %69 : vector<128x1xf32>
    %77 = arith.subf %13, %76 : vector<128x1xf32>
    %78 = math.exp %77 : vector<128x1xf32>
    %79 = arith.subf %21, %76 : vector<128x1xf32>
    %80 = math.exp %79 : vector<128x1xf32>
    %81 = arith.subf %29, %76 : vector<128x1xf32>
    %82 = math.exp %81 : vector<128x1xf32>
    %83 = arith.subf %37, %76 : vector<128x1xf32>
    %84 = math.exp %83 : vector<128x1xf32>
    %85 = arith.subf %45, %76 : vector<128x1xf32>
    %86 = math.exp %85 : vector<128x1xf32>
    %87 = arith.subf %53, %76 : vector<128x1xf32>
    %88 = math.exp %87 : vector<128x1xf32>
    %89 = arith.subf %61, %76 : vector<128x1xf32>
    %90 = math.exp %89 : vector<128x1xf32>
    %91 = arith.subf %69, %76 : vector<128x1xf32>
    %92 = math.exp %91 : vector<128x1xf32>
    %93 = arith.addf %78, %80 : vector<128x1xf32>
    %94 = arith.addf %93, %82 : vector<128x1xf32>
    %95 = arith.addf %94, %84 : vector<128x1xf32>
    %96 = arith.addf %95, %86 : vector<128x1xf32>
    %97 = arith.addf %96, %88 : vector<128x1xf32>
    %98 = arith.addf %97, %90 : vector<128x1xf32>
    %99 = arith.addf %98, %92 : vector<128x1xf32>
    %100 = tpu.reciprocal %99 {approx = true} : vector<128x1xf32> -> vector<128x1xf32>
    %cst_15 = arith.constant 0.000000e+00 : f32
    %101 = vector.broadcast %cst_15 : f32 to vector<128x256xf32>
    %102 = vector.extract_strided_slice %3 {offsets = [0, 0], sizes = [128, 1], strides = [1, 1]} : vector<128x8xi32> to vector<128x1xi32>
    %103 = vector.broadcast %102 : vector<128x1xi32> to vector<128x256xi32>
    %104 = arith.cmpi eq, %103, %5 : vector<128x256xi32>
    %105 = arith.extui %104 : vector<128x256xi1> to vector<128x256xi32>
    %106 = arith.sitofp %105 : vector<128x256xi32> to vector<128x256xf32>
    %107 = arith.mulf %78, %100 : vector<128x1xf32>
    %108 = vector.broadcast %107 : vector<128x1xf32> to vector<128x256xf32>
    %109 = arith.mulf %106, %108 : vector<128x256xf32>
    %110 = arith.addf %101, %109 : vector<128x256xf32>
    %111 = vector.extract_strided_slice %3 {offsets = [0, 1], sizes = [128, 1], strides = [1, 1]} : vector<128x8xi32> to vector<128x1xi32>
    %112 = vector.broadcast %111 : vector<128x1xi32> to vector<128x256xi32>
    %113 = arith.cmpi eq, %112, %5 : vector<128x256xi32>
    %114 = arith.extui %113 : vector<128x256xi1> to vector<128x256xi32>
    %115 = arith.sitofp %114 : vector<128x256xi32> to vector<128x256xf32>
    %116 = arith.mulf %80, %100 : vector<128x1xf32>
    %117 = vector.broadcast %116 : vector<128x1xf32> to vector<128x256xf32>
    %118 = arith.mulf %115, %117 : vector<128x256xf32>
    %119 = arith.addf %110, %118 : vector<128x256xf32>
    %120 = vector.extract_strided_slice %3 {offsets = [0, 2], sizes = [128, 1], strides = [1, 1]} : vector<128x8xi32> to vector<128x1xi32>
    %121 = vector.broadcast %120 : vector<128x1xi32> to vector<128x256xi32>
    %122 = arith.cmpi eq, %121, %5 : vector<128x256xi32>
    %123 = arith.extui %122 : vector<128x256xi1> to vector<128x256xi32>
    %124 = arith.sitofp %123 : vector<128x256xi32> to vector<128x256xf32>
    %125 = arith.mulf %82, %100 : vector<128x1xf32>
    %126 = vector.broadcast %125 : vector<128x1xf32> to vector<128x256xf32>
    %127 = arith.mulf %124, %126 : vector<128x256xf32>
    %128 = arith.addf %119, %127 : vector<128x256xf32>
    %129 = vector.extract_strided_slice %3 {offsets = [0, 3], sizes = [128, 1], strides = [1, 1]} : vector<128x8xi32> to vector<128x1xi32>
    %130 = vector.broadcast %129 : vector<128x1xi32> to vector<128x256xi32>
    %131 = arith.cmpi eq, %130, %5 : vector<128x256xi32>
    %132 = arith.extui %131 : vector<128x256xi1> to vector<128x256xi32>
    %133 = arith.sitofp %132 : vector<128x256xi32> to vector<128x256xf32>
    %134 = arith.mulf %84, %100 : vector<128x1xf32>
    %135 = vector.broadcast %134 : vector<128x1xf32> to vector<128x256xf32>
    %136 = arith.mulf %133, %135 : vector<128x256xf32>
    %137 = arith.addf %128, %136 : vector<128x256xf32>
    %138 = vector.extract_strided_slice %3 {offsets = [0, 4], sizes = [128, 1], strides = [1, 1]} : vector<128x8xi32> to vector<128x1xi32>
    %139 = vector.broadcast %138 : vector<128x1xi32> to vector<128x256xi32>
    %140 = arith.cmpi eq, %139, %5 : vector<128x256xi32>
    %141 = arith.extui %140 : vector<128x256xi1> to vector<128x256xi32>
    %142 = arith.sitofp %141 : vector<128x256xi32> to vector<128x256xf32>
    %143 = arith.mulf %86, %100 : vector<128x1xf32>
    %144 = vector.broadcast %143 : vector<128x1xf32> to vector<128x256xf32>
    %145 = arith.mulf %142, %144 : vector<128x256xf32>
    %146 = arith.addf %137, %145 : vector<128x256xf32>
    %147 = vector.extract_strided_slice %3 {offsets = [0, 5], sizes = [128, 1], strides = [1, 1]} : vector<128x8xi32> to vector<128x1xi32>
    %148 = vector.broadcast %147 : vector<128x1xi32> to vector<128x256xi32>
    %149 = arith.cmpi eq, %148, %5 : vector<128x256xi32>
    %150 = arith.extui %149 : vector<128x256xi1> to vector<128x256xi32>
    %151 = arith.sitofp %150 : vector<128x256xi32> to vector<128x256xf32>
    %152 = arith.mulf %88, %100 : vector<128x1xf32>
    %153 = vector.broadcast %152 : vector<128x1xf32> to vector<128x256xf32>
    %154 = arith.mulf %151, %153 : vector<128x256xf32>
    %155 = arith.addf %146, %154 : vector<128x256xf32>
    %156 = vector.extract_strided_slice %3 {offsets = [0, 6], sizes = [128, 1], strides = [1, 1]} : vector<128x8xi32> to vector<128x1xi32>
    %157 = vector.broadcast %156 : vector<128x1xi32> to vector<128x256xi32>
    %158 = arith.cmpi eq, %157, %5 : vector<128x256xi32>
    %159 = arith.extui %158 : vector<128x256xi1> to vector<128x256xi32>
    %160 = arith.sitofp %159 : vector<128x256xi32> to vector<128x256xf32>
    %161 = arith.mulf %90, %100 : vector<128x1xf32>
    %162 = vector.broadcast %161 : vector<128x1xf32> to vector<128x256xf32>
    %163 = arith.mulf %160, %162 : vector<128x256xf32>
    %164 = arith.addf %155, %163 : vector<128x256xf32>
    %165 = vector.extract_strided_slice %3 {offsets = [0, 7], sizes = [128, 1], strides = [1, 1]} : vector<128x8xi32> to vector<128x1xi32>
    %166 = vector.broadcast %165 : vector<128x1xi32> to vector<128x256xi32>
    %167 = arith.cmpi eq, %166, %5 : vector<128x256xi32>
    %168 = arith.extui %167 : vector<128x256xi1> to vector<128x256xi32>
    %169 = arith.sitofp %168 : vector<128x256xi32> to vector<128x256xf32>
    %170 = arith.mulf %92, %100 : vector<128x1xf32>
    %171 = vector.broadcast %170 : vector<128x1xf32> to vector<128x256xf32>
    %172 = arith.mulf %169, %171 : vector<128x256xf32>
    %173 = arith.addf %164, %172 : vector<128x256xf32>
    %174 = arith.truncf %173 : vector<128x256xf32> to vector<128x256xbf16>
    %cst_16 = arith.constant dense<0.000000e+00> : vector<128x128xf32>
    %175 = tpu.matmul %174, %2, %cst_16 {dimension_numbers = #tpu.dot_dimension_numbers<[1], [0], [0], [1], [0, 0, 1, 1], [], []>} : vector<128x256xbf16>, vector<256x128xbf16>, vector<128x128xf32> -> vector<128x128xf32>
    %c0_17 = arith.constant 0 : index
    %c0_18 = arith.constant 0 : index
    %176 = vector.load %arg3[%c0_17, %c0_18] : memref<128x128xf32, #tpu.memory_space<vmem>>, vector<128x128xf32>
    %177 = arith.addf %175, %176 : vector<128x128xf32>
    %c0_19 = arith.constant 0 : index
    %c0_20 = arith.constant 0 : index
    %178 = vector.load %arg6[%c0_19, %c0_20] : memref<128x128xf32, #tpu.memory_space<vmem>>, vector<128x128xf32>
    tpu.vector_store %arg6[%c0_19, %c0_20], %177 {strides = array<i32>} : memref<128x128xf32, #tpu.memory_space<vmem>>, vector<128x128xf32>,
    return
  }
  func.func @transform_0(%arg0: i32) -> (i32, i32) {
    %c0_i32 = arith.constant 0 : i32
    %c0_i32_0 = arith.constant 0 : i32
    return %arg0, %c0_i32 : i32, i32
  }
  func.func @transform_1(%arg0: i32) -> (i32, i32) {
    %c0_i32 = arith.constant 0 : i32
    %c0_i32_0 = arith.constant 0 : i32
    return %arg0, %c0_i32 : i32, i32
  }
  func.func @transform_2(%arg0: i32) -> (i32, i32) {
    %c0_i32 = arith.constant 0 : i32
    %c0_i32_0 = arith.constant 0 : i32
    return %arg0, %c0_i32 : i32, i32
  }
  func.func @transform_3(%arg0: i32) -> (i32, i32) {
    %c0_i32 = arith.constant 0 : i32
    %c0_i32_0 = arith.constant 0 : i32
    %c0_i32_1 = arith.constant 0 : i32
    return %c0_i32, %c0_i32_0 : i32, i32
  }
  func.func @transform_4(%arg0: i32) -> (i32, i32) {
    %c0_i32 = arith.constant 0 : i32
    %c0_i32_0 = arith.constant 0 : i32
    %c0_i32_1 = arith.constant 0 : i32
    return %c0_i32, %c0_i32_0 : i32, i32
  }
  func.func @transform_5(%arg0: i32) -> (i32, i32) {
    %c0_i32 = arith.constant 0 : i32
    %c0_i32_0 = arith.constant 0 : i32
    return %arg0, %c0_i32 : i32, i32
  }
}

</mosaic_0001>

<bundles_post_ra>
// kernel: _lambda_.13
= control target key start
LH: loop header
LB: loop body
LE: loop exit
PB: predicated region body
PF: predicated region fallthrough
CT: control target
= control target key end

     0   :  { %s1225_s24 = smov 0   ;;  %s1372_s0 = inlined_call_operand.vmem [shape: f32[256,128], index: 0, kind: input, shape index: {}]   ;;  %s1373_s1 = inlined_call_operand.vmem [shape: bf16[128,128], index: 1, kind: input, shape index: {}]   ;;  %s1374_s2 = inlined_call_operand.vmem [shape: f32[1,128], index: 2, kind: input, shape index: {}]   ;;  %s1375_s3 = inlined_call_operand.vmem [shape: bf16[128,128], index: 3, kind: input, shape index: {}]   ;;  %s1376_s4 = inlined_call_operand.vmem [shape: f32[1,128], index: 4, kind: input, shape index: {}]   ;;  %s1377_s5 = inlined_call_operand.vmem [shape: bf16[128,128], index: 5, kind: input, shape index: {}]   ;;  %s1378_s6 = inlined_call_operand.vmem [shape: f32[1,128], index: 6, kind: input, shape index: {}]   ;;  %s1379_s7 = inlined_call_operand.vmem [shape: f32[256,128], index: 7, kind: output, shape index: {}]  }
   0x1 LB: > { %s947_s25 = sadd.s32 4294967295, %s1183_s24   ;;  %p951_p0 = scmp.ge.s32.totalorder %s1183_s24, 1  ;;  %s1183_s24 = sphi %s1225_s24, %s17_s24  }
   0x2   : > { %p238_p1 = scmp.lt.s32.totalorder %s1183_s24, 3 }
   0x4   : > { %p239_p2 = pnand %p951_p0, %p238_p1 }
   0x5   : > { %s952_s28 = sshll.u32 (!%p239_p2), %s947_s25, 4 }
   0x6   : > { %242 = sbr.rel (%p239_p2) target bundleno = 684 (0x2ac), region = 48  ;;  %p271_p3 = scmp.lt.s32.totalorder (!%p239_p2), %s952_s28, 31 }
   0xb   : > { %v1153_v0 = vld [vmem:[%s1373_s1 + $0x38] sm:$0xff]   ;;  %v1154_v1 = vld [vmem:[%s1373_s1 + $0x30] sm:$0xff]   ;;  %s1381_s28 = smov (!%p271_p3, %s952_s28), 31  ;;  %v1155_v2 = vld [vmem:[%s1373_s1 + $0x28] sm:$0xff]  }
   0xc   : > { %1033 = vmatprep.subr.bf16.mxu0 %v1153_v0  ;;  %s953_s10 = sshll.u32 %s1381_s28, 3  ;;  %v1156_v3 = vld [vmem:[%s1373_s1 + $0x20] sm:$0xff]   ;;  %v1157_v7 = vld [vmem:[%s1373_s1 + $0x18] sm:$0xff]   ;;  %v1162_v9 = vld [vmem:[%s1375_s3 + $0x30] sm:$0xff]  }
   0xd   : > { %1034 = vmatpush3.bf16.msra.mxu0 %v1153_v0  ;;  %s1250_s13 = scalar_lea.vmem %s1372_s0, %s953_s10  ;;  %v1161_v8 = vld [vmem:[%s1375_s3 + $0x38] sm:$0xff]   ;;  %v1158_v10 = vld [vmem:[%s1373_s1 + $0x10] sm:$0xff]   ;;  %v1159_v11 = vld [vmem:[%s1373_s1 + $0x8] sm:$0xff]   ;;  %s1351_s25 = scalar_lea.vmem %s1379_s7, %s953_s10 }
   0xe   : > { %1035 = vmatprep.subr.bf16.mxu0 %v1154_v1  ;;  %v283_v4 = vld [vmem:[%s1250_s13] sm:$0xff]  ;;  %v284_v5 = vld [vmem:[%s1250_s13 + $0x8] sm:$0xff]  ;;  %1065 = vmatprep.subr.bf16.mxu1 %v1161_v8  ;;  %v1165_v15 = vld [vmem:[%s1375_s3 + $0x18] sm:$0xff]  }
   0xf   : > { %v299_v6 = vpack.c.bf16 %v284_v5, %v283_v4  ;;  %1066 = vmatpush3.bf16.msra.mxu1 %v1161_v8  ;;  %v1163_v12 = vld [vmem:[%s1375_s3 + $0x28] sm:$0xff]   ;;  %v1164_v13 = vld [vmem:[%s1375_s3 + $0x20] sm:$0xff]   ;;  %v285_v16 = vld [vmem:[%s1250_s13 + $0x10] sm:$0xff] }
  0x10   : > { %1067 = vmatprep.subr.bf16.mxu1 %v1162_v9  ;;  %v1160_v14 = vld [vmem:[%s1373_s1] sm:$0xff]   ;;  %v286_v17 = vld [vmem:[%s1250_s13 + $0x18] sm:$0xff]  ;;  %v288_v19 = vld [vmem:[%s1250_s13 + $0x28] sm:$0xff] }
  0x11   : > { %1036 = vmatpush3.bf16.msra.mxu0 %v1154_v1  ;;  %1049 = vmatprep.mubr.bf16.mxu0 %v299_v6  ;;  %v287_v18 = vld [vmem:[%s1250_s13 + $0x20] sm:$0xff]  ;;  %v300_v20 = vpack.c.bf16 %v286_v17, %v285_v16  ;;  %v289_v22 = vld [vmem:[%s1250_s13 + $0x30] sm:$0xff]  ;;  %v290_v23 = vld [vmem:[%s1250_s13 + $0x38] sm:$0xff] }
  0x12   : > { %1037 = vmatprep.subr.bf16.mxu0 %v1155_v2  ;;  %v301_v21 = vpack.c.bf16 %v288_v19, %v287_v18  ;;  %v291_v24 = vld [vmem:[%s1250_s13 + $0x40] sm:$0xff]  ;;  %v292_v25 = vld [vmem:[%s1250_s13 + $0x48] sm:$0xff]  ;;  %v302_v26 = vpack.c.bf16 %v290_v23, %v289_v22  ;;  %v293_v28 = vld [vmem:[%s1250_s13 + $0x50] sm:$0xff] }
  0x13   : > { %1068 = vmatpush3.bf16.msra.mxu1 %v1162_v9  ;;  %v303_v27 = vpack.c.bf16 %v292_v25, %v291_v24  ;;  %v294_v29 = vld [vmem:[%s1250_s13 + $0x58] sm:$0xff]  ;;  %v295_v30 = vld [vmem:[%s1250_s13 + $0x60] sm:$0xff]  ;;  %v296_v31 = vld [vmem:[%s1250_s13 + $0x68] sm:$0xff] }
  0x14   : > { %1069 = vmatprep.subr.bf16.mxu1 %v1163_v12  ;;  %v304_v32 = vpack.c.bf16 %v294_v29, %v293_v28  ;;  %v305_v33 = vpack.c.bf16 %v296_v31, %v295_v30  ;;  %v297_v34 = vld [vmem:[%s1250_s13 + $0x70] sm:$0xff]  ;;  %v298_v35 = vld [vmem:[%s1250_s13 + $0x78] sm:$0xff]  ;;  %v1167_v38 = vld [vmem:[%s1375_s3 + $0x8] sm:$0xff]  }
  0x15   : > { %1038 = vmatpush3.bf16.msra.mxu0 %v1155_v2  ;;  %v306_v36 = vpack.c.bf16 %v298_v35, %v297_v34  ;;  %v1166_v37 = vld [vmem:[%s1375_s3 + $0x10] sm:$0xff]   ;;  %v1168_v39 = vld [vmem:[%s1375_s3] sm:$0xff]   ;;  %v1169_v40 = vld [vmem:[%s1377_s5 + $0x38] sm:$0xff]  }
  0x16   : > { %1039 = vmatprep.subr.bf16.mxu0 %v1156_v3  ;;  %v1170_v41 = vld [vmem:[%s1377_s5 + $0x30] sm:$0xff]   ;;  %v1171_v42 = vld [vmem:[%s1377_s5 + $0x28] sm:$0xff]   ;;  %v1172_v43 = vld [vmem:[%s1377_s5 + $0x20] sm:$0xff]  }
  0x17   : > { %1070 = vmatpush3.bf16.msra.mxu1 %v1163_v12  ;;  %v1322_v44 = vld [vmem:[%s1377_s5 + $0x18] sm:$0xff]   ;;  %v956_v47 = vld [vmem:[%s1374_s2] ss:$0 sm:$0xff] }
  0x18   : > { %1071 = vmatprep.subr.bf16.mxu1 %v1164_v13 }
  0x19   : > { %1040 = vmatpush3.bf16.msra.mxu0 %v1156_v3 }
  0x1a   : > { %1041 = vmatprep.subr.bf16.mxu0 %v1157_v7 }
  0x1b   : > { %1072 = vmatpush3.bf16.msra.mxu1 %v1164_v13 }
  0x1c   : > { %1073 = vmatprep.subr.bf16.mxu1 %v1165_v15 }
  0x1d   : > { %1042 = vmatpush3.bf16.msra.mxu0 %v1157_v7 }
  0x1e   : > { %1043 = vmatprep.subr.bf16.mxu0 %v1158_v10 }
  0x1f   : > { %1074 = vmatpush3.bf16.msra.mxu1 %v1165_v15 }
  0x20   : > { %1075 = vmatprep.subr.bf16.mxu1 %v1166_v37 }
  0x21   : > { %1044 = vmatpush3.bf16.msra.mxu0 %v1158_v10 }
  0x22   : > { %1045 = vmatprep.subr.bf16.mxu0 %v1159_v11 }
  0x23   : > { %1076 = vmatpush3.bf16.msra.mxu1 %v1166_v37 }
  0x24   : > { %1077 = vmatprep.subr.bf16.mxu1 %v1167_v38 }
  0x25   : > { %1046 = vmatpush3.bf16.msra.mxu0 %v1159_v11 }
  0x26   : > { %1047 = vmatprep.subr.bf16.mxu0 %v1160_v14 }
  0x27   : > { %1078 = vmatpush3.bf16.msra.mxu1 %v1167_v38  ;;  %v1174_v38 = vld [vmem:[%s1377_s5 + $0x10] sm:$0xff]  }
  0x28   : > { %1079 = vmatprep.subr.bf16.mxu1 %v1168_v39 }
  0x29   : > { %1048 = vmatpush3.bf16.msra.mxu0 %v1160_v14 }
  0x2a   : > { %1097 = vmatprep.subr.bf16.mxu0 %v1169_v40 }
  0x2b   : > { %1080 = vmatpush3.bf16.msra.mxu1 %v1168_v39  ;;  %v1175_v39 = vld [vmem:[%s1377_s5 + $0x8] sm:$0xff]  }
  0x2c   : > { %1050 = vmatmul.mubr.bf16.vlgmr.msra.gmra.mxu0 %v300_v20  ;;  %1129 = vmatprep.subr.bf16.mxu1 %v1169_v40 }
  0x2d   : > { %1053 = vmatprep.mubr.bf16.mxu0 %v301_v21  ;;  %1098 = vmatpush3.bf16.msra.mxu0 %v1169_v40 }
  0x2e   : > { %1099 = vmatprep.subr.bf16.mxu0 %v1170_v41 }
  0x31   : > { %1100 = vmatpush3.bf16.msra.mxu0 %v1170_v41 }
  0x32   : > { %1101 = vmatprep.subr.bf16.mxu0 %v1171_v42 }
  0x34   : > { %1054 = vmatmul.mubr.bf16.gmra.mxu0 %v302_v26 }
  0x35   : > { %1057 = vmatprep.mubr.bf16.mxu0 %v303_v27  ;;  %1102 = vmatpush3.bf16.msra.mxu0 %v1171_v42 }
  0x36   : > { %1103 = vmatprep.subr.bf16.mxu0 %v1172_v43 }
  0x39   : > { %1104 = vmatpush3.bf16.msra.mxu0 %v1172_v43 }
  0x3a   : > { %1105 = vmatprep.subr.bf16.mxu0 %v1322_v44 }
  0x3c   : > { %1058 = vmatmul.mubr.bf16.gmra.mxu0 %v304_v32 }
  0x3d   : > { %1061 = vmatprep.mubr.bf16.mxu0 %v305_v33  ;;  %1106 = vmatpush3.bf16.msra.mxu0 %v1322_v44 }
  0x3e   : > { %1107 = vmatprep.subr.bf16.mxu0 %v1174_v38 }
  0x41   : > { %1108 = vmatpush3.bf16.msra.mxu0 %v1174_v38 }
  0x42   : > { %1109 = vmatprep.subr.bf16.mxu0 %v1175_v39 }
  0x44   : > { %1062 = vmatmul.mubr.bf16.gmra.mxu0 %v306_v36 }
  0x45   : > { %1110 = vmatpush3.bf16.msra.mxu0 %v1175_v39 }
  0xec   : > { %v1051_v45 = vpop.f32.mrf.mxu0 }
  0xed   : > { %v421_v51 = vadd.f32 %v1051_v45, %v956_v47 }
  0xee   : > { %v412_v46 = vpop.f32.mrf.mxu0 }
  0xef   : > { %v413_v49 = vadd.f32 %v956_v47, %v412_v46  ;;  %v477_v58 = vmax.f32 %v421_v51, 0.0 }
  0xf0   : > { %v1052_v48 = vpop.f32.mrf.mxu0 }
  0xf1   : > { %v424_v50 = vadd.f32 %v1052_v48, %v956_v47  ;;  %v475_v56 = vmax.f32 %v413_v49, 0.0 }
  0xf2   : > { %v415_v52 = vpop.f32.mrf.mxu0 }
  0xf3   : > { %v416_v53 = vadd.f32 %v956_v47, %v415_v52  ;;  %v478_v54 = vmax.f32 %v424_v50, 0.0 }
  0xf4   : > { %v1055_v55 = vpop.f32.mrf.mxu0 }
  0xf5   : > { %v476_v57 = vmax.f32 %v416_v53, 0.0  ;;  %v492_v61 = vpack.c.bf16 %v478_v54, %v477_v58  ;;  %v437_v1 = vadd.f32 %v1055_v55, %v956_v47 }
  0xf6   : > { %v428_v59 = vpop.f32.mrf.mxu0 }
  0xf7   : > { %v491_v60 = vpack.c.bf16 %v476_v57, %v475_v56  ;;  %v429_v63 = vadd.f32 %v956_v47, %v428_v59  ;;  %v481_v8 = vmax.f32 %v437_v1, 0.0 }
  0xf8   : > { %v1056_v62 = vpop.f32.mrf.mxu0 }
  0xf9   : > { %v440_v0 = vadd.f32 %v1056_v62, %v956_v47  ;;  %1081 = vmatprep.mubr.bf16.mxu1 %v491_v60  ;;  %v479_v6 = vmax.f32 %v429_v63, 0.0 }
  0xfa   : > { %v431_v2 = vpop.f32.mrf.mxu0  ;;  %1082 = vmatmul.mubr.bf16.vlgmr.msra.gmra.mxu1 %v492_v61 }
  0xfb   : > { %v432_v3 = vadd.f32 %v956_v47, %v431_v2  ;;  %1137 = vmatpush3.bf16.msra.mxu1 %v1169_v40  ;;  %v482_v4 = vmax.f32 %v440_v0, 0.0  ;;  %v1176_v40 = vld [vmem:[%s1377_s5] sm:$0xff]  }
  0xfc   : > { %v1059_v5 = vpop.f32.mrf.mxu0  ;;  %1130 = vmatprep.subr.bf16.mxu1 %v1170_v41  ;;  %1111 = vmatprep.subr.bf16.mxu0 %v1176_v40 }
  0xfd   : > { %v480_v7 = vmax.f32 %v432_v3, 0.0  ;;  %v494_v11 = vpack.c.bf16 %v482_v4, %v481_v8  ;;  %v453_v15 = vadd.f32 %v1059_v5, %v956_v47  ;;  %1112 = vmatpush3.bf16.msra.mxu0 %v1176_v40 }
  0xfe   : > { %v444_v9 = vpop.f32.mrf.mxu0 }
  0xff   : > { %v493_v10 = vpack.c.bf16 %v480_v7, %v479_v6  ;;  %1138 = vmatpush3.bf16.msra.mxu1 %v1170_v41  ;;  %v445_v13 = vadd.f32 %v956_v47, %v444_v9  ;;  %v485_v22 = vmax.f32 %v453_v15, 0.0 }
 0x100   : > { %v1060_v12 = vpop.f32.mrf.mxu0  ;;  %1131 = vmatprep.subr.bf16.mxu1 %v1171_v42 }
 0x101   : > { %v456_v14 = vadd.f32 %v1060_v12, %v956_v47  ;;  %1085 = vmatprep.mubr.bf16.mxu1 %v493_v10  ;;  %v483_v20 = vmax.f32 %v445_v13, 0.0 }
 0x102   : > { %v447_v16 = vpop.f32.mrf.mxu0  ;;  %1086 = vmatmul.mubr.bf16.gmra.mxu1 %v494_v11 }
 0x103   : > { %v448_v17 = vadd.f32 %v956_v47, %v447_v16  ;;  %1139 = vmatpush3.bf16.msra.mxu1 %v1171_v42  ;;  %v486_v18 = vmax.f32 %v456_v14, 0.0 }
 0x104   : > { %v1063_v19 = vpop.f32.mrf.mxu0  ;;  %1132 = vmatprep.subr.bf16.mxu1 %v1172_v43 }
 0x105   : > { %v484_v21 = vmax.f32 %v448_v17, 0.0  ;;  %v496_v25 = vpack.c.bf16 %v486_v18, %v485_v22  ;;  %v469_v29 = vadd.f32 %v1063_v19, %v956_v47 }
 0x106   : > { %v460_v23 = vpop.f32.mrf.mxu0 }
 0x107   : > { %v495_v24 = vpack.c.bf16 %v484_v21, %v483_v20  ;;  %1140 = vmatpush3.bf16.msra.mxu1 %v1172_v43  ;;  %v461_v27 = vadd.f32 %v956_v47, %v460_v23  ;;  %v489_v35 = vmax.f32 %v469_v29, 0.0  ;;  %v965_v43 = vld [vmem:[%s1376_s4] ss:$0 sm:$0xff] }
 0x108   : > { %v1064_v26 = vpop.f32.mrf.mxu0  ;;  %1133 = vmatprep.subr.bf16.mxu1 %v1322_v44 }
 0x109   : > { %v472_v28 = vadd.f32 %v1064_v26, %v956_v47  ;;  %1089 = vmatprep.mubr.bf16.mxu1 %v495_v24  ;;  %v487_v33 = vmax.f32 %v461_v27, 0.0 }
 0x10a   : > { %v463_v30 = vpop.f32.mrf.mxu0  ;;  %1090 = vmatmul.mubr.bf16.gmra.mxu1 %v496_v25 }
 0x10b   : > { %v464_v31 = vadd.f32 %v956_v47, %v463_v30  ;;  %1141 = vmatpush3.bf16.msra.mxu1 %v1322_v44  ;;  %v490_v32 = vmax.f32 %v472_v28, 0.0 }
 0x10c   : > { %1134 = vmatprep.subr.bf16.mxu1 %v1174_v38 }
 0x10d   : > { %v488_v34 = vmax.f32 %v464_v31, 0.0  ;;  %v498_v37 = vpack.c.bf16 %v490_v32, %v489_v35 }
 0x10f   : > { %v497_v36 = vpack.c.bf16 %v488_v34, %v487_v33  ;;  %1142 = vmatpush3.bf16.msra.mxu1 %v1174_v38  ;;  %v974_v34 = vld [vmem:[%s1378_s6] ss:$0 sm:$0xff] }
 0x110   : > { %1135 = vmatprep.subr.bf16.mxu1 %v1175_v39 }
 0x111   : > { %1093 = vmatprep.mubr.bf16.mxu1 %v497_v36 }
 0x112   : > { %1094 = vmatmul.mubr.bf16.gmra.mxu1 %v498_v37 }
 0x113   : > { %1143 = vmatpush3.bf16.msra.mxu1 %v1175_v39 }
 0x114   : > { %1136 = vmatprep.subr.bf16.mxu1 %v1176_v40 }
 0x117   : > { %1144 = vmatpush3.bf16.msra.mxu1 %v1176_v40 }
 0x1ba   : > { %v1083_v41 = vpop.f32.mrf.mxu1 }
 0x1bb   : > { %v613_v47 = vadd.f32 %v1083_v41, %v965_v43 }
 0x1bc   : > { %v604_v42 = vpop.f32.mrf.mxu1 }
 0x1bd   : > { %v605_v45 = vadd.f32 %v965_v43, %v604_v42  ;;  %v669_v54 = vmax.f32 %v613_v47, 0.0 }
 0x1be   : > { %v1084_v44 = vpop.f32.mrf.mxu1 }
 0x1bf   : > { %v616_v46 = vadd.f32 %v1084_v44, %v965_v43  ;;  %v667_v52 = vmax.f32 %v605_v45, 0.0 }
 0x1c0   : > { %v607_v48 = vpop.f32.mrf.mxu1 }
 0x1c1   : > { %v608_v49 = vadd.f32 %v965_v43, %v607_v48  ;;  %v670_v50 = vmax.f32 %v616_v46, 0.0 }
 0x1c2   : > { %v1087_v51 = vpop.f32.mrf.mxu1 }
 0x1c3   : > { %v668_v53 = vmax.f32 %v608_v49, 0.0  ;;  %v684_v57 = vpack.c.bf16 %v670_v50, %v669_v54  ;;  %v629_v61 = vadd.f32 %v1087_v51, %v965_v43 }
 0x1c4   : > { %v620_v55 = vpop.f32.mrf.mxu1 }
 0x1c5   : > { %v683_v56 = vpack.c.bf16 %v668_v53, %v667_v52  ;;  %v621_v59 = vadd.f32 %v965_v43, %v620_v55  ;;  %v673_v4 = vmax.f32 %v629_v61, 0.0 }
 0x1c6   : > { %v1088_v58 = vpop.f32.mrf.mxu1 }
 0x1c7   : > { %v632_v60 = vadd.f32 %v1088_v58, %v965_v43  ;;  %1113 = vmatprep.mubr.bf16.mxu0 %v683_v56  ;;  %v671_v2 = vmax.f32 %v621_v59, 0.0 }
 0x1c8   : > { %v623_v62 = vpop.f32.mrf.mxu1  ;;  %1114 = vmatmul.mubr.bf16.vlgmr.msra.gmra.mxu0 %v684_v57 }
 0x1c9   : > { %v624_v63 = vadd.f32 %v965_v43, %v623_v62  ;;  %v674_v0 = vmax.f32 %v632_v60, 0.0 }
 0x1ca   : > { %v1091_v1 = vpop.f32.mrf.mxu1 }
 0x1cb   : > { %v672_v3 = vmax.f32 %v624_v63, 0.0  ;;  %v686_v7 = vpack.c.bf16 %v674_v0, %v673_v4  ;;  %v645_v11 = vadd.f32 %v1091_v1, %v965_v43 }
 0x1cc   : > { %v636_v5 = vpop.f32.mrf.mxu1 }
 0x1cd   : > { %v685_v6 = vpack.c.bf16 %v672_v3, %v671_v2  ;;  %v637_v9 = vadd.f32 %v965_v43, %v636_v5  ;;  %v677_v18 = vmax.f32 %v645_v11, 0.0 }
 0x1ce   : > { %v1092_v8 = vpop.f32.mrf.mxu1 }
 0x1cf   : > { %v648_v10 = vadd.f32 %v1092_v8, %v965_v43  ;;  %1117 = vmatprep.mubr.bf16.mxu0 %v685_v6  ;;  %v675_v16 = vmax.f32 %v637_v9, 0.0 }
 0x1d0   : > { %v639_v12 = vpop.f32.mrf.mxu1  ;;  %1118 = vmatmul.mubr.bf16.gmra.mxu0 %v686_v7 }
 0x1d1   : > { %v640_v13 = vadd.f32 %v965_v43, %v639_v12  ;;  %v678_v14 = vmax.f32 %v648_v10, 0.0 }
 0x1d2   : > { %v1095_v15 = vpop.f32.mrf.mxu1 }
 0x1d3   : > { %v676_v17 = vmax.f32 %v640_v13, 0.0  ;;  %v688_v21 = vpack.c.bf16 %v678_v14, %v677_v18  ;;  %v661_v25 = vadd.f32 %v1095_v15, %v965_v43 }
 0x1d4   : > { %v652_v19 = vpop.f32.mrf.mxu1 }
 0x1d5   : > { %v687_v20 = vpack.c.bf16 %v676_v17, %v675_v16  ;;  %v653_v23 = vadd.f32 %v965_v43, %v652_v19  ;;  %v681_v31 = vmax.f32 %v661_v25, 0.0 }
 0x1d6   : > { %v1096_v22 = vpop.f32.mrf.mxu1 }
 0x1d7   : > { %v664_v24 = vadd.f32 %v1096_v22, %v965_v43  ;;  %1121 = vmatprep.mubr.bf16.mxu1 %v687_v20  ;;  %v679_v29 = vmax.f32 %v653_v23, 0.0 }
 0x1d8   : > { %v655_v26 = vpop.f32.mrf.mxu1  ;;  %1122 = vmatmul.mubr.bf16.vlgmr.msra.gmra.mxu1 %v688_v21 }
 0x1d9   : > { %v656_v27 = vadd.f32 %v965_v43, %v655_v26  ;;  %v682_v28 = vmax.f32 %v664_v24, 0.0 }
 0x1db   : > { %v680_v30 = vmax.f32 %v656_v27, 0.0  ;;  %v690_v33 = vpack.c.bf16 %v682_v28, %v681_v31 }
 0x1dd   : > { %v689_v32 = vpack.c.bf16 %v680_v30, %v679_v29 }
 0x1df   : > { %1125 = vmatprep.mubr.bf16.mxu1 %v689_v32 }
 0x1e0   : > { %1126 = vmatmul.mubr.bf16.gmra.mxu1 %v690_v33 }
 0x288   : > { %v1115_v35 = vpop.f32.mrf.mxu0 }
 0x289   : > { %v805_v36 = vadd.f32 %v1115_v35, %v974_v34 }
 0x28a   : > { %v796_v37 = vpop.f32.mrf.mxu0 }
 0x28b   : > { %v861_v38 = vmax.f32 %v805_v36, 0.0  ;;  %v797_v39 = vadd.f32 %v974_v34, %v796_v37 }
 0x28c   : > { %v1116_v40 = vpop.f32.mrf.mxu0 }
 0x28d   : > { %877 = vst [vmem:[%s1351_s25 + $0x10] sm:$0xff] %v861_v38  ;;  %v859_v41 = vmax.f32 %v797_v39, 0.0  ;;  %v808_v42 = vadd.f32 %v1116_v40, %v974_v34 }
 0x28e   : > { %v799_v43 = vpop.f32.mrf.mxu0 }
 0x28f   : > { %875 = vst [vmem:[%s1351_s25] sm:$0xff] %v859_v41  ;;  %v862_v44 = vmax.f32 %v808_v42, 0.0  ;;  %v800_v45 = vadd.f32 %v974_v34, %v799_v43 }
 0x290   : > { %v1119_v46 = vpop.f32.mrf.mxu0 }
 0x291   : > { %878 = vst [vmem:[%s1351_s25 + $0x18] sm:$0xff] %v862_v44  ;;  %v860_v47 = vmax.f32 %v800_v45, 0.0  ;;  %v821_v48 = vadd.f32 %v1119_v46, %v974_v34 }
 0x292   : > { %v812_v49 = vpop.f32.mrf.mxu0 }
 0x293   : > { %876 = vst [vmem:[%s1351_s25 + $0x8] sm:$0xff] %v860_v47  ;;  %v865_v50 = vmax.f32 %v821_v48, 0.0  ;;  %v813_v51 = vadd.f32 %v974_v34, %v812_v49 }
 0x294   : > { %v1120_v52 = vpop.f32.mrf.mxu0 }
 0x295   : > { %881 = vst [vmem:[%s1351_s25 + $0x30] sm:$0xff] %v865_v50  ;;  %v863_v53 = vmax.f32 %v813_v51, 0.0  ;;  %v824_v54 = vadd.f32 %v1120_v52, %v974_v34 }
 0x296   : > { %v815_v55 = vpop.f32.mrf.mxu0 }
 0x297   : > { %879 = vst [vmem:[%s1351_s25 + $0x20] sm:$0xff] %v863_v53  ;;  %v866_v56 = vmax.f32 %v824_v54, 0.0  ;;  %v816_v57 = vadd.f32 %v974_v34, %v815_v55 }
 0x298   : > { %v1123_v58 = vpop.f32.mrf.mxu1 }
 0x299   : > { %882 = vst [vmem:[%s1351_s25 + $0x38] sm:$0xff] %v866_v56  ;;  %v864_v59 = vmax.f32 %v816_v57, 0.0  ;;  %v837_v60 = vadd.f32 %v1123_v58, %v974_v34 }
 0x29a   : > { %v828_v61 = vpop.f32.mrf.mxu1 }
 0x29b   : > { %880 = vst [vmem:[%s1351_s25 + $0x28] sm:$0xff] %v864_v59  ;;  %v869_v62 = vmax.f32 %v837_v60, 0.0  ;;  %v829_v63 = vadd.f32 %v974_v34, %v828_v61 }
 0x29c   : > { %v1124_v0 = vpop.f32.mrf.mxu1 }
 0x29d   : > { %885 = vst [vmem:[%s1351_s25 + $0x50] sm:$0xff] %v869_v62  ;;  %v867_v1 = vmax.f32 %v829_v63, 0.0  ;;  %v840_v2 = vadd.f32 %v1124_v0, %v974_v34 }
 0x29e   : > { %v831_v3 = vpop.f32.mrf.mxu1 }
 0x29f   : > { %883 = vst [vmem:[%s1351_s25 + $0x40] sm:$0xff] %v867_v1  ;;  %v870_v4 = vmax.f32 %v840_v2, 0.0  ;;  %v832_v5 = vadd.f32 %v974_v34, %v831_v3 }
 0x2a0   : > { %v1127_v6 = vpop.f32.mrf.mxu1 }
 0x2a1   : > { %886 = vst [vmem:[%s1351_s25 + $0x58] sm:$0xff] %v870_v4  ;;  %v868_v7 = vmax.f32 %v832_v5, 0.0  ;;  %v853_v8 = vadd.f32 %v1127_v6, %v974_v34 }
 0x2a2   : > { %v844_v9 = vpop.f32.mrf.mxu1 }
 0x2a3   : > { %884 = vst [vmem:[%s1351_s25 + $0x48] sm:$0xff] %v868_v7  ;;  %v873_v10 = vmax.f32 %v853_v8, 0.0  ;;  %v845_v11 = vadd.f32 %v974_v34, %v844_v9 }
 0x2a4   : > { %v1128_v12 = vpop.f32.mrf.mxu1 }
 0x2a5   : > { %889 = vst [vmem:[%s1351_s25 + $0x70] sm:$0xff] %v873_v10  ;;  %v871_v13 = vmax.f32 %v845_v11, 0.0  ;;  %v856_v14 = vadd.f32 %v1128_v12, %v974_v34 }
 0x2a6   : > { %v847_v15 = vpop.f32.mrf.mxu1 }
 0x2a7   : > { %887 = vst [vmem:[%s1351_s25 + $0x60] sm:$0xff] %v871_v13  ;;  %v874_v16 = vmax.f32 %v856_v14, 0.0  ;;  %v848_v17 = vadd.f32 %v974_v34, %v847_v15 }
 0x2a9   : > { %890 = vst [vmem:[%s1351_s25 + $0x78] sm:$0xff] %v874_v16  ;;  %v872_v18 = vmax.f32 %v848_v17, 0.0 }
 0x2ab   : > { %888 = vst [vmem:[%s1351_s25 + $0x68] sm:$0xff] %v872_v18 }
 0x2ac PF: > { %s17_s24 = sadd.s32 1, %s1183_s24  }
 0x2ad   : > { %p14_p4 = scmp.ge.s32.totalorder %s17_s24, 4  }
 0x2af   :  { %16 = sbr.rel (!%p14_p4) target bundleno = 1 (0x1), region = 78 }

// kernel: _lambda_.7
= control target key start
LH: loop header
LB: loop body
LE: loop exit
PB: predicated region body
PF: predicated region fallthrough
CT: control target
= control target key end

     0   :  { %s3326_s20 = smov 0   ;;  %s3788_s0 = inlined_call_operand.vmem [shape: f32[256,128], index: 0, kind: input, shape index: {}]   ;;  %s3789_s1 = inlined_call_operand.vmem [shape: bf16[128,128], index: 1, kind: input, shape index: {}]   ;;  %s3790_s2 = inlined_call_operand.vmem [shape: f32[1,128], index: 2, kind: input, shape index: {}]   ;;  %s3791_s3 = inlined_call_operand.vmem [shape: bf16[128,128], index: 3, kind: input, shape index: {}]   ;;  %s3792_s4 = inlined_call_operand.vmem [shape: f32[1,128], index: 4, kind: input, shape index: {}]   ;;  %s3793_s5 = inlined_call_operand.vmem [shape: bf16[128,128], index: 5, kind: input, shape index: {}]   ;;  %s3794_s6 = inlined_call_operand.vmem [shape: f32[1,128], index: 6, kind: input, shape index: {}]   ;;  %s3795_s7 = inlined_call_operand.vmem [shape: bf16[128,128], index: 7, kind: input, shape index: {}]   ;;  %s3796_s8 = inlined_call_operand.vmem [shape: f32[1,128], index: 8, kind: input, shape index: {}]   ;;  %s3797_s9 = inlined_call_operand.vmem [shape: f32[1,128], index: 9, kind: input, shape index: {}]   ;;  %s3798_s10 = inlined_call_operand.<no memory space> [shape: f32[1,1], index: 10, kind: input, shape index: {}]   ;;  %s3799_s11 = inlined_call_operand.vmem [shape: bf16[128,128], index: 11, kind: input, shape index: {}]   ;;  %s3800_s12 = inlined_call_operand.vmem [shape: f32[1,128], index: 12, kind: input, shape index: {}]   ;;  %s3801_s13 = inlined_call_operand.vmem [shape: bf16[128,128], index: 13, kind: input, shape index: {}]   ;;  %s3802_s14 = inlined_call_operand.vmem [shape: f32[1,128], index: 14, kind: input, shape index: {}]   ;;  %s3803_s15 = inlined_call_operand.vmem [shape: bf16[128,128], index: 15, kind: input, shape index: {}]   ;;  %s3804_s16 = inlined_call_operand.vmem [shape: f32[1,128], index: 16, kind: input, shape index: {}]   ;;  %s3805_s17 = inlined_call_operand.vmem [shape: bf16[256,128], index: 17, kind: output, shape index: {0}]   ;;  %s3806_s18 = inlined_call_operand.vmem [shape: bf16[256,128], index: 18, kind: output, shape index: {1}]   ;;  %s3807_s19 = inlined_call_operand.vmem [shape: bf16[256,128], index: 19, kind: output, shape index: {2}]  }
   0x1   :  { %3810 = sst [smem:[#allocation3_spill]] %s3788_s0  ;;  %v25_v0 = vstv %s3798_s10 }
   0x2   :  { %3811 = sst [smem:[#allocation4_spill]] %s3789_s1  ;;  %26 = vst [vmem:[#allocation2] sm:$0x1] %v25_v0 }
   0x3   :  { %3812 = sst [smem:[#allocation5_spill]] %s3790_s2 }
   0x4   :  { %3813 = sst [smem:[#allocation6_spill]] %s3791_s3 }
   0x5 LB: > { %s2478_s21 = sadd.s32 4294967295, %s3220_s20   ;;  %p2482_p0 = scmp.ge.s32.totalorder %s3220_s20, 1  ;;  %s3220_s20 = sphi %s3326_s20, %s32_s20  }
   0x6   : > { %p545_p1 = scmp.lt.s32.totalorder %s3220_s20, 3 }
   0x8   : > { %p546_p2 = pnand %p2482_p0, %p545_p1 }
   0x9   : > { %s3814_s2 = sld [smem:[#allocation4_spill]] (!%p546_p2)  ;;  %s2483_s10 = sshll.u32 (!%p546_p2), %s2478_s21, 4 }
   0xa   : > { %549 = sbr.rel (%p546_p2) target bundleno = 1017 (0x3f9), region = 88  ;;  %p612_p3 = scmp.lt.s32.totalorder (!%p546_p2), %s2483_s10, 31 }
   0xb   : > { %s3815_s29 = sld [smem:[#allocation3_spill]] (!%p546_p2) }
   0xc   : > { %s3816_s25 = sld [smem:[#allocation6_spill]] (!%p546_p2) }
   0xd   : > { %s3817_s24 = sld [smem:[#allocation5_spill]] (!%p546_p2) }
   0xf   : > { %v3158_v1 = vld [vmem:[%s3814_s2 + $0x38] sm:$0xff]   ;;  %v3159_v2 = vld [vmem:[%s3814_s2 + $0x30] sm:$0xff]   ;;  %s3819_s10 = smov (!%p612_p3, %s2483_s10), 31  ;;  %v3160_v3 = vld [vmem:[%s3814_s2 + $0x28] sm:$0xff]  }
  0x10   : > { %2907 = vmatprep.subr.bf16.mxu0 %v3158_v1  ;;  %s2484_s26 = sshll.u32 %s3819_s10, 3  ;;  %v3161_v4 = vld [vmem:[%s3814_s2 + $0x20] sm:$0xff]   ;;  %v3162_v8 = vld [vmem:[%s3814_s2 + $0x18] sm:$0xff]   ;;  %v3163_v11 = vld [vmem:[%s3814_s2 + $0x10] sm:$0xff]   ;;  %s3706_s22 = sshll.u32 %s3819_s10, 2 }
  0x11   : > { %2908 = vmatpush3.bf16.msra.mxu0 %v3158_v1  ;;  %s3349_s0 = scalar_lea.vmem %s3815_s29, %s2484_s26  ;;  %v3164_v12 = vld [vmem:[%s3814_s2 + $0x8] sm:$0xff]   ;;  %v3165_v15 = vld [vmem:[%s3814_s2] sm:$0xff]   ;;  %v3174_v41 = vld [vmem:[%s3795_s7 + $0x38] sm:$0xff]   ;;  %s3718_s10 = scalar_lea.vmem %s3805_s17, %s3706_s22 }
  0x12   : > { %2909 = vmatprep.subr.bf16.mxu0 %v3159_v2  ;;  %v636_v5 = vld [vmem:[%s3349_s0] sm:$0xff]  ;;  %v637_v6 = vld [vmem:[%s3349_s0 + $0x8] sm:$0xff]  ;;  %v3166_v9 = vld [vmem:[%s3816_s25 + $0x38] sm:$0xff]   ;;  %s3724_s26 = scalar_lea.vmem %s3806_s18, %s3706_s22  ;;  %s3775_s21 = scalar_lea.vmem %s3807_s19, %s3706_s22 }
  0x13   : > { %v3356_v7 = vpack.c.bf16 %v637_v6, %v636_v5  ;;  %v3167_v10 = vld [vmem:[%s3816_s25 + $0x30] sm:$0xff]   ;;  %2939 = vmatprep.subr.bf16.mxu1 %v3166_v9  ;;  %v3168_v13 = vld [vmem:[%s3816_s25 + $0x28] sm:$0xff]   ;;  %v3169_v14 = vld [vmem:[%s3816_s25 + $0x20] sm:$0xff]  }
  0x14   : > { %2940 = vmatpush3.bf16.msra.mxu1 %v3166_v9  ;;  %v3170_v16 = vld [vmem:[%s3816_s25 + $0x18] sm:$0xff]   ;;  %v638_v17 = vld [vmem:[%s3349_s0 + $0x10] sm:$0xff]  ;;  %v640_v19 = vld [vmem:[%s3349_s0 + $0x20] sm:$0xff] }
  0x15   : > { %2910 = vmatpush3.bf16.msra.mxu0 %v3159_v2  ;;  %2923 = vmatprep.mubr.bf16.mxu0 %v3356_v7  ;;  %v639_v18 = vld [vmem:[%s3349_s0 + $0x18] sm:$0xff]  ;;  %v641_v20 = vld [vmem:[%s3349_s0 + $0x28] sm:$0xff]  ;;  %v642_v23 = vld [vmem:[%s3349_s0 + $0x30] sm:$0xff] }
  0x16   : > { %2911 = vmatprep.subr.bf16.mxu0 %v3160_v3  ;;  %2941 = vmatprep.subr.bf16.mxu1 %v3167_v10  ;;  %v3390_v21 = vpack.c.bf16 %v639_v18, %v638_v17  ;;  %v3392_v22 = vpack.c.bf16 %v641_v20, %v640_v19  ;;  %v643_v24 = vld [vmem:[%s3349_s0 + $0x38] sm:$0xff]  ;;  %v644_v25 = vld [vmem:[%s3349_s0 + $0x40] sm:$0xff]  ;;  %v645_v26 = vld [vmem:[%s3349_s0 + $0x48] sm:$0xff] }
  0x17   : > { %v3400_v27 = vpack.c.bf16 %v643_v24, %v642_v23  ;;  %v3402_v28 = vpack.c.bf16 %v645_v26, %v644_v25  ;;  %v646_v29 = vld [vmem:[%s3349_s0 + $0x50] sm:$0xff]  ;;  %v647_v30 = vld [vmem:[%s3349_s0 + $0x58] sm:$0xff]  ;;  %v648_v31 = vld [vmem:[%s3349_s0 + $0x60] sm:$0xff] }
  0x18   : > { %2942 = vmatpush3.bf16.msra.mxu1 %v3167_v10  ;;  %v649_v32 = vld [vmem:[%s3349_s0 + $0x68] sm:$0xff]  ;;  %v3410_v33 = vpack.c.bf16 %v647_v30, %v646_v29  ;;  %v650_v35 = vld [vmem:[%s3349_s0 + $0x70] sm:$0xff]  ;;  %v651_v36 = vld [vmem:[%s3349_s0 + $0x78] sm:$0xff] }
  0x19   : > { %2912 = vmatpush3.bf16.msra.mxu0 %v3160_v3  ;;  %2943 = vmatprep.subr.bf16.mxu1 %v3168_v13  ;;  %v3412_v34 = vpack.c.bf16 %v649_v32, %v648_v31  ;;  %v3418_v37 = vpack.c.bf16 %v651_v36, %v650_v35  ;;  %v3171_v38 = vld [vmem:[%s3816_s25 + $0x10] sm:$0xff]   ;;  %v3172_v39 = vld [vmem:[%s3816_s25 + $0x8] sm:$0xff]   ;;  %v3173_v40 = vld [vmem:[%s3816_s25] sm:$0xff]  }
  0x1a   : > { %2913 = vmatprep.subr.bf16.mxu0 %v3161_v4  ;;  %v3182_v42 = vld [vmem:[%s3793_s5 + $0x38] sm:$0xff]   ;;  %v3183_v43 = vld [vmem:[%s3793_s5 + $0x30] sm:$0xff]   ;;  %v3184_v44 = vld [vmem:[%s3793_s5 + $0x28] sm:$0xff]  }
  0x1b   : > { %v3185_v45 = vld [vmem:[%s3793_s5 + $0x20] sm:$0xff]   ;;  %v3186_v46 = vld [vmem:[%s3793_s5 + $0x18] sm:$0xff]   ;;  %v3175_v1 = vld [vmem:[%s3795_s7 + $0x30] sm:$0xff]  }
  0x1c   : > { %2944 = vmatpush3.bf16.msra.mxu1 %v3168_v13  ;;  %v3451_v49 = vld [vmem:[%s3817_s24] ss:$0 sm:$0xff]  ;;  %v3176_v10 = vld [vmem:[%s3795_s7 + $0x28] sm:$0xff]   ;;  %v3178_v30 = vld [vmem:[%s3795_s7 + $0x18] sm:$0xff]  }
  0x1d   : > { %2914 = vmatpush3.bf16.msra.mxu0 %v3161_v4  ;;  %2945 = vmatprep.subr.bf16.mxu1 %v3169_v14  ;;  %v3177_v18 = vld [vmem:[%s3795_s7 + $0x20] sm:$0xff]  }
  0x1e   : > { %2915 = vmatprep.subr.bf16.mxu0 %v3162_v8 }
  0x20   : > { %2946 = vmatpush3.bf16.msra.mxu1 %v3169_v14 }
  0x21   : > { %2916 = vmatpush3.bf16.msra.mxu0 %v3162_v8  ;;  %2947 = vmatprep.subr.bf16.mxu1 %v3170_v16 }
  0x22   : > { %2917 = vmatprep.subr.bf16.mxu0 %v3163_v11 }
  0x24   : > { %2948 = vmatpush3.bf16.msra.mxu1 %v3170_v16 }
  0x25   : > { %2918 = vmatpush3.bf16.msra.mxu0 %v3163_v11  ;;  %2949 = vmatprep.subr.bf16.mxu1 %v3171_v38 }
  0x26   : > { %2919 = vmatprep.subr.bf16.mxu0 %v3164_v12 }
  0x28   : > { %2950 = vmatpush3.bf16.msra.mxu1 %v3171_v38 }
  0x29   : > { %2920 = vmatpush3.bf16.msra.mxu0 %v3164_v12  ;;  %2951 = vmatprep.subr.bf16.mxu1 %v3172_v39 }
  0x2a   : > { %2921 = vmatprep.subr.bf16.mxu0 %v3165_v15 }
  0x2c   : > { %2952 = vmatpush3.bf16.msra.mxu1 %v3172_v39 }
  0x2d   : > { %2922 = vmatpush3.bf16.msra.mxu0 %v3165_v15  ;;  %2953 = vmatprep.subr.bf16.mxu1 %v3173_v40 }
  0x2e   : > { %2971 = vmatprep.subr.bf16.mxu0 %v3182_v42 }
  0x30   : > { %2924 = vmatmul.mubr.bf16.vlgmr.msra.gmra.mxu0 %v3390_v21  ;;  %2954 = vmatpush3.bf16.msra.mxu1 %v3173_v40 }
  0x31   : > { %2927 = vmatprep.mubr.bf16.mxu0 %v3392_v22  ;;  %3003 = vmatprep.subr.bf16.mxu1 %v3174_v41 }
  0x32   : > { %2972 = vmatpush3.bf16.msra.mxu0 %v3182_v42 }
  0x33   : > { %2973 = vmatprep.subr.bf16.mxu0 %v3183_v43 }
  0x36   : > { %2974 = vmatpush3.bf16.msra.mxu0 %v3183_v43 }
  0x37   : > { %2975 = vmatprep.subr.bf16.mxu0 %v3184_v44 }
  0x38   : > { %2928 = vmatmul.mubr.bf16.gmra.mxu0 %v3400_v27 }
  0x39   : > { %2931 = vmatprep.mubr.bf16.mxu0 %v3402_v28 }
  0x3a   : > { %2976 = vmatpush3.bf16.msra.mxu0 %v3184_v44 }
  0x3b   : > { %2977 = vmatprep.subr.bf16.mxu0 %v3185_v45 }
  0x3e   : > { %2978 = vmatpush3.bf16.msra.mxu0 %v3185_v45 }
  0x3f   : > { %2979 = vmatprep.subr.bf16.mxu0 %v3186_v46 }
  0x40   : > { %2932 = vmatmul.mubr.bf16.gmra.mxu0 %v3410_v33 }
  0x41   : > { %2935 = vmatprep.mubr.bf16.mxu0 %v3412_v34 }
  0x42   : > { %2980 = vmatpush3.bf16.msra.mxu0 %v3186_v46 }
  0x48   : > { %2936 = vmatmul.mubr.bf16.gmra.mxu0 %v3418_v37 }
  0xf0   : > { %v2925_v47 = vpop.f32.mrf.mxu0 }
  0xf1   : > { %v774_v53 = vadd.f32 %v2925_v47, %v3451_v49 }
  0xf2   : > { %v765_v48 = vpop.f32.mrf.mxu0 }
  0xf3   : > { %v766_v51 = vadd.f32 %v3451_v49, %v765_v48  ;;  %v830_v60 = vmax.f32 %v774_v53, 0.0  ;;  %v3180_v48 = vld [vmem:[%s3795_s7 + $0x8] sm:$0xff]  }
  0xf4   : > { %v2926_v50 = vpop.f32.mrf.mxu0 }
  0xf5   : > { %v777_v52 = vadd.f32 %v2926_v50, %v3451_v49  ;;  %v828_v58 = vmax.f32 %v766_v51, 0.0 }
  0xf6   : > { %v768_v54 = vpop.f32.mrf.mxu0 }
  0xf7   : > { %v769_v55 = vadd.f32 %v3451_v49, %v768_v54  ;;  %v831_v56 = vmax.f32 %v777_v52, 0.0 }
  0xf8   : > { %v2929_v57 = vpop.f32.mrf.mxu0 }
  0xf9   : > { %v829_v59 = vmax.f32 %v769_v55, 0.0  ;;  %v845_v63 = vpack.c.bf16 %v831_v56, %v830_v60  ;;  %v790_v4 = vadd.f32 %v2929_v57, %v3451_v49  ;;  %v3181_v55 = vld [vmem:[%s3795_s7] sm:$0xff]  }
  0xfa   : > { %v781_v61 = vpop.f32.mrf.mxu0 }
  0xfb   : > { %v844_v62 = vpack.c.bf16 %v829_v59, %v828_v58  ;;  %v782_v2 = vadd.f32 %v3451_v49, %v781_v61  ;;  %v834_v13 = vmax.f32 %v790_v4, 0.0 }
  0xfc   : > { %v2930_v0 = vpop.f32.mrf.mxu0 }
  0xfd   : > { %v793_v3 = vadd.f32 %v2930_v0, %v3451_v49  ;;  %2955 = vmatprep.mubr.bf16.mxu1 %v844_v62  ;;  %v832_v11 = vmax.f32 %v782_v2, 0.0 }
  0xfe   : > { %v784_v5 = vpop.f32.mrf.mxu0  ;;  %2956 = vmatmul.mubr.bf16.vlgmr.msra.gmra.mxu1 %v845_v63 }
  0xff   : > { %v785_v6 = vadd.f32 %v3451_v49, %v784_v5  ;;  %3004 = vmatpush3.bf16.msra.mxu1 %v3174_v41  ;;  %v835_v8 = vmax.f32 %v793_v3, 0.0  ;;  %v3179_v41 = vld [vmem:[%s3795_s7 + $0x10] sm:$0xff]  }
 0x100   : > { %v2933_v9 = vpop.f32.mrf.mxu0  ;;  %3005 = vmatprep.subr.bf16.mxu1 %v3175_v1 }
 0x101   : > { %v833_v12 = vmax.f32 %v785_v6, 0.0  ;;  %v847_v16 = vpack.c.bf16 %v835_v8, %v834_v13  ;;  %v806_v23 = vadd.f32 %v2933_v9, %v3451_v49 }
 0x102   : > { %v797_v14 = vpop.f32.mrf.mxu0 }
 0x103   : > { %v846_v15 = vpack.c.bf16 %v833_v12, %v832_v11  ;;  %3006 = vmatpush3.bf16.msra.mxu1 %v3175_v1  ;;  %v798_v19 = vadd.f32 %v3451_v49, %v797_v14  ;;  %v838_v35 = vmax.f32 %v806_v23, 0.0 }
 0x104   : > { %v2934_v17 = vpop.f32.mrf.mxu0  ;;  %3007 = vmatprep.subr.bf16.mxu1 %v3176_v10 }
 0x105   : > { %v809_v20 = vadd.f32 %v2934_v17, %v3451_v49  ;;  %2959 = vmatprep.mubr.bf16.mxu1 %v846_v15  ;;  %v836_v31 = vmax.f32 %v798_v19, 0.0 }
 0x106   : > { %v800_v24 = vpop.f32.mrf.mxu0  ;;  %2960 = vmatmul.mubr.bf16.gmra.mxu1 %v847_v16 }
 0x107   : > { %v801_v25 = vadd.f32 %v3451_v49, %v800_v24  ;;  %3008 = vmatpush3.bf16.msra.mxu1 %v3176_v10  ;;  %v839_v26 = vmax.f32 %v809_v20, 0.0 }
 0x108   : > { %v2937_v29 = vpop.f32.mrf.mxu0  ;;  %3009 = vmatprep.subr.bf16.mxu1 %v3177_v18 }
 0x109   : > { %v837_v32 = vmax.f32 %v801_v25, 0.0  ;;  %v849_v39 = vpack.c.bf16 %v839_v26, %v838_v35  ;;  %v822_v44 = vadd.f32 %v2937_v29, %v3451_v49 }
 0x10a   : > { %v813_v36 = vpop.f32.mrf.mxu0 }
 0x10b   : > { %v848_v38 = vpack.c.bf16 %v837_v32, %v836_v31  ;;  %3010 = vmatpush3.bf16.msra.mxu1 %v3177_v18  ;;  %v814_v42 = vadd.f32 %v3451_v49, %v813_v36  ;;  %v842_v52 = vmax.f32 %v822_v44, 0.0  ;;  %v3513_v44 = vld [vmem:[%s3796_s8] ss:$0 sm:$0xff] }
 0x10c   : > { %v2938_v40 = vpop.f32.mrf.mxu0  ;;  %3011 = vmatprep.subr.bf16.mxu1 %v3178_v30 }
 0x10d   : > { %v825_v43 = vadd.f32 %v2938_v40, %v3451_v49  ;;  %2963 = vmatprep.mubr.bf16.mxu1 %v848_v38  ;;  %v840_v50 = vmax.f32 %v814_v42, 0.0 }
 0x10e   : > { %v816_v45 = vpop.f32.mrf.mxu0  ;;  %2964 = vmatmul.mubr.bf16.gmra.mxu1 %v849_v39 }
 0x10f   : > { %v817_v46 = vadd.f32 %v3451_v49, %v816_v45  ;;  %3012 = vmatpush3.bf16.msra.mxu1 %v3178_v30  ;;  %v843_v47 = vmax.f32 %v825_v43, 0.0 }
 0x110   : > { %3013 = vmatprep.subr.bf16.mxu1 %v3179_v41 }
 0x111   : > { %v841_v51 = vmax.f32 %v817_v46, 0.0  ;;  %v851_v54 = vpack.c.bf16 %v843_v47, %v842_v52 }
 0x113   : > { %v850_v53 = vpack.c.bf16 %v841_v51, %v840_v50  ;;  %3014 = vmatpush3.bf16.msra.mxu1 %v3179_v41 }
 0x114   : > { %3015 = vmatprep.subr.bf16.mxu1 %v3180_v48 }
 0x115   : > { %2967 = vmatprep.mubr.bf16.mxu1 %v850_v53 }
 0x116   : > { %2968 = vmatmul.mubr.bf16.gmra.mxu1 %v851_v54  ;;  %v3519_v54 = vld [vmem:[%s3797_s9] ss:$0 sm:$0xff] }
 0x117   : > { %3016 = vmatpush3.bf16.msra.mxu1 %v3180_v48  ;;  %3019 = vmatprep.mubr.bf16.mxu1 %v3356_v7  ;;  %v3187_v7 = vld [vmem:[%s3793_s5 + $0x10] sm:$0xff]  }
 0x118   : > { %3017 = vmatprep.subr.bf16.mxu1 %v3181_v55  ;;  %2981 = vmatprep.subr.bf16.mxu0 %v3187_v7 }
 0x119   : > { %2982 = vmatpush3.bf16.msra.mxu0 %v3187_v7 }
 0x11b   : > { %3018 = vmatpush3.bf16.msra.mxu1 %v3181_v55 }
 0x11e   : > { %3020 = vmatmul.mubr.bf16.vlgmr.msra.gmra.mxu1 %v3390_v21  ;;  %v3188_v21 = vld [vmem:[%s3793_s5 + $0x8] sm:$0xff]  }
 0x11f   : > { %3023 = vmatprep.mubr.bf16.mxu1 %v3392_v22  ;;  %2983 = vmatprep.subr.bf16.mxu0 %v3188_v21  ;;  %v3189_v22 = vld [vmem:[%s3793_s5] sm:$0xff]  }
 0x120   : > { %2984 = vmatpush3.bf16.msra.mxu0 %v3188_v21 }
 0x121   : > { %2985 = vmatprep.subr.bf16.mxu0 %v3189_v22 }
 0x124   : > { %2986 = vmatpush3.bf16.msra.mxu0 %v3189_v22 }
 0x126   : > { %3024 = vmatmul.mubr.bf16.gmra.mxu1 %v3400_v27 }
 0x127   : > { %3027 = vmatprep.mubr.bf16.mxu1 %v3402_v28 }
 0x12e   : > { %3028 = vmatmul.mubr.bf16.gmra.mxu1 %v3410_v33  ;;  %v2500_v33 = vld [vmem:[%s3792_s4] ss:$0 sm:$0xff] }
 0x12f   : > { %3031 = vmatprep.mubr.bf16.mxu1 %v3412_v34 }
 0x136   : > { %3032 = vmatmul.mubr.bf16.gmra.mxu1 %v3418_v37 }
 0x1be   : > { %v2957_v27 = vpop.f32.mrf.mxu1 }
 0x1bf   : > { %v966_v56 = vadd.f32 %v2957_v27, %v2500_v33 }
 0x1c0   : > { %v957_v28 = vpop.f32.mrf.mxu1 }
 0x1c1   : > { %v958_v37 = vadd.f32 %v2500_v33, %v957_v28  ;;  %v1022_v63 = vmax.f32 %v966_v56, 0.0 }
 0x1c2   : > { %v2958_v34 = vpop.f32.mrf.mxu1 }
 0x1c3   : > { %v969_v49 = vadd.f32 %v2958_v34, %v2500_v33  ;;  %v1020_v61 = vmax.f32 %v958_v37, 0.0 }
 0x1c4   : > { %v960_v57 = vpop.f32.mrf.mxu1 }
 0x1c5   : > { %v961_v58 = vadd.f32 %v2500_v33, %v960_v57  ;;  %v1023_v59 = vmax.f32 %v969_v49, 0.0 }
 0x1c6   : > { %v2961_v60 = vpop.f32.mrf.mxu1 }
 0x1c7   : > { %v1021_v62 = vmax.f32 %v961_v58, 0.0  ;;  %v1037_v2 = vpack.c.bf16 %v1023_v59, %v1022_v63  ;;  %v982_v6 = vadd.f32 %v2961_v60, %v2500_v33 }
 0x1c8   : > { %v973_v0 = vpop.f32.mrf.mxu1 }
 0x1c9   : > { %v1036_v1 = vpack.c.bf16 %v1021_v62, %v1020_v61  ;;  %v974_v4 = vadd.f32 %v2500_v33, %v973_v0  ;;  %v1026_v14 = vmax.f32 %v982_v6, 0.0 }
 0x1ca   : > { %v2962_v3 = vpop.f32.mrf.mxu1 }
 0x1cb   : > { %v985_v5 = vadd.f32 %v2962_v3, %v2500_v33  ;;  %2987 = vmatprep.mubr.bf16.mxu0 %v1036_v1  ;;  %v1024_v12 = vmax.f32 %v974_v4, 0.0 }
 0x1cc   : > { %v976_v8 = vpop.f32.mrf.mxu1  ;;  %2988 = vmatmul.mubr.bf16.vlgmr.msra.gmra.mxu0 %v1037_v2 }
 0x1cd   : > { %v977_v9 = vadd.f32 %v2500_v33, %v976_v8  ;;  %v1027_v10 = vmax.f32 %v985_v5, 0.0 }
 0x1ce   : > { %v2965_v11 = vpop.f32.mrf.mxu1 }
 0x1cf   : > { %v1025_v13 = vmax.f32 %v977_v9, 0.0  ;;  %v1039_v17 = vpack.c.bf16 %v1027_v10, %v1026_v14  ;;  %v998_v23 = vadd.f32 %v2965_v11, %v2500_v33 }
 0x1d0   : > { %v989_v15 = vpop.f32.mrf.mxu1 }
 0x1d1   : > { %v1038_v16 = vpack.c.bf16 %v1025_v13, %v1024_v12  ;;  %v990_v19 = vadd.f32 %v2500_v33, %v989_v15  ;;  %v1030_v32 = vmax.f32 %v998_v23, 0.0 }
 0x1d2   : > { %v2966_v18 = vpop.f32.mrf.mxu1 }
 0x1d3   : > { %v1001_v20 = vadd.f32 %v2966_v18, %v2500_v33  ;;  %2991 = vmatprep.mubr.bf16.mxu0 %v1038_v16  ;;  %v1028_v30 = vmax.f32 %v990_v19, 0.0  ;;  %v3222_v18 = vmov 0  }
 0x1d4   : > { %v992_v24 = vpop.f32.mrf.mxu1  ;;  %2992 = vmatmul.mubr.bf16.gmra.mxu0 %v1039_v17  ;;  %3157 = vset.pattern.permute.xlu1 %v3222_v18 }
 0x1d5   : > { %v993_v25 = vadd.f32 %v2500_v33, %v992_v24  ;;  %v1031_v26 = vmax.f32 %v1001_v20, 0.0  ;;  %3156 = vset.pattern.permute.xlu0 %v3222_v18 }
 0x1d6   : > { %v2969_v29 = vpop.f32.mrf.mxu1 }
 0x1d7   : > { %v1029_v31 = vmax.f32 %v993_v25, 0.0  ;;  %v1041_v38 = vpack.c.bf16 %v1031_v26, %v1030_v32  ;;  %v1014_v42 = vadd.f32 %v2969_v29, %v2500_v33 }
 0x1d8   : > { %v1005_v35 = vpop.f32.mrf.mxu1 }
 0x1d9   : > { %v1040_v36 = vpack.c.bf16 %v1029_v31, %v1028_v30  ;;  %v1006_v40 = vadd.f32 %v2500_v33, %v1005_v35  ;;  %v1034_v52 = vmax.f32 %v1014_v42, 0.0 }
 0x1da   : > { %v2970_v39 = vpop.f32.mrf.mxu1 }
 0x1db   : > { %v1017_v41 = vadd.f32 %v2970_v39, %v2500_v33  ;;  %2995 = vmatprep.mubr.bf16.mxu0 %v1040_v36  ;;  %v1032_v48 = vmax.f32 %v1006_v40, 0.0 }
 0x1dc   : > { %v1008_v43 = vpop.f32.mrf.mxu1  ;;  %2996 = vmatmul.mubr.bf16.gmra.mxu0 %v1041_v38 }
 0x1dd   : > { %v1009_v45 = vadd.f32 %v2500_v33, %v1008_v43  ;;  %v1035_v46 = vmax.f32 %v1017_v41, 0.0 }
 0x1de   : > { %v3021_v47 = vpop.f32.mrf.mxu1 }
 0x1df   : > { %v1033_v50 = vmax.f32 %v1009_v45, 0.0  ;;  %v1342_v51 = vadd.f32 %v3021_v47, %v3513_v44  ;;  %v1043_v22 = vpack.c.bf16 %v1035_v46, %v1034_v52 }
 0x1e0   : > { %v1333_v53 = vpop.f32.mrf.mxu1 }
 0x1e1   : > { %v1042_v55 = vpack.c.bf16 %v1033_v50, %v1032_v48  ;;  %v1398_v7 = vmax.f32 %v1342_v51, 0.0  ;;  %v1334_v21 = vadd.f32 %v3513_v44, %v1333_v53 }
 0x1e2   : > { %v3022_v27 = vpop.f32.mrf.mxu1 }
 0x1e3   : > { %v1396_v28 = vmax.f32 %v1334_v21, 0.0  ;;  %v1345_v33 = vadd.f32 %v3022_v27, %v3513_v44  ;;  %2999 = vmatprep.mubr.bf16.mxu0 %v1042_v55  ;;  %v1421_v34 = vmul.f32 %v3519_v54, %v1398_v7  ;;  %v3190_v21 = vld [vmem:[%s3799_s11 + $0x38] sm:$0xff]   ;;  %v3193_v27 = vld [vmem:[%s3801_s13 + $0x30] sm:$0xff]  }
 0x1e4   : > { %3000 = vmatmul.mubr.bf16.gmra.mxu0 %v1043_v22  ;;  %v1336_v37 = vpop.f32.mrf.mxu1  ;;  %v3192_v22 = vld [vmem:[%s3799_s11 + $0x30] sm:$0xff]   ;;  %3035 = vmatprep.subr.bf16.mxu0 %v3190_v21 }
 0x1e5   : > { %v1399_v49 = vmax.f32 %v1345_v33, 0.0  ;;  %v1337_v56 = vadd.f32 %v3513_v44, %v1336_v37  ;;  %1439 = vadd.xlane.f32.xlu1 %v1421_v34  ;;  %v1419_v57 = vmul.f32 %v3519_v54, %v1396_v28  ;;  %3036 = vmatpush3.bf16.msra.mxu0 %v3190_v21  ;;  %v3195_v28 = vld [vmem:[%s3801_s13 + $0x28] sm:$0xff]   ;;  %v3196_v33 = vld [vmem:[%s3799_s11 + $0x20] sm:$0xff]   ;;  %v3198_v37 = vld [vmem:[%s3799_s11 + $0x18] sm:$0xff]  }
 0x1e6   : > { %v3025_v58 = vpop.f32.mrf.mxu1  ;;  %3037 = vmatprep.subr.bf16.mxu0 %v3192_v22  ;;  %v3197_v34 = vld [vmem:[%s3801_s13 + $0x20] sm:$0xff]  }
 0x1e7   : > { %v1397_v59 = vmax.f32 %v1337_v56, 0.0  ;;  %1435 = vadd.xlane.f32.xlu0 %v1419_v57  ;;  %v1422_v60 = vmul.f32 %v3519_v54, %v1399_v49  ;;  %v1358_v62 = vadd.f32 %v3025_v58, %v3513_v44  ;;  %v3199_v49 = vld [vmem:[%s3801_s13 + $0x18] sm:$0xff]   ;;  %v3582_v56 = vld [vmem:[#allocation2] ss:$0 sm:$0xff]  ;;  %v3200_v58 = vld [vmem:[%s3801_s13 + $0x10] sm:$0xff]  }
 0x1e8   : > { %v1349_v61 = vpop.f32.mrf.mxu1 }
 0x1e9   : > { %v1350_v63 = vadd.f32 %v3513_v44, %v1349_v61  ;;  %1441 = vadd.xlane.f32.xlu1 %v1422_v60  ;;  %v1420_v0 = vmul.f32 %v3519_v54, %v1397_v59  ;;  %v1402_v5 = vmax.f32 %v1358_v62, 0.0  ;;  %3038 = vmatpush3.bf16.msra.mxu0 %v3192_v22  ;;  %v3201_v59 = vld [vmem:[%s3799_s11 + $0x10] sm:$0xff]  }
 0x1ea   : > { %v3026_v1 = vpop.f32.mrf.mxu1 }
 0x1eb   : > { %v1400_v2 = vmax.f32 %v1350_v63, 0.0  ;;  %v1361_v3 = vadd.f32 %v3026_v1, %v3513_v44  ;;  %1437 = vadd.xlane.f32.xlu0 %v1420_v0  ;;  %v1425_v16 = vmul.f32 %v3519_v54, %v1402_v5  ;;  %v3202_v1 = vld [vmem:[%s3799_s11 + $0x8] sm:$0xff]  }
 0x1ec   : > { %v1352_v4 = vpop.f32.mrf.mxu1 }
 0x1ed   : > { %v1403_v6 = vmax.f32 %v1361_v3, 0.0  ;;  %v1353_v8 = vadd.f32 %v3513_v44, %v1352_v4  ;;  %v1423_v9 = vmul.f32 %v3519_v54, %v1400_v2  ;;  %v3203_v2 = vld [vmem:[%s3801_s13 + $0x8] sm:$0xff]  }
 0x1ee   : > { %v3029_v10 = vpop.f32.mrf.mxu1 }
 0x1ef   : > { %v1401_v11 = vmax.f32 %v1353_v8, 0.0  ;;  %v1374_v12 = vadd.f32 %v3029_v10, %v3513_v44  ;;  %1443 = vadd.xlane.f32.xlu0 %v1423_v9  ;;  %v1426_v13 = vmul.f32 %v3519_v54, %v1403_v6  ;;  %v3204_v9 = vld [vmem:[%s3799_s11] sm:$0xff]  }
 0x1f0   : > { %v1365_v14 = vpop.f32.mrf.mxu1  ;;  %v3205_v10 = vld [vmem:[%s3801_s13] sm:$0xff]  }
 0x1f1   : > { %v1366_v15 = vadd.f32 %v3513_v44, %v1365_v14  ;;  %1449 = vadd.xlane.f32.xlu1 %v1426_v13  ;;  %v1406_v19 = vmax.f32 %v1374_v12, 0.0  ;;  %v1424_v24 = vmul.f32 %v3519_v54, %v1401_v11 }
 0x1f2   : > { %v3030_v17 = vpop.f32.mrf.mxu1 }
 0x1f3   : > { %v1404_v20 = vmax.f32 %v1366_v15, 0.0  ;;  %v1377_v23 = vadd.f32 %v3030_v17, %v3513_v44  ;;  %1447 = vadd.xlane.f32.xlu0 %v1425_v16  ;;  %v1429_v38 = vmul.f32 %v3519_v54, %v1406_v19  ;;  %v3611_v19 = vld [vmem:[%s3803_s15 + $0x38] sm:$0xff]  }
 0x1f4   : > { %v1368_v25 = vpop.f32.mrf.mxu1 }
 0x1f5   : > { %v1407_v26 = vmax.f32 %v1377_v23, 0.0  ;;  %v1369_v29 = vadd.f32 %v3513_v44, %v1368_v25  ;;  %1445 = vadd.xlane.f32.xlu1 %v1424_v24  ;;  %v1427_v30 = vmul.f32 %v3519_v54, %v1404_v20 }
 0x1f6   : > { %v3033_v31 = vpop.f32.mrf.mxu1 }
 0x1f7   : > { %v1405_v32 = vmax.f32 %v1369_v29, 0.0  ;;  %v1390_v35 = vadd.f32 %v3033_v31, %v3513_v44  ;;  %1451 = vadd.xlane.f32.xlu0 %v1427_v30  ;;  %v1430_v36 = vmul.f32 %v3519_v54, %v1407_v26 }
 0x1f8   : > { %v1381_v39 = vpop.f32.mrf.mxu1 }
 0x1f9   : > { %v1382_v40 = vadd.f32 %v3513_v44, %v1381_v39  ;;  %1457 = vadd.xlane.f32.xlu1 %v1430_v36  ;;  %v1410_v42 = vmax.f32 %v1390_v35, 0.0  ;;  %v1428_v46 = vmul.f32 %v3519_v54, %v1405_v32 }
 0x1fa   : > { %v3034_v41 = vpop.f32.mrf.mxu1 }
 0x1fb   : > { %v1408_v43 = vmax.f32 %v1382_v40, 0.0  ;;  %v1393_v45 = vadd.f32 %v3034_v41, %v3513_v44  ;;  %1455 = vadd.xlane.f32.xlu0 %v1429_v38  ;;  %v1433_v55 = vmul.f32 %v3519_v54, %v1410_v42 }
 0x1fc   : > { %v1384_v47 = vpop.f32.mrf.mxu1 }
 0x1fd   : > { %v1411_v48 = vmax.f32 %v1393_v45, 0.0  ;;  %v1385_v50 = vadd.f32 %v3513_v44, %v1384_v47  ;;  %1453 = vadd.xlane.f32.xlu1 %v1428_v46  ;;  %v1431_v51 = vmul.f32 %v3519_v54, %v1408_v43  ;;  %v3191_v44 = vld [vmem:[%s3801_s13 + $0x38] sm:$0xff]  }
 0x1fe   : > { %3067 = vmatprep.subr.bf16.mxu1 %v3191_v44 }
 0x1ff   : > { %v1409_v52 = vmax.f32 %v1385_v50, 0.0  ;;  %1459 = vadd.xlane.f32.xlu0 %v1431_v51  ;;  %v1434_v53 = vmul.f32 %v3519_v54, %v1411_v48  ;;  %3068 = vmatpush3.bf16.msra.mxu1 %v3191_v44 }
 0x200   : > { %3069 = vmatprep.subr.bf16.mxu1 %v3193_v27 }
 0x201   : > { %1465 = vadd.xlane.f32.xlu1 %v1434_v53  ;;  %v1432_v7 = vmul.f32 %v3519_v54, %v1409_v52  ;;  %v3194_v54 = vld [vmem:[%s3799_s11 + $0x28] sm:$0xff]  }
 0x202   : > { %3039 = vmatprep.subr.bf16.mxu0 %v3194_v54 }
 0x203   : > { %1463 = vadd.xlane.f32.xlu0 %v1433_v55  ;;  %3070 = vmatpush3.bf16.msra.mxu1 %v3193_v27 }
 0x204   : > { %3071 = vmatprep.subr.bf16.mxu1 %v3195_v28  ;;  %3040 = vmatpush3.bf16.msra.mxu0 %v3194_v54 }
 0x205   : > { %1461 = vadd.xlane.f32.xlu1 %v1432_v7  ;;  %3041 = vmatprep.subr.bf16.mxu0 %v3196_v33 }
 0x207   : > { %3072 = vmatpush3.bf16.msra.mxu1 %v3195_v28 }
 0x208   : > { %3073 = vmatprep.subr.bf16.mxu1 %v3197_v34  ;;  %3042 = vmatpush3.bf16.msra.mxu0 %v3196_v33 }
 0x209   : > { %3043 = vmatprep.subr.bf16.mxu0 %v3198_v37 }
 0x20b   : > { %3074 = vmatpush3.bf16.msra.mxu1 %v3197_v34 }
 0x20c   : > { %3075 = vmatprep.subr.bf16.mxu1 %v3199_v49  ;;  %3044 = vmatpush3.bf16.msra.mxu0 %v3198_v37 }
 0x20d   : > { %3045 = vmatprep.subr.bf16.mxu0 %v3201_v59 }
 0x20f   : > { %3076 = vmatpush3.bf16.msra.mxu1 %v3199_v49 }
 0x210   : > { %3077 = vmatprep.subr.bf16.mxu1 %v3200_v58  ;;  %3046 = vmatpush3.bf16.msra.mxu0 %v3201_v59 }
 0x211   : > { %3047 = vmatprep.subr.bf16.mxu0 %v3202_v1 }
 0x213   : > { %3078 = vmatpush3.bf16.msra.mxu1 %v3200_v58  ;;  %v3628_v58 = vld [vmem:[%s3794_s6] ss:$0 sm:$0xff] }
 0x214   : > { %3079 = vmatprep.subr.bf16.mxu1 %v3203_v2  ;;  %3048 = vmatpush3.bf16.msra.mxu0 %v3202_v1 }
 0x215   : > { %3049 = vmatprep.subr.bf16.mxu0 %v3204_v9 }
 0x217   : > { %3080 = vmatpush3.bf16.msra.mxu1 %v3203_v2 }
 0x218   : > { %3081 = vmatprep.subr.bf16.mxu1 %v3205_v10  ;;  %3050 = vmatpush3.bf16.msra.mxu0 %v3204_v9 }
 0x219   : > { %3099 = vmatprep.subr.bf16.mxu0 %v3611_v19 }
 0x21b   : > { %3082 = vmatpush3.bf16.msra.mxu1 %v3205_v10 }
 0x21c   : > { %3131 = vmatprep.subr.bf16.mxu1 %v3611_v19 }
 0x26e   : > { %v1440_v57 = vpop.xlane.xlu1 %1439 }
 0x26f   : > { %v1476_v60 = vadd.f32 %v3582_v56, %v1440_v57 }
 0x270   : > { %v1436_v61 = vpop.xlane.xlu0 %1435 }
 0x271   : > { %v1492_v62 = vmax.f32 %v1476_v60, 0.0  ;;  %v1474_v63 = vadd.f32 %v3582_v56, %v1436_v61 }
 0x272   : > { %v1442_v0 = vpop.xlane.xlu1 %1441 }
 0x273   : > { %v1490_v3 = vmax.f32 %v1474_v63, 0.0  ;;  %v1477_v4 = vadd.f32 %v3582_v56, %v1442_v0  ;;  %1518 = vperm.xlu1 %3157, %v1492_v62  }
 0x274   : > { %v1438_v5 = vpop.xlane.xlu0 %1437 }
 0x275   : > { %v1493_v6 = vmax.f32 %v1477_v4, 0.0  ;;  %v1475_v8 = vadd.f32 %v3582_v56, %v1438_v5  ;;  %1508 = vperm.xlu0 %3156, %v1490_v3  }
 0x277   : > { %1523 = vperm.xlu1 %3157, %v1493_v6   ;;  %v1491_v12 = vmax.f32 %v1475_v8, 0.0 }
 0x278   : > { %v1444_v11 = vpop.xlane.xlu0 %1443 }
 0x279   : > { %v1478_v17 = vadd.f32 %v3582_v56, %v1444_v11 }
 0x27a   : > { %v1450_v13 = vpop.xlane.xlu1 %1449 }
 0x27b   : > { %1513 = vperm.xlu1 %3157, %v1491_v12   ;;  %v1494_v24 = vmax.f32 %v1478_v17, 0.0  ;;  %v1481_v29 = vadd.f32 %v3582_v56, %v1450_v13 }
 0x27c   : > { %v1448_v14 = vpop.xlane.xlu0 %1447 }
 0x27d   : > { %v1480_v15 = vadd.f32 %v3582_v56, %v1448_v14  ;;  %v1497_v39 = vmax.f32 %v1481_v29, 0.0 }
 0x27e   : > { %v1446_v16 = vpop.xlane.xlu1 %1445 }
 0x27f   : > { %v1496_v18 = vmax.f32 %v1480_v15, 0.0  ;;  %v1479_v25 = vadd.f32 %v3582_v56, %v1446_v16  ;;  %v3207_v15 = vld [vmem:[%s3803_s15 + $0x30] sm:$0xff]  }
 0x280   : > { %v1452_v20 = vpop.xlane.xlu0 %1451 }
 0x281   : > { %1538 = vperm.xlu1 %3157, %v1496_v18   ;;  %v1495_v30 = vmax.f32 %v1479_v25, 0.0  ;;  %v1482_v40 = vadd.f32 %v3582_v56, %v1452_v20  ;;  %v3208_v18 = vld [vmem:[%s3803_s15 + $0x28] sm:$0xff]  }
 0x282   : > { %v1458_v23 = vpop.xlane.xlu1 %1457 }
 0x283   : > { %v1485_v35 = vadd.f32 %v3582_v56, %v1458_v23  ;;  %v1498_v45 = vmax.f32 %v1482_v40, 0.0 }
 0x284   : > { %v1456_v32 = vpop.xlane.xlu0 %1455 }
 0x285   : > { %1528 = vperm.xlu1 %3157, %v1494_v24   ;;  %v1501_v41 = vmax.f32 %v1485_v35, 0.0  ;;  %v1484_v46 = vadd.f32 %v3582_v56, %v1456_v32 }
 0x286   : > { %v1454_v26 = vpop.xlane.xlu1 %1453 }
 0x287   : > { %v1483_v31 = vadd.f32 %v3582_v56, %v1454_v26  ;;  %v1500_v51 = vmax.f32 %v1484_v46, 0.0  ;;  %v3210_v46 = vld [vmem:[%s3803_s15 + $0x18] sm:$0xff]  }
 0x288   : > { %v1460_v42 = vpop.xlane.xlu0 %1459 }
 0x289   : > { %v1499_v36 = vmax.f32 %v1483_v31, 0.0  ;;  %1533 = vperm.xlu1 %3157, %v1495_v30   ;;  %v1486_v52 = vadd.f32 %v3582_v56, %v1460_v42 }
 0x28a   : > { %v1466_v38 = vpop.xlane.xlu1 %1465 }
 0x28b   : > { %1553 = vperm.xlu0 %3156, %v1499_v36   ;;  %v1489_v48 = vadd.f32 %v3582_v56, %v1466_v38  ;;  %v1502_v7 = vmax.f32 %v1486_v52, 0.0 }
 0x28c   : > { %v1464_v53 = vpop.xlane.xlu0 %1463  ;;  %v2989_v22 = vpop.f32.mrf.mxu0 }
 0x28d   : > { %1543 = vperm.xlu1 %3157, %v1497_v39   ;;  %v1505_v55 = vmax.f32 %v1489_v48, 0.0  ;;  %v1488_v21 = vadd.f32 %v3582_v56, %v1464_v53  ;;  %v1158_v62 = vadd.f32 %v2989_v22, %v3628_v58  ;;  %v3211_v22 = vld [vmem:[%s3803_s15 + $0x10] sm:$0xff]  }
 0x28e   : > { %v1462_v43 = vpop.xlane.xlu1 %1461  ;;  %v1149_v27 = vpop.f32.mrf.mxu0 }
 0x28f   : > { %v1487_v47 = vadd.f32 %v3582_v56, %v1462_v43  ;;  %1563 = vperm.xlu0 %3156, %v1501_v41   ;;  %v1504_v44 = vmax.f32 %v1488_v21, 0.0  ;;  %v1150_v60 = vadd.f32 %v3628_v58, %v1149_v27  ;;  %v1214_v5 = vmax.f32 %v1158_v62, 0.0 }
 0x290   : > { %v2990_v54 = vpop.f32.mrf.mxu0 }
 0x291   : > { %v1503_v50 = vmax.f32 %v1487_v47, 0.0  ;;  %1548 = vperm.xlu1 %3157, %v1498_v45   ;;  %v1161_v56 = vadd.f32 %v2990_v54, %v3628_v58  ;;  %v1212_v3 = vmax.f32 %v1150_v60, 0.0 }
 0x292   : > { %v1152_v28 = vpop.f32.mrf.mxu0 }
 0x293   : > { %1573 = vperm.xlu0 %3156, %v1503_v50   ;;  %v1153_v61 = vadd.f32 %v3628_v58, %v1152_v28  ;;  %v1215_v0 = vmax.f32 %v1161_v56, 0.0 }
 0x294   : > { %v2993_v33 = vpop.f32.mrf.mxu0 }
 0x295   : > { %1558 = vperm.xlu1 %3157, %v1500_v51   ;;  %v1213_v4 = vmax.f32 %v1153_v61, 0.0  ;;  %v1174_v26 = vadd.f32 %v2993_v33, %v3628_v58 }
 0x296   : > { %v1165_v34 = vpop.f32.mrf.mxu0 }
 0x297   : > { %1583 = vperm.xlu0 %3156, %v1505_v55   ;;  %v1166_v20 = vadd.f32 %v3628_v58, %v1165_v34  ;;  %v1218_v39 = vmax.f32 %v1174_v26, 0.0 }
 0x298   : > { %v2994_v37 = vpop.f32.mrf.mxu0 }
 0x299   : > { %1568 = vperm.xlu1 %3157, %v1502_v7   ;;  %v1216_v29 = vmax.f32 %v1166_v20, 0.0  ;;  %v1177_v30 = vadd.f32 %v2994_v37, %v3628_v58 }
 0x29a   : > { %v1168_v49 = vpop.f32.mrf.mxu0 }
 0x29b   : > { %v1169_v23 = vadd.f32 %v3628_v58, %v1168_v49  ;;  %v1219_v41 = vmax.f32 %v1177_v30, 0.0 }
 0x29c   : > { %v3631_v59 = vpop.f32.mrf.mxu0 }
 0x29d   : > { %1578 = vperm.xlu1 %3157, %v1504_v44   ;;  %v1217_v31 = vmax.f32 %v1169_v23, 0.0  ;;  %v1190_v52 = vadd.f32 %v3631_v59, %v3628_v58  ;;  %v3212_v59 = vld [vmem:[%s3803_s15 + $0x8] sm:$0xff]  }
 0x29e   : > { %v1181_v1 = vpop.f32.mrf.mxu0 }
 0x29f   : > { %v1182_v42 = vadd.f32 %v3628_v58, %v1181_v1  ;;  %v1222_v34 = vmax.f32 %v1190_v52, 0.0 }
 0x2a0   : > { %v2998_v11 = vpop.f32.mrf.mxu0 }
 0x2a1   : > { %v1220_v55 = vmax.f32 %v1182_v42, 0.0  ;;  %v1193_v7 = vadd.f32 %v2998_v11, %v3628_v58 }
 0x2a2   : > { %v1184_v16 = vpop.f32.mrf.mxu0 }
 0x2a3   : > { %v1185_v43 = vadd.f32 %v3628_v58, %v1184_v16  ;;  %v1223_v37 = vmax.f32 %v1193_v7, 0.0 }
 0x2a4   : > { %v3654_v24 = vpop.f32.mrf.mxu0 }
 0x2a5   : > { %v1221_v21 = vmax.f32 %v1185_v43, 0.0 }
 0x2a6   : > { %v1197_v32 = vpop.f32.mrf.mxu0 }
 0x2a7   : > { %v1198_v49 = vadd.f32 %v3628_v58, %v1197_v32 }
 0x2a8   : > { %v3002_v47 = vpop.f32.mrf.mxu0 }
 0x2a9   : > { %v1224_v1 = vmax.f32 %v1198_v49, 0.0 }
 0x2aa   : > { %v1200_v27 = vpop.f32.mrf.mxu0 }
 0x2ee   : > { %v1519_v57 = vpop.permute.xlu1 %1518 }
 0x2ef   : > { %v1588_v12 = vmul.f32 %v1519_v57, %v1214_v5  ;;  %v1201_v57 = vadd.f32 %v3628_v58, %v1200_v27  ;;  %v3213_v5 = vld [vmem:[%s3803_s15] sm:$0xff]  }
 0x2f0   : > { %v1509_v2 = vpop.permute.xlu0 %1508 }
 0x2f1   : > { %v1586_v9 = vmul.f32 %v1509_v2, %v1212_v3  ;;  %v1209_v2 = vadd.f32 %v3002_v47, %v3628_v58  ;;  %v1225_v3 = vmax.f32 %v1201_v57, 0.0 }
 0x2f2   : > { %v1524_v63 = vpop.permute.xlu1 %1523 }
 0x2f3   : > { %v1589_v6 = vmul.f32 %v1524_v63, %v1215_v0  ;;  %v1206_v0 = vadd.f32 %v3654_v24, %v3628_v58  ;;  %v3698_v24 = vld [vmem:[%s3800_s12] ss:$0 sm:$0xff] }
 0x2f5   : > { %v3638_v14 = vpack.c.bf16 %v1589_v6, %v1588_v12  ;;  %v1226_v11 = vmax.f32 %v1206_v0, 0.0  ;;  %v1227_v12 = vmax.f32 %v1209_v2, 0.0 }
 0x2f6   : > { %v1514_v8 = vpop.permute.xlu1 %1513 }
 0x2f7   : > { %v1587_v10 = vmul.f32 %v1514_v8, %v1213_v4 }
 0x2f9   : > { %v3636_v13 = vpack.c.bf16 %v1587_v10, %v1586_v9 }
 0x2fb   : > { %3051 = vmatprep.mubr.bf16.mxu0 %v3636_v13  ;;  %3083 = vmatprep.mubr.bf16.mxu1 %v3636_v13 }
 0x2fc   : > { %v1539_v17 = vpop.permute.xlu1 %1538  ;;  %3052 = vmatmul.mubr.bf16.vlgmr.msra.gmra.mxu0 %v3638_v14  ;;  %3084 = vmatmul.mubr.bf16.vlgmr.msra.gmra.mxu1 %v3638_v14 }
 0x2fd   : > { %3100 = vmatpush3.bf16.msra.mxu0 %v3611_v19  ;;  %3139 = vmatpush3.bf16.msra.mxu1 %v3611_v19  ;;  %v3209_v19 = vld [vmem:[%s3803_s15 + $0x20] sm:$0xff]   ;;  %v1592_v50 = vmul.f32 %v1539_v17, %v1218_v39 }
 0x2fe   : > { %3101 = vmatprep.subr.bf16.mxu0 %v3207_v15  ;;  %3132 = vmatprep.subr.bf16.mxu1 %v3207_v15 }
 0x300   : > { %v1529_v25 = vpop.permute.xlu1 %1528 }
 0x301   : > { %3102 = vmatpush3.bf16.msra.mxu0 %v3207_v15  ;;  %3140 = vmatpush3.bf16.msra.mxu1 %v3207_v15  ;;  %v1590_v36 = vmul.f32 %v1529_v25, %v1216_v29 }
 0x302   : > { %3103 = vmatprep.subr.bf16.mxu0 %v3208_v18  ;;  %3133 = vmatprep.subr.bf16.mxu1 %v3208_v18 }
 0x304   : > { %v1534_v35 = vpop.permute.xlu1 %1533 }
 0x305   : > { %v1591_v38 = vmul.f32 %v1534_v35, %v1217_v31  ;;  %3104 = vmatpush3.bf16.msra.mxu0 %v3208_v18  ;;  %3141 = vmatpush3.bf16.msra.mxu1 %v3208_v18 }
 0x306   : > { %v1554_v40 = vpop.permute.xlu0 %1553  ;;  %3105 = vmatprep.subr.bf16.mxu0 %v3209_v19  ;;  %3134 = vmatprep.subr.bf16.mxu1 %v3209_v19 }
 0x307   : > { %v3663_v45 = vpack.c.bf16 %v1591_v38, %v1590_v36  ;;  %v1595_v28 = vmul.f32 %v1554_v40, %v1221_v21 }
 0x308   : > { %v1544_v48 = vpop.permute.xlu1 %1543 }
 0x309   : > { %v1593_v51 = vmul.f32 %v1544_v48, %v1219_v41  ;;  %3055 = vmatprep.mubr.bf16.mxu0 %v3663_v45  ;;  %3087 = vmatprep.mubr.bf16.mxu1 %v3663_v45 }
 0x30a   : > { %v1564_v53 = vpop.permute.xlu0 %1563  ;;  %3106 = vmatpush3.bf16.msra.mxu0 %v3209_v19  ;;  %3142 = vmatpush3.bf16.msra.mxu1 %v3209_v19 }
 0x30b   : > { %v3673_v44 = vpack.c.bf16 %v1593_v51, %v1592_v50  ;;  %3107 = vmatprep.subr.bf16.mxu0 %v3210_v46  ;;  %3135 = vmatprep.subr.bf16.mxu1 %v3210_v46  ;;  %v1597_v62 = vmul.f32 %v1564_v53, %v1223_v37 }
 0x30c   : > { %v1549_v54 = vpop.permute.xlu1 %1548 }
 0x30d   : > { %v1594_v33 = vmul.f32 %v1549_v54, %v1220_v55  ;;  %3056 = vmatmul.mubr.bf16.gmra.mxu0 %v3673_v44  ;;  %3088 = vmatmul.mubr.bf16.gmra.mxu1 %v3673_v44 }
 0x30e   : > { %3108 = vmatpush3.bf16.msra.mxu0 %v3210_v46  ;;  %3143 = vmatpush3.bf16.msra.mxu1 %v3210_v46  ;;  %v1574_v60 = vpop.permute.xlu0 %1573 }
 0x30f   : > { %v1606_v56 = vpack.c.bf16 %v1595_v28, %v1594_v33  ;;  %3109 = vmatprep.subr.bf16.mxu0 %v3211_v22  ;;  %3136 = vmatprep.subr.bf16.mxu1 %v3211_v22  ;;  %v1599_v8 = vmul.f32 %v1574_v60, %v1225_v3 }
 0x310   : > { %v1559_v61 = vpop.permute.xlu1 %1558 }
 0x311   : > { %v1596_v63 = vmul.f32 %v1559_v61, %v1222_v34  ;;  %3059 = vmatprep.mubr.bf16.mxu0 %v1606_v56  ;;  %3091 = vmatprep.mubr.bf16.mxu1 %v1606_v56 }
 0x312   : > { %3110 = vmatpush3.bf16.msra.mxu0 %v3211_v22  ;;  %3144 = vmatpush3.bf16.msra.mxu1 %v3211_v22  ;;  %v1584_v10 = vpop.permute.xlu0 %1583 }
 0x313   : > { %v1607_v4 = vpack.c.bf16 %v1597_v62, %v1596_v63  ;;  %3111 = vmatprep.subr.bf16.mxu0 %v3212_v59  ;;  %3137 = vmatprep.subr.bf16.mxu1 %v3212_v59  ;;  %v1601_v16 = vmul.f32 %v1584_v10, %v1227_v12 }
 0x314   : > { %v1569_v6 = vpop.permute.xlu1 %1568 }
 0x315   : > { %v1598_v9 = vmul.f32 %v1569_v6, %v1224_v1  ;;  %3060 = vmatmul.mubr.bf16.gmra.mxu0 %v1607_v4  ;;  %3092 = vmatmul.mubr.bf16.gmra.mxu1 %v1607_v4 }
 0x316   : > { %3112 = vmatpush3.bf16.msra.mxu0 %v3212_v59  ;;  %3145 = vmatpush3.bf16.msra.mxu1 %v3212_v59 }
 0x317   : > { %v1608_v15 = vpack.c.bf16 %v1599_v8, %v1598_v9  ;;  %3113 = vmatprep.subr.bf16.mxu0 %v3213_v5  ;;  %3138 = vmatprep.subr.bf16.mxu1 %v3213_v5 }
 0x318   : > { %v1579_v58 = vpop.permute.xlu1 %1578 }
 0x319   : > { %v1600_v17 = vmul.f32 %v1579_v58, %v1226_v11  ;;  %3063 = vmatprep.mubr.bf16.mxu0 %v1608_v15  ;;  %3095 = vmatprep.mubr.bf16.mxu1 %v1608_v15 }
 0x31a   : > { %3114 = vmatpush3.bf16.msra.mxu0 %v3213_v5  ;;  %3146 = vmatpush3.bf16.msra.mxu1 %v3213_v5 }
 0x31b   : > { %v1609_v18 = vpack.c.bf16 %v1601_v16, %v1600_v17 }
 0x31d   : > { %3064 = vmatmul.mubr.bf16.gmra.mxu0 %v1609_v18  ;;  %3096 = vmatmul.mubr.bf16.gmra.mxu1 %v1609_v18 }
 0x31e   : > { %3115 = vmatprep.mubr.bf16.mxu0 %v3636_v13  ;;  %3123 = vmatprep.mubr.bf16.mxu1 %v1606_v56  ;;  %v3703_v13 = vld [vmem:[%s3802_s14] ss:$0 sm:$0xff] }
 0x325   : > { %3116 = vmatmul.mubr.bf16.vlgmr.msra.gmra.mxu0 %v3638_v14  ;;  %3124 = vmatmul.mubr.bf16.vlgmr.msra.gmra.mxu1 %v1607_v4 }
 0x326   : > { %3119 = vmatprep.mubr.bf16.mxu0 %v3663_v45  ;;  %3127 = vmatprep.mubr.bf16.mxu1 %v1608_v15 }
 0x32d   : > { %3120 = vmatmul.mubr.bf16.gmra.mxu0 %v3673_v44  ;;  %3128 = vmatmul.mubr.bf16.gmra.mxu1 %v1609_v18 }
 0x3bc   : > { %v3053_v20 = vpop.f32.mrf.mxu0  ;;  %v3085_v23 = vpop.f32.mrf.mxu1 }
 0x3bd   : > { %v1724_v29 = vadd.f32 %v3053_v20, %v3698_v24  ;;  %v1972_v30 = vadd.f32 %v3085_v23, %v3703_v13 }
 0x3be   : > { %v1715_v14 = vpop.f32.mrf.mxu0  ;;  %v1963_v25 = vpop.f32.mrf.mxu1 }
 0x3bf   : > { %v1716_v35 = vadd.f32 %v3698_v24, %v1715_v14  ;;  %v1964_v36 = vadd.f32 %v3703_v13, %v1963_v25 }
 0x3c0   : > { %v3054_v26 = vpop.f32.mrf.mxu0  ;;  %v3086_v19 = vpop.f32.mrf.mxu1 }
 0x3c1   : > { %v1727_v31 = vadd.f32 %v3054_v26, %v3698_v24  ;;  %v1975_v32 = vadd.f32 %v3086_v19, %v3703_v13 }
 0x3c2   : > { %v1718_v38 = vpop.f32.mrf.mxu0  ;;  %v1966_v39 = vpop.f32.mrf.mxu1 }
 0x3c3   : > { %v2662_v40 = vpack.c.bf16 %v1727_v31, %v1724_v29  ;;  %v2702_v41 = vpack.c.bf16 %v1975_v32, %v1972_v30  ;;  %v1719_v42 = vadd.f32 %v3698_v24, %v1718_v38  ;;  %v1967_v43 = vadd.f32 %v3703_v13, %v1966_v39 }
 0x3c5   : > { %2774 = vst [vmem:[%s3718_s10 + $0x8] sm:$0xff] %v2662_v40   ;;  %2781 = vst [vmem:[%s3724_s26 + $0x8] sm:$0xff] %v2702_v41   ;;  %v2657_v45 = vpack.c.bf16 %v1719_v42, %v1716_v35  ;;  %v2697_v46 = vpack.c.bf16 %v1967_v43, %v1964_v36 }
 0x3c7   : > { %2658 = vst [vmem:[%s3718_s10] sm:$0xff] %v2657_v45   ;;  %2698 = vst [vmem:[%s3724_s26] sm:$0xff] %v2697_v46  }
 0x3cd   : > { %v3057_v47 = vpop.f32.mrf.mxu0  ;;  %v3089_v48 = vpop.f32.mrf.mxu1 }
 0x3ce   : > { %v1740_v55 = vadd.f32 %v3057_v47, %v3698_v24  ;;  %v1988_v7 = vadd.f32 %v3089_v48, %v3703_v13  ;;  %v2579_v47 = vld [vmem:[%s3804_s16] ss:$0 sm:$0xff] }
 0x3cf   : > { %v1731_v50 = vpop.f32.mrf.mxu0  ;;  %v1979_v51 = vpop.f32.mrf.mxu1 }
 0x3d0   : > { %v1732_v22 = vadd.f32 %v3698_v24, %v1731_v50  ;;  %v1980_v27 = vadd.f32 %v3703_v13, %v1979_v51 }
 0x3d1   : > { %v3058_v52 = vpop.f32.mrf.mxu0  ;;  %v3090_v53 = vpop.f32.mrf.mxu1 }
 0x3d2   : > { %v1743_v21 = vadd.f32 %v3058_v52, %v3698_v24  ;;  %v1991_v44 = vadd.f32 %v3090_v53, %v3703_v13 }
 0x3d3   : > { %v1734_v54 = vpop.f32.mrf.mxu0  ;;  %v1982_v28 = vpop.f32.mrf.mxu1 }
 0x3d4   : > { %v2672_v33 = vpack.c.bf16 %v1743_v21, %v1740_v55  ;;  %v2712_v34 = vpack.c.bf16 %v1991_v44, %v1988_v7  ;;  %v1735_v37 = vadd.f32 %v3698_v24, %v1734_v54  ;;  %v1983_v49 = vadd.f32 %v3703_v13, %v1982_v28 }
 0x3d5   : > { %v3061_v57 = vpop.f32.mrf.mxu0  ;;  %v3093_v56 = vpop.f32.mrf.mxu1 }
 0x3d6   : > { %2776 = vst [vmem:[%s3718_s10 + $0x18] sm:$0xff] %v2672_v33   ;;  %2783 = vst [vmem:[%s3724_s26 + $0x18] sm:$0xff] %v2712_v34   ;;  %v2667_v59 = vpack.c.bf16 %v1735_v37, %v1732_v22  ;;  %v2707_v60 = vpack.c.bf16 %v1983_v49, %v1980_v27  ;;  %v1756_v1 = vadd.f32 %v3061_v57, %v3698_v24 }
 0x3d7   : > { %v1747_v61 = vpop.f32.mrf.mxu0  ;;  %v1995_v62 = vpop.f32.mrf.mxu1  ;;  %v2004_v2 = vadd.f32 %v3093_v56, %v3703_v13 }
 0x3d8   : > { %2775 = vst [vmem:[%s3718_s10 + $0x10] sm:$0xff] %v2667_v59   ;;  %2782 = vst [vmem:[%s3724_s26 + $0x10] sm:$0xff] %v2707_v60   ;;  %v1748_v5 = vadd.f32 %v3698_v24, %v1747_v61  ;;  %v1996_v6 = vadd.f32 %v3703_v13, %v1995_v62 }
 0x3d9   : > { %v3062_v63 = vpop.f32.mrf.mxu0  ;;  %v3094_v0 = vpop.f32.mrf.mxu1 }
 0x3da   : > { %v1759_v3 = vadd.f32 %v3062_v63, %v3698_v24  ;;  %v2007_v4 = vadd.f32 %v3094_v0, %v3703_v13 }
 0x3db   : > { %v1750_v8 = vpop.f32.mrf.mxu0  ;;  %v1998_v9 = vpop.f32.mrf.mxu1 }
 0x3dc   : > { %v2682_v10 = vpack.c.bf16 %v1759_v3, %v1756_v1  ;;  %v2722_v11 = vpack.c.bf16 %v2007_v4, %v2004_v2  ;;  %v1751_v12 = vadd.f32 %v3698_v24, %v1750_v8  ;;  %v1999_v15 = vadd.f32 %v3703_v13, %v1998_v9 }
 0x3dd   : > { %v3065_v58 = vpop.f32.mrf.mxu0  ;;  %v3097_v16 = vpop.f32.mrf.mxu1 }
 0x3de   : > { %2778 = vst [vmem:[%s3718_s10 + $0x28] sm:$0xff] %v2682_v10   ;;  %2785 = vst [vmem:[%s3724_s26 + $0x28] sm:$0xff] %v2722_v11   ;;  %v2677_v17 = vpack.c.bf16 %v1751_v12, %v1748_v5  ;;  %v2717_v18 = vpack.c.bf16 %v1999_v15, %v1996_v6  ;;  %v1772_v26 = vadd.f32 %v3065_v58, %v3698_v24 }
 0x3df   : > { %v1763_v20 = vpop.f32.mrf.mxu0  ;;  %v2011_v23 = vpop.f32.mrf.mxu1  ;;  %v2020_v19 = vadd.f32 %v3097_v16, %v3703_v13 }
 0x3e0   : > { %2777 = vst [vmem:[%s3718_s10 + $0x20] sm:$0xff] %v2677_v17   ;;  %2784 = vst [vmem:[%s3724_s26 + $0x20] sm:$0xff] %v2717_v18   ;;  %v1764_v31 = vadd.f32 %v3698_v24, %v1763_v20  ;;  %v2012_v32 = vadd.f32 %v3703_v13, %v2011_v23 }
 0x3e1   : > { %v3066_v14 = vpop.f32.mrf.mxu0  ;;  %v3098_v25 = vpop.f32.mrf.mxu1 }
 0x3e2   : > { %v1775_v29 = vadd.f32 %v3066_v14, %v3698_v24  ;;  %v2023_v30 = vadd.f32 %v3098_v25, %v3703_v13 }
 0x3e3   : > { %v1766_v35 = vpop.f32.mrf.mxu0  ;;  %v2014_v36 = vpop.f32.mrf.mxu1 }
 0x3e4   : > { %v2692_v38 = vpack.c.bf16 %v1775_v29, %v1772_v26  ;;  %v2732_v39 = vpack.c.bf16 %v2023_v30, %v2020_v19  ;;  %v1767_v40 = vadd.f32 %v3698_v24, %v1766_v35  ;;  %v2015_v41 = vadd.f32 %v3703_v13, %v2014_v36 }
 0x3e5   : > { %v3117_v42 = vpop.f32.mrf.mxu0  ;;  %v3125_v43 = vpop.f32.mrf.mxu1 }
 0x3e6   : > { %2780 = vst [vmem:[%s3718_s10 + $0x38] sm:$0xff] %v2692_v38   ;;  %2787 = vst [vmem:[%s3724_s26 + $0x38] sm:$0xff] %v2732_v39   ;;  %v2687_v45 = vpack.c.bf16 %v1767_v40, %v1764_v31  ;;  %v2727_v46 = vpack.c.bf16 %v2015_v41, %v2012_v32  ;;  %v2220_v24 = vadd.f32 %v3117_v42, %v2579_v47 }
 0x3e7   : > { %v2211_v48 = vpop.f32.mrf.mxu0  ;;  %v2243_v50 = vpop.f32.mrf.mxu1  ;;  %v2252_v53 = vadd.f32 %v3125_v43, %v2579_v47 }
 0x3e8   : > { %2779 = vst [vmem:[%s3718_s10 + $0x30] sm:$0xff] %v2687_v45   ;;  %2786 = vst [vmem:[%s3724_s26 + $0x30] sm:$0xff] %v2727_v46   ;;  %v2212_v7 = vadd.f32 %v2579_v47, %v2211_v48  ;;  %v2244_v21 = vadd.f32 %v2579_v47, %v2243_v50 }
 0x3e9   : > { %v3118_v51 = vpop.f32.mrf.mxu0  ;;  %v3126_v52 = vpop.f32.mrf.mxu1 }
 0x3ea   : > { %v2223_v13 = vadd.f32 %v3118_v51, %v2579_v47  ;;  %v2255_v55 = vadd.f32 %v3126_v52, %v2579_v47 }
 0x3eb   : > { %v2214_v44 = vpop.f32.mrf.mxu0  ;;  %v2246_v22 = vpop.f32.mrf.mxu1 }
 0x3ec   : > { %v2742_v27 = vpack.c.bf16 %v2223_v13, %v2220_v24  ;;  %v2762_v54 = vpack.c.bf16 %v2255_v55, %v2252_v53  ;;  %v2215_v28 = vadd.f32 %v2579_v47, %v2214_v44  ;;  %v2247_v33 = vadd.f32 %v2579_v47, %v2246_v22 }
 0x3ed   : > { %v3121_v34 = vpop.f32.mrf.mxu0  ;;  %v3129_v37 = vpop.f32.mrf.mxu1 }
 0x3ee   : > { %2788 = vst [vmem:[%s3775_s21 + $0x8] sm:$0xff] %v2742_v27   ;;  %2792 = vst [vmem:[%s3775_s21 + $0x28] sm:$0xff] %v2762_v54   ;;  %v2737_v49 = vpack.c.bf16 %v2215_v28, %v2212_v7  ;;  %v2757_v57 = vpack.c.bf16 %v2247_v33, %v2244_v21  ;;  %v2236_v62 = vadd.f32 %v3121_v34, %v2579_v47 }
 0x3ef   : > { %v2227_v56 = vpop.f32.mrf.mxu0  ;;  %v2259_v59 = vpop.f32.mrf.mxu1  ;;  %v2268_v63 = vadd.f32 %v3129_v37, %v2579_v47 }
 0x3f0   : > { %2738 = vst [vmem:[%s3775_s21] sm:$0xff] %v2737_v49   ;;  %2791 = vst [vmem:[%s3775_s21 + $0x20] sm:$0xff] %v2757_v57   ;;  %v2228_v2 = vadd.f32 %v2579_v47, %v2227_v56  ;;  %v2260_v3 = vadd.f32 %v2579_v47, %v2259_v59 }
 0x3f1   : > { %v3122_v60 = vpop.f32.mrf.mxu0  ;;  %v3130_v61 = vpop.f32.mrf.mxu1 }
 0x3f2   : > { %v2239_v0 = vadd.f32 %v3122_v60, %v2579_v47  ;;  %v2271_v1 = vadd.f32 %v3130_v61, %v2579_v47 }
 0x3f3   : > { %v2230_v4 = vpop.f32.mrf.mxu0  ;;  %v2262_v5 = vpop.f32.mrf.mxu1 }
 0x3f4   : > { %v2752_v6 = vpack.c.bf16 %v2239_v0, %v2236_v62  ;;  %v2772_v8 = vpack.c.bf16 %v2271_v1, %v2268_v63  ;;  %v2231_v9 = vadd.f32 %v2579_v47, %v2230_v4  ;;  %v2263_v10 = vadd.f32 %v2579_v47, %v2262_v5 }
 0x3f6   : > { %2790 = vst [vmem:[%s3775_s21 + $0x18] sm:$0xff] %v2752_v6   ;;  %2794 = vst [vmem:[%s3775_s21 + $0x38] sm:$0xff] %v2772_v8   ;;  %v2747_v11 = vpack.c.bf16 %v2231_v9, %v2228_v2  ;;  %v2767_v12 = vpack.c.bf16 %v2263_v10, %v2260_v3 }
 0x3f8   : > { %2789 = vst [vmem:[%s3775_s21 + $0x10] sm:$0xff] %v2747_v11   ;;  %2793 = vst [vmem:[%s3775_s21 + $0x30] sm:$0xff] %v2767_v12  }
 0x3f9 PF: > { %s32_s20 = sadd.s32 1, %s3220_s20  }
 0x3fa   : > { %p29_p4 = scmp.ge.s32.totalorder %s32_s20, 4  }
 0x3fc   :  { %31 = sbr.rel (!%p29_p4) target bundleno = 5 (0x5), region = 142 }

// kernel: _lambda_.8
= control target key start
LH: loop header
LB: loop body
LE: loop exit
PB: predicated region body
PF: predicated region fallthrough
CT: control target
= control target key end

     0   :  { %s4863_s18 = smov 0   ;;  %s9150_s0 = inlined_call_operand.vmem [shape: bf16[256,128], index: 0, kind: input, shape index: {}]   ;;  %s9151_s1 = inlined_call_operand.vmem [shape: s32[256,8], index: 1, kind: input, shape index: {}]   ;;  %s9152_s2 = inlined_call_operand.vmem [shape: f32[256,128], index: 2, kind: input, shape index: {}]   ;;  %s9153_s3 = inlined_call_operand.vmem [shape: bf16[256,128], index: 3, kind: input, shape index: {}]   ;;  %s9154_s4 = inlined_call_operand.vmem [shape: bf16[256,128], index: 4, kind: input, shape index: {}]   ;;  %s9155_s5 = inlined_call_operand.vmem [shape: f32[256,128], index: 5, kind: output, shape index: {}]  }
   0x1 LB: > { %s4006_s19 = sadd.s32 4294967295, %s4822_s18   ;;  %p4010_p0 = scmp.ge.s32.totalorder %s4822_s18, 1  ;;  %s4822_s18 = sphi %s4863_s18, %s15_s18  }
   0x2   : > { %p210_p1 = scmp.lt.s32.totalorder %s4822_s18, 3 }
   0x4   : > { %p211_p2 = pnand %p4010_p0, %p210_p1 }
   0x6   : > { %214 = sbr.rel (%p211_p2) target bundleno = 1440 (0x5a0), region = 40 }
   0xb   : > { %v4472_v0 = vld [vmem:[%s9153_s3 + $0x78] sm:$0xff]   ;;  %v4824_v2 = vmov 0   ;;  %s4011_s24 = sshll.u32 %s4006_s19, 4  ;;  %v4474_v3 = vld [vmem:[%s9153_s3 + $0x70] sm:$0xff]   ;;  %v4476_v6 = vld [vmem:[%s9153_s3 + $0x68] sm:$0xff]   ;;  %v4825_v30 = vmov 1  }
   0xc   : > { %v4473_v1 = vld [vmem:[%s9153_s3 + $0x38] sm:$0xff]   ;;  %4431 = vset.pattern.permute.xlu1 %v4824_v2  ;;  %4430 = vset.pattern.permute.xlu0 %v4824_v2  ;;  %p249_p3 = scmp.lt.s32.totalorder %s4011_s24, 31  ;;  %v4475_v4 = vld [vmem:[%s9153_s3 + $0x30] sm:$0xff]   ;;  %v4477_v9 = vld [vmem:[%s9153_s3 + $0x28] sm:$0xff]   ;;  %v4826_v36 = vmov 2  }
   0xd   : > { %4317 = vmatprep.subr.bf16.mxu0 %v4472_v0  ;;  %v4478_v11 = vld [vmem:[%s9153_s3 + $0x60] sm:$0xff]   ;;  %v4480_v17 = vld [vmem:[%s9153_s3 + $0x58] sm:$0xff]   ;;  %v4482_v23 = vld [vmem:[%s9153_s3 + $0x50] sm:$0xff]  }
   0xe   : > { %4318 = vmatpush3.bf16.xpose.msra.mxu0 %v4473_v1  ;;  %s10466_s24 = smov (!%p249_p3, %s4011_s24), 31  ;;  %v4479_v16 = vld [vmem:[%s9153_s3 + $0x20] sm:$0xff]   ;;  %v4481_v21 = vld [vmem:[%s9153_s3 + $0x18] sm:$0xff]   ;;  %v4483_v28 = vld [vmem:[%s9153_s3 + $0x10] sm:$0xff]  }
   0xf   : > { %4319 = vmatprep.subr.bf16.mxu0 %v4474_v3  ;;  %s4880_s27 = sshll.u32 %s10466_s24, 3  ;;  %s4012_s10 = sshll.u32 %s10466_s24, 2  ;;  %v4484_v29 = vld [vmem:[%s9153_s3 + $0x48] sm:$0xff]   ;;  %v4486_v33 = vld [vmem:[%s9153_s3 + $0x40] sm:$0xff]  }
  0x10   : > { %s4889_s7 = scalar_lea.vmem %s9151_s1, %s4880_s27  ;;  %s4919_s17 = scalar_lea.vmem %s9150_s0, %s4012_s10  ;;  %v4485_v32 = vld [vmem:[%s9153_s3 + $0x8] sm:$0xff]   ;;  %v4487_v34 = vld [vmem:[%s9153_s3] sm:$0xff]  }
  0x11   : > { %v4892_v5 = vld [vmem:[%s4889_s7 + $0x10] sm:$0xff]  ;;  %v4899_v7 = vld [vmem:[%s4889_s7 + $0x18] sm:$0xff]  ;;  %v4903_v8 = vld [vmem:[%s4889_s7 + $0x28] sm:$0xff]  ;;  %s9107_s25 = scalar_lea.vmem %s9152_s2, %s4880_s27  ;;  %s9114_s29 = scalar_lea.vmem %s9155_s5, %s4880_s27 }
  0x12   : > { %636 = vperm.xlu1 %4431, %v4892_v5   ;;  %v4909_v10 = vld [vmem:[%s4889_s7] sm:$0xff]  ;;  %v4922_v12 = vld [vmem:[%s4889_s7 + $0x38] sm:$0xff]  ;;  %v354_v14 = vld [vmem:[%s4889_s7 + $0x8] sm:$0xff] }
  0x13   : > { %630 = vperm.xlu0 %4430, %v4909_v10   ;;  %v4488_v13 = vld [vmem:[%s4919_s17] sm:$0xff]   ;;  %v362_v15 = vld [vmem:[%s4889_s7 + $0x48] sm:$0xff]  ;;  %v364_v19 = vld [vmem:[%s4889_s7 + $0x58] sm:$0xff] }
  0x14   : > { %4333 = vmatprep.mubr.bf16.mxu0 %v4488_v13  ;;  %v4935_v18 = vld [vmem:[%s4889_s7 + $0x20] sm:$0xff]  ;;  %v4940_v20 = vld [vmem:[%s4889_s7 + $0x30] sm:$0xff]  ;;  %v366_v22 = vld [vmem:[%s4889_s7 + $0x68] sm:$0xff] }
  0x15   : > { %v4951_v24 = vld [vmem:[%s4889_s7 + $0x40] sm:$0xff]  ;;  %v368_v25 = vld [vmem:[%s4889_s7 + $0x78] sm:$0xff]  ;;  %v4955_v26 = vld [vmem:[%s4889_s7 + $0x50] sm:$0xff] }
  0x16   : > { %4320 = vmatpush3.bf16.xpose.msra.mxu0 %v4475_v4  ;;  %639 = vperm.xlu1 %4431, %v4899_v7   ;;  %v4959_v27 = vld [vmem:[%s4889_s7 + $0x60] sm:$0xff]  ;;  %v4971_v31 = vld [vmem:[%s4889_s7 + $0x70] sm:$0xff]  ;;  %v4489_v35 = vld [vmem:[%s4919_s17 + $0x8] sm:$0xff]   ;;  %v4827_v4 = vmov 3  }
  0x17   : > { %4321 = vmatprep.subr.bf16.mxu0 %v4476_v6  ;;  %633 = vperm.xlu0 %4430, %v354_v14   ;;  %v4490_v37 = vld [vmem:[%s4919_s17 + $0x10] sm:$0xff]   ;;  %v4491_v38 = vld [vmem:[%s4919_s17 + $0x18] sm:$0xff]   ;;  %v4492_v39 = vld [vmem:[%s4919_s17 + $0x20] sm:$0xff]  }
  0x18   : > { %v4493_v40 = vld [vmem:[%s4919_s17 + $0x28] sm:$0xff]   ;;  %v4494_v41 = vld [vmem:[%s4919_s17 + $0x30] sm:$0xff]   ;;  %v4495_v42 = vld [vmem:[%s4919_s17 + $0x38] sm:$0xff]  }
  0x1a   : > { %645 = vperm.xlu1 %4431, %v4903_v8  }
  0x1b   : > { %642 = vperm.xlu0 %4430, %v4935_v18  }
  0x1e   : > { %4322 = vmatpush3.bf16.xpose.msra.mxu0 %v4477_v9  ;;  %651 = vperm.xlu1 %4431, %v4922_v12   ;;  %v626_v9 = vlaneseq }
  0x1f   : > { %4323 = vmatprep.subr.bf16.mxu0 %v4478_v11  ;;  %648 = vperm.xlu0 %4430, %v4940_v20  }
  0x20   : > { %v5067_v11 = vand.u32 127, %v626_v9 }
  0x22   : > { %657 = vperm.xlu1 %4431, %v362_v15  }
  0x23   : > { %654 = vperm.xlu0 %4430, %v4951_v24  }
  0x26   : > { %4324 = vmatpush3.bf16.xpose.msra.mxu0 %v4479_v16  ;;  %663 = vperm.xlu1 %4431, %v364_v19  }
  0x27   : > { %4325 = vmatprep.subr.bf16.mxu0 %v4480_v17  ;;  %660 = vperm.xlu0 %4430, %v4955_v26   ;;  %v9230_v17 = vmov 0.0  }
  0x2a   : > { %669 = vperm.xlu1 %4431, %v366_v22  }
  0x2b   : > { %666 = vperm.xlu0 %4430, %v4959_v27  }
  0x2e   : > { %4326 = vmatpush3.bf16.xpose.msra.mxu0 %v4481_v21  ;;  %675 = vperm.xlu1 %4431, %v368_v25  }
  0x2f   : > { %4327 = vmatprep.subr.bf16.mxu0 %v4482_v23  ;;  %672 = vperm.xlu0 %4430, %v4971_v31  }
  0x32   : > { %4432 = vset.pattern.permute.xlu1 %v4825_v30 }
  0x33   : > { %854 = vperm.xlu1 %4432, %v4909_v10   ;;  %4433 = vset.pattern.permute.xlu0 %v4825_v30 }
  0x34   : > { %857 = vperm.xlu0 %4433, %v354_v14  }
  0x36   : > { %4328 = vmatpush3.bf16.xpose.msra.mxu0 %v4483_v28 }
  0x37   : > { %4329 = vmatprep.subr.bf16.mxu0 %v4484_v29  ;;  %860 = vperm.xlu1 %4432, %v4892_v5  }
  0x38   : > { %884 = vperm.xlu0 %4433, %v4955_v26  }
  0x3b   : > { %863 = vperm.xlu1 %4432, %v4899_v7  }
  0x3c   : > { %890 = vperm.xlu0 %4433, %v4959_v27  }
  0x3e   : > { %4330 = vmatpush3.bf16.xpose.msra.mxu0 %v4485_v32 }
  0x3f   : > { %4331 = vmatprep.subr.bf16.mxu0 %v4486_v33  ;;  %866 = vperm.xlu1 %4432, %v4935_v18  }
  0x40   : > { %896 = vperm.xlu0 %4433, %v4971_v31  }
  0x43   : > { %869 = vperm.xlu1 %4432, %v4903_v8  }
  0x44   : > { %4435 = vset.pattern.permute.xlu0 %v4826_v36 }
  0x45   : > { %1081 = vperm.xlu0 %4435, %v354_v14  }
  0x46   : > { %4332 = vmatpush3.bf16.xpose.msra.mxu0 %v4487_v34 }
  0x47   : > { %872 = vperm.xlu1 %4432, %v4940_v20  }
  0x49   : > { %1105 = vperm.xlu0 %4435, %v362_v15  }
  0x4b   : > { %875 = vperm.xlu1 %4432, %v4922_v12  }
  0x4d   : > { %4334 = vmatmul.mubr.bf16.vlgmr.msra.gmra.mxu0 %v4488_v13  ;;  %1111 = vperm.xlu0 %4435, %v364_v19   ;;  %v5072_v13 = vadd.s32 128, %v5067_v11 }
  0x4e   : > { %4335 = vmatprep.mubr.bf16.mxu0 %v4489_v35 }
  0x4f   : > { %878 = vperm.xlu1 %4432, %v4951_v24  }
  0x51   : > { %1117 = vperm.xlu0 %4435, %v366_v22  }
  0x53   : > { %881 = vperm.xlu1 %4432, %v362_v15  }
  0x55   : > { %4336 = vmatmul.mubr.bf16.gmra.mxu0 %v4489_v35  ;;  %1123 = vperm.xlu0 %4435, %v368_v25  }
  0x56   : > { %4337 = vmatprep.mubr.bf16.mxu0 %v4490_v37 }
  0x57   : > { %887 = vperm.xlu1 %4432, %v364_v19  }
  0x59   : > { %4436 = vset.pattern.permute.xlu0 %v4827_v4 }
  0x5b   : > { %893 = vperm.xlu1 %4432, %v366_v22  }
  0x5d   : > { %4338 = vmatmul.mubr.bf16.gmra.mxu0 %v4490_v37 }
  0x5e   : > { %4339 = vmatprep.mubr.bf16.mxu0 %v4491_v38 }
  0x5f   : > { %899 = vperm.xlu1 %4432, %v368_v25  }
  0x63   : > { %4434 = vset.pattern.permute.xlu1 %v4826_v36 }
  0x64   : > { %1078 = vperm.xlu1 %4434, %v4909_v10  }
  0x65   : > { %4340 = vmatmul.mubr.bf16.gmra.mxu0 %v4491_v38 }
  0x66   : > { %4341 = vmatprep.mubr.bf16.mxu0 %v4492_v39 }
  0x68   : > { %1084 = vperm.xlu1 %4434, %v4892_v5  }
  0x6c   : > { %1087 = vperm.xlu1 %4434, %v4899_v7  }
  0x6d   : > { %4342 = vmatmul.mubr.bf16.gmra.mxu0 %v4492_v39 }
  0x6e   : > { %4343 = vmatprep.mubr.bf16.mxu0 %v4493_v40 }
  0x70   : > { %1090 = vperm.xlu1 %4434, %v4935_v18  }
  0x74   : > { %1093 = vperm.xlu1 %4434, %v4903_v8  }
  0x75   : > { %4344 = vmatmul.mubr.bf16.gmra.mxu0 %v4493_v40 }
  0x76   : > { %4345 = vmatprep.mubr.bf16.mxu0 %v4494_v41 }
  0x78   : > { %1096 = vperm.xlu1 %4434, %v4940_v20  }
  0x7c   : > { %1099 = vperm.xlu1 %4434, %v4922_v12  }
  0x7d   : > { %4346 = vmatmul.mubr.bf16.gmra.mxu0 %v4494_v41 }
  0x7e   : > { %4347 = vmatprep.mubr.bf16.mxu0 %v4495_v42 }
  0x80   : > { %1102 = vperm.xlu1 %4434, %v4951_v24  }
  0x84   : > { %1108 = vperm.xlu1 %4434, %v4955_v26  }
  0x85   : > { %4348 = vmatmul.mubr.bf16.gmra.mxu0 %v4495_v42 }
  0x88   : > { %1114 = vperm.xlu1 %4434, %v4959_v27  }
  0x8c   : > { %1120 = vperm.xlu1 %4434, %v4971_v31  }
  0x8d   : > { %v5011_v43 = vpop.permute.xlu1 %636 }
  0x8e   : > { %v631_v53 = vpop.permute.xlu0 %630  ;;  %vm681_vm12 = vcmp.eq.s32.totalorder %v5011_v43, %v5067_v11  ;;  %vm682_vm13 = vcmp.eq.s32.totalorder %v5011_v43, %v5072_v13 }
  0x8f   : > { %vm677_vm2 = vcmp.eq.s32.totalorder %v631_v53, %v5067_v11  ;;  %vm678_vm3 = vcmp.eq.s32.totalorder %v631_v53, %v5072_v13 }
  0x90   : > { %4437 = vset.pattern.permute.xlu1 %v4827_v4  ;;  %v5094_v22 = vsel %vm677_vm2, 1.0, %v9230_v17  ;;  %v5103_v24 = vsel %vm678_vm3, 1.0, %v9230_v17 }
  0x91   : > { %v5013_v44 = vpop.permute.xlu1 %639  ;;  %9585 = vst [vmem:[#allocation4_spill] sm:$0xff] %v5094_v22  ;;  %9586 = vst [vmem:[#allocation5_spill] sm:$0xff] %v5103_v24 }
  0x92   : > { %v634_v55 = vpop.permute.xlu0 %633 }
  0x93   : > { %vm679_vm5 = vcmp.eq.s32.totalorder %v634_v55, %v5067_v11  ;;  %vm680_vm7 = vcmp.eq.s32.totalorder %v634_v55, %v5072_v13 }
  0x94   : > { %v5126_v31 = vsel %vm679_vm5, 1.0, %v9230_v17  ;;  %v5144_v37 = vsel %vm680_vm7, 1.0, %v9230_v17 }
  0x95   : > { %v5015_v45 = vpop.permute.xlu1 %645  ;;  %9588 = vst [vmem:[#allocation7_spill] sm:$0xff] %v5126_v31  ;;  %9590 = vst [vmem:[#allocation9_spill] sm:$0xff] %v5144_v37 }
  0x96   : > { %v5035_v57 = vpop.permute.xlu0 %642 }
  0x97   : > { %vm686_vm2 = vcmp.eq.s32.totalorder %v5035_v57, %v5072_v13 }
  0x99   : > { %v5017_v46 = vpop.permute.xlu1 %651 }
  0x9a   : > { %v5039_v59 = vpop.permute.xlu0 %648 }
  0x9d   : > { %v5019_v47 = vpop.permute.xlu1 %657 }
  0x9e   : > { %v5043_v61 = vpop.permute.xlu0 %654 }
  0xa1   : > { %v5021_v48 = vpop.permute.xlu1 %663 }
  0xa2   : > { %v5047_v63 = vpop.permute.xlu0 %660 }
  0xa5   : > { %v5023_v49 = vpop.permute.xlu1 %669 }
  0xa6   : > { %v5051_v1 = vpop.permute.xlu0 %666 }
  0xa9   : > { %v5025_v50 = vpop.permute.xlu1 %675 }
  0xaa   : > { %v5055_v3 = vpop.permute.xlu0 %672 }
  0xae   : > { %v5027_v51 = vpop.permute.xlu1 %854 }
  0xaf   : > { %v5057_v5 = vpop.permute.xlu0 %857  ;;  %vm902_vm4 = vcmp.eq.s32.totalorder %v5027_v51, %v5072_v13  ;;  %vm901_vm6 = vcmp.eq.s32.totalorder %v5027_v51, %v5067_v11 }
  0xb0   : > { %vm904_vm9 = vcmp.eq.s32.totalorder %v5057_v5, %v5072_v13  ;;  %v5121_v30 = vsel %vm902_vm4, 1.0, %v9230_v17  ;;  %vm903_vm11 = vcmp.eq.s32.totalorder %v5057_v5, %v5067_v11  ;;  %v5139_v36 = vsel %vm901_vm6, 1.0, %v9230_v17 }
  0xb1   : > { %9587 = vst [vmem:[#allocation6_spill] sm:$0xff] %v5121_v30  ;;  %9589 = vst [vmem:[#allocation8_spill] sm:$0xff] %v5139_v36  ;;  %v5172_v55 = vsel %vm904_vm9, 1.0, %v9230_v17 }
  0xb2   : > { %v5029_v52 = vpop.permute.xlu1 %860  ;;  %9593 = vst [vmem:[#allocation12_spill] sm:$0xff] %v5172_v55 }
  0xb3   : > { %v5061_v7 = vpop.permute.xlu0 %884  ;;  %vm906_vm3 = vcmp.eq.s32.totalorder %v5029_v52, %v5072_v13 }
  0xb6   : > { %v5031_v54 = vpop.permute.xlu1 %863 }
  0xb7   : > { %v5065_v10 = vpop.permute.xlu0 %890 }
  0xba   : > { %v5033_v56 = vpop.permute.xlu1 %866 }
  0xbb   : > { %v5074_v15 = vpop.permute.xlu0 %896  ;;  %vm910_vm6 = vcmp.eq.s32.totalorder %v5033_v56, %v5072_v13  ;;  %vm909_vm7 = vcmp.eq.s32.totalorder %v5033_v56, %v5067_v11 }
  0xbe   : > { %v5037_v58 = vpop.permute.xlu1 %869 }
  0xc0   : > { %v1082_v21 = vpop.permute.xlu0 %1081 }
  0xc1   : > { %vm1128_vm8 = vcmp.eq.s32.totalorder %v1082_v21, %v5072_v13  ;;  %vm1127_vm10 = vcmp.eq.s32.totalorder %v1082_v21, %v5067_v11  ;;  %v5185_v21 = vsel %vm903_vm11, 1.0, %v9230_v17 }
  0xc2   : > { %v5041_v60 = vpop.permute.xlu1 %872  ;;  %v5149_v38 = vsel %vm1128_vm8, 1.0, %v9230_v17  ;;  %v5166_v53 = vsel %vm1127_vm10, 1.0, %v9230_v17  ;;  %9594 = vst [vmem:[#allocation13_spill] sm:$0xff] %v5185_v21  ;;  %vm684_vm8 = vcmp.eq.s32.totalorder %v5013_v44, %v5072_v13  ;;  %vm683_vm10 = vcmp.eq.s32.totalorder %v5013_v44, %v5067_v11 }
  0xc3   : > { %9591 = vst [vmem:[#allocation10_spill] sm:$0xff] %v5149_v38  ;;  %9592 = vst [vmem:[#allocation11_spill] sm:$0xff] %v5166_v53  ;;  %v5332_v56 = vsel %vm684_vm8, 1.0, %v9230_v17  ;;  %vm912_vm8 = vcmp.eq.s32.totalorder %v5037_v58, %v5072_v13 }
  0xc4   : > { %9611 = vst [vmem:[#allocation30_spill] sm:$0xff] %v5332_v56 }
  0xc6   : > { %v5045_v62 = vpop.permute.xlu1 %875 }
  0xca   : > { %v5049_v0 = vpop.permute.xlu1 %878 }
  0xce   : > { %v5053_v2 = vpop.permute.xlu1 %881 }
  0xd2   : > { %v5059_v6 = vpop.permute.xlu1 %887 }
  0xd6   : > { %v5063_v8 = vpop.permute.xlu1 %893 }
  0xda   : > { %v5069_v12 = vpop.permute.xlu1 %899 }
  0xdf   : > { %v1079_v14 = vpop.permute.xlu1 %1078 }
  0xe0   : > { %vm1125_vm0 = vcmp.eq.s32.totalorder %v1079_v14, %v5067_v11  ;;  %vm1126_vm1 = vcmp.eq.s32.totalorder %v1079_v14, %v5072_v13 }
  0xe1   : > { %v5083_v18 = vsel %vm1125_vm0, 1.0, %v9230_v17  ;;  %v5086_v19 = vsel %vm1126_vm1, 1.0, %v9230_v17  ;;  %vm905_vm0 = vcmp.eq.s32.totalorder %v5029_v52, %v5067_v11  ;;  %vm685_vm1 = vcmp.eq.s32.totalorder %v5035_v57, %v5067_v11 }
  0xe2   : > { %9583 = vst [vmem:[#allocation2_spill] sm:$0xff] %v5083_v18  ;;  %9584 = vst [vmem:[#allocation3_spill] sm:$0xff] %v5086_v19 }
  0xe3   : > { %v5091_v20 = vpop.permute.xlu1 %1084 }
  0xe4   : > { %vm1129_vm4 = vcmp.eq.s32.totalorder %v5091_v20, %v5067_v11  ;;  %vm1130_vm5 = vcmp.eq.s32.totalorder %v5091_v20, %v5072_v13 }
  0xe7   : > { %v1088_v39 = vpop.permute.xlu1 %1087 }
  0xe8   : > { %vm1131_vm14 = vcmp.eq.s32.totalorder %v1088_v39, %v5067_v11  ;;  %vm1132_vm15 = vcmp.eq.s32.totalorder %v1088_v39, %v5072_v13  ;;  %v5248_v39 = vsel %vm906_vm3, 1.0, %v9230_v17 }
  0xe9   : > { %v5227_v43 = vsel %vm1131_vm14, 1.0, %v9230_v17  ;;  %9599 = vst [vmem:[#allocation18_spill] sm:$0xff] %v5248_v39  ;;  %vm689_vm14 = vcmp.eq.s32.totalorder %v5039_v59, %v5067_v11 }
  0xea   : > { %9597 = vst [vmem:[#allocation16_spill] sm:$0xff] %v5227_v43 }
 0x10d   : > { %v5080_v16 = vpop.f32.mrf.mxu0 }
 0x10e   : > { %v1221_v25 = vmul.f32 %v5083_v18, %v5080_v16  ;;  %v773_v27 = vmul.f32 %v5094_v22, %v5080_v16  ;;  %v997_v40 = vmul.f32 %v5139_v36, %v5080_v16  ;;  %v5262_v22 = vsel %vm1129_vm4, 1.0, %v9230_v17 }
 0x10f   : > { %v5100_v23 = vpop.f32.mrf.mxu0  ;;  %9601 = vst [vmem:[#allocation20_spill] sm:$0xff] %v5262_v22  ;;  %vm688_vm4 = vcmp.eq.s32.totalorder %v5015_v45, %v5072_v13 }
 0x110   : > { %v1222_v26 = vmul.f32 %v5086_v19, %v5100_v23  ;;  %v774_v28 = vmul.f32 %v5103_v24, %v5100_v23  ;;  %v998_v34 = vmul.f32 %v5121_v30, %v5100_v23 }
 0x111   : > { %v5115_v29 = vpop.f32.mrf.mxu0 }
 0x112   : > { %v1253_v32 = vadd.f32 %v1222_v26, %v1221_v25  ;;  %v805_v33 = vadd.f32 %v774_v28, %v773_v27  ;;  %v775_v41 = vmul.f32 %v5126_v31, %v5115_v29  ;;  %v1029_v4 = vadd.f32 %v998_v34, %v997_v40  ;;  %v5214_v34 = vpop.permute.xlu1 %1090 }
 0x113   : > { %v5133_v35 = vpop.f32.mrf.mxu0  ;;  %v1223_v27 = vmul.f32 %v5166_v53, %v5115_v29  ;;  %v999_v28 = vmul.f32 %v5185_v21, %v5115_v29  ;;  %v5315_v21 = vsel %vm909_vm7, 1.0, %v9230_v17  ;;  %vm1133_vm3 = vcmp.eq.s32.totalorder %v5214_v34, %v5067_v11 }
 0x114   : > { %1254 = vadd.xlane.f32.xlu1 %v1253_v32  ;;  %806 = vadd.xlane.f32.xlu0 %v805_v33  ;;  %v776_v42 = vmul.f32 %v5144_v37, %v5133_v35  ;;  %v1224_v14 = vmul.f32 %v5149_v38, %v5133_v35  ;;  %v1000_v25 = vmul.f32 %v5172_v55, %v5133_v35  ;;  %v5196_v32 = vsel %vm681_vm12, 1.0, %v9230_v17 }
 0x115   : > { %v5161_v51 = vpop.f32.mrf.mxu0  ;;  %9595 = vst [vmem:[#allocation14_spill] sm:$0xff] %v5196_v32  ;;  %v5210_v33 = vsel %vm682_vm13, 1.0, %v9230_v17  ;;  %9609 = vst [vmem:[#allocation28_spill] sm:$0xff] %v5315_v21  ;;  %vm908_vm12 = vcmp.eq.s32.totalorder %v5031_v54, %v5072_v13  ;;  %vm690_vm13 = vcmp.eq.s32.totalorder %v5039_v59, %v5072_v13  ;;  %v5353_v55 = vsel %vm683_vm10, 1.0, %v9230_v17 }
 0x116   : > { %v808_v9 = vadd.f32 %v776_v42, %v775_v41  ;;  %9596 = vst [vmem:[#allocation15_spill] sm:$0xff] %v5210_v33  ;;  %v1256_v40 = vadd.f32 %v1224_v14, %v1223_v27  ;;  %v1032_v41 = vadd.f32 %v1000_v25, %v999_v28  ;;  %v777_v14 = vmul.f32 %v5196_v32, %v5161_v51 }
 0x117   : > { %v5179_v26 = vpop.f32.mrf.mxu0  ;;  %9614 = vst [vmem:[#allocation33_spill] sm:$0xff] %v5353_v55  ;;  %v5439_v37 = vsel %vm1133_vm3, 1.0, %v9230_v17  ;;  %vm693_vm10 = vcmp.eq.s32.totalorder %v5043_v61, %v5067_v11  ;;  %v9260_v32 = vmov 6  }
 0x118   : > { %1030 = vadd.xlane.f32.xlu0 %v1029_v4  ;;  %809 = vadd.xlane.f32.xlu1 %v808_v9  ;;  %v778_v42 = vmul.f32 %v5210_v33, %v5179_v26  ;;  %v5232_v9 = vsel %vm1132_vm15, 1.0, %v9230_v17  ;;  %v1002_v36 = vmul.f32 %v5248_v39, %v5179_v26  ;;  %vm907_vm15 = vcmp.eq.s32.totalorder %v5031_v54, %v5067_v11 }
 0x119   : > { %v5204_v5 = vpop.f32.mrf.mxu0  ;;  %9598 = vst [vmem:[#allocation17_spill] sm:$0xff] %v5232_v9  ;;  %9622 = vst [vmem:[#allocation41_spill] sm:$0xff] %v5439_v37 }
 0x11a   : > { %v1227_v25 = vmul.f32 %v5227_v43, %v5204_v5 }
 0x11b   : > { %v5222_v4 = vpop.f32.mrf.mxu0 }
 0x11c   : > { %1257 = vadd.xlane.f32.xlu0 %v1256_v40  ;;  %1033 = vadd.xlane.f32.xlu1 %v1032_v41  ;;  %v1228_v27 = vmul.f32 %v5232_v9, %v5222_v4  ;;  %v5254_v40 = vsel %vm685_vm1, 1.0, %v9230_v17  ;;  %v811_v41 = vadd.f32 %v778_v42, %v777_v14  ;;  %v5272_v42 = vsel %vm905_vm0, 1.0, %v9230_v17 }
 0x11d   : > { %v5242_v28 = vpop.f32.mrf.mxu0  ;;  %9600 = vst [vmem:[#allocation19_spill] sm:$0xff] %v5254_v40  ;;  %9603 = vst [vmem:[#allocation22_spill] sm:$0xff] %v5272_v42  ;;  %v5278_v14 = vsel %vm686_vm2, 1.0, %v9230_v17  ;;  %v1001_v52 = vmul.f32 %v5272_v42, %v5161_v51  ;;  %vm914_vm0 = vcmp.eq.s32.totalorder %v5041_v60, %v5072_v13  ;;  %vm1134_vm1 = vcmp.eq.s32.totalorder %v5214_v34, %v5072_v13 }
 0x11e   : > { %v1262_v18 = vadd.f32 %v1228_v27, %v1227_v25  ;;  %9604 = vst [vmem:[#allocation23_spill] sm:$0xff] %v5278_v14  ;;  %v5284_v25 = vsel %vm1130_vm5, 1.0, %v9230_v17  ;;  %v1094_v27 = vpop.permute.xlu1 %1093  ;;  %v781_v30 = vmul.f32 %v5254_v40, %v5242_v28  ;;  %vm913_vm2 = vcmp.eq.s32.totalorder %v5041_v60, %v5067_v11 }
 0x11f   : > { %v5266_v19 = vpop.f32.mrf.mxu0  ;;  %9605 = vst [vmem:[#allocation24_spill] sm:$0xff] %v5284_v25  ;;  %vm1136_vm9 = vcmp.eq.s32.totalorder %v1094_v27, %v5072_v13  ;;  %v1035_v40 = vadd.f32 %v1002_v36, %v1001_v52  ;;  %v1226_v43 = vmul.f32 %v5284_v25, %v5179_v26  ;;  %vm1135_vm11 = vcmp.eq.s32.totalorder %v1094_v27, %v5067_v11 }
 0x120   : > { %9602 = vst [vmem:[#allocation21_spill] sm:$0xff] %v5266_v19  ;;  %812 = vadd.xlane.f32.xlu0 %v811_v41  ;;  %1263 = vadd.xlane.f32.xlu1 %v1262_v18  ;;  %v782_v57 = vmul.f32 %v5278_v14, %v5266_v19  ;;  %v1225_v41 = vmul.f32 %v5262_v22, %v5161_v51  ;;  %v5303_v18 = vsel %vm910_vm6, 1.0, %v9230_v17  ;;  %v5376_v27 = vsel %vm908_vm12, 1.0, %v9230_v17 }
 0x121   : > { %v5295_v20 = vpop.f32.mrf.mxu0  ;;  %9607 = vst [vmem:[#allocation26_spill] sm:$0xff] %v5303_v18  ;;  %v1006_v9 = vmul.f32 %v5303_v18, %v5266_v19  ;;  %9616 = vst [vmem:[#allocation35_spill] sm:$0xff] %v5376_v27  ;;  %vm687_vm6 = vcmp.eq.s32.totalorder %v5015_v45, %v5067_v11  ;;  %v5462_v60 = vsel %vm688_vm4, 1.0, %v9230_v17  ;;  %vm918_vm12 = vcmp.eq.s32.totalorder %v5049_v0, %v5072_v13 }
 0x122   : > { %9606 = vst [vmem:[#allocation25_spill] sm:$0xff] %v5295_v20  ;;  %v817_v24 = vadd.f32 %v782_v57, %v781_v30  ;;  %v1005_v30 = vmul.f32 %v5315_v21, %v5242_v28  ;;  %v1259_v52 = vadd.f32 %v1226_v43, %v1225_v41  ;;  %v780_v21 = vmul.f32 %v5332_v56, %v5222_v4 }
 0x123   : > { %v5309_v53 = vpop.f32.mrf.mxu0  ;;  %v5358_v43 = vsel %vm1135_vm11, 1.0, %v9230_v17  ;;  %v5396_v56 = vsel %vm907_vm15, 1.0, %v9230_v17  ;;  %9624 = vst [vmem:[#allocation43_spill] sm:$0xff] %v5462_v60  ;;  %vm911_vm11 = vcmp.eq.s32.totalorder %v5037_v58, %v5067_v11  ;;  %vm916_vm4 = vcmp.eq.s32.totalorder %v5045_v62, %v5072_v13 }
 0x124   : > { %9608 = vst [vmem:[#allocation27_spill] sm:$0xff] %v5309_v53  ;;  %1036 = vadd.xlane.f32.xlu0 %v1035_v40  ;;  %818 = vadd.xlane.f32.xlu1 %v817_v24  ;;  %v5337_v24 = vsel %vm1136_vm9, 1.0, %v9230_v17  ;;  %v5339_v40 = vpop.permute.xlu1 %1096  ;;  %v1041_v57 = vadd.f32 %v1006_v9, %v1005_v30  ;;  %9615 = vst [vmem:[#allocation34_spill] sm:$0xff] %v5358_v43  ;;  %v779_v9 = vmul.f32 %v5353_v55, %v5204_v5 }
 0x125   : > { %v5326_v36 = vpop.f32.mrf.mxu0  ;;  %9612 = vst [vmem:[#allocation31_spill] sm:$0xff] %v5337_v24  ;;  %v1232_v31 = vmul.f32 %v5337_v24, %v5309_v53  ;;  %v1231_v41 = vmul.f32 %v5358_v43, %v5295_v20  ;;  %v5382_v30 = vsel %vm690_vm13, 1.0, %v9230_v17  ;;  %v1004_v43 = vmul.f32 %v5376_v27, %v5222_v4  ;;  %9618 = vst [vmem:[#allocation37_spill] sm:$0xff] %v5396_v56 }
 0x126   : > { %9610 = vst [vmem:[#allocation29_spill] sm:$0xff] %v5326_v36  ;;  %9617 = vst [vmem:[#allocation36_spill] sm:$0xff] %v5382_v30  ;;  %vm694_vm9 = vcmp.eq.s32.totalorder %v5043_v61, %v5072_v13  ;;  %vm1138_vm13 = vcmp.eq.s32.totalorder %v5339_v40, %v5072_v13  ;;  %vm1137_vm15 = vcmp.eq.s32.totalorder %v5339_v40, %v5067_v11 }
 0x127   : > { %v5347_v38 = vpop.f32.mrf.mxu0  ;;  %v5567_v18 = vsel %vm1137_vm15, 1.0, %v9230_v17 }
 0x128   : > { %9613 = vst [vmem:[#allocation32_spill] sm:$0xff] %v5347_v38  ;;  %1260 = vadd.xlane.f32.xlu0 %v1259_v52  ;;  %1042 = vadd.xlane.f32.xlu1 %v1041_v57  ;;  %v814_v52 = vadd.f32 %v780_v21, %v779_v9  ;;  %v1268_v57 = vadd.f32 %v1232_v31, %v1231_v41  ;;  %v5402_v31 = vsel %vm689_vm14, 1.0, %v9230_v17  ;;  %v1100_v21 = vpop.permute.xlu1 %1099  ;;  %v5419_v41 = vsel %vm1134_vm1, 1.0, %v9230_v17 }
 0x129   : > { %v5370_v44 = vpop.f32.mrf.mxu0  ;;  %v786_v24 = vmul.f32 %v5382_v30, %v5347_v38  ;;  %9619 = vst [vmem:[#allocation38_spill] sm:$0xff] %v5402_v31  ;;  %v1003_v9 = vmul.f32 %v5396_v56, %v5204_v5  ;;  %v785_v54 = vmul.f32 %v5402_v31, %v5326_v36  ;;  %vm1140_vm5 = vcmp.eq.s32.totalorder %v1100_v21, %v5072_v13 }
 0x12a   : > { %9620 = vst [vmem:[#allocation39_spill] sm:$0xff] %v5419_v41  ;;  %v1230_v30 = vmul.f32 %v5419_v41, %v5266_v19  ;;  %vm1139_vm7 = vcmp.eq.s32.totalorder %v1100_v21, %v5067_v11  ;;  %v5481_v41 = vsel %vm687_vm6, 1.0, %v9230_v17  ;;  %v5504_v21 = vsel %vm912_vm8, 1.0, %v9230_v17  ;;  %9634 = vst [vmem:[#allocation53_spill] sm:$0xff] %v5567_v18 }
 0x12b   : > { %v5390_v55 = vpop.f32.mrf.mxu0  ;;  %v823_v31 = vadd.f32 %v786_v24, %v785_v54  ;;  %v5445_v24 = vsel %vm913_vm2, 1.0, %v9230_v17  ;;  %9626 = vst [vmem:[#allocation45_spill] sm:$0xff] %v5481_v41  ;;  %9628 = vst [vmem:[#allocation47_spill] sm:$0xff] %v5504_v21  ;;  %vm917_vm14 = vcmp.eq.s32.totalorder %v5049_v0, %v5067_v11  ;;  %vm691_vm2 = vcmp.eq.s32.totalorder %v5017_v46, %v5067_v11 }
 0x12c   : > { %815 = vadd.xlane.f32.xlu0 %v814_v52  ;;  %1269 = vadd.xlane.f32.xlu1 %v1268_v57  ;;  %v5425_v52 = vsel %vm914_vm0, 1.0, %v9230_v17  ;;  %v1038_v57 = vadd.f32 %v1004_v43, %v1003_v9  ;;  %9623 = vst [vmem:[#allocation42_spill] sm:$0xff] %v5445_v24  ;;  %v1229_v43 = vmul.f32 %v5439_v37, %v5242_v28 }
 0x12d   : > { %v5413_v59 = vpop.f32.mrf.mxu0  ;;  %9621 = vst [vmem:[#allocation40_spill] sm:$0xff] %v5425_v52  ;;  %v1010_v56 = vmul.f32 %v5425_v52, %v5347_v38  ;;  %v1009_v9 = vmul.f32 %v5445_v24, %v5326_v36  ;;  %v784_v24 = vmul.f32 %v5462_v60, %v5309_v53  ;;  %v5524_v60 = vsel %vm911_vm11, 1.0, %v9230_v17 }
 0x12e   : > { %v1265_v54 = vadd.f32 %v1230_v30, %v1229_v43  ;;  %v783_v30 = vmul.f32 %v5481_v41, %v5295_v20  ;;  %9630 = vst [vmem:[#allocation49_spill] sm:$0xff] %v5524_v60  ;;  %vm692_vm0 = vcmp.eq.s32.totalorder %v5017_v46, %v5072_v13  ;;  %vm697_vm6 = vcmp.eq.s32.totalorder %v5047_v63, %v5067_v11 }
 0x12f   : > { %v5433_v27 = vpop.f32.mrf.mxu0  ;;  %v5588_v0 = vsel %vm692_vm0, 1.0, %v9230_v17  ;;  %vm922_vm8 = vcmp.eq.s32.totalorder %v5061_v7, %v5072_v13  ;;  %v5627_v46 = vsel %vm916_vm4, 1.0, %v9230_v17  ;;  %vm920_vm0 = vcmp.eq.s32.totalorder %v5053_v2, %v5072_v13 }
 0x130   : > { %1039 = vadd.xlane.f32.xlu0 %v1038_v57  ;;  %824 = vadd.xlane.f32.xlu1 %v823_v31  ;;  %v5467_v31 = vsel %vm1140_vm5, 1.0, %v9230_v17  ;;  %v1047_v57 = vadd.f32 %v1010_v56, %v1009_v9  ;;  %v5486_v56 = vsel %vm1139_vm7, 1.0, %v9230_v17  ;;  %v5510_v9 = vsel %vm694_vm9, 1.0, %v9230_v17  ;;  %9636 = vst [vmem:[#allocation55_spill] sm:$0xff] %v5588_v0  ;;  %9640 = vst [vmem:[#allocation59_spill] sm:$0xff] %v5627_v46 }
 0x131   : > { %v5456_v34 = vpop.f32.mrf.mxu0  ;;  %9625 = vst [vmem:[#allocation44_spill] sm:$0xff] %v5467_v31  ;;  %v1236_v52 = vmul.f32 %v5467_v31, %v5390_v55  ;;  %9627 = vst [vmem:[#allocation46_spill] sm:$0xff] %v5486_v56  ;;  %v1235_v43 = vmul.f32 %v5486_v56, %v5370_v44  ;;  %v1008_v56 = vmul.f32 %v5504_v21, %v5309_v53 }
 0x132   : > { %9629 = vst [vmem:[#allocation48_spill] sm:$0xff] %v5510_v9  ;;  %v790_v31 = vmul.f32 %v5510_v9, %v5433_v27  ;;  %vm698_vm5 = vcmp.eq.s32.totalorder %v5047_v63, %v5072_v13  ;;  %vm915_vm7 = vcmp.eq.s32.totalorder %v5045_v62, %v5067_v11  ;;  %v5672_v63 = vsel %vm922_vm8, 1.0, %v9230_v17 }
 0x133   : > { %v5475_v37 = vpop.f32.mrf.mxu0  ;;  %9645 = vst [vmem:[#allocation64_spill] sm:$0xff] %v5672_v63  ;;  %vm926_vm4 = vcmp.eq.s32.totalorder %v5065_v10, %v5072_v13  ;;  %vm700_vm8 = vcmp.eq.s32.totalorder %v5021_v48, %v5072_v13 }
 0x134   : > { %1266 = vadd.xlane.f32.xlu0 %v1265_v54  ;;  %1048 = vadd.xlane.f32.xlu1 %v1047_v57  ;;  %v820_v54 = vadd.f32 %v784_v24, %v783_v30  ;;  %v1274_v57 = vadd.f32 %v1236_v52, %v1235_v43  ;;  %v5530_v52 = vsel %vm693_vm10, 1.0, %v9230_v17  ;;  %v1106_v24 = vpop.permute.xlu0 %1105  ;;  %v1007_v30 = vmul.f32 %v5524_v60, %v5295_v20 }
 0x135   : > { %v5498_v45 = vpop.f32.mrf.mxu0  ;;  %9631 = vst [vmem:[#allocation50_spill] sm:$0xff] %v5530_v52  ;;  %v789_v58 = vmul.f32 %v5530_v52, %v5413_v59  ;;  %vm1144_vm1 = vcmp.eq.s32.totalorder %v1106_v24, %v5072_v13  ;;  %v5547_v43 = vsel %vm1138_vm13, 1.0, %v9230_v17  ;;  %vm1143_vm3 = vcmp.eq.s32.totalorder %v1106_v24, %v5067_v11 }
 0x136   : > { %9632 = vst [vmem:[#allocation51_spill] sm:$0xff] %v5547_v43  ;;  %v1234_v9 = vmul.f32 %v5547_v43, %v5347_v38  ;;  %v5593_v40 = vsel %vm1144_vm1, 1.0, %v9230_v17  ;;  %v5633_v24 = vsel %vm698_vm5, 1.0, %v9230_v17  ;;  %vm921_vm10 = vcmp.eq.s32.totalorder %v5061_v7, %v5067_v11 }
 0x137   : > { %v5518_v41 = vpop.f32.mrf.mxu0  ;;  %v829_v52 = vadd.f32 %v790_v31, %v789_v58  ;;  %v5573_v31 = vsel %vm917_vm14, 1.0, %v9230_v17  ;;  %9637 = vst [vmem:[#allocation56_spill] sm:$0xff] %v5593_v40  ;;  %9641 = vst [vmem:[#allocation60_spill] sm:$0xff] %v5633_v24  ;;  %v5647_v43 = vsel %vm915_vm7, 1.0, %v9230_v17  ;;  %vm695_vm14 = vcmp.eq.s32.totalorder %v5019_v47, %v5067_v11 }
 0x138   : > { %821 = vadd.xlane.f32.xlu0 %v820_v54  ;;  %1275 = vadd.xlane.f32.xlu1 %v1274_v57  ;;  %v5553_v54 = vsel %vm918_vm12, 1.0, %v9230_v17  ;;  %v1044_v57 = vadd.f32 %v1008_v56, %v1007_v30  ;;  %9635 = vst [vmem:[#allocation54_spill] sm:$0xff] %v5573_v31  ;;  %v1233_v56 = vmul.f32 %v5567_v18, %v5326_v36  ;;  %v5607_v18 = vsel %vm691_vm2, 1.0, %v9230_v17 }
 0x139   : > { %v5541_v61 = vpop.f32.mrf.mxu0  ;;  %9633 = vst [vmem:[#allocation52_spill] sm:$0xff] %v5553_v54  ;;  %v1014_v60 = vmul.f32 %v5553_v54, %v5433_v27  ;;  %v1013_v30 = vmul.f32 %v5573_v31, %v5413_v59  ;;  %v1240_v31 = vmul.f32 %v5593_v40, %v5475_v37  ;;  %9638 = vst [vmem:[#allocation57_spill] sm:$0xff] %v5607_v18 }
 0x13a   : > { %v794_v40 = vmul.f32 %v5633_v24, %v5518_v41  ;;  %9642 = vst [vmem:[#allocation61_spill] sm:$0xff] %v5647_v43  ;;  %vm696_vm12 = vcmp.eq.s32.totalorder %v5019_v47, %v5072_v13  ;;  %v1018_v24 = vmul.f32 %v5672_v63, %v5518_v41  ;;  %vm702_vm1 = vcmp.eq.s32.totalorder %v5051_v1, %v5072_v13 }
 0x13b   : > { %v5561_v21 = vpop.f32.mrf.mxu0  ;;  %v1053_v58 = vadd.f32 %v1014_v60, %v1013_v30  ;;  %v5612_v60 = vsel %vm1143_vm3, 1.0, %v9230_v17  ;;  %v5706_v7 = vsel %vm696_vm12, 1.0, %v9230_v17  ;;  %vm701_vm2 = vcmp.eq.s32.totalorder %v5051_v1, %v5067_v11 }
 0x13c   : > { %1045 = vadd.xlane.f32.xlu0 %v1044_v57  ;;  %830 = vadd.xlane.f32.xlu1 %v829_v52  ;;  %v1271_v52 = vadd.f32 %v1234_v9, %v1233_v56  ;;  %v788_v57 = vmul.f32 %v5588_v0, %v5390_v55  ;;  %9639 = vst [vmem:[#allocation58_spill] sm:$0xff] %v5612_v60  ;;  %v1103_v9 = vpop.permute.xlu1 %1102  ;;  %9648 = vst [vmem:[#allocation67_spill] sm:$0xff] %v5706_v7  ;;  %v5745_v47 = vsel %vm920_vm0, 1.0, %v9230_v17 }
 0x13d   : > { %v5601_v54 = vpop.f32.mrf.mxu0  ;;  %v787_v56 = vmul.f32 %v5607_v18, %v5370_v44  ;;  %v1239_v30 = vmul.f32 %v5612_v60, %v5456_v34  ;;  %vm1142_vm9 = vcmp.eq.s32.totalorder %v1103_v9, %v5072_v13  ;;  %v1012_v60 = vmul.f32 %v5627_v46, %v5390_v55  ;;  %9652 = vst [vmem:[#allocation71_spill] sm:$0xff] %v5745_v47 }
 0x13e   : > { %vm1141_vm11 = vcmp.eq.s32.totalorder %v1103_v9, %v5067_v11  ;;  %v5666_v62 = vsel %vm1142_vm9, 1.0, %v9230_v17  ;;  %vm919_vm3 = vcmp.eq.s32.totalorder %v5053_v2, %v5067_v11  ;;  %vm706_vm9 = vcmp.eq.s32.totalorder %v5055_v3, %v5072_v13 }
 0x13f   : > { %v5641_v18 = vpop.f32.mrf.mxu0  ;;  %9644 = vst [vmem:[#allocation63_spill] sm:$0xff] %v5666_v62  ;;  %v5685_v46 = vsel %vm1141_vm11, 1.0, %v9230_v17  ;;  %v5791_v2 = vsel %vm926_vm4, 1.0, %v9230_v17  ;;  %vm705_vm11 = vcmp.eq.s32.totalorder %v5055_v3, %v5067_v11  ;;  %vm924_vm12 = vcmp.eq.s32.totalorder %v5059_v6, %v5072_v13 }
 0x140   : > { %1272 = vadd.xlane.f32.xlu0 %v1271_v52  ;;  %1054 = vadd.xlane.f32.xlu1 %v1053_v58  ;;  %v826_v52 = vadd.f32 %v788_v57, %v787_v56  ;;  %v1280_v58 = vadd.f32 %v1240_v31, %v1239_v30  ;;  %v5653_v31 = vsel %vm697_vm6, 1.0, %v9230_v17  ;;  %v1112_v57 = vpop.permute.xlu0 %1111  ;;  %v1011_v56 = vmul.f32 %v5647_v43, %v5370_v44 }
 0x141   : > { %9643 = vst [vmem:[#allocation62_spill] sm:$0xff] %v5653_v31  ;;  %v793_v30 = vmul.f32 %v5653_v31, %v5498_v45  ;;  %vm1148_vm13 = vcmp.eq.s32.totalorder %v1112_v57, %v5072_v13  ;;  %v1238_v31 = vmul.f32 %v5666_v62, %v5433_v27  ;;  %v5680_v43 = vpop.f32.mrf.mxu0  ;;  %9646 = vst [vmem:[#allocation65_spill] sm:$0xff] %v5685_v46  ;;  %v5765_v62 = vsel %vm919_vm3, 1.0, %v9230_v17 }
 0x142   : > { %vm1147_vm15 = vcmp.eq.s32.totalorder %v1112_v57, %v5067_v11  ;;  %v5711_v9 = vsel %vm1148_vm13, 1.0, %v9230_v17  ;;  %v5751_v57 = vsel %vm702_vm1, 1.0, %v9230_v17  ;;  %vm925_vm6 = vcmp.eq.s32.totalorder %v5065_v10, %v5067_v11  ;;  %9654 = vst [vmem:[#allocation73_spill] sm:$0xff] %v5765_v62  ;;  %9657 = vst [vmem:[#allocation76_spill] sm:$0xff] %v5791_v2 }
 0x143   : > { %9649 = vst [vmem:[#allocation68_spill] sm:$0xff] %v5711_v9  ;;  %v5719_v63 = vpop.f32.mrf.mxu0  ;;  %9653 = vst [vmem:[#allocation72_spill] sm:$0xff] %v5751_v57  ;;  %v5822_v10 = vsel %vm706_vm9, 1.0, %v9230_v17  ;;  %vm930_vm13 = vcmp.eq.s32.totalorder %v5074_v15, %v5072_v13  ;;  %v5837_v3 = vsel %vm705_vm11, 1.0, %v9230_v17  ;;  %vm704_vm4 = vcmp.eq.s32.totalorder %v5023_v49, %v5072_v13 }
 0x144   : > { %827 = vadd.xlane.f32.xlu0 %v826_v52  ;;  %1281 = vadd.xlane.f32.xlu1 %v1280_v58  ;;  %v1050_v52 = vadd.f32 %v1012_v60, %v1011_v56  ;;  %v835_v58 = vadd.f32 %v794_v40, %v793_v30  ;;  %v5691_v40 = vsel %vm921_vm10, 1.0, %v9230_v17  ;;  %v1237_v60 = vmul.f32 %v5685_v46, %v5413_v59 }
 0x145   : > { %9647 = vst [vmem:[#allocation66_spill] sm:$0xff] %v5691_v40  ;;  %v1017_v56 = vmul.f32 %v5691_v40, %v5498_v45  ;;  %v1244_v40 = vmul.f32 %v5711_v9, %v5561_v21  ;;  %v5725_v46 = vsel %vm695_vm14, 1.0, %v9230_v17  ;;  %v798_v9 = vmul.f32 %v5751_v57, %v5641_v18  ;;  %9660 = vst [vmem:[#allocation79_spill] sm:$0xff] %v5822_v10 }
 0x146   : > { %v1277_v30 = vadd.f32 %v1238_v31, %v1237_v60  ;;  %9650 = vst [vmem:[#allocation69_spill] sm:$0xff] %v5725_v46  ;;  %v1109_v31 = vpop.permute.xlu1 %1108  ;;  %v791_v60 = vmul.f32 %v5725_v46, %v5456_v34  ;;  %v5759_v46 = vpop.f32.mrf.mxu0  ;;  %vm699_vm10 = vcmp.eq.s32.totalorder %v5021_v48, %v5067_v11  ;;  %9662 = vst [vmem:[#allocation81_spill] sm:$0xff] %v5837_v3  ;;  %v5862_v48 = vsel %vm924_vm12, 1.0, %v9230_v17 }
 0x147   : > { %vm1146_vm5 = vcmp.eq.s32.totalorder %v1109_v31, %v5072_v13  ;;  %vm1145_vm7 = vcmp.eq.s32.totalorder %v1109_v31, %v5067_v11  ;;  %vm929_vm14 = vcmp.eq.s32.totalorder %v5074_v15, %v5067_v11  ;;  %9665 = vst [vmem:[#allocation84_spill] sm:$0xff] %v5862_v48  ;;  %vm927_vm9 = vcmp.eq.s32.totalorder %v5063_v8, %v5067_v11 }
 0x148   : > { %1051 = vadd.xlane.f32.xlu0 %v1050_v52  ;;  %836 = vadd.xlane.f32.xlu1 %v835_v58  ;;  %v1059_v52 = vadd.f32 %v1018_v24, %v1017_v56  ;;  %v792_v58 = vmul.f32 %v5706_v7, %v5475_v37  ;;  %v5730_v24 = vsel %vm1147_vm15, 1.0, %v9230_v17  ;;  %v5785_v1 = vsel %vm1146_vm5, 1.0, %v9230_v17  ;;  %v5799_v31 = vpop.f32.mrf.mxu0 }
 0x149   : > { %9651 = vst [vmem:[#allocation70_spill] sm:$0xff] %v5730_v24  ;;  %v1243_v56 = vmul.f32 %v5730_v24, %v5541_v61  ;;  %v1016_v24 = vmul.f32 %v5745_v47, %v5475_v37  ;;  %9656 = vst [vmem:[#allocation75_spill] sm:$0xff] %v5785_v1  ;;  %v5802_v57 = vsel %vm1145_vm7, 1.0, %v9230_v17  ;;  %vm923_vm15 = vcmp.eq.s32.totalorder %v5059_v6, %v5067_v11 }
 0x14a   : > { %9658 = vst [vmem:[#allocation77_spill] sm:$0xff] %v5802_v57  ;;  %vm707_vm11 = vcmp.eq.s32.totalorder %v5025_v50, %v5067_v11  ;;  %vm932_vm12 = vcmp.eq.s32.totalorder %v5069_v12, %v5072_v13 }
 0x14c   : > { %1278 = vadd.xlane.f32.xlu0 %v1277_v30  ;;  %1060 = vadd.xlane.f32.xlu1 %v1059_v52  ;;  %v832_v30 = vadd.f32 %v792_v58, %v791_v60  ;;  %v1286_v52 = vadd.f32 %v1244_v40, %v1243_v56  ;;  %v5771_v40 = vsel %vm701_vm2, 1.0, %v9230_v17  ;;  %v1015_v58 = vmul.f32 %v5765_v62, %v5456_v34  ;;  %v5875_v62 = vpop.f32.mrf.mxu0 }
 0x14d   : > { %9655 = vst [vmem:[#allocation74_spill] sm:$0xff] %v5771_v40  ;;  %v797_v60 = vmul.f32 %v5771_v40, %v5601_v54  ;;  %v1022_v40 = vmul.f32 %v5791_v2, %v5641_v18 }
 0x14e   : > { %v1056_v56 = vadd.f32 %v1016_v24, %v1015_v58  ;;  %v5808_v24 = vsel %vm925_vm6, 1.0, %v9230_v17  ;;  %v1241_v58 = vmul.f32 %v5802_v57, %v5498_v45  ;;  %v802_v57 = vmul.f32 %v5822_v10, %v5799_v31 }
 0x14f   : > { %9659 = vst [vmem:[#allocation78_spill] sm:$0xff] %v5808_v24  ;;  %vm703_vm6 = vcmp.eq.s32.totalorder %v5023_v49, %v5067_v11 }
 0x150   : > { %833 = vadd.xlane.f32.xlu0 %v832_v30  ;;  %1287 = vadd.xlane.f32.xlu1 %v1286_v52  ;;  %v841_v30 = vadd.f32 %v798_v9, %v797_v60  ;;  %v1242_v52 = vmul.f32 %v5785_v1, %v5518_v41  ;;  %v1118_v9 = vpop.permute.xlu0 %1117  ;;  %v1021_v60 = vmul.f32 %v5808_v24, %v5601_v54  ;;  %v5845_v1 = vsel %vm699_vm10, 1.0, %v9230_v17 }
 0x151   : > { %9663 = vst [vmem:[#allocation82_spill] sm:$0xff] %v5845_v1  ;;  %vm1152_vm1 = vcmp.eq.s32.totalorder %v1118_v9, %v5072_v13  ;;  %vm1151_vm2 = vcmp.eq.s32.totalorder %v1118_v9, %v5067_v11  ;;  %vm708_vm10 = vcmp.eq.s32.totalorder %v5025_v50, %v5072_v13 }
 0x152   : > { %v1065_v24 = vadd.f32 %v1022_v40, %v1021_v60  ;;  %v1115_v40 = vpop.permute.xlu1 %1114  ;;  %v5854_v60 = vsel %vm930_vm13, 1.0, %v9230_v17  ;;  %vm931_vm13 = vcmp.eq.s32.totalorder %v5069_v12, %v5067_v11 }
 0x153   : > { %9664 = vst [vmem:[#allocation83_spill] sm:$0xff] %v5854_v60  ;;  %vm1150_vm0 = vcmp.eq.s32.totalorder %v1115_v40, %v5072_v13  ;;  %vm1149_vm3 = vcmp.eq.s32.totalorder %v1115_v40, %v5067_v11  ;;  %v5935_v40 = vsel %vm704_vm4, 1.0, %v9230_v17 }
 0x154   : > { %1057 = vadd.xlane.f32.xlu0 %v1056_v56  ;;  %842 = vadd.xlane.f32.xlu1 %v841_v30  ;;  %v5830_v56 = vsel %vm700_vm8, 1.0, %v9230_v17  ;;  %v1283_v30 = vadd.f32 %v1242_v52, %v1241_v58  ;;  %v795_v52 = vmul.f32 %v5845_v1, %v5541_v61  ;;  %v801_v58 = vmul.f32 %v5837_v3, %v5759_v46 }
 0x155   : > { %9661 = vst [vmem:[#allocation80_spill] sm:$0xff] %v5830_v56  ;;  %v796_v2 = vmul.f32 %v5830_v56, %v5561_v21  ;;  %v1020_v1 = vmul.f32 %v5862_v48, %v5561_v21  ;;  %v1026_v3 = vmul.f32 %v5854_v60, %v5799_v31  ;;  %v5872_v56 = vsel %vm929_vm14, 1.0, %v9230_v17  ;;  %9673 = vst [vmem:[#allocation92_spill] sm:$0xff] %v5935_v40  ;;  %v6075_v48 = vld [vmem:[%s4889_s7 + $0x70] sm:$0xff] }
 0x156   : > { %v847_v10 = vadd.f32 %v802_v57, %v801_v58  ;;  %9666 = vst [vmem:[#allocation85_spill] sm:$0xff] %v5872_v56  ;;  %v5881_v57 = vsel %vm923_vm15, 1.0, %v9230_v17  ;;  %v1025_v15 = vmul.f32 %v5872_v56, %v5759_v46  ;;  %v5899_v6 = vsel %vm1150_vm0, 1.0, %v9230_v17 }
 0x157   : > { %9667 = vst [vmem:[#allocation86_spill] sm:$0xff] %v5881_v57  ;;  %9669 = vst [vmem:[#allocation88_spill] sm:$0xff] %v5899_v6  ;;  %v5910_v60 = vsel %vm1151_vm2, 1.0, %v9230_v17  ;;  %vm928_vm8 = vcmp.eq.s32.totalorder %v5063_v8, %v5072_v13  ;;  %v5964_v8 = vsel %vm927_vm9, 1.0, %v9230_v17 }
 0x158   : > { %1284 = vadd.xlane.f32.xlu0 %v1283_v30  ;;  %1066 = vadd.xlane.f32.xlu1 %v1065_v24  ;;  %v1124_v24 = vpop.permute.xlu0 %1123  ;;  %v838_v30 = vadd.f32 %v796_v2, %v795_v52  ;;  %v1019_v2 = vmul.f32 %v5881_v57, %v5541_v61  ;;  %v5893_v52 = vsel %vm1152_vm1, 1.0, %v9230_v17  ;;  %v1071_v58 = vadd.f32 %v1026_v3, %v1025_v15  ;;  %v5912_v57 = vpop.f32.mrf.mxu0 }
 0x159   : > { %9668 = vst [vmem:[#allocation87_spill] sm:$0xff] %v5893_v52  ;;  %vm1156_vm5 = vcmp.eq.s32.totalorder %v1124_v24, %v5072_v13  ;;  %v1248_v56 = vmul.f32 %v5893_v52, %v5719_v63  ;;  %9670 = vst [vmem:[#allocation89_spill] sm:$0xff] %v5910_v60  ;;  %vm1155_vm7 = vcmp.eq.s32.totalorder %v1124_v24, %v5067_v11  ;;  %v5948_v24 = vsel %vm703_vm6, 1.0, %v9230_v17  ;;  %v6063_v52 = vld [vmem:[%s4889_s7 + $0x60] sm:$0xff] }
 0x15a   : > { %v5929_v9 = vsel %vm1156_vm5, 1.0, %v9230_v17  ;;  %9675 = vst [vmem:[#allocation94_spill] sm:$0xff] %v5948_v24  ;;  %9677 = vst [vmem:[#allocation96_spill] sm:$0xff] %v5964_v8 }
 0x15b   : > { %9672 = vst [vmem:[#allocation91_spill] sm:$0xff] %v5929_v9 }
 0x15c   : > { %839 = vadd.xlane.f32.xlu0 %v838_v30  ;;  %848 = vadd.xlane.f32.xlu1 %v847_v10  ;;  %v1062_v10 = vadd.f32 %v1020_v1, %v1019_v2  ;;  %v1246_v30 = vmul.f32 %v5899_v6, %v5641_v18  ;;  %v5917_v1 = vsel %vm1149_vm3, 1.0, %v9230_v17  ;;  %v1247_v2 = vmul.f32 %v5910_v60, %v5680_v43  ;;  %v6067_v6 = vld [vmem:[%s4889_s7 + $0x78] sm:$0xff] }
 0x15d   : > { %9671 = vst [vmem:[#allocation90_spill] sm:$0xff] %v5917_v1  ;;  %v1245_v3 = vmul.f32 %v5917_v1, %v5601_v54  ;;  %v1252_v60 = vmul.f32 %v5929_v9, %v5912_v57  ;;  %v5942_v1 = vsel %vm1155_vm7, 1.0, %v9230_v17 }
 0x15e   : > { %9674 = vst [vmem:[#allocation93_spill] sm:$0xff] %v5942_v1 }
 0x15f   : > { %v1289_v15 = vadd.f32 %v1246_v30, %v1245_v3  ;;  %v1251_v30 = vmul.f32 %v5942_v1, %v5875_v62  ;;  %v5957_v3 = vsel %vm928_vm8, 1.0, %v9230_v17 }
 0x160   : > { %1063 = vadd.xlane.f32.xlu0 %v1062_v10  ;;  %1072 = vadd.xlane.f32.xlu1 %v1071_v58  ;;  %v1292_v10 = vadd.f32 %v1248_v56, %v1247_v2  ;;  %v800_v58 = vmul.f32 %v5935_v40, %v5719_v63  ;;  %v799_v56 = vmul.f32 %v5948_v24, %v5680_v43 }
 0x161   : > { %9676 = vst [vmem:[#allocation95_spill] sm:$0xff] %v5957_v3  ;;  %v1298_v2 = vadd.f32 %v1252_v60, %v1251_v30  ;;  %v1024_v9 = vmul.f32 %v5957_v3, %v5719_v63  ;;  %v5978_v30 = vsel %vm707_vm11, 1.0, %v9230_v17 }
 0x162   : > { %v844_v49 = vadd.f32 %v800_v58, %v799_v56  ;;  %v1121_v56 = vpop.permute.xlu1 %1120  ;;  %9679 = vst [vmem:[#allocation98_spill] sm:$0xff] %v5978_v30  ;;  %v803_v50 = vmul.f32 %v5978_v30, %v5875_v62  ;;  %v6043_v30 = vld [vmem:[%s4889_s7 + $0x40] sm:$0xff] }
 0x163   : > { %vm1154_vm14 = vcmp.eq.s32.totalorder %v1121_v56, %v5072_v13  ;;  %vm1153_vm15 = vcmp.eq.s32.totalorder %v1121_v56, %v5067_v11 }
 0x164   : > { %1290 = vadd.xlane.f32.xlu0 %v1289_v15  ;;  %1293 = vadd.xlane.f32.xlu1 %v1292_v10  ;;  %v1023_v15 = vmul.f32 %v5964_v8, %v5680_v43  ;;  %v5971_v10 = vsel %vm708_vm10, 1.0, %v9230_v17  ;;  %v6002_v1 = vsel %vm1153_vm15, 1.0, %v9230_v17 }
 0x165   : > { %9678 = vst [vmem:[#allocation97_spill] sm:$0xff] %v5971_v10  ;;  %v804_v58 = vmul.f32 %v5971_v10, %v5912_v57  ;;  %9683 = vst [vmem:[#allocation102_spill] sm:$0xff] %v6002_v1  ;;  %v1249_v56 = vmul.f32 %v6002_v1, %v5759_v46  ;;  %v6039_v1 = vld [vmem:[%s4889_s7 + $0x48] sm:$0xff] }
 0x166   : > { %v1068_v60 = vadd.f32 %v1024_v9, %v1023_v15  ;;  %v5991_v15 = vsel %vm931_vm13, 1.0, %v9230_v17  ;;  %v6055_v10 = vld [vmem:[%s4889_s7 + $0x68] sm:$0xff] }
 0x167   : > { %v850_v9 = vadd.f32 %v804_v58, %v803_v50  ;;  %9681 = vst [vmem:[#allocation100_spill] sm:$0xff] %v5991_v15  ;;  %v1027_v12 = vmul.f32 %v5991_v15, %v5875_v62  ;;  %v6007_v15 = vld [vmem:[%s4889_s7 + $0x8] sm:$0xff] }
 0x168   : > { %845 = vadd.xlane.f32.xlu0 %v844_v49  ;;  %1299 = vadd.xlane.f32.xlu1 %v1298_v2  ;;  %v5985_v49 = vsel %vm932_vm12, 1.0, %v9230_v17 }
 0x169   : > { %9680 = vst [vmem:[#allocation99_spill] sm:$0xff] %v5985_v49  ;;  %v1028_v2 = vmul.f32 %v5985_v49, %v5912_v57  ;;  %v6051_v49 = vld [vmem:[%s4889_s7 + $0x50] sm:$0xff] }
 0x16b   : > { %v1074_v58 = vadd.f32 %v1028_v2, %v1027_v12  ;;  %v6011_v2 = vld [vmem:[%s4889_s7 + $0x10] sm:$0xff]  ;;  %v6015_v12 = vld [vmem:[%s4889_s7 + $0x18] sm:$0xff] }
 0x16c   : > { %1069 = vadd.xlane.f32.xlu0 %v1068_v60  ;;  %v5997_v60 = vsel %vm1154_vm14, 1.0, %v9230_v17  ;;  %v6035_v17 = vld [vmem:[%s4889_s7 + $0x38] sm:$0xff] }
 0x16d   : > { %9682 = vst [vmem:[#allocation101_spill] sm:$0xff] %v5997_v60  ;;  %v1250_v50 = vmul.f32 %v5997_v60, %v5799_v31  ;;  %v6047_v60 = vld [vmem:[%s4889_s7 + $0x58] sm:$0xff] }
 0x170   : > { %851 = vadd.xlane.f32.xlu0 %v850_v9  ;;  %v1295_v9 = vadd.f32 %v1250_v50, %v1249_v56  ;;  %v6023_v50 = vld [vmem:[%s4889_s7 + $0x28] sm:$0xff]  ;;  %v6027_v56 = vld [vmem:[%s4889_s7 + $0x30] sm:$0xff] }
 0x174   : > { %1075 = vadd.xlane.f32.xlu0 %v1074_v58  ;;  %v6019_v58 = vld [vmem:[%s4889_s7 + $0x20] sm:$0xff] }
 0x178   : > { %1296 = vadd.xlane.f32.xlu0 %v1295_v9  ;;  %v6031_v9 = vld [vmem:[%s4889_s7] sm:$0xff] }
 0x179   : > { %1305 = vperm.xlu1 %4437, %v6007_v15  }
 0x17d   : > { %1308 = vperm.xlu1 %4437, %v6011_v2  }
 0x181   : > { %1311 = vperm.xlu1 %4437, %v6015_v12  }
 0x185   : > { %1314 = vperm.xlu1 %4437, %v6019_v58  }
 0x189   : > { %1317 = vperm.xlu1 %4437, %v6023_v50  }
 0x18d   : > { %1320 = vperm.xlu1 %4437, %v6027_v56  }
 0x18e   : > { %1302 = vperm.xlu0 %4436, %v6031_v9  }
 0x191   : > { %1323 = vperm.xlu1 %4437, %v6035_v17  }
 0x192   : > { %1329 = vperm.xlu0 %4436, %v6039_v1  }
 0x195   : > { %1326 = vperm.xlu1 %4437, %v6043_v30  }
 0x196   : > { %1335 = vperm.xlu0 %4436, %v6047_v60  }
 0x199   : > { %1332 = vperm.xlu1 %4437, %v6051_v49  }
 0x19a   : > { %1341 = vperm.xlu0 %4436, %v6055_v10  }
 0x19d   : > { %v6058_v8 = vpop.xlane.xlu1 %1254  ;;  %v6060_v24 = vpop.xlane.xlu0 %806  ;;  %1338 = vperm.xlu1 %4437, %v6063_v52  }
 0x19e   : > { %9684 = vst [vmem:[#allocation103_spill] sm:$0xff] %v6058_v8  ;;  %9685 = vst [vmem:[#allocation104_spill] sm:$0xff] %v6060_v24  ;;  %1347 = vperm.xlu0 %4436, %v6067_v6   ;;  %v9271_v24 = vmov 4  }
 0x1a1   : > { %v6070_v3 = vpop.xlane.xlu0 %1030  ;;  %v6072_v40 = vpop.xlane.xlu1 %809  ;;  %1344 = vperm.xlu1 %4437, %v6075_v48  }
 0x1a2   : > { %9686 = vst [vmem:[#allocation105_spill] sm:$0xff] %v6070_v3  ;;  %9687 = vst [vmem:[#allocation106_spill] sm:$0xff] %v6072_v40  ;;  %4440 = vset.pattern.permute.xlu0 %v9260_v32 }
 0x1a5   : > { %v6078_v47 = vpop.xlane.xlu0 %1257  ;;  %v6080_v7 = vpop.xlane.xlu1 %1033  ;;  %4438 = vset.pattern.permute.xlu1 %v9271_v24 }
 0x1a6   : > { %9688 = vst [vmem:[#allocation107_spill] sm:$0xff] %v6078_v47  ;;  %9689 = vst [vmem:[#allocation108_spill] sm:$0xff] %v6080_v7 }
 0x1a9   : > { %v6082_v0 = vpop.xlane.xlu0 %812  ;;  %v6084_v14 = vpop.xlane.xlu1 %1263 }
 0x1aa   : > { %9690 = vst [vmem:[#allocation109_spill] sm:$0xff] %v6082_v0  ;;  %9691 = vst [vmem:[#allocation110_spill] sm:$0xff] %v6084_v14 }
 0x1ad   : > { %v6086_v22 = vpop.xlane.xlu0 %1036  ;;  %v6088_v42 = vpop.xlane.xlu1 %818 }
 0x1ae   : > { %9692 = vst [vmem:[#allocation111_spill] sm:$0xff] %v6086_v22  ;;  %9693 = vst [vmem:[#allocation112_spill] sm:$0xff] %v6088_v42 }
 0x1b1   : > { %v6091_v25 = vpop.xlane.xlu0 %1260  ;;  %v6093_v39 = vpop.xlane.xlu1 %1042 }
 0x1b2   : > { %9694 = vst [vmem:[#allocation113_spill] sm:$0xff] %v6091_v25  ;;  %9695 = vst [vmem:[#allocation114_spill] sm:$0xff] %v6093_v39 }
 0x1b5   : > { %v6095_v33 = vpop.xlane.xlu0 %815  ;;  %v6097_v47 = vpop.xlane.xlu1 %1269 }
 0x1b6   : > { %9696 = vst [vmem:[#allocation115_spill] sm:$0xff] %v6095_v33  ;;  %9697 = vst [vmem:[#allocation116_spill] sm:$0xff] %v6097_v47 }
 0x1b9   : > { %v6099_v8 = vpop.xlane.xlu0 %1039  ;;  %v6101_v40 = vpop.xlane.xlu1 %824 }
 0x1ba   : > { %9698 = vst [vmem:[#allocation117_spill] sm:$0xff] %v6099_v8  ;;  %9699 = vst [vmem:[#allocation118_spill] sm:$0xff] %v6101_v40 }
 0x1bd   : > { %v6103_v14 = vpop.xlane.xlu0 %1266  ;;  %v6105_v7 = vpop.xlane.xlu1 %1048 }
 0x1be   : > { %9700 = vst [vmem:[#allocation119_spill] sm:$0xff] %v6103_v14  ;;  %9701 = vst [vmem:[#allocation120_spill] sm:$0xff] %v6105_v7 }
 0x1c1   : > { %v6108_v32 = vpop.xlane.xlu0 %821  ;;  %v6110_v3 = vpop.xlane.xlu1 %1275 }
 0x1c2   : > { %9702 = vst [vmem:[#allocation121_spill] sm:$0xff] %v6108_v32  ;;  %9703 = vst [vmem:[#allocation122_spill] sm:$0xff] %v6110_v3 }
 0x1c5   : > { %v6112_v42 = vpop.xlane.xlu0 %1045  ;;  %v6114_v33 = vpop.xlane.xlu1 %830 }
 0x1c6   : > { %9704 = vst [vmem:[#allocation123_spill] sm:$0xff] %v6112_v42  ;;  %9705 = vst [vmem:[#allocation124_spill] sm:$0xff] %v6114_v33 }
 0x1c9   : > { %v6116_v47 = vpop.xlane.xlu0 %1272  ;;  %v6118_v8 = vpop.xlane.xlu1 %1054 }
 0x1ca   : > { %9706 = vst [vmem:[#allocation125_spill] sm:$0xff] %v6116_v47  ;;  %9707 = vst [vmem:[#allocation126_spill] sm:$0xff] %v6118_v8 }
 0x1cd   : > { %v6120_v40 = vpop.xlane.xlu0 %827  ;;  %v6122_v14 = vpop.xlane.xlu1 %1281 }
 0x1ce   : > { %9708 = vst [vmem:[#allocation127_spill] sm:$0xff] %v6120_v40  ;;  %9709 = vst [vmem:[#allocation128_spill] sm:$0xff] %v6122_v14 }
 0x1d1   : > { %v6124_v7 = vpop.xlane.xlu0 %1051  ;;  %v6126_v39 = vpop.xlane.xlu1 %836 }
 0x1d2   : > { %9710 = vst [vmem:[#allocation129_spill] sm:$0xff] %v6124_v7  ;;  %9711 = vst [vmem:[#allocation130_spill] sm:$0xff] %v6126_v39 }
 0x1d5   : > { %v6128_v24 = vpop.xlane.xlu0 %1278  ;;  %v6130_v32 = vpop.xlane.xlu1 %1060 }
 0x1d6   : > { %9712 = vst [vmem:[#allocation131_spill] sm:$0xff] %v6128_v24  ;;  %9713 = vst [vmem:[#allocation132_spill] sm:$0xff] %v6130_v32 }
 0x1d9   : > { %v6132_v3 = vpop.xlane.xlu0 %833  ;;  %v6134_v42 = vpop.xlane.xlu1 %1287 }
 0x1da   : > { %9714 = vst [vmem:[#allocation133_spill] sm:$0xff] %v6132_v3  ;;  %9715 = vst [vmem:[#allocation134_spill] sm:$0xff] %v6134_v42 }
 0x1dd   : > { %v6136_v33 = vpop.xlane.xlu0 %1057  ;;  %v6138_v47 = vpop.xlane.xlu1 %842 }
 0x1de   : > { %9716 = vst [vmem:[#allocation135_spill] sm:$0xff] %v6136_v33  ;;  %9717 = vst [vmem:[#allocation136_spill] sm:$0xff] %v6138_v47 }
 0x1e1   : > { %v6140_v8 = vpop.xlane.xlu0 %1284  ;;  %v6142_v40 = vpop.xlane.xlu1 %1066 }
 0x1e2   : > { %9718 = vst [vmem:[#allocation137_spill] sm:$0xff] %v6140_v8  ;;  %9719 = vst [vmem:[#allocation138_spill] sm:$0xff] %v6142_v40 }
 0x1e5   : > { %v6144_v14 = vpop.xlane.xlu0 %839  ;;  %v6146_v7 = vpop.xlane.xlu1 %848 }
 0x1e6   : > { %9720 = vst [vmem:[#allocation139_spill] sm:$0xff] %v6144_v14  ;;  %9721 = vst [vmem:[#allocation140_spill] sm:$0xff] %v6146_v7  ;;  %v9729_v7 = vmov 0.0  }
 0x1e9   : > { %v6148_v39 = vpop.xlane.xlu0 %1063  ;;  %v6150_v24 = vpop.xlane.xlu1 %1072 }
 0x1ea   : > { %9722 = vst [vmem:[#allocation141_spill] sm:$0xff] %v6148_v39  ;;  %9723 = vst [vmem:[#allocation142_spill] sm:$0xff] %v6150_v24 }
 0x1ed   : > { %v6152_v32 = vpop.xlane.xlu0 %1290  ;;  %v6154_v3 = vpop.xlane.xlu1 %1293 }
 0x1ee   : > { %9724 = vst [vmem:[#allocation143_spill] sm:$0xff] %v6152_v32  ;;  %9725 = vst [vmem:[#allocation144_spill] sm:$0xff] %v6154_v3 }
 0x1f1   : > { %v6156_v42 = vpop.xlane.xlu0 %845  ;;  %v6158_v33 = vpop.xlane.xlu1 %1299 }
 0x1f2   : > { %9726 = vst [vmem:[#allocation145_spill] sm:$0xff] %v6156_v42  ;;  %9727 = vst [vmem:[#allocation146_spill] sm:$0xff] %v6158_v33 }
 0x1f5   : > { %v6160_v47 = vpop.xlane.xlu0 %1069  ;;  %v1306_v8 = vpop.permute.xlu1 %1305 }
 0x1f6   : > { %9728 = vst [vmem:[#allocation147_spill] sm:$0xff] %v6160_v47  ;;  %vm1351_vm0 = vcmp.eq.s32.totalorder %v1306_v8, %v5067_v11  ;;  %vm1352_vm1 = vcmp.eq.s32.totalorder %v1306_v8, %v5072_v13 }
 0x1f7   : > { %v6165_v40 = vsel %vm1351_vm0, 1.0, %v9729_v7  ;;  %v6168_v24 = vsel %vm1352_vm1, 1.0, %v9729_v7 }
 0x1f8   : > { %9730 = vst [vmem:[#allocation148_spill] sm:$0xff] %v6165_v40  ;;  %9731 = vst [vmem:[#allocation149_spill] sm:$0xff] %v6168_v24  ;;  %v1447_v3 = vmul.f32 %v6165_v40, %v5115_v29  ;;  %v1448_v32 = vmul.f32 %v6168_v24, %v5133_v35 }
 0x1f9   : > { %v1309_v33 = vpop.permute.xlu1 %1308  ;;  %v6174_v42 = vpop.xlane.xlu0 %851 }
 0x1fa   : > { %9732 = vst [vmem:[#allocation150_spill] sm:$0xff] %v6174_v42  ;;  %vm1353_vm2 = vcmp.eq.s32.totalorder %v1309_v33, %v5067_v11  ;;  %vm1354_vm3 = vcmp.eq.s32.totalorder %v1309_v33, %v5072_v13  ;;  %v1480_v8 = vadd.f32 %v1448_v32, %v1447_v3 }
 0x1fb   : > { %v6179_v47 = vsel %vm1353_vm2, 1.0, %v9729_v7  ;;  %v6182_v14 = vsel %vm1354_vm3, 1.0, %v9729_v7 }
 0x1fc   : > { %9733 = vst [vmem:[#allocation151_spill] sm:$0xff] %v6179_v47  ;;  %9734 = vst [vmem:[#allocation152_spill] sm:$0xff] %v6182_v14  ;;  %v1449_v40 = vmul.f32 %v6179_v47, %v5161_v51  ;;  %v1450_v24 = vmul.f32 %v6182_v14, %v5179_v26  ;;  %1481 = vadd.xlane.f32.xlu0 %v1480_v8 }
 0x1fd   : > { %v1312_v39 = vpop.permute.xlu1 %1311  ;;  %v6188_v25 = vpop.xlane.xlu0 %1075 }
 0x1fe   : > { %v1483_v42 = vadd.f32 %v1450_v24, %v1449_v40  ;;  %9735 = vst [vmem:[#allocation153_spill] sm:$0xff] %v6188_v25  ;;  %vm1355_vm6 = vcmp.eq.s32.totalorder %v1312_v39, %v5067_v11  ;;  %vm1356_vm7 = vcmp.eq.s32.totalorder %v1312_v39, %v5072_v13 }
 0x200   : > { %1484 = vadd.xlane.f32.xlu0 %v1483_v42 }
 0x201   : > { %v1315_v33 = vpop.permute.xlu1 %1314  ;;  %v6202_v24 = vpop.xlane.xlu0 %1296 }
 0x202   : > { %vm1357_vm4 = vcmp.eq.s32.totalorder %v1315_v33, %v5067_v11  ;;  %vm1358_vm5 = vcmp.eq.s32.totalorder %v1315_v33, %v5072_v13  ;;  %9738 = vst [vmem:[#allocation156_spill] sm:$0xff] %v6202_v24 }
 0x203   : > { %v6193_v32 = vsel %vm1357_vm4, 1.0, %v9729_v7  ;;  %v6196_v3 = vsel %vm1358_vm5, 1.0, %v9729_v7 }
 0x204   : > { %9736 = vst [vmem:[#allocation154_spill] sm:$0xff] %v6193_v32  ;;  %9737 = vst [vmem:[#allocation155_spill] sm:$0xff] %v6196_v3  ;;  %v1453_v47 = vmul.f32 %v6193_v32, %v5242_v28  ;;  %v1454_v40 = vmul.f32 %v6196_v3, %v5266_v19 }
 0x205   : > { %v1318_v42 = vpop.permute.xlu1 %1317 }
 0x206   : > { %v1489_v8 = vadd.f32 %v1454_v40, %v1453_v47  ;;  %vm1359_vm12 = vcmp.eq.s32.totalorder %v1318_v42, %v5067_v11  ;;  %vm1360_vm13 = vcmp.eq.s32.totalorder %v1318_v42, %v5072_v13 }
 0x208   : > { %1490 = vadd.xlane.f32.xlu0 %v1489_v8  ;;  %v6223_v8 = vsel %vm1355_vm6, 1.0, %v9729_v7 }
 0x209   : > { %v1321_v33 = vpop.permute.xlu1 %1320  ;;  %v1303_v14 = vpop.permute.xlu0 %1302  ;;  %9743 = vst [vmem:[#allocation161_spill] sm:$0xff] %v6223_v8  ;;  %v1451_v19 = vmul.f32 %v6223_v8, %v5204_v5 }
 0x20a   : > { %vm1361_vm8 = vcmp.eq.s32.totalorder %v1321_v33, %v5067_v11  ;;  %vm1362_vm9 = vcmp.eq.s32.totalorder %v1321_v33, %v5072_v13  ;;  %vm1349_vm10 = vcmp.eq.s32.totalorder %v1303_v14, %v5067_v11  ;;  %vm1350_vm11 = vcmp.eq.s32.totalorder %v1303_v14, %v5072_v13 }
 0x20b   : > { %v6211_v32 = vsel %vm1361_vm8, 1.0, %v9729_v7  ;;  %v6214_v47 = vsel %vm1362_vm9, 1.0, %v9729_v7  ;;  %v6217_v40 = vsel %vm1349_vm10, 1.0, %v9729_v7  ;;  %v6220_v39 = vsel %vm1350_vm11, 1.0, %v9729_v7 }
 0x20c   : > { %9739 = vst [vmem:[#allocation157_spill] sm:$0xff] %v6211_v32  ;;  %9740 = vst [vmem:[#allocation158_spill] sm:$0xff] %v6214_v47  ;;  %v6226_v33 = vsel %vm1356_vm7, 1.0, %v9729_v7  ;;  %v1457_v14 = vmul.f32 %v6211_v32, %v5326_v36  ;;  %v1458_v3 = vmul.f32 %v6214_v47, %v5347_v38  ;;  %v1445_v24 = vmul.f32 %v6217_v40, %v5080_v16 }
 0x20d   : > { %9741 = vst [vmem:[#allocation159_spill] sm:$0xff] %v6217_v40  ;;  %9742 = vst [vmem:[#allocation160_spill] sm:$0xff] %v6220_v39  ;;  %v1446_v25 = vmul.f32 %v6220_v39, %v5100_v23  ;;  %v1324_v0 = vpop.permute.xlu1 %1323  ;;  %v1330_v22 = vpop.permute.xlu0 %1329  ;;  %v1452_v32 = vmul.f32 %v6226_v33, %v5222_v4  ;;  %v6243_v47 = vsel %vm1359_vm12, 1.0, %v9729_v7  ;;  %v6246_v40 = vsel %vm1360_vm13, 1.0, %v9729_v7 }
 0x20e   : > { %9744 = vst [vmem:[#allocation162_spill] sm:$0xff] %v6226_v33  ;;  %9745 = vst [vmem:[#allocation163_spill] sm:$0xff] %v6243_v47  ;;  %v1495_v38 = vadd.f32 %v1458_v3, %v1457_v14  ;;  %vm1363_vm14 = vcmp.eq.s32.totalorder %v1324_v0, %v5067_v11  ;;  %vm1364_vm1 = vcmp.eq.s32.totalorder %v1324_v0, %v5072_v13 }
 0x20f   : > { %9746 = vst [vmem:[#allocation164_spill] sm:$0xff] %v6246_v40  ;;  %v1477_v39 = vadd.f32 %v1446_v25, %v1445_v24  ;;  %v1455_v25 = vmul.f32 %v6243_v47, %v5295_v20  ;;  %v1456_v3 = vmul.f32 %v6246_v40, %v5309_v53  ;;  %v1486_v14 = vadd.f32 %v1452_v32, %v1451_v19 }
 0x210   : > { %1496 = vadd.xlane.f32.xlu0 %v1495_v38  ;;  %vm1367_vm2 = vcmp.eq.s32.totalorder %v1330_v22, %v5067_v11  ;;  %v6271_v33 = vsel %vm1364_vm1, 1.0, %v9729_v7  ;;  %vm1368_vm5 = vcmp.eq.s32.totalorder %v1330_v22, %v5072_v13 }
 0x211   : > { %v1327_v36 = vpop.permute.xlu1 %1326  ;;  %1478 = vadd.xlane.f32.xlu1 %v1477_v39  ;;  %v1336_v24 = vpop.permute.xlu0 %1335  ;;  %9750 = vst [vmem:[#allocation168_spill] sm:$0xff] %v6271_v33  ;;  %v1492_v47 = vadd.f32 %v1456_v3, %v1455_v25  ;;  %v1460_v40 = vmul.f32 %v6271_v33, %v5390_v55  ;;  %v6294_v20 = vsel %vm1368_vm5, 1.0, %v9729_v7 }
 0x212   : > { %vm1365_vm15 = vcmp.eq.s32.totalorder %v1327_v36, %v5067_v11  ;;  %vm1366_vm0 = vcmp.eq.s32.totalorder %v1327_v36, %v5072_v13  ;;  %v6263_v36 = vsel %vm1363_vm14, 1.0, %v9729_v7  ;;  %9754 = vst [vmem:[#allocation172_spill] sm:$0xff] %v6294_v20  ;;  %vm1371_vm6 = vcmp.eq.s32.totalorder %v1336_v24, %v5067_v11 }
 0x213   : > { %v6253_v42 = vsel %vm1365_vm15, 1.0, %v9729_v7  ;;  %v6256_v8 = vsel %vm1366_vm0, 1.0, %v9729_v7  ;;  %9749 = vst [vmem:[#allocation167_spill] sm:$0xff] %v6263_v36  ;;  %vm1372_vm9 = vcmp.eq.s32.totalorder %v1336_v24, %v5072_v13 }
 0x214   : > { %9747 = vst [vmem:[#allocation165_spill] sm:$0xff] %v6253_v42  ;;  %9748 = vst [vmem:[#allocation166_spill] sm:$0xff] %v6256_v8  ;;  %v1461_v38 = vmul.f32 %v6253_v42, %v5413_v59  ;;  %v1462_v0 = vmul.f32 %v6256_v8, %v5433_v27  ;;  %v1459_v42 = vmul.f32 %v6263_v36, %v5370_v44  ;;  %v6285_v8 = vsel %vm1367_vm2, 1.0, %v9729_v7 }
 0x215   : > { %v1333_v39 = vpop.permute.xlu1 %1332  ;;  %1487 = vadd.xlane.f32.xlu1 %v1486_v14  ;;  %9753 = vst [vmem:[#allocation171_spill] sm:$0xff] %v6285_v8  ;;  %v1342_v36 = vpop.permute.xlu0 %1341  ;;  %v6318_v33 = vsel %vm1372_vm9, 1.0, %v9729_v7 }
 0x216   : > { %vm1369_vm3 = vcmp.eq.s32.totalorder %v1333_v39, %v5067_v11  ;;  %vm1370_vm4 = vcmp.eq.s32.totalorder %v1333_v39, %v5072_v13  ;;  %v1501_v39 = vadd.f32 %v1462_v0, %v1461_v38  ;;  %v1463_v38 = vmul.f32 %v6285_v8, %v5456_v34  ;;  %9758 = vst [vmem:[#allocation176_spill] sm:$0xff] %v6318_v33 }
 0x217   : > { %v6277_v19 = vsel %vm1369_vm3, 1.0, %v9729_v7  ;;  %v6280_v32 = vsel %vm1370_vm4, 1.0, %v9729_v7  ;;  %vm1375_vm10 = vcmp.eq.s32.totalorder %v1342_v36, %v5067_v11  ;;  %vm1376_vm13 = vcmp.eq.s32.totalorder %v1342_v36, %v5072_v13 }
 0x218   : > { %9751 = vst [vmem:[#allocation169_spill] sm:$0xff] %v6277_v19  ;;  %9752 = vst [vmem:[#allocation170_spill] sm:$0xff] %v6280_v32  ;;  %v1465_v22 = vmul.f32 %v6277_v19, %v5498_v45  ;;  %v1466_v14 = vmul.f32 %v6280_v32, %v5518_v41  ;;  %1502 = vadd.xlane.f32.xlu0 %v1501_v39  ;;  %v1498_v39 = vadd.f32 %v1460_v40, %v1459_v42 }
 0x219   : > { %v1339_v53 = vpop.permute.xlu1 %1338  ;;  %1493 = vadd.xlane.f32.xlu1 %v1492_v47  ;;  %v6315_v47 = vsel %vm1371_vm6, 1.0, %v9729_v7  ;;  %v1348_v42 = vpop.permute.xlu0 %1347  ;;  %v1468_v36 = vmul.f32 %v6318_v33, %v5561_v21  ;;  %v6342_v8 = vsel %vm1376_vm13, 1.0, %v9729_v7  ;;  %v9782_v33 = vmov 5  }
 0x21a   : > { %vm1373_vm7 = vcmp.eq.s32.totalorder %v1339_v53, %v5067_v11  ;;  %vm1374_vm8 = vcmp.eq.s32.totalorder %v1339_v53, %v5072_v13  ;;  %v1464_v53 = vmul.f32 %v6294_v20, %v5475_v37  ;;  %9757 = vst [vmem:[#allocation175_spill] sm:$0xff] %v6315_v47  ;;  %v1507_v24 = vadd.f32 %v1466_v14, %v1465_v22 }
 0x21b   : > { %v6301_v25 = vsel %vm1373_vm7, 1.0, %v9729_v7  ;;  %v6304_v3 = vsel %vm1374_vm8, 1.0, %v9729_v7  ;;  %9762 = vst [vmem:[#allocation180_spill] sm:$0xff] %v6342_v8  ;;  %vm1379_vm14 = vcmp.eq.s32.totalorder %v1348_v42, %v5067_v11  ;;  %vm1380_vm15 = vcmp.eq.s32.totalorder %v1348_v42, %v5072_v13 }
 0x21c   : > { %9755 = vst [vmem:[#allocation173_spill] sm:$0xff] %v6301_v25  ;;  %9756 = vst [vmem:[#allocation174_spill] sm:$0xff] %v6304_v3  ;;  %v1469_v0 = vmul.f32 %v6301_v25, %v5601_v54  ;;  %v1470_v19 = vmul.f32 %v6304_v3, %v5641_v18  ;;  %1508 = vadd.xlane.f32.xlu0 %v1507_v24  ;;  %v1504_v24 = vadd.f32 %v1464_v53, %v1463_v38 }
 0x21d   : > { %v1345_v32 = vpop.permute.xlu1 %1344  ;;  %1499 = vadd.xlane.f32.xlu1 %v1498_v39  ;;  %v6339_v39 = vsel %vm1375_vm10, 1.0, %v9729_v7  ;;  %v6351_v53 = vsel %vm1379_vm14, 1.0, %v9729_v7 }
 0x21e   : > { %vm1377_vm11 = vcmp.eq.s32.totalorder %v1345_v32, %v5067_v11  ;;  %vm1378_vm12 = vcmp.eq.s32.totalorder %v1345_v32, %v5072_v13  ;;  %v1513_v40 = vadd.f32 %v1470_v19, %v1469_v0  ;;  %v1467_v32 = vmul.f32 %v6315_v47, %v5541_v61  ;;  %9761 = vst [vmem:[#allocation179_spill] sm:$0xff] %v6339_v39 }
 0x21f   : > { %v6325_v25 = vsel %vm1377_vm11, 1.0, %v9729_v7  ;;  %v6328_v22 = vsel %vm1378_vm12, 1.0, %v9729_v7  ;;  %v1471_v0 = vmul.f32 %v6339_v39, %v5680_v43  ;;  %9763 = vst [vmem:[#allocation181_spill] sm:$0xff] %v6351_v53 }
 0x220   : > { %9759 = vst [vmem:[#allocation177_spill] sm:$0xff] %v6325_v25  ;;  %9760 = vst [vmem:[#allocation178_spill] sm:$0xff] %v6328_v22  ;;  %v1473_v14 = vmul.f32 %v6325_v25, %v5759_v46  ;;  %v1474_v3 = vmul.f32 %v6328_v22, %v5799_v31  ;;  %1514 = vadd.xlane.f32.xlu0 %v1513_v40  ;;  %v1472_v25 = vmul.f32 %v6342_v8, %v5719_v63 }
 0x221   : > { %1505 = vadd.xlane.f32.xlu1 %v1504_v24  ;;  %v1510_v38 = vadd.f32 %v1468_v36, %v1467_v32  ;;  %v6354_v22 = vsel %vm1380_vm15, 1.0, %v9729_v7  ;;  %v1475_v40 = vmul.f32 %v6351_v53, %v5875_v62  ;;  %v9765_v32 = vmov 4  }
 0x222   : > { %v1519_v19 = vadd.f32 %v1474_v3, %v1473_v14  ;;  %9764 = vst [vmem:[#allocation182_spill] sm:$0xff] %v6354_v22  ;;  %v1476_v3 = vmul.f32 %v6354_v22, %v5912_v57  ;;  %v1516_v42 = vadd.f32 %v1472_v25, %v1471_v0  ;;  %v9341_v25 = vmov 5  }
 0x223   : > { %v9766_v36 = vmov 6   ;;  %v9346_v24 = vmov 7  }
 0x224   : > { %1520 = vadd.xlane.f32.xlu0 %v1519_v19  ;;  %v1522_v14 = vadd.f32 %v1476_v3, %v1475_v40 }
 0x225   : > { %1511 = vadd.xlane.f32.xlu1 %v1510_v38 }
 0x229   : > { %1517 = vadd.xlane.f32.xlu1 %v1516_v42 }
 0x22d   : > { %1523 = vadd.xlane.f32.xlu1 %v1522_v14 }
 0x23a   : > { %1974 = vperm.xlu0 %4440, %v6031_v9  }
 0x23e   : > { %1529 = vperm.xlu1 %4438, %v6007_v15   ;;  %1980 = vperm.xlu0 %4440, %v6011_v2  }
 0x242   : > { %1532 = vperm.xlu1 %4438, %v6011_v2   ;;  %1986 = vperm.xlu0 %4440, %v6019_v58  }
 0x246   : > { %1535 = vperm.xlu1 %4438, %v6015_v12   ;;  %1995 = vperm.xlu0 %4440, %v6035_v17  }
 0x24a   : > { %1538 = vperm.xlu1 %4438, %v6019_v58   ;;  %2004 = vperm.xlu0 %4440, %v6051_v49  }
 0x24e   : > { %1541 = vperm.xlu1 %4438, %v6023_v50   ;;  %2013 = vperm.xlu0 %4440, %v6055_v10  }
 0x252   : > { %4439 = vset.pattern.permute.xlu1 %v9341_v25  ;;  %4464 = vset.pattern.permute.xlu0 %v9765_v32 }
 0x253   : > { %1750 = vperm.xlu1 %4439, %v6031_v9   ;;  %1526 = vperm.xlu0 %4464, %v6031_v9  }
 0x257   : > { %1753 = vperm.xlu1 %4439, %v6007_v15   ;;  %1550 = vperm.xlu0 %4464, %v6043_v30  }
 0x25b   : > { %4441 = vset.pattern.permute.xlu1 %v9766_v36  ;;  %1559 = vperm.xlu0 %4464, %v6047_v60  }
 0x25c   : > { %1977 = vperm.xlu1 %4441, %v6007_v15  }
 0x25f   : > { %1568 = vperm.xlu0 %4464, %v6075_v48  }
 0x260   : > { %4442 = vset.pattern.permute.xlu1 %v9346_v24 }
 0x261   : > { %2198 = vperm.xlu1 %4442, %v6031_v9  }
 0x263   : > { %4466 = vset.pattern.permute.xlu0 %v9341_v25 }
 0x264   : > { %1768 = vperm.xlu0 %4466, %v6027_v56  }
 0x265   : > { %4443 = vset.pattern.permute.xlu1 %v9341_v25 }
 0x266   : > { %1756 = vperm.xlu1 %4443, %v6011_v2  }
 0x268   : > { %1777 = vperm.xlu0 %4466, %v6039_v1  }
 0x26a   : > { %1759 = vperm.xlu1 %4443, %v6015_v12  }
 0x26c   : > { %1786 = vperm.xlu0 %4466, %v6063_v52  }
 0x26e   : > { %4444 = vset.pattern.permute.xlu1 %v9766_v36 }
 0x26f   : > { %1983 = vperm.xlu1 %4444, %v6015_v12  }
 0x270   : > { %1795 = vperm.xlu0 %4466, %v6067_v6  }
 0x273   : > { %4445 = vset.pattern.permute.xlu1 %v9346_v24 }
 0x274   : > { %2204 = vperm.xlu1 %4445, %v6011_v2   ;;  %4469 = vset.pattern.permute.xlu0 %v9346_v24 }
 0x275   : > { %2201 = vperm.xlu0 %4469, %v6007_v15  }
 0x278   : > { %4446 = vset.pattern.permute.xlu1 %v9341_v25 }
 0x279   : > { %1762 = vperm.xlu1 %4446, %v6019_v58   ;;  %2207 = vperm.xlu0 %4469, %v6015_v12  }
 0x27d   : > { %1765 = vperm.xlu1 %4446, %v6023_v50   ;;  %2213 = vperm.xlu0 %4469, %v6023_v50  }
 0x281   : > { %4447 = vset.pattern.permute.xlu1 %v9766_v36  ;;  %2222 = vperm.xlu0 %4469, %v6043_v30  }
 0x282   : > { %1989 = vperm.xlu1 %4447, %v6023_v50  }
 0x285   : > { %2231 = vperm.xlu0 %4469, %v6047_v60   ;;  %v6418_v2 = vpop.xlane.xlu0 %1481 }
 0x286   : > { %4448 = vset.pattern.permute.xlu1 %v9346_v24  ;;  %9768 = vst [vmem:[#allocation184_spill] sm:$0xff] %v6418_v2 }
 0x287   : > { %2210 = vperm.xlu1 %4448, %v6019_v58  }
 0x289   : > { %2240 = vperm.xlu0 %4469, %v6075_v48   ;;  %v6424_v58 = vpop.xlane.xlu0 %1484 }
 0x28b   : > { %4449 = vset.pattern.permute.xlu1 %v9765_v32 }
 0x28c   : > { %1544 = vperm.xlu1 %4449, %v6027_v56  }
 0x290   : > { %1547 = vperm.xlu1 %4449, %v6035_v17  }
 0x291   : > { %v6429_v9 = vpop.xlane.xlu0 %1490 }
 0x294   : > { %4450 = vset.pattern.permute.xlu1 %v9341_v25 }
 0x295   : > { %1771 = vperm.xlu1 %4450, %v6035_v17  }
 0x299   : > { %4451 = vset.pattern.permute.xlu1 %v9766_v36  ;;  %v6435_v0 = vpop.xlane.xlu0 %1496 }
 0x29a   : > { %v6415_v15 = vpop.xlane.xlu1 %1478  ;;  %1992 = vperm.xlu1 %4451, %v6027_v56  }
 0x29b   : > { %9767 = vst [vmem:[#allocation183_spill] sm:$0xff] %v6415_v15 }
 0x29e   : > { %v6420_v12 = vpop.xlane.xlu1 %1487  ;;  %4452 = vset.pattern.permute.xlu1 %v9346_v24 }
 0x29f   : > { %9769 = vst [vmem:[#allocation185_spill] sm:$0xff] %v6420_v12  ;;  %2216 = vperm.xlu1 %4452, %v6027_v56  }
 0x2a1   : > { %v6440_v56 = vpop.xlane.xlu0 %1502 }
 0x2a2   : > { %v6426_v50 = vpop.xlane.xlu1 %1493  ;;  %9773 = vst [vmem:[#allocation189_spill] sm:$0xff] %v6440_v56 }
 0x2a3   : > { %9770 = vst [vmem:[#allocation186_spill] sm:$0xff] %v6426_v50  ;;  %2219 = vperm.xlu1 %4452, %v6035_v17  }
 0x2a5   : > { %v6449_v3 = vpop.xlane.xlu0 %1508 }
 0x2a6   : > { %v6431_v19 = vpop.xlane.xlu1 %1499  ;;  %9776 = vst [vmem:[#allocation192_spill] sm:$0xff] %v6449_v3 }
 0x2a7   : > { %9771 = vst [vmem:[#allocation187_spill] sm:$0xff] %v6431_v19  ;;  %4453 = vset.pattern.permute.xlu1 %v9765_v32 }
 0x2a8   : > { %1553 = vperm.xlu1 %4453, %v6039_v1  }
 0x2a9   : > { %v6454_v14 = vpop.xlane.xlu0 %1514 }
 0x2aa   : > { %v6437_v38 = vpop.xlane.xlu1 %1505  ;;  %9778 = vst [vmem:[#allocation194_spill] sm:$0xff] %v6454_v14 }
 0x2ab   : > { %9772 = vst [vmem:[#allocation188_spill] sm:$0xff] %v6437_v38 }
 0x2ac   : > { %4454 = vset.pattern.permute.xlu1 %v9341_v25 }
 0x2ad   : > { %1774 = vperm.xlu1 %4454, %v6043_v30   ;;  %v6470_v8 = vpop.xlane.xlu0 %1520 }
 0x2ae   : > { %v6443_v40 = vpop.xlane.xlu1 %1511  ;;  %9781 = vst [vmem:[#allocation197_spill] sm:$0xff] %v6470_v8 }
 0x2af   : > { %9774 = vst [vmem:[#allocation190_spill] sm:$0xff] %v6443_v40  ;;  %v9787_v40 = vmov 7  }
 0x2b1   : > { %4455 = vset.pattern.permute.xlu1 %v9766_v36 }
 0x2b2   : > { %v6446_v17 = vpop.xlane.xlu1 %1517  ;;  %1998 = vperm.xlu1 %4455, %v6043_v30  }
 0x2b3   : > { %9775 = vst [vmem:[#allocation191_spill] sm:$0xff] %v6446_v17 }
 0x2b5   : > { %v1975_v47 = vpop.permute.xlu0 %1974 }
 0x2b6   : > { %2001 = vperm.xlu1 %4455, %v6039_v1   ;;  %v6452_v42 = vpop.xlane.xlu1 %1523  ;;  %vm2021_vm2 = vcmp.eq.s32.totalorder %v1975_v47, %v5067_v11  ;;  %vm2022_vm3 = vcmp.eq.s32.totalorder %v1975_v47, %v5072_v13 }
 0x2b7   : > { %9777 = vst [vmem:[#allocation193_spill] sm:$0xff] %v6452_v42  ;;  %v6497_v42 = vsel %vm2022_vm3, 1.0, %v9729_v7 }
 0x2b8   : > { %9784 = vst [vmem:[#allocation199_spill] sm:$0xff] %v6497_v42  ;;  %v2118_v38 = vmul.f32 %v6497_v42, %v5100_v23 }
 0x2ba   : > { %4456 = vset.pattern.permute.xlu1 %v9346_v24  ;;  %v1530_v25 = vpop.permute.xlu1 %1529 }
 0x2bb   : > { %vm1575_vm0 = vcmp.eq.s32.totalorder %v1530_v25, %v5067_v11  ;;  %vm1576_vm1 = vcmp.eq.s32.totalorder %v1530_v25, %v5072_v13  ;;  %2225 = vperm.xlu1 %4456, %v6039_v1  }
 0x2bc   : > { %v6461_v53 = vsel %vm1575_vm0, 1.0, %v9729_v7  ;;  %v6464_v30 = vsel %vm1576_vm1, 1.0, %v9729_v7 }
 0x2bd   : > { %9779 = vst [vmem:[#allocation195_spill] sm:$0xff] %v6461_v53  ;;  %9780 = vst [vmem:[#allocation196_spill] sm:$0xff] %v6464_v30  ;;  %v1671_v22 = vmul.f32 %v6461_v53, %v5115_v29  ;;  %v1672_v39 = vmul.f32 %v6464_v30, %v5133_v35  ;;  %v6480_v53 = vpop.permute.xlu0 %1980 }
 0x2be   : > { %v1533_v24 = vpop.permute.xlu1 %1532  ;;  %vm2025_vm12 = vcmp.eq.s32.totalorder %v6480_v53, %v5067_v11  ;;  %vm2026_vm13 = vcmp.eq.s32.totalorder %v6480_v53, %v5072_v13 }
 0x2bf   : > { %4457 = vset.pattern.permute.xlu1 %v9765_v32  ;;  %v1704_v1 = vadd.f32 %v1672_v39, %v1671_v22  ;;  %vm1577_vm6 = vcmp.eq.s32.totalorder %v1533_v24, %v5067_v11  ;;  %vm1578_vm7 = vcmp.eq.s32.totalorder %v1533_v24, %v5072_v13 }
 0x2c0   : > { %1556 = vperm.xlu1 %4457, %v6051_v49  }
 0x2c1   : > { %1705 = vadd.xlane.f32.xlu0 %v1704_v1  ;;  %v6489_v39 = vpop.permute.xlu0 %1986  ;;  %v6494_v1 = vsel %vm2021_vm2, 1.0, %v9729_v7 }
 0x2c2   : > { %v6474_v25 = vpop.permute.xlu1 %1535  ;;  %9783 = vst [vmem:[#allocation198_spill] sm:$0xff] %v6494_v1  ;;  %v2117_v14 = vmul.f32 %v6494_v1, %v5080_v16 }
 0x2c4   : > { %4458 = vset.pattern.permute.xlu1 %v9782_v33 }
 0x2c5   : > { %1780 = vperm.xlu1 %4458, %v6051_v49   ;;  %v6517_v19 = vpop.permute.xlu0 %1995 }
 0x2c6   : > { %v6478_v20 = vpop.permute.xlu1 %1538 }
 0x2c7   : > { %vm1581_vm14 = vcmp.eq.s32.totalorder %v6478_v20, %v5067_v11  ;;  %vm1582_vm15 = vcmp.eq.s32.totalorder %v6478_v20, %v5072_v13 }
 0x2c9   : > { %1783 = vperm.xlu1 %4458, %v6047_v60   ;;  %v6525_v1 = vpop.permute.xlu0 %2004 }
 0x2ca   : > { %v6483_v30 = vpop.permute.xlu1 %1541 }
 0x2cd   : > { %4459 = vset.pattern.permute.xlu1 %v9766_v36  ;;  %v6551_v42 = vpop.permute.xlu0 %2013 }
 0x2ce   : > { %2007 = vperm.xlu1 %4459, %v6047_v60   ;;  %v1751_v22 = vpop.permute.xlu1 %1750 }
 0x2cf   : > { %vm1797_vm4 = vcmp.eq.s32.totalorder %v1751_v22, %v5067_v11  ;;  %vm1798_vm5 = vcmp.eq.s32.totalorder %v1751_v22, %v5072_v13 }
 0x2d0   : > { %v6500_v17 = vsel %vm1797_vm4, 1.0, %v9729_v7  ;;  %v6503_v47 = vsel %vm1798_vm5, 1.0, %v9729_v7  ;;  %vm2029_vm4 = vcmp.eq.s32.totalorder %v6489_v39, %v5067_v11  ;;  %vm2030_vm5 = vcmp.eq.s32.totalorder %v6489_v39, %v5072_v13 }
 0x2d1   : > { %9785 = vst [vmem:[#allocation200_spill] sm:$0xff] %v6500_v17  ;;  %9786 = vst [vmem:[#allocation201_spill] sm:$0xff] %v6503_v47  ;;  %v1893_v60 = vmul.f32 %v6500_v17, %v5080_v16  ;;  %v1894_v8 = vmul.f32 %v6503_v47, %v5100_v23  ;;  %v2149_v47 = vadd.f32 %v2118_v38, %v2117_v14  ;;  %v6534_v38 = vsel %vm1578_vm7, 1.0, %v9729_v7  ;;  %v6580_v53 = vpop.permute.xlu0 %1526 }
 0x2d2   : > { %4460 = vset.pattern.permute.xlu1 %v9787_v40  ;;  %v6510_v22 = vpop.permute.xlu1 %1753  ;;  %9789 = vst [vmem:[#allocation203_spill] sm:$0xff] %v6534_v38  ;;  %v6649_v39 = vsel %vm2030_vm5, 1.0, %v9729_v7 }
 0x2d3   : > { %2228 = vperm.xlu1 %4460, %v6051_v49   ;;  %v1925_v3 = vadd.f32 %v1894_v8, %v1893_v60  ;;  %v6531_v8 = vsel %vm1577_vm6, 1.0, %v9729_v7  ;;  %9804 = vst [vmem:[#allocation216_spill] sm:$0xff] %v6649_v39  ;;  %vm1800_vm5 = vcmp.eq.s32.totalorder %v6510_v22, %v5072_v13 }
 0x2d4   : > { %9788 = vst [vmem:[#allocation202_spill] sm:$0xff] %v6531_v8  ;;  %v1673_v60 = vmul.f32 %v6531_v8, %v5161_v51 }
 0x2d5   : > { %1926 = vadd.xlane.f32.xlu0 %v1925_v3  ;;  %v6590_v12 = vpop.permute.xlu0 %1550 }
 0x2d7   : > { %4461 = vset.pattern.permute.xlu1 %v9765_v32  ;;  %v6520_v17 = vpop.permute.xlu1 %1977 }
 0x2d8   : > { %1562 = vperm.xlu1 %4461, %v6063_v52  }
 0x2d9   : > { %2150 = vadd.xlane.f32.xlu0 %v2149_v47 }
 0x2dc   : > { %1565 = vperm.xlu1 %4461, %v6055_v10   ;;  %v2199_v49 = vpop.permute.xlu1 %2198 }
 0x2dd   : > { %vm2245_vm8 = vcmp.eq.s32.totalorder %v2199_v49, %v5067_v11  ;;  %vm2246_vm9 = vcmp.eq.s32.totalorder %v2199_v49, %v5072_v13  ;;  %v1674_v49 = vmul.f32 %v6534_v38, %v5179_v26  ;;  %v6578_v38 = vsel %vm2026_vm13, 1.0, %v9729_v7 }
 0x2de   : > { %v6537_v3 = vsel %vm2245_vm8, 1.0, %v9729_v7  ;;  %v6540_v24 = vsel %vm2246_vm9, 1.0, %v9729_v7  ;;  %9795 = vst [vmem:[#allocation209_spill] sm:$0xff] %v6578_v38 }
 0x2df   : > { %9790 = vst [vmem:[#allocation204_spill] sm:$0xff] %v6537_v3  ;;  %9791 = vst [vmem:[#allocation205_spill] sm:$0xff] %v6540_v24  ;;  %v2341_v14 = vmul.f32 %v6537_v3, %v5080_v16  ;;  %v2342_v47 = vmul.f32 %v6540_v24, %v5100_v23 }
 0x2e0   : > { %4462 = vset.pattern.permute.xlu1 %v9782_v33 }
 0x2e1   : > { %1789 = vperm.xlu1 %4462, %v6055_v10   ;;  %v1757_v56 = vpop.permute.xlu1 %1756  ;;  %v2373_v50 = vadd.f32 %v2342_v47, %v2341_v14  ;;  %v1707_v47 = vadd.f32 %v1674_v49, %v1673_v60  ;;  %v2122_v49 = vmul.f32 %v6578_v38, %v5179_v26 }
 0x2e2   : > { %vm1801_vm10 = vcmp.eq.s32.totalorder %v1757_v56, %v5067_v11  ;;  %vm1802_vm11 = vcmp.eq.s32.totalorder %v1757_v56, %v5072_v13 }
 0x2e3   : > { %v6557_v3 = vsel %vm1801_vm10, 1.0, %v9729_v7  ;;  %v6560_v24 = vsel %vm1802_vm11, 1.0, %v9729_v7  ;;  %2374 = vadd.xlane.f32.xlu0 %v2373_v50  ;;  %v6575_v50 = vsel %vm2025_vm12, 1.0, %v9729_v7 }
 0x2e4   : > { %9792 = vst [vmem:[#allocation206_spill] sm:$0xff] %v6557_v3  ;;  %9793 = vst [vmem:[#allocation207_spill] sm:$0xff] %v6560_v24  ;;  %v1897_v56 = vmul.f32 %v6557_v3, %v5161_v51  ;;  %v1898_v8 = vmul.f32 %v6560_v24, %v5179_v26  ;;  %v2121_v60 = vmul.f32 %v6575_v50, %v5161_v51 }
 0x2e5   : > { %4463 = vset.pattern.permute.xlu1 %v9766_v36  ;;  %v6567_v14 = vpop.permute.xlu1 %1759  ;;  %9794 = vst [vmem:[#allocation208_spill] sm:$0xff] %v6575_v50 }
 0x2e6   : > { %2010 = vperm.xlu1 %4463, %v6063_v52   ;;  %v1931_v24 = vadd.f32 %v1898_v8, %v1897_v56  ;;  %v6603_v8 = vsel %vm1582_vm15, 1.0, %v9729_v7  ;;  %vm1590_vm15 = vcmp.eq.s32.totalorder %v6590_v12, %v5072_v13 }
 0x2e7   : > { %1708 = vadd.xlane.f32.xlu0 %v1707_v47  ;;  %v2155_v47 = vadd.f32 %v2122_v49, %v2121_v60  ;;  %9797 = vst [vmem:[#allocation211_spill] sm:$0xff] %v6603_v8  ;;  %v9800_v49 = vld [vmem:[#allocation21_spill] sm:$0xff] }
 0x2ea   : > { %4465 = vset.pattern.permute.xlu1 %v9787_v40  ;;  %v6587_v3 = vpop.permute.xlu1 %1983 }
 0x2eb   : > { %2234 = vperm.xlu1 %4465, %v6063_v52   ;;  %1932 = vadd.xlane.f32.xlu0 %v1931_v24  ;;  %v6600_v52 = vsel %vm1581_vm14, 1.0, %v9729_v7  ;;  %vm1589_vm14 = vcmp.eq.s32.totalorder %v6590_v12, %v5067_v11 }
 0x2ec   : > { %9796 = vst [vmem:[#allocation210_spill] sm:$0xff] %v6600_v52  ;;  %v1677_v60 = vmul.f32 %v6600_v52, %v5242_v28 }
 0x2ef   : > { %2237 = vperm.xlu1 %4465, %v6055_v10   ;;  %v2205_v50 = vpop.permute.xlu1 %2204  ;;  %2156 = vadd.xlane.f32.xlu0 %v2155_v47  ;;  %v1678_v47 = vmul.f32 %v6603_v8, %v9800_v49 }
 0x2f0   : > { %vm2249_vm0 = vcmp.eq.s32.totalorder %v2205_v50, %v5067_v11  ;;  %vm2250_vm1 = vcmp.eq.s32.totalorder %v2205_v50, %v5072_v13  ;;  %v6615_v50 = vpop.permute.xlu0 %1559 }
 0x2f1   : > { %v6606_v24 = vsel %vm2249_vm0, 1.0, %v9729_v7  ;;  %v6609_v20 = vsel %vm2250_vm1, 1.0, %v9729_v7 }
 0x2f2   : > { %9798 = vst [vmem:[#allocation212_spill] sm:$0xff] %v6606_v24  ;;  %9799 = vst [vmem:[#allocation213_spill] sm:$0xff] %v6609_v20  ;;  %v2345_v10 = vmul.f32 %v6606_v24, %v5161_v51  ;;  %v2346_v56 = vmul.f32 %v6609_v20, %v5179_v26 }
 0x2f3   : > { %4467 = vset.pattern.permute.xlu1 %v9765_v32 }
 0x2f4   : > { %1571 = vperm.xlu1 %4467, %v6067_v6   ;;  %v1763_v38 = vpop.permute.xlu1 %1762  ;;  %v2379_v15 = vadd.f32 %v2346_v56, %v2345_v10  ;;  %v1713_v10 = vadd.f32 %v1678_v47, %v1677_v60  ;;  %v6638_v56 = vpop.permute.xlu0 %1568  ;;  %v2126_v60 = vmul.f32 %v6649_v39, %v9800_v49 }
 0x2f5   : > { %vm1805_vm2 = vcmp.eq.s32.totalorder %v1763_v38, %v5067_v11  ;;  %vm1806_vm3 = vcmp.eq.s32.totalorder %v1763_v38, %v5072_v13 }
 0x2f6   : > { %v6626_v51 = vsel %vm1805_vm2, 1.0, %v9729_v7  ;;  %v6629_v26 = vsel %vm1806_vm3, 1.0, %v9729_v7  ;;  %2380 = vadd.xlane.f32.xlu0 %v2379_v15  ;;  %v6646_v15 = vsel %vm2029_vm4, 1.0, %v9729_v7  ;;  %vm1573_vm2 = vcmp.eq.s32.totalorder %v6580_v53, %v5067_v11 }
 0x2f7   : > { %9801 = vst [vmem:[#allocation21_spill] sm:$0xff] %v6626_v51  ;;  %9802 = vst [vmem:[#allocation214_spill] sm:$0xff] %v6629_v26  ;;  %v1901_v38 = vmul.f32 %v6626_v51, %v5242_v28  ;;  %v1902_v52 = vmul.f32 %v6629_v26, %v9800_v49  ;;  %vm1574_vm3 = vcmp.eq.s32.totalorder %v6580_v53, %v5072_v13 }
 0x2f8   : > { %4468 = vset.pattern.permute.xlu1 %v9782_v33  ;;  %v6636_v32 = vpop.permute.xlu1 %1765  ;;  %9803 = vst [vmem:[#allocation215_spill] sm:$0xff] %v6646_v15  ;;  %v2125_v33 = vmul.f32 %v6646_v15, %v5242_v28  ;;  %v1769_v26 = vpop.permute.xlu0 %1768  ;;  %vm1799_vm4 = vcmp.eq.s32.totalorder %v6510_v22, %v5067_v11 }
 0x2f9   : > { %1792 = vperm.xlu1 %4468, %v6075_v48   ;;  %v1937_v51 = vadd.f32 %v1902_v52, %v1901_v38  ;;  %vm1809_vm8 = vcmp.eq.s32.totalorder %v1769_v26, %v5067_v11  ;;  %vm1810_vm9 = vcmp.eq.s32.totalorder %v1769_v26, %v5072_v13 }
 0x2fa   : > { %1714 = vadd.xlane.f32.xlu0 %v1713_v10  ;;  %v2161_v8 = vadd.f32 %v2126_v60, %v2125_v33  ;;  %v6681_v38 = vsel %vm1809_vm8, 1.0, %v9729_v7  ;;  %v9812_v33 = vld [vmem:[#allocation32_spill] sm:$0xff] }
 0x2fb   : > { %9807 = vst [vmem:[#allocation219_spill] sm:$0xff] %v6681_v38 }
 0x2fc   : > { %v6668_v52 = vpop.permute.xlu0 %1777 }
 0x2fd   : > { %4470 = vset.pattern.permute.xlu1 %v9766_v36  ;;  %v6656_v47 = vpop.permute.xlu1 %1989 }
 0x2fe   : > { %2016 = vperm.xlu1 %4470, %v6075_v48   ;;  %1938 = vadd.xlane.f32.xlu0 %v1937_v51 }
 0x302   : > { %2019 = vperm.xlu1 %4470, %v6067_v6   ;;  %v2211_v24 = vpop.permute.xlu1 %2210  ;;  %2162 = vadd.xlane.f32.xlu0 %v2161_v8 }
 0x303   : > { %vm2253_vm6 = vcmp.eq.s32.totalorder %v2211_v24, %v5067_v11  ;;  %vm2254_vm7 = vcmp.eq.s32.totalorder %v2211_v24, %v5072_v13 }
 0x304   : > { %v6663_v10 = vsel %vm2253_vm6, 1.0, %v9729_v7  ;;  %v6666_v36 = vsel %vm2254_vm7, 1.0, %v9729_v7  ;;  %vm2023_vm6 = vcmp.eq.s32.totalorder %v6520_v17, %v5067_v11  ;;  %vm2024_vm7 = vcmp.eq.s32.totalorder %v6520_v17, %v5072_v13 }
 0x305   : > { %9805 = vst [vmem:[#allocation217_spill] sm:$0xff] %v6663_v10  ;;  %9806 = vst [vmem:[#allocation218_spill] sm:$0xff] %v6666_v36  ;;  %v2349_v48 = vmul.f32 %v6663_v10, %v5242_v28  ;;  %v2350_v51 = vmul.f32 %v6666_v36, %v9800_v49  ;;  %v6684_v28 = vsel %vm1810_vm9, 1.0, %v9729_v7 }
 0x306   : > { %4471 = vset.pattern.permute.xlu1 %v9787_v40  ;;  %9808 = vst [vmem:[#allocation220_spill] sm:$0xff] %v6684_v28  ;;  %v1906_v10 = vmul.f32 %v6684_v28, %v9812_v33 }
 0x307   : > { %2243 = vperm.xlu1 %4471, %v6067_v6   ;;  %v1545_v8 = vpop.permute.xlu1 %1544  ;;  %v2385_v24 = vadd.f32 %v2350_v51, %v2349_v48  ;;  %v9811_v6 = vld [vmem:[#allocation29_spill] sm:$0xff]  ;;  %v6696_v48 = vpop.permute.xlu0 %1786 }
 0x308   : > { %vm1585_vm10 = vcmp.eq.s32.totalorder %v1545_v8, %v5067_v11  ;;  %vm1586_vm11 = vcmp.eq.s32.totalorder %v1545_v8, %v5072_v13  ;;  %v1905_v8 = vmul.f32 %v6681_v38, %v9811_v6 }
 0x309   : > { %v6687_v49 = vsel %vm1585_vm10, 1.0, %v9729_v7  ;;  %v6690_v26 = vsel %vm1586_vm11, 1.0, %v9729_v7  ;;  %2386 = vadd.xlane.f32.xlu0 %v2385_v24 }
 0x30a   : > { %9809 = vst [vmem:[#allocation221_spill] sm:$0xff] %v6687_v49  ;;  %9810 = vst [vmem:[#allocation222_spill] sm:$0xff] %v6690_v26  ;;  %v1681_v40 = vmul.f32 %v6687_v49, %v9811_v6  ;;  %v1682_v60 = vmul.f32 %v6690_v26, %v9812_v33  ;;  %v1943_v24 = vadd.f32 %v1906_v10, %v1905_v8  ;;  %v6732_v8 = vsel %vm1590_vm15, 1.0, %v9729_v7 }
 0x30b   : > { %v6698_v51 = vpop.permute.xlu1 %1547  ;;  %v6706_v39 = vpop.permute.xlu0 %1795  ;;  %9816 = vst [vmem:[#allocation224_spill] sm:$0xff] %v6732_v8 }
 0x30c   : > { %v1719_v15 = vadd.f32 %v1682_v60, %v1681_v40  ;;  %v6729_v60 = vsel %vm1589_vm14, 1.0, %v9729_v7 }
 0x30d   : > { %9815 = vst [vmem:[#allocation223_spill] sm:$0xff] %v6729_v60 }
 0x30e   : > { %1720 = vadd.xlane.f32.xlu0 %v1719_v15 }
 0x30f   : > { %v6710_v26 = vpop.permute.xlu0 %2201 }
 0x310   : > { %v6704_v36 = vpop.permute.xlu1 %1771  ;;  %vm2247_vm10 = vcmp.eq.s32.totalorder %v6710_v26, %v5067_v11  ;;  %vm2248_vm11 = vcmp.eq.s32.totalorder %v6710_v26, %v5072_v13 }
 0x312   : > { %1944 = vadd.xlane.f32.xlu0 %v1943_v24 }
 0x313   : > { %v6740_v12 = vpop.permute.xlu0 %2207 }
 0x315   : > { %v1993_v49 = vpop.permute.xlu1 %1992 }
 0x316   : > { %vm2033_vm12 = vcmp.eq.s32.totalorder %v1993_v49, %v5067_v11  ;;  %vm2034_vm13 = vcmp.eq.s32.totalorder %v1993_v49, %v5072_v13 }
 0x317   : > { %v6713_v38 = vsel %vm2033_vm12, 1.0, %v9729_v7  ;;  %v6716_v28 = vsel %vm2034_vm13, 1.0, %v9729_v7  ;;  %v6766_v53 = vpop.permute.xlu0 %2213  ;;  %vm1579_vm12 = vcmp.eq.s32.totalorder %v6474_v25, %v5067_v11  ;;  %vm1580_vm13 = vcmp.eq.s32.totalorder %v6474_v25, %v5072_v13 }
 0x318   : > { %9813 = vst [vmem:[#allocation29_spill] sm:$0xff] %v6713_v38  ;;  %9814 = vst [vmem:[#allocation32_spill] sm:$0xff] %v6716_v28  ;;  %v2129_v15 = vmul.f32 %v6713_v38, %v9811_v6  ;;  %v2130_v10 = vmul.f32 %v6716_v28, %v9812_v33  ;;  %v1685_v28 = vmul.f32 %v6729_v60, %v5413_v59 }
 0x31a   : > { %v2217_v49 = vpop.permute.xlu1 %2216  ;;  %v2167_v40 = vadd.f32 %v2130_v10, %v2129_v15 }
 0x31b   : > { %vm2257_vm0 = vcmp.eq.s32.totalorder %v2217_v49, %v5067_v11  ;;  %vm2258_vm1 = vcmp.eq.s32.totalorder %v2217_v49, %v5072_v13 }
 0x31c   : > { %v6735_v24 = vsel %vm2257_vm0, 1.0, %v9729_v7  ;;  %v6738_v38 = vsel %vm2258_vm1, 1.0, %v9729_v7  ;;  %2168 = vadd.xlane.f32.xlu0 %v2167_v40  ;;  %v1686_v40 = vmul.f32 %v6732_v8, %v5433_v27  ;;  %v6778_v8 = vsel %vm1800_vm5, 1.0, %v9729_v7 }
 0x31d   : > { %9817 = vst [vmem:[#allocation225_spill] sm:$0xff] %v6735_v24  ;;  %9818 = vst [vmem:[#allocation226_spill] sm:$0xff] %v6738_v38  ;;  %v2353_v15 = vmul.f32 %v6735_v24, %v9811_v6  ;;  %v2354_v10 = vmul.f32 %v6738_v38, %v9812_v33  ;;  %v6757_v6 = vsel %vm1573_vm2, 1.0, %v9729_v7  ;;  %v6760_v33 = vsel %vm1574_vm3, 1.0, %v9729_v7 }
 0x31e   : > { %v6748_v49 = vpop.permute.xlu1 %2219  ;;  %9819 = vst [vmem:[#allocation227_spill] sm:$0xff] %v6757_v6  ;;  %9820 = vst [vmem:[#allocation228_spill] sm:$0xff] %v6760_v33  ;;  %v1725_v24 = vadd.f32 %v1686_v40, %v1685_v28  ;;  %v2223_v28 = vpop.permute.xlu0 %2222  ;;  %v6791_v40 = vsel %vm2023_vm6, 1.0, %v9729_v7  ;;  %v6794_v38 = vsel %vm2024_vm7, 1.0, %v9729_v7  ;;  %vm1803_vm2 = vcmp.eq.s32.totalorder %v6567_v14, %v5067_v11 }
 0x31f   : > { %v2391_v20 = vadd.f32 %v2354_v10, %v2353_v15  ;;  %v1670_v15 = vmul.f32 %v6760_v33, %v5100_v23  ;;  %v6775_v10 = vsel %vm1799_vm4, 1.0, %v9729_v7  ;;  %9822 = vst [vmem:[#allocation230_spill] sm:$0xff] %v6778_v8  ;;  %v1896_v23 = vmul.f32 %v6778_v8, %v5133_v35  ;;  %9823 = vst [vmem:[#allocation231_spill] sm:$0xff] %v6791_v40 }
 0x320   : > { %9821 = vst [vmem:[#allocation229_spill] sm:$0xff] %v6775_v10  ;;  %v1895_v22 = vmul.f32 %v6775_v10, %v5115_v29  ;;  %9824 = vst [vmem:[#allocation232_spill] sm:$0xff] %v6794_v38  ;;  %vm2261_vm14 = vcmp.eq.s32.totalorder %v2223_v28, %v5067_v11  ;;  %vm2262_vm15 = vcmp.eq.s32.totalorder %v2223_v28, %v5072_v13  ;;  %v6824_v10 = vsel %vm2248_vm11, 1.0, %v9729_v7 }
 0x321   : > { %2392 = vadd.xlane.f32.xlu0 %v2391_v20  ;;  %v1669_v20 = vmul.f32 %v6757_v6, %v5080_v16  ;;  %v2119_v26 = vmul.f32 %v6791_v40, %v5115_v29  ;;  %9828 = vst [vmem:[#allocation236_spill] sm:$0xff] %v6824_v10  ;;  %v6829_v28 = vsel %vm2261_vm14, 1.0, %v9729_v7  ;;  %v6832_v40 = vsel %vm2262_vm15, 1.0, %v9729_v7 }
 0x322   : > { %v1928_v33 = vadd.f32 %v1896_v23, %v1895_v22  ;;  %9829 = vst [vmem:[#allocation237_spill] sm:$0xff] %v6829_v28  ;;  %9830 = vst [vmem:[#allocation238_spill] sm:$0xff] %v6832_v40  ;;  %v6844_v23 = vsel %vm1579_vm12, 1.0, %v9729_v7  ;;  %v2358_v25 = vmul.f32 %v6832_v40, %v5433_v27  ;;  %vm1804_vm3 = vcmp.eq.s32.totalorder %v6567_v14, %v5072_v13 }
 0x323   : > { %v6768_v60 = vpop.permute.xlu1 %1553  ;;  %9833 = vst [vmem:[#allocation241_spill] sm:$0xff] %v6844_v23  ;;  %vm2027_vm4 = vcmp.eq.s32.totalorder %v6587_v3, %v5067_v11  ;;  %vm2028_vm5 = vcmp.eq.s32.totalorder %v6587_v3, %v5072_v13  ;;  %vm2041_vm6 = vcmp.eq.s32.totalorder %v6525_v1, %v5067_v11  ;;  %vm2251_vm7 = vcmp.eq.s32.totalorder %v6740_v12, %v5067_v11 }
 0x324   : > { %vm2042_vm11 = vcmp.eq.s32.totalorder %v6525_v1, %v5072_v13  ;;  %vm1583_vm12 = vcmp.eq.s32.totalorder %v6483_v30, %v5067_v11 }
 0x325   : > { %1726 = vadd.xlane.f32.xlu0 %v1725_v24  ;;  %v1701_v24 = vadd.f32 %v1670_v15, %v1669_v20 }
 0x328   : > { %v1775_v16 = vpop.permute.xlu1 %1774 }
 0x329   : > { %vm1813_vm8 = vcmp.eq.s32.totalorder %v1775_v16, %v5067_v11  ;;  %vm1814_vm9 = vcmp.eq.s32.totalorder %v1775_v16, %v5072_v13  ;;  %v2120_v16 = vmul.f32 %v6794_v38, %v5133_v35 }
 0x32a   : > { %v6797_v17 = vsel %vm1813_vm8, 1.0, %v9729_v7  ;;  %v6800_v6 = vsel %vm1814_vm9, 1.0, %v9729_v7  ;;  %vm2252_vm8 = vcmp.eq.s32.totalorder %v6740_v12, %v5072_v13 }
 0x32b   : > { %9825 = vst [vmem:[#allocation233_spill] sm:$0xff] %v6797_v17  ;;  %9826 = vst [vmem:[#allocation234_spill] sm:$0xff] %v6800_v6  ;;  %v1909_v20 = vmul.f32 %v6797_v17, %v5413_v59  ;;  %v1910_v15 = vmul.f32 %v6800_v6, %v5433_v27  ;;  %1702 = vadd.xlane.f32.xlu1 %v1701_v24  ;;  %v6821_v24 = vsel %vm2247_vm10, 1.0, %v9729_v7 }
 0x32c   : > { %9827 = vst [vmem:[#allocation235_spill] sm:$0xff] %v6821_v24  ;;  %v2152_v2 = vadd.f32 %v2120_v16, %v2119_v26  ;;  %v6875_v26 = vsel %vm1803_vm2, 1.0, %v9729_v7  ;;  %vm2031_vm2 = vcmp.eq.s32.totalorder %v6656_v47, %v5067_v11 }
 0x32d   : > { %v1999_v17 = vpop.permute.xlu1 %1998  ;;  %v1949_v6 = vadd.f32 %v1910_v15, %v1909_v20  ;;  %v6854_v15 = vsel %vm1580_vm13, 1.0, %v9729_v7  ;;  %9835 = vst [vmem:[#allocation243_spill] sm:$0xff] %v6875_v26  ;;  %vm1584_vm13 = vcmp.eq.s32.totalorder %v6483_v30, %v5072_v13  ;;  %v6946_v30 = vsel %vm1583_vm12, 1.0, %v9729_v7 }
 0x32e   : > { %vm2037_vm0 = vcmp.eq.s32.totalorder %v1999_v17, %v5067_v11  ;;  %vm2038_vm1 = vcmp.eq.s32.totalorder %v1999_v17, %v5072_v13  ;;  %9834 = vst [vmem:[#allocation242_spill] sm:$0xff] %v6854_v15  ;;  %9845 = vst [vmem:[#allocation253_spill] sm:$0xff] %v6946_v30  ;;  %v6949_v1 = vsel %vm1584_vm13, 1.0, %v9729_v7  ;;  %vm1811_vm12 = vcmp.eq.s32.totalorder %v6704_v36, %v5067_v11 }
 0x32f   : > { %v6835_v38 = vsel %vm2037_vm0, 1.0, %v9729_v7  ;;  %v6838_v22 = vsel %vm2038_vm1, 1.0, %v9729_v7  ;;  %1929 = vadd.xlane.f32.xlu1 %v1928_v33  ;;  %1950 = vadd.xlane.f32.xlu0 %v1949_v6  ;;  %v2343_v6 = vmul.f32 %v6821_v24, %v5115_v29  ;;  %v2344_v33 = vmul.f32 %v6824_v10, %v5133_v35  ;;  %9846 = vst [vmem:[#allocation254_spill] sm:$0xff] %v6949_v1  ;;  %v9946_v10 = vld [vmem:[#allocation145_spill] sm:$0xff] }
 0x330   : > { %9831 = vst [vmem:[#allocation239_spill] sm:$0xff] %v6835_v38  ;;  %9832 = vst [vmem:[#allocation240_spill] sm:$0xff] %v6838_v22  ;;  %v2133_v17 = vmul.f32 %v6835_v38, %v5413_v59  ;;  %v2134_v20 = vmul.f32 %v6838_v22, %v5433_v27  ;;  %v2357_v38 = vmul.f32 %v6829_v28, %v5413_v59  ;;  %v6878_v59 = vsel %vm1804_vm3, 1.0, %v9729_v7 }
 0x331   : > { %v6860_v8 = vpop.permute.xlu1 %2001  ;;  %v1675_v29 = vmul.f32 %v6844_v23, %v5204_v5  ;;  %v1676_v35 = vmul.f32 %v6854_v15, %v5222_v4  ;;  %v2376_v16 = vadd.f32 %v2344_v33, %v2343_v6  ;;  %9836 = vst [vmem:[#allocation244_spill] sm:$0xff] %v6878_v59  ;;  %v6894_v6 = vsel %vm2028_vm5, 1.0, %v9729_v7  ;;  %v9944_v15 = vld [vmem:[#allocation139_spill] sm:$0xff] }
 0x332   : > { %v2173_v22 = vadd.f32 %v2134_v20, %v2133_v17  ;;  %v1900_v17 = vmul.f32 %v6878_v59, %v5222_v4  ;;  %v6891_v20 = vsel %vm2027_vm4, 1.0, %v9729_v7  ;;  %9838 = vst [vmem:[#allocation246_spill] sm:$0xff] %v6894_v6  ;;  %v2124_v33 = vmul.f32 %v6894_v6, %v5222_v4  ;;  %v9943_v59 = vld [vmem:[#allocation141_spill] sm:$0xff] }
 0x333   : > { %2153 = vadd.xlane.f32.xlu1 %v2152_v2  ;;  %v2397_v2 = vadd.f32 %v2358_v25, %v2357_v38  ;;  %v1710_v14 = vadd.f32 %v1676_v35, %v1675_v29  ;;  %9837 = vst [vmem:[#allocation245_spill] sm:$0xff] %v6891_v20  ;;  %v2123_v38 = vmul.f32 %v6891_v20, %v5204_v5  ;;  %v6917_v35 = vsel %vm2251_vm7, 1.0, %v9729_v7 }
 0x334   : > { %2174 = vadd.xlane.f32.xlu0 %v2173_v22  ;;  %v1899_v22 = vmul.f32 %v6875_v26, %v5204_v5  ;;  %9841 = vst [vmem:[#allocation249_spill] sm:$0xff] %v6917_v35  ;;  %vm1807_vm0 = vcmp.eq.s32.totalorder %v6636_v32, %v5067_v11  ;;  %vm1808_vm1 = vcmp.eq.s32.totalorder %v6636_v32, %v5072_v13 }
 0x335   : > { %v2158_v28 = vadd.f32 %v2124_v33, %v2123_v38  ;;  %v6976_v26 = vsel %vm1807_vm0, 1.0, %v9729_v7  ;;  %vm2032_vm3 = vcmp.eq.s32.totalorder %v6656_v47, %v5072_v13  ;;  %vm2255_vm4 = vcmp.eq.s32.totalorder %v6766_v53, %v5067_v11 }
 0x336   : > { %v6884_v27 = vpop.permute.xlu1 %2225  ;;  %v1934_v29 = vadd.f32 %v1900_v17, %v1899_v22  ;;  %v6934_v22 = vsel %vm2041_vm6, 1.0, %v9729_v7  ;;  %v6937_v17 = vsel %vm2042_vm11, 1.0, %v9729_v7  ;;  %vm2256_vm5 = vcmp.eq.s32.totalorder %v6766_v53, %v5072_v13 }
 0x337   : > { %2377 = vadd.xlane.f32.xlu1 %v2376_v16  ;;  %v6920_v16 = vsel %vm2252_vm8, 1.0, %v9729_v7  ;;  %9843 = vst [vmem:[#allocation251_spill] sm:$0xff] %v6934_v22  ;;  %9844 = vst [vmem:[#allocation252_spill] sm:$0xff] %v6937_v17  ;;  %v2137_v33 = vmul.f32 %v6934_v22, %v5498_v45  ;;  %v6996_v47 = vsel %vm2031_vm2, 1.0, %v9729_v7  ;;  %vm1821_vm6 = vcmp.eq.s32.totalorder %v6696_v48, %v5067_v11 }
 0x338   : > { %2398 = vadd.xlane.f32.xlu0 %v2397_v2  ;;  %9842 = vst [vmem:[#allocation250_spill] sm:$0xff] %v6920_v16  ;;  %v2348_v40 = vmul.f32 %v6920_v16, %v5222_v4  ;;  %9853 = vst [vmem:[#allocation257_spill] sm:$0xff] %v6996_v47  ;;  %vm1587_vm7 = vcmp.eq.s32.totalorder %v6698_v51, %v5067_v11  ;;  %vm1588_vm8 = vcmp.eq.s32.totalorder %v6698_v51, %v5072_v13  ;;  %v9942_v16 = vld [vmem:[#allocation124_spill] sm:$0xff] }
 0x339   : > { %vm1822_vm11 = vcmp.eq.s32.totalorder %v6696_v48, %v5072_v13  ;;  %vm1812_vm13 = vcmp.eq.s32.totalorder %v6704_v36, %v5072_v13  ;;  %vm2035_vm0 = vcmp.eq.s32.totalorder %v6517_v19, %v5067_v11  ;;  %vm2259_vm2 = vcmp.eq.s32.totalorder %v6748_v49, %v5067_v11 }
 0x33a   : > { %v2432_v24 = vmax.f32 %v9944_v15, %v9943_v59 }
 0x33b   : > { %v1557_v3 = vpop.permute.xlu1 %1556  ;;  %1711 = vadd.xlane.f32.xlu1 %v1710_v14 }
 0x33c   : > { %vm1593_vm9 = vcmp.eq.s32.totalorder %v1557_v3, %v5067_v11  ;;  %vm1594_vm10 = vcmp.eq.s32.totalorder %v1557_v3, %v5072_v13 }
 0x33d   : > { %v6911_v25 = vsel %vm1593_vm9, 1.0, %v9729_v7  ;;  %v6914_v12 = vsel %vm1594_vm10, 1.0, %v9729_v7 }
 0x33e   : > { %9839 = vst [vmem:[#allocation247_spill] sm:$0xff] %v6911_v25  ;;  %9840 = vst [vmem:[#allocation248_spill] sm:$0xff] %v6914_v12  ;;  %v1689_v2 = vmul.f32 %v6911_v25, %v5498_v45  ;;  %v1690_v14 = vmul.f32 %v6914_v12, %v5518_v41  ;;  %v2347_v12 = vmul.f32 %v6917_v35, %v5204_v5  ;;  %v9850_v35 = vld [vmem:[#allocation27_spill] sm:$0xff] }
 0x33f   : > { %1935 = vadd.xlane.f32.xlu1 %v1934_v29  ;;  %v1680_v32 = vmul.f32 %v6949_v1, %v9850_v35  ;;  %v9940_v1 = vld [vmem:[#allocation133_spill] sm:$0xff] }
 0x340   : > { %v1781_v3 = vpop.permute.xlu1 %1780  ;;  %v1731_v25 = vadd.f32 %v1690_v14, %v1689_v2  ;;  %v2138_v2 = vmul.f32 %v6937_v17, %v5518_v41  ;;  %v9849_v14 = vld [vmem:[#allocation25_spill] sm:$0xff]  ;;  %v2382_v20 = vadd.f32 %v2348_v40, %v2347_v12 }
 0x341   : > { %vm1817_vm14 = vcmp.eq.s32.totalorder %v1781_v3, %v5067_v11  ;;  %vm1818_vm15 = vcmp.eq.s32.totalorder %v1781_v3, %v5072_v13  ;;  %v1679_v3 = vmul.f32 %v6946_v30, %v9849_v14  ;;  %9851 = vst [vmem:[#allocation25_spill] sm:$0xff] %v6976_v26  ;;  %v1903_v17 = vmul.f32 %v6976_v26, %v9849_v14 }
 0x342   : > { %v6952_v29 = vsel %vm1817_vm14, 1.0, %v9729_v7  ;;  %v6955_v38 = vsel %vm1818_vm15, 1.0, %v9729_v7  ;;  %1732 = vadd.xlane.f32.xlu0 %v1731_v25  ;;  %v2179_v22 = vadd.f32 %v2138_v2, %v2137_v33  ;;  %v2127_v33 = vmul.f32 %v6996_v47, %v9849_v14 }
 0x343   : > { %9847 = vst [vmem:[#allocation255_spill] sm:$0xff] %v6952_v29  ;;  %9848 = vst [vmem:[#allocation256_spill] sm:$0xff] %v6955_v38  ;;  %v1913_v5 = vmul.f32 %v6952_v29, %v5498_v45  ;;  %v1914_v4 = vmul.f32 %v6955_v38, %v5518_v41  ;;  %2159 = vadd.xlane.f32.xlu1 %v2158_v28  ;;  %v6979_v28 = vsel %vm1808_vm1, 1.0, %v9729_v7 }
 0x344   : > { %v6969_v25 = vpop.permute.xlu1 %1783  ;;  %9852 = vst [vmem:[#allocation27_spill] sm:$0xff] %v6979_v28  ;;  %v1904_v40 = vmul.f32 %v6979_v28, %v9850_v35  ;;  %vm2036_vm1 = vcmp.eq.s32.totalorder %v6517_v19, %v5072_v13  ;;  %v9938_v28 = vld [vmem:[#allocation127_spill] sm:$0xff] }
 0x345   : > { %v1955_v29 = vadd.f32 %v1914_v4, %v1913_v5  ;;  %v1716_v5 = vadd.f32 %v1680_v32, %v1679_v3  ;;  %v7005_v4 = vsel %vm2256_vm5, 1.0, %v9729_v7  ;;  %v7096_v19 = vsel %vm2036_vm1, 1.0, %v9729_v7 }
 0x346   : > { %9856 = vst [vmem:[#allocation260_spill] sm:$0xff] %v7005_v4  ;;  %v1940_v2 = vadd.f32 %v1904_v40, %v1903_v17  ;;  %v2352_v17 = vmul.f32 %v7005_v4, %v9850_v35  ;;  %9868 = vst [vmem:[#allocation272_spill] sm:$0xff] %v7096_v19  ;;  %vm1592_vm5 = vcmp.eq.s32.totalorder %v6768_v60, %v5072_v13 }
 0x347   : > { %2383 = vadd.xlane.f32.xlu1 %v2382_v20  ;;  %1956 = vadd.xlane.f32.xlu0 %v1955_v29  ;;  %v6999_v20 = vsel %vm2032_vm3, 1.0, %v9729_v7  ;;  %v7002_v29 = vsel %vm2255_vm4, 1.0, %v9729_v7  ;;  %vm2260_vm3 = vcmp.eq.s32.totalorder %v6748_v49, %v5072_v13  ;;  %vm1591_vm4 = vcmp.eq.s32.totalorder %v6768_v60, %v5067_v11 }
 0x348   : > { %9854 = vst [vmem:[#allocation258_spill] sm:$0xff] %v6999_v20  ;;  %9855 = vst [vmem:[#allocation259_spill] sm:$0xff] %v7002_v29  ;;  %v2128_v53 = vmul.f32 %v6999_v20, %v9850_v35  ;;  %v7039_v35 = vsel %vm1588_vm8, 1.0, %v9729_v7  ;;  %vm1596_vm1 = vcmp.eq.s32.totalorder %v6615_v50, %v5072_v13 }
 0x349   : > { %v6991_v12 = vpop.permute.xlu1 %2007  ;;  %9860 = vst [vmem:[#allocation264_spill] sm:$0xff] %v7039_v35 }
 0x34b   : > { %1717 = vadd.xlane.f32.xlu1 %v1716_v5  ;;  %2180 = vadd.xlane.f32.xlu0 %v2179_v22  ;;  %v2351_v22 = vmul.f32 %v7002_v29, %v9849_v14  ;;  %v7036_v14 = vsel %vm1587_vm7, 1.0, %v9729_v7  ;;  %v7093_v29 = vsel %vm2035_vm0, 1.0, %v9729_v7 }
 0x34c   : > { %9859 = vst [vmem:[#allocation263_spill] sm:$0xff] %v7036_v14  ;;  %9867 = vst [vmem:[#allocation271_spill] sm:$0xff] %v7093_v29 }
 0x34d   : > { %v2388_v48 = vadd.f32 %v2352_v17, %v2351_v22 }
 0x34e   : > { %v2229_v3 = vpop.permute.xlu1 %2228 }
 0x34f   : > { %vm2265_vm9 = vcmp.eq.s32.totalorder %v2229_v3, %v5067_v11  ;;  %vm2266_vm10 = vcmp.eq.s32.totalorder %v2229_v3, %v5072_v13  ;;  %1941 = vadd.xlane.f32.xlu1 %v1940_v2  ;;  %v2164_v2 = vadd.f32 %v2128_v53, %v2127_v33  ;;  %v7045_v3 = vsel %vm1821_vm6, 1.0, %v9729_v7  ;;  %v7054_v53 = vpop.permute.xlu0 %2231 }
 0x350   : > { %v7024_v32 = vsel %vm2265_vm9, 1.0, %v9729_v7  ;;  %v7027_v40 = vsel %vm2266_vm10, 1.0, %v9729_v7  ;;  %9861 = vst [vmem:[#allocation265_spill] sm:$0xff] %v7045_v3  ;;  %v7052_v33 = vsel %vm1822_vm11, 1.0, %v9729_v7  ;;  %vm1815_vm6 = vcmp.eq.s32.totalorder %v6668_v52, %v5067_v11 }
 0x351   : > { %9857 = vst [vmem:[#allocation261_spill] sm:$0xff] %v7024_v32  ;;  %9858 = vst [vmem:[#allocation262_spill] sm:$0xff] %v7027_v40  ;;  %v2361_v51 = vmul.f32 %v7024_v32, %v5498_v45  ;;  %v2362_v5 = vmul.f32 %v7027_v40, %v5518_v41  ;;  %v1683_v32 = vmul.f32 %v7036_v14, %v5370_v44 }
 0x352   : > { %9862 = vst [vmem:[#allocation266_spill] sm:$0xff] %v7052_v33  ;;  %v1684_v40 = vmul.f32 %v7039_v35, %v5390_v55  ;;  %v1918_v38 = vmul.f32 %v7052_v33, %v5641_v18  ;;  %v7111_v33 = vsel %vm2259_vm2, 1.0, %v9729_v7  ;;  %vm1601_vm9 = vcmp.eq.s32.totalorder %v6638_v56, %v5067_v11 }
 0x353   : > { %v1563_v41 = vpop.permute.xlu1 %1562  ;;  %2165 = vadd.xlane.f32.xlu1 %v2164_v2  ;;  %v2403_v45 = vadd.f32 %v2362_v5, %v2361_v51  ;;  %v7069_v5 = vsel %vm1811_vm12, 1.0, %v9729_v7  ;;  %v7072_v2 = vsel %vm1812_vm13, 1.0, %v9729_v7  ;;  %9869 = vst [vmem:[#allocation273_spill] sm:$0xff] %v7111_v33  ;;  %v2355_v49 = vmul.f32 %v7111_v33, %v5370_v44 }
 0x354   : > { %vm1597_vm14 = vcmp.eq.s32.totalorder %v1563_v41, %v5067_v11  ;;  %vm1598_vm15 = vcmp.eq.s32.totalorder %v1563_v41, %v5072_v13  ;;  %9865 = vst [vmem:[#allocation269_spill] sm:$0xff] %v7069_v5  ;;  %9866 = vst [vmem:[#allocation270_spill] sm:$0xff] %v7072_v2  ;;  %v1722_v35 = vadd.f32 %v1684_v40, %v1683_v32 }
 0x355   : > { %v7063_v36 = vsel %vm1597_vm14, 1.0, %v9729_v7  ;;  %v7066_v51 = vsel %vm1598_vm15, 1.0, %v9729_v7  ;;  %2404 = vadd.xlane.f32.xlu0 %v2403_v45  ;;  %v1917_v45 = vmul.f32 %v7045_v3, %v5601_v54  ;;  %v2131_v32 = vmul.f32 %v7093_v29, %v5370_v44 }
 0x356   : > { %9863 = vst [vmem:[#allocation267_spill] sm:$0xff] %v7063_v36  ;;  %9864 = vst [vmem:[#allocation268_spill] sm:$0xff] %v7066_v51  ;;  %v1693_v22 = vmul.f32 %v7063_v36, %v5601_v54  ;;  %v1694_v17 = vmul.f32 %v7066_v51, %v5641_v18  ;;  %v1907_v36 = vmul.f32 %v7069_v5, %v5370_v44 }
 0x357   : > { %v7082_v41 = vpop.permute.xlu1 %1565  ;;  %2389 = vadd.xlane.f32.xlu1 %v2388_v48  ;;  %v1908_v51 = vmul.f32 %v7072_v2, %v5390_v55  ;;  %v7098_v48 = vpop.permute.xlu0 %2240  ;;  %v2132_v40 = vmul.f32 %v7096_v19, %v5390_v55  ;;  %vm1816_vm10 = vcmp.eq.s32.totalorder %v6668_v52, %v5072_v13  ;;  %vm1602_vm11 = vcmp.eq.s32.totalorder %v6638_v56, %v5072_v13 }
 0x358   : > { %v1737_v14 = vadd.f32 %v1694_v17, %v1693_v22  ;;  %v1961_v17 = vadd.f32 %v1918_v38, %v1917_v45  ;;  %v7132_v45 = vsel %vm1592_vm5, 1.0, %v9729_v7  ;;  %vm1595_vm12 = vcmp.eq.s32.totalorder %v6615_v50, %v5067_v11 }
 0x359   : > { %v1946_v3 = vadd.f32 %v1908_v51, %v1907_v36  ;;  %v2170_v36 = vadd.f32 %v2132_v40, %v2131_v32  ;;  %v7129_v51 = vsel %vm1591_vm4, 1.0, %v9729_v7  ;;  %9872 = vst [vmem:[#allocation276_spill] sm:$0xff] %v7132_v45  ;;  %v7158_v32 = vsel %vm1815_vm6, 1.0, %v9729_v7 }
 0x35a   : > { %1738 = vadd.xlane.f32.xlu0 %v1737_v14  ;;  %v7114_v14 = vsel %vm2260_vm3, 1.0, %v9729_v7  ;;  %9871 = vst [vmem:[#allocation275_spill] sm:$0xff] %v7129_v51  ;;  %9875 = vst [vmem:[#allocation279_spill] sm:$0xff] %v7158_v32  ;;  %v1687_v40 = vmul.f32 %v7129_v51, %v5456_v34  ;;  %vm2039_vm13 = vcmp.eq.s32.totalorder %v6860_v8, %v5067_v11 }
 0x35b   : > { %1723 = vadd.xlane.f32.xlu1 %v1722_v35  ;;  %9870 = vst [vmem:[#allocation274_spill] sm:$0xff] %v7114_v14  ;;  %v7116_v5 = vpop.xlane.xlu0 %1705  ;;  %v2356_v38 = vmul.f32 %v7114_v14, %v5390_v55  ;;  %vm2040_vm14 = vcmp.eq.s32.totalorder %v6860_v8, %v5072_v13  ;;  %vm2263_vm2 = vcmp.eq.s32.totalorder %v6884_v27, %v5067_v11  ;;  %v7228_v8 = vsel %vm1595_vm12, 1.0, %v9729_v7 }
 0x35c   : > { %v7104_v22 = vpop.permute.xlu1 %1789  ;;  %vm2264_vm3 = vcmp.eq.s32.totalorder %v6884_v27, %v5072_v13  ;;  %9883 = vst [vmem:[#allocation287_spill] sm:$0xff] %v7228_v8  ;;  %vm1819_vm4 = vcmp.eq.s32.totalorder %v6969_v25, %v5067_v11  ;;  %vm1820_vm5 = vcmp.eq.s32.totalorder %v6969_v25, %v5072_v13  ;;  %vm2267_vm6 = vcmp.eq.s32.totalorder %v7054_v53, %v5067_v11 }
 0x35d   : > { %v7243_v50 = vsel %vm2264_vm3, 1.0, %v9729_v7  ;;  %vm2044_vm12 = vcmp.eq.s32.totalorder %v6991_v12, %v5072_v13  ;;  %vm1824_vm3 = vcmp.eq.s32.totalorder %v7104_v22, %v5072_v13 }
 0x35e   : > { %1962 = vadd.xlane.f32.xlu0 %v1961_v17  ;;  %9886 = vst [vmem:[#allocation290_spill] sm:$0xff] %v7243_v50  ;;  %v2360_v2 = vmul.f32 %v7243_v50, %v5475_v37 }
 0x35f   : > { %1947 = vadd.xlane.f32.xlu1 %v1946_v3  ;;  %v7134_v17 = vpop.xlane.xlu0 %1926 }
 0x361   : > { %v2011_v35 = vpop.permute.xlu1 %2010 }
 0x362   : > { %vm2045_vm7 = vcmp.eq.s32.totalorder %v2011_v35, %v5067_v11  ;;  %vm2046_vm8 = vcmp.eq.s32.totalorder %v2011_v35, %v5072_v13  ;;  %v1688_v35 = vmul.f32 %v7132_v45, %v5475_v37 }
 0x363   : > { %v7143_v55 = vsel %vm2045_vm7, 1.0, %v9729_v7  ;;  %v7146_v44 = vsel %vm2046_vm8, 1.0, %v9729_v7  ;;  %2171 = vadd.xlane.f32.xlu1 %v2170_v36  ;;  %v2394_v36 = vadd.f32 %v2356_v38, %v2355_v49  ;;  %v7182_v49 = vsel %vm1602_vm11, 1.0, %v9729_v7 }
 0x364   : > { %9873 = vst [vmem:[#allocation277_spill] sm:$0xff] %v7143_v55  ;;  %9874 = vst [vmem:[#allocation278_spill] sm:$0xff] %v7146_v44  ;;  %v2141_v60 = vmul.f32 %v7143_v55, %v5601_v54  ;;  %v2142_v3 = vmul.f32 %v7146_v44, %v5641_v18  ;;  %v7167_v55 = vsel %vm1601_vm9, 1.0, %v9729_v7  ;;  %v7170_v44 = vsel %vm1816_vm10, 1.0, %v9729_v7 }
 0x365   : > { %9876 = vst [vmem:[#allocation280_spill] sm:$0xff] %v7167_v55  ;;  %9877 = vst [vmem:[#allocation281_spill] sm:$0xff] %v7170_v44  ;;  %v1911_v38 = vmul.f32 %v7158_v32, %v5456_v34  ;;  %v1728_v45 = vadd.f32 %v1688_v35, %v1687_v40  ;;  %v1697_v32 = vmul.f32 %v7167_v55, %v5759_v46 }
 0x366   : > { %v2235_v33 = vpop.permute.xlu1 %2234  ;;  %v2185_v52 = vadd.f32 %v2142_v3, %v2141_v60  ;;  %9878 = vst [vmem:[#allocation282_spill] sm:$0xff] %v7182_v49  ;;  %v7186_v60 = vpop.xlane.xlu0 %2150  ;;  %v1698_v40 = vmul.f32 %v7182_v49, %v5799_v31  ;;  %vm2273_vm7 = vcmp.eq.s32.totalorder %v7098_v48, %v5067_v11  ;;  %vm2274_vm8 = vcmp.eq.s32.totalorder %v7098_v48, %v5072_v13 }
 0x367   : > { %vm2269_vm15 = vcmp.eq.s32.totalorder %v2235_v33, %v5067_v11  ;;  %vm2270_vm0 = vcmp.eq.s32.totalorder %v2235_v33, %v5072_v13  ;;  %2395 = vadd.xlane.f32.xlu1 %v2394_v36  ;;  %v1912_v33 = vmul.f32 %v7170_v44, %v5475_v37  ;;  %vm2043_vm11 = vcmp.eq.s32.totalorder %v6991_v12, %v5067_v11 }
 0x368   : > { %v7189_v3 = vsel %vm2269_vm15, 1.0, %v9729_v7  ;;  %v7192_v51 = vsel %vm2270_vm0, 1.0, %v9729_v7  ;;  %2186 = vadd.xlane.f32.xlu0 %v2185_v52  ;;  %v7208_v52 = vsel %vm2039_vm13, 1.0, %v9729_v7  ;;  %v1743_v14 = vadd.f32 %v1698_v40, %v1697_v32 }
 0x369   : > { %9879 = vst [vmem:[#allocation283_spill] sm:$0xff] %v7189_v3  ;;  %9880 = vst [vmem:[#allocation284_spill] sm:$0xff] %v7192_v51  ;;  %v2365_v56 = vmul.f32 %v7189_v3, %v5601_v54  ;;  %v2366_v36 = vmul.f32 %v7192_v51, %v5641_v18  ;;  %v7214_v54 = vsel %vm2040_vm14, 1.0, %v9729_v7  ;;  %v7233_v3 = vsel %vm1596_vm1, 1.0, %v9729_v7 }
 0x36a   : > { %9881 = vst [vmem:[#allocation285_spill] sm:$0xff] %v7208_v52  ;;  %9882 = vst [vmem:[#allocation286_spill] sm:$0xff] %v7214_v54  ;;  %v7216_v18 = vpop.permute.xlu1 %2237  ;;  %v2135_v49 = vmul.f32 %v7208_v52, %v5456_v34  ;;  %v2136_v51 = vmul.f32 %v7214_v54, %v5475_v37  ;;  %v1952_v27 = vadd.f32 %v1912_v33, %v1911_v38  ;;  %v9889_v33 = vld [vmem:[#allocation113_spill] sm:$0xff]  ;;  %v7307_v40 = vsel %vm2267_vm6, 1.0, %v9729_v7 }
 0x36b   : > { %1729 = vadd.xlane.f32.xlu1 %v1728_v45  ;;  %v2409_v35 = vadd.f32 %v2366_v36, %v2365_v56  ;;  %9884 = vst [vmem:[#allocation288_spill] sm:$0xff] %v7233_v3  ;;  %v7240_v45 = vsel %vm2263_vm2, 1.0, %v9729_v7  ;;  %v9887_v56 = vld [vmem:[#allocation111_spill] sm:$0xff]  ;;  %v9888_v36 = vld [vmem:[#allocation109_spill] sm:$0xff]  ;;  %v1691_v52 = vmul.f32 %v7228_v8, %v5541_v61  ;;  %vm2268_vm13 = vcmp.eq.s32.totalorder %v7054_v53, %v5072_v13 }
 0x36c   : > { %v7230_v55 = vpop.xlane.xlu0 %2374  ;;  %9885 = vst [vmem:[#allocation289_spill] sm:$0xff] %v7240_v45  ;;  %v2423_v44 = vmax.f32 %v9888_v36, %v9887_v56  ;;  %v2359_v19 = vmul.f32 %v7240_v45, %v5456_v34  ;;  %v2176_v47 = vadd.f32 %v2136_v51, %v2135_v49  ;;  %v7275_v51 = vsel %vm1819_vm4, 1.0, %v9729_v7  ;;  %9894 = vst [vmem:[#allocation292_spill] sm:$0xff] %v7307_v40 }
 0x36d   : > { %2410 = vadd.xlane.f32.xlu0 %v2409_v35  ;;  %v1692_v35 = vmul.f32 %v7233_v3, %v5561_v21  ;;  %9890 = vst [vmem:[#allocation111_spill] sm:$0xff] %v7275_v51  ;;  %v7285_v49 = vsel %vm1820_vm5, 1.0, %v9729_v7  ;;  %v4500_v3 = vld [vmem:[%s9154_s4 + $0x68] sm:$0xff]   ;;  %vm1599_vm0 = vcmp.eq.s32.totalorder %v7082_v41, %v5067_v11  ;;  %vm1600_vm1 = vcmp.eq.s32.totalorder %v7082_v41, %v5072_v13 }
 0x36e   : > { %v2439_v54 = vmax.f32 %v2423_v44, %v9889_v33  ;;  %v4497_v44 = vld [vmem:[%s9154_s4 + $0x38] sm:$0xff]   ;;  %9891 = vst [vmem:[#allocation109_spill] sm:$0xff] %v7285_v49  ;;  %vm1823_vm2 = vcmp.eq.s32.totalorder %v7104_v22, %v5067_v11  ;;  %vm2047_vm4 = vcmp.eq.s32.totalorder %v6551_v42, %v5067_v11  ;;  %vm2048_vm5 = vcmp.eq.s32.totalorder %v6551_v42, %v5072_v13 }
 0x36f   : > { %v7247_v29 = vpop.permute.xlu1 %1571  ;;  %1953 = vadd.xlane.f32.xlu1 %v1952_v27  ;;  %v1734_v34 = vadd.f32 %v1692_v35, %v1691_v52  ;;  %v7313_v27 = vsel %vm2273_vm7, 1.0, %v9729_v7  ;;  %v7319_v35 = vsel %vm2274_vm8, 1.0, %v9729_v7  ;;  %vm2271_vm6 = vcmp.eq.s32.totalorder %v7216_v18, %v5067_v11 }
 0x370   : > { %v7253_v38 = vpop.xlane.xlu0 %1708  ;;  %v2455_v32 = vmax.f32 %v2439_v54, %v6424_v58  ;;  %9895 = vst [vmem:[#allocation293_spill] sm:$0xff] %v7313_v27  ;;  %9896 = vst [vmem:[#allocation294_spill] sm:$0xff] %v7319_v35  ;;  %vm2272_vm7 = vcmp.eq.s32.totalorder %v7216_v18, %v5072_v13  ;;  %vm1603_vm8 = vcmp.eq.s32.totalorder %v7247_v29, %v5067_v11 }
 0x371   : > { %1744 = vadd.xlane.f32.xlu0 %v1743_v14  ;;  %v4496_v14 = vld [vmem:[%s9154_s4 + $0x78] sm:$0xff]   ;;  %v7496_v18 = vsel %vm2272_vm7, 1.0, %v9729_v7 }
 0x372   : > { %4349 = vmatprep.subr.bf16.mxu1 %v4496_v14  ;;  %v1915_v14 = vmul.f32 %v7275_v51, %v5541_v61  ;;  %v7341_v51 = vsel %vm2044_vm12, 1.0, %v9729_v7  ;;  %v2471_v8 = vmax.f32 %v2455_v32, %v7253_v38  ;;  %9912 = vst [vmem:[#allocation304_spill] sm:$0xff] %v7496_v18 }
 0x373   : > { %2177 = vadd.xlane.f32.xlu1 %v2176_v47  ;;  %v2400_v47 = vadd.f32 %v2360_v2, %v2359_v19  ;;  %4350 = vmatpush3.bf16.msra.mxu1 %v4497_v44  ;;  %v7332_v44 = vsel %vm2043_vm11, 1.0, %v9729_v7  ;;  %9898 = vst [vmem:[#allocation296_spill] sm:$0xff] %v7341_v51  ;;  %vm1828_vm11 = vcmp.eq.s32.totalorder %v6706_v39, %v5072_v13 }
 0x374   : > { %v1793_v37 = vpop.permute.xlu1 %1792  ;;  %v7279_v25 = vpop.xlane.xlu0 %1932  ;;  %9897 = vst [vmem:[#allocation295_spill] sm:$0xff] %v7332_v44 }
 0x375   : > { %vm1825_vm9 = vcmp.eq.s32.totalorder %v1793_v37, %v5067_v11  ;;  %vm1826_vm10 = vcmp.eq.s32.totalorder %v1793_v37, %v5072_v13  ;;  %v4498_v37 = vld [vmem:[%s9154_s4 + $0x70] sm:$0xff]   ;;  %v2487_v53 = vmax.f32 %v2471_v8, %v7279_v25  ;;  %v4501_v8 = vld [vmem:[%s9154_s4 + $0x28] sm:$0xff]  }
 0x376   : > { %v7290_v52 = vsel %vm1825_vm9, 1.0, %v9729_v7  ;;  %v7293_v54 = vsel %vm1826_vm10, 1.0, %v9729_v7  ;;  %4351 = vmatprep.subr.bf16.mxu1 %v4498_v37  ;;  %vm1604_vm9 = vcmp.eq.s32.totalorder %v7247_v29, %v5072_v13  ;;  %vm1827_vm10 = vcmp.eq.s32.totalorder %v6706_v39, %v5067_v11 }
 0x377   : > { %9892 = vst [vmem:[#allocation113_spill] sm:$0xff] %v7290_v52  ;;  %9893 = vst [vmem:[#allocation291_spill] sm:$0xff] %v7293_v54  ;;  %v1921_v2 = vmul.f32 %v7290_v52, %v5759_v46  ;;  %v1922_v19 = vmul.f32 %v7293_v54, %v5799_v31  ;;  %2401 = vadd.xlane.f32.xlu1 %v2400_v47  ;;  %v1916_v47 = vmul.f32 %v7285_v49, %v5561_v21  ;;  %v4499_v54 = vld [vmem:[%s9154_s4 + $0x30] sm:$0xff]  }
 0x378   : > { %v7354_v49 = vpop.xlane.xlu0 %2156  ;;  %4352 = vmatpush3.bf16.msra.mxu1 %v4499_v54  ;;  %v2363_v54 = vmul.f32 %v7307_v40, %v5541_v61  ;;  %v2368_v29 = vmul.f32 %v7496_v18, %v5719_v63 }
 0x379   : > { %v2017_v52 = vpop.permute.xlu1 %2016  ;;  %v1967_v48 = vadd.f32 %v1922_v19, %v1921_v2  ;;  %v7350_v2 = vsel %vm2268_vm13, 1.0, %v9729_v7  ;;  %v2369_v19 = vmul.f32 %v7313_v27, %v5759_v46  ;;  %4353 = vmatprep.subr.bf16.mxu1 %v4500_v3  ;;  %v4502_v3 = vld [vmem:[%s9154_s4 + $0x60] sm:$0xff]  }
 0x37a   : > { %vm2049_vm14 = vcmp.eq.s32.totalorder %v2017_v52, %v5067_v11  ;;  %vm2050_vm15 = vcmp.eq.s32.totalorder %v2017_v52, %v5072_v13  ;;  %9899 = vst [vmem:[#allocation297_spill] sm:$0xff] %v7350_v2  ;;  %v2370_v52 = vmul.f32 %v7319_v35, %v5799_v31  ;;  %v1958_v35 = vadd.f32 %v1916_v47, %v1915_v14 }
 0x37b   : > { %v7357_v12 = vsel %vm2049_vm14, 1.0, %v9729_v7  ;;  %v7360_v32 = vsel %vm2050_vm15, 1.0, %v9729_v7  ;;  %1735 = vadd.xlane.f32.xlu1 %v1734_v34  ;;  %1968 = vadd.xlane.f32.xlu0 %v1967_v48  ;;  %v2139_v34 = vmul.f32 %v7332_v44, %v5541_v61  ;;  %v2140_v48 = vmul.f32 %v7341_v51, %v5561_v21 }
 0x37c   : > { %9900 = vst [vmem:[#allocation298_spill] sm:$0xff] %v7357_v12  ;;  %9901 = vst [vmem:[#allocation299_spill] sm:$0xff] %v7360_v32  ;;  %v2145_v37 = vmul.f32 %v7357_v12, %v5759_v46  ;;  %v2146_v27 = vmul.f32 %v7360_v32, %v5799_v31  ;;  %v2503_v46 = vmax.f32 %v2487_v53, %v7354_v49  ;;  %v9902_v12 = vld [vmem:[#allocation114_spill] sm:$0xff]  ;;  %v9903_v32 = vld [vmem:[#allocation112_spill] sm:$0xff]  ;;  %4354 = vmatpush3.bf16.msra.mxu1 %v4501_v8 }
 0x37d   : > { %v2364_v14 = vmul.f32 %v7350_v2, %v5561_v21  ;;  %v2425_v44 = vmax.f32 %v9903_v32, %v9902_v12  ;;  %v2415_v41 = vadd.f32 %v2370_v52, %v2369_v19  ;;  %v7399_v61 = vsel %vm1599_vm0, 1.0, %v9729_v7  ;;  %4355 = vmatprep.subr.bf16.mxu1 %v4502_v3 }
 0x37e   : > { %v2191_v31 = vadd.f32 %v2146_v27, %v2145_v37  ;;  %9904 = vst [vmem:[#allocation114_spill] sm:$0xff] %v7399_v61  ;;  %v7402_v21 = vsel %vm1600_vm1, 1.0, %v9729_v7  ;;  %v2182_v27 = vadd.f32 %v2140_v48, %v2139_v34 }
 0x37f   : > { %1959 = vadd.xlane.f32.xlu1 %v1958_v35  ;;  %v7388_v47 = vpop.xlane.xlu0 %2380  ;;  %9905 = vst [vmem:[#allocation112_spill] sm:$0xff] %v7402_v21  ;;  %v4503_v35 = vld [vmem:[%s9154_s4 + $0x20] sm:$0xff]  }
 0x380   : > { %v7393_v51 = vmax.f32 %v2503_v46, %v7388_v47  ;;  %2192 = vadd.xlane.f32.xlu0 %v2191_v31  ;;  %4356 = vmatpush3.bf16.msra.mxu1 %v4503_v35  ;;  %v7433_v46 = vsel %vm1823_vm2, 1.0, %v9729_v7 }
 0x381   : > { %9906 = vst [vmem:[#allocation300_spill] sm:$0xff] %v7433_v46 }
 0x382   : > { %v2535_v19 = vsub.f32 %v9888_v36, %v7393_v51  ;;  %v2583_v52 = vsub.f32 %v9887_v56, %v7393_v51  ;;  %v2631_v53 = vsub.f32 %v9889_v33, %v7393_v51  ;;  %v2679_v37 = vsub.f32 %v6424_v58, %v7393_v51 }
 0x383   : > { %2183 = vadd.xlane.f32.xlu1 %v2182_v27  ;;  %v7423_v34 = vpop.xlane.xlu0 %1714  ;;  %v2406_v36 = vadd.f32 %v2364_v14, %v2363_v54  ;;  %v1695_v56 = vmul.f32 %v7399_v61, %v5680_v43  ;;  %v1696_v33 = vmul.f32 %v7402_v21, %v5719_v63  ;;  %v7439_v58 = vsel %vm1824_vm3, 1.0, %v9729_v7  ;;  %v9908_v14 = vld [vmem:[#allocation119_spill] sm:$0xff] }
 0x384   : > { %v2553_v48 = vmul.f32 1.442695, %v2535_v19  ;;  %v2601_v8 = vmul.f32 1.442695, %v2583_v52  ;;  %2416 = vadd.xlane.f32.xlu0 %v2415_v41  ;;  %9907 = vst [vmem:[#allocation301_spill] sm:$0xff] %v7439_v58  ;;  %v2727_v54 = vsub.f32 %v7253_v38, %v7393_v51  ;;  %v2441_v3 = vmax.f32 %v2425_v44, %v9908_v14  ;;  %v4504_v41 = vld [vmem:[%s9154_s4 + $0x58] sm:$0xff]  }
 0x385   : > { %v2649_v31 = vmul.f32 1.442695, %v2631_v53  ;;  %v7451_v27 = vsel %vm2047_vm4, 1.0, %v9729_v7  ;;  %v2697_v22 = vmul.f32 1.442695, %v2679_v37  ;;  %v2775_v35 = vsub.f32 %v7279_v25, %v7393_v51  ;;  %v4505_v38 = vld [vmem:[%s9154_s4 + $0x18] sm:$0xff]   ;;  %4357 = vmatprep.subr.bf16.mxu1 %v4504_v41 }
 0x386   : > { %4512 = vpow2.f32 %v2553_v48  ;;  %9909 = vst [vmem:[#allocation119_spill] sm:$0xff] %v7451_v27  ;;  %v7462_v44 = vsel %vm2048_vm5, 1.0, %v9729_v7  ;;  %v1919_v19 = vmul.f32 %v7433_v46, %v5680_v43  ;;  %v1920_v52 = vmul.f32 %v7439_v58, %v5719_v63  ;;  %v4506_v37 = vld [vmem:[%s9154_s4 + $0x50] sm:$0xff]   ;;  %4358 = vmatpush3.bf16.msra.mxu1 %v4505_v38  ;;  %v4508_v41 = vld [vmem:[%s9154_s4 + $0x48] sm:$0xff]  }
 0x387   : > { %4514 = vpow2.f32 %v2601_v8  ;;  %2407 = vadd.xlane.f32.xlu1 %v2406_v36  ;;  %9910 = vst [vmem:[#allocation302_spill] sm:$0xff] %v7462_v44  ;;  %v7468_v53 = vpop.xlane.xlu0 %1938  ;;  %v1740_v25 = vadd.f32 %v1696_v33, %v1695_v56  ;;  %v2745_v42 = vmul.f32 1.442695, %v2727_v54  ;;  %v2823_v36 = vsub.f32 %v7354_v49, %v7393_v51  ;;  %v4507_v48 = vld [vmem:[%s9154_s4 + $0x10] sm:$0xff]   ;;  %4359 = vmatprep.subr.bf16.mxu1 %v4506_v37  ;;  %v9920_v46 = vld [vmem:[#allocation107_spill] sm:$0xff] }
 0x388   : > { %4516 = vpow2.f32 %v2649_v31  ;;  %v2457_v56 = vmax.f32 %v2441_v3, %v6429_v9  ;;  %v2143_v33 = vmul.f32 %v7451_v27, %v5680_v43  ;;  %v2144_v8 = vmul.f32 %v7462_v44, %v5719_v63  ;;  %v9919_v63 = vld [vmem:[#allocation103_spill] sm:$0xff] }
 0x389   : > { %4518 = vpow2.f32 %v2697_v22  ;;  %v2793_v31 = vmul.f32 1.442695, %v2775_v35  ;;  %v2871_v49 = vsub.f32 %v7388_v47, %v7393_v51  ;;  %v7490_v54 = vsel %vm2271_vm6, 1.0, %v9729_v7  ;;  %v4509_v51 = vld [vmem:[%s9154_s4 + $0x8] sm:$0xff]   ;;  %v9913_v47 = vld [vmem:[#allocation105_spill] sm:$0xff]  ;;  %v9914_v35 = vld [vmem:[#allocation104_spill] sm:$0xff] }
 0x38a   : > { %9911 = vst [vmem:[#allocation303_spill] sm:$0xff] %v7490_v54  ;;  %v1964_v3 = vadd.f32 %v1920_v52, %v1919_v19  ;;  %4520 = vpow2.f32 %v2745_v42  ;;  %v2841_v38 = vmul.f32 1.442695, %v2823_v36  ;;  %v2473_v22 = vmax.f32 %v2457_v56, %v7423_v34  ;;  %4360 = vmatpush3.bf16.msra.mxu1 %v4507_v48  ;;  %v9915_v19 = vld [vmem:[#allocation108_spill] sm:$0xff]  ;;  %v9916_v52 = vld [vmem:[#allocation106_spill] sm:$0xff]  ;;  %v9924_v58 = vld [vmem:[#allocation115_spill] sm:$0xff] }
 0x38b   : > { %1741 = vadd.xlane.f32.xlu1 %v1740_v25  ;;  %v2421_v25 = vmax.f32 %v9914_v35, %v9913_v47  ;;  %v2422_v37 = vmax.f32 %v9916_v52, %v9915_v19  ;;  %v7510_v42 = vpop.xlane.xlu0 %2162  ;;  %4361 = vmatprep.subr.bf16.mxu1 %v4508_v41  ;;  %4522 = vpow2.f32 %v2793_v31  ;;  %v2889_v36 = vmul.f32 1.442695, %v2871_v49  ;;  %v4510_v31 = vld [vmem:[%s9154_s4 + $0x40] sm:$0xff]  }
 0x38c   : > { %v2489_v48 = vmax.f32 %v2473_v22, %v7468_v53  ;;  %v2188_v56 = vadd.f32 %v2144_v8, %v2143_v33  ;;  %v2367_v27 = vmul.f32 %v7490_v54, %v5680_v43  ;;  %v7525_v49 = vsel %vm1603_vm8, 1.0, %v9729_v7  ;;  %v2020_v8 = vpop.permute.xlu1 %2019  ;;  %v4511_v43 = vld [vmem:[%s9154_s4] sm:$0xff]  }
 0x38d   : > { %9917 = vst [vmem:[#allocation105_spill] sm:$0xff] %v7525_v49  ;;  %v7528_v33 = vsel %vm1604_vm9, 1.0, %v9729_v7  ;;  %4524 = vpow2.f32 %v2841_v38  ;;  %v7535_v41 = vmax.f32 %v2421_v25, %v9919_v63  ;;  %v7542_v61 = vmax.f32 %v2422_v37, %v9920_v46 }
 0x38e   : > { %9918 = vst [vmem:[#allocation104_spill] sm:$0xff] %v7528_v33  ;;  %4362 = vmatpush3.bf16.msra.mxu1 %v4509_v51  ;;  %v7548_v38 = vsel %vm1827_vm10, 1.0, %v9729_v7  ;;  %4526 = vpow2.f32 %v2889_v36  ;;  %v1699_v37 = vmul.f32 %v7525_v49, %v5875_v62  ;;  %v2412_v18 = vadd.f32 %v2368_v29, %v2367_v27  ;;  %v9923_v49 = vld [vmem:[#allocation117_spill] sm:$0xff] }
 0x38f   : > { %1965 = vadd.xlane.f32.xlu1 %v1964_v3  ;;  %v2505_v3 = vmax.f32 %v2489_v48, %v7510_v42  ;;  %4363 = vmatprep.subr.bf16.mxu1 %v4510_v31  ;;  %9921 = vst [vmem:[#allocation108_spill] sm:$0xff] %v7548_v38  ;;  %v7559_v48 = vsel %vm1828_vm11, 1.0, %v9729_v7  ;;  %v1700_v31 = vmul.f32 %v7528_v33, %v5912_v57 }
 0x390   : > { %9922 = vst [vmem:[#allocation106_spill] sm:$0xff] %v7559_v48  ;;  %v2424_v21 = vmax.f32 %v9924_v58, %v9923_v49  ;;  %vm2051_vm12 = vcmp.eq.s32.totalorder %v2020_v8, %v5067_v11  ;;  %vm2052_vm13 = vcmp.eq.s32.totalorder %v2020_v8, %v5072_v13  ;;  %v2244_v29 = vpop.permute.xlu1 %2243  ;;  %v1924_v40 = vmul.f32 %v7559_v48, %v5912_v57  ;;  %v9930_v48 = vld [vmem:[#allocation121_spill] sm:$0xff]  ;;  %v9978_v58 = vld [vmem:[#allocation194_spill] sm:$0xff] }
 0x391   : > { %v1746_v45 = vadd.f32 %v1700_v31, %v1699_v37  ;;  %vm2275_vm14 = vcmp.eq.s32.totalorder %v2244_v29, %v5067_v11  ;;  %v9928_v37 = vld [vmem:[#allocation118_spill] sm:$0xff]  ;;  %vm2276_vm15 = vcmp.eq.s32.totalorder %v2244_v29, %v5072_v13 }
 0x392   : > { %v7537_v22 = vpop.xlane.xlu0 %2386  ;;  %4364 = vmatpush3.bf16.msra.mxu1 %v4511_v43  ;;  %v7622_v13 = vsel %vm2275_vm14, 1.0, %v9729_v7 }
 0x393   : > { %v7539_v54 = vpop.eup %4512  ;;  %v7551_v51 = vmax.f32 %v2505_v3, %v7537_v22  ;;  %2189 = vadd.xlane.f32.xlu1 %v2188_v56 }
 0x394   : > { %v7553_v25 = vpop.eup %4514 }
 0x395   : > { %v2919_v36 = vadd.f32 %v7553_v25, %v7539_v54  ;;  %v2537_v56 = vsub.f32 %v9903_v32, %v7551_v51  ;;  %v2585_v3 = vsub.f32 %v9902_v12, %v7551_v51  ;;  %v2633_v39 = vsub.f32 %v9908_v14, %v7551_v51  ;;  %v7573_v44 = vpop.eup %4516 }
 0x396   : > { %v2681_v27 = vsub.f32 %v6429_v9, %v7551_v51  ;;  %v1923_v32 = vmul.f32 %v7548_v38, %v5875_v62  ;;  %v7584_v33 = vpop.eup %4518  ;;  %v2729_v8 = vsub.f32 %v7423_v34, %v7551_v51  ;;  %v7591_v9 = vsel %vm2051_vm12, 1.0, %v9729_v7  ;;  %v9927_v34 = vld [vmem:[#allocation120_spill] sm:$0xff] }
 0x397   : > { %v2935_v12 = vadd.f32 %v7573_v44, %v2919_v36  ;;  %v2557_v14 = vmul.f32 1.442695, %v2537_v56  ;;  %v2605_v43 = vmul.f32 1.442695, %v2585_v3  ;;  %2413 = vadd.xlane.f32.xlu1 %v2412_v18  ;;  %v2653_v2 = vmul.f32 1.442695, %v2633_v39  ;;  %v7597_v18 = vpop.eup %4520 }
 0x398   : > { %9925 = vst [vmem:[#allocation103_spill] sm:$0xff] %v7591_v9  ;;  %v7594_v38 = vsel %vm2052_vm13, 1.0, %v9729_v7  ;;  %v2701_v56 = vmul.f32 1.442695, %v2681_v27  ;;  %v2777_v3 = vsub.f32 %v7468_v53, %v7551_v51  ;;  %v2427_v31 = vmax.f32 %v9928_v37, %v9927_v34  ;;  %v9929_v39 = vld [vmem:[#allocation123_spill] sm:$0xff]  ;;  %9931 = vst [vmem:[#allocation120_spill] sm:$0xff] %v7622_v13 }
 0x399   : > { %9926 = vst [vmem:[#allocation107_spill] sm:$0xff] %v7594_v38  ;;  %v2951_v36 = vadd.f32 %v7584_v33, %v2935_v12  ;;  %4528 = vpow2.f32 %v2557_v14  ;;  %v2426_v50 = vmax.f32 %v9930_v48, %v9929_v39  ;;  %v7608_v12 = vpop.xlane.xlu0 %1720  ;;  %v7610_v14 = vpop.eup %4522  ;;  %v2749_v27 = vmul.f32 1.442695, %v2729_v8  ;;  %v9960_v39 = vld [vmem:[#allocation140_spill] sm:$0xff] }
 0x39a   : > { %4530 = vpow2.f32 %v2605_v43  ;;  %v2825_v53 = vsub.f32 %v7510_v42, %v7551_v51  ;;  %v1970_v43 = vadd.f32 %v1924_v40, %v1923_v32  ;;  %v2147_v30 = vmul.f32 %v7591_v9, %v5875_v62  ;;  %v9933_v32 = vld [vmem:[#allocation125_spill] sm:$0xff]  ;;  %v9934_v9 = vld [vmem:[#allocation110_spill] sm:$0xff]  ;;  %v9968_v48 = vld [vmem:[#allocation156_spill] sm:$0xff] }
 0x39b   : > { %v2967_v26 = vadd.f32 %v7597_v18, %v2951_v36  ;;  %1747 = vadd.xlane.f32.xlu1 %v1746_v45  ;;  %4532 = vpow2.f32 %v2653_v2  ;;  %v2148_v4 = vmul.f32 %v7594_v38, %v5912_v57  ;;  %v7624_v45 = vpop.eup %4524  ;;  %v7627_v2 = vsel %vm2276_vm15, 1.0, %v9729_v7  ;;  %v9937_v7 = vld [vmem:[#allocation129_spill] sm:$0xff] }
 0x39c   : > { %9932 = vst [vmem:[#allocation118_spill] sm:$0xff] %v7627_v2  ;;  %4534 = vpow2.f32 %v2701_v56  ;;  %v2797_v40 = vmul.f32 1.442695, %v2777_v3  ;;  %v2873_v42 = vsub.f32 %v7537_v22, %v7551_v51  ;;  %v2443_v8 = vmax.f32 %v2427_v31, %v9933_v32  ;;  %v7639_v29 = vpop.eup %4526  ;;  %v9939_v3 = vld [vmem:[#allocation135_spill] sm:$0xff] }
 0x39d   : > { %v2983_v36 = vadd.f32 %v7610_v14, %v2967_v26  ;;  %v7633_v38 = vmax.f32 %v2424_v21, %v9934_v9  ;;  %v9935_v26 = vld [vmem:[#allocation116_spill] sm:$0xff]  ;;  %v2428_v56 = vmax.f32 %v9938_v28, %v9937_v7  ;;  %v2430_v23 = vmax.f32 %v9940_v1, %v9939_v3  ;;  %v7650_v31 = vpop.xlane.xlu0 %1944  ;;  %v9947_v3 = vld [vmem:[#allocation153_spill] sm:$0xff]  ;;  %v9948_v1 = vld [vmem:[#allocation150_spill] sm:$0xff] }
 0x39e   : > { %v7636_v20 = vmax.f32 %v2426_v50, %v9935_v26  ;;  %4536 = vpow2.f32 %v2749_v27  ;;  %v2845_v22 = vmul.f32 1.442695, %v2825_v53  ;;  %v2371_v21 = vmul.f32 %v7622_v13, %v5875_v62  ;;  %v9945_v53 = vld [vmem:[#allocation147_spill] sm:$0xff]  ;;  %v9952_v28 = vld [vmem:[#allocation122_spill] sm:$0xff] }
 0x39f   : > { %v2999_v11 = vadd.f32 %v7624_v45, %v2983_v36  ;;  %1971 = vadd.xlane.f32.xlu1 %v1970_v43  ;;  %v2372_v50 = vmul.f32 %v7627_v2, %v5912_v57  ;;  %v2194_v43 = vadd.f32 %v2148_v4, %v2147_v30  ;;  %v9941_v36 = vld [vmem:[#allocation126_spill] sm:$0xff]  ;;  %4538 = vpow2.f32 %v2797_v40  ;;  %v9949_v57 = vld [vmem:[#allocation131_spill] sm:$0xff]  ;;  %v9950_v4 = vld [vmem:[#allocation132_spill] sm:$0xff] }
 0x3a0   : > { %9936 = vst [vmem:[#allocation125_spill] sm:$0xff] %v7636_v20  ;;  %v2429_v6 = vmax.f32 %v9942_v16, %v9941_v36  ;;  %v2893_v27 = vmul.f32 1.442695, %v2873_v42  ;;  %v2436_v62 = vmax.f32 %v9948_v1, %v9947_v3  ;;  %v2459_v13 = vmax.f32 %v2443_v8, %v6435_v0  ;;  %v9951_v2 = vld [vmem:[#allocation130_spill] sm:$0xff]  ;;  %v9955_v42 = vld [vmem:[#allocation136_spill] sm:$0xff] }
 0x3a1   : > { %v3015_v51 = vadd.f32 %v7639_v29, %v2999_v11  ;;  %v2434_v11 = vmax.f32 %v9946_v10, %v9945_v53  ;;  %v2431_v7 = vmax.f32 %v9951_v2, %v9950_v4  ;;  %v7667_v59 = vmax.f32 %v2428_v56, %v9952_v28  ;;  %v9954_v40 = vld [vmem:[#allocation138_spill] sm:$0xff]  ;;  %v9956_v10 = vld [vmem:[#allocation128_spill] sm:$0xff] }
 0x3a2   : > { %v7662_v30 = vmax.f32 %v2429_v6, %v9949_v57  ;;  %v2433_v53 = vmax.f32 %v9955_v42, %v9954_v40  ;;  %v7672_v15 = vmax.f32 %v2430_v23, %v9956_v10  ;;  %v2475_v8 = vmax.f32 %v2459_v13, %v7608_v12  ;;  %v9958_v6 = vld [vmem:[#allocation137_spill] sm:$0xff]  ;;  %v9959_v26 = vld [vmem:[#allocation142_spill] sm:$0xff]  ;;  %v9963_v23 = vld [vmem:[#allocation143_spill] sm:$0xff] }
 0x3a3   : > { %4540 = vrcp.f32 %v3015_v51  ;;  %2195 = vadd.xlane.f32.xlu1 %v2194_v43  ;;  %9953 = vst [vmem:[#allocation126_spill] sm:$0xff] %v7667_v59  ;;  %v2418_v43 = vadd.f32 %v2372_v50, %v2371_v21  ;;  %v7678_v1 = vmax.f32 %v2431_v7, %v9958_v6  ;;  %v2435_v56 = vmax.f32 %v9960_v39, %v9959_v26  ;;  %v9961_v28 = vld [vmem:[#allocation134_spill] sm:$0xff]  ;;  %v9964_v13 = vld [vmem:[#allocation144_spill] sm:$0xff] }
 0x3a4   : > { %4542 = vpow2.f32 %v2845_v22  ;;  %9957 = vst [vmem:[#allocation124_spill] sm:$0xff] %v7672_v15  ;;  %v7683_v22 = vmax.f32 %v2432_v24, %v9961_v28  ;;  %v7688_v10 = vmax.f32 %v2433_v53, %v9963_v23  ;;  %v7691_v42 = vmax.f32 %v2434_v11, %v9964_v13  ;;  %v9966_v21 = vld [vmem:[#allocation146_spill] sm:$0xff]  ;;  %v9970_v24 = vld [vmem:[#allocation184_spill] sm:$0xff]  ;;  %v9971_v28 = vld [vmem:[#allocation183_spill] sm:$0xff] }
 0x3a5   : > { %v2169_v51 = vpop.xlane.xlu0 %2168  ;;  %4544 = vpow2.f32 %v2893_v27  ;;  %v7694_v50 = vmax.f32 %v2436_v62, %v9966_v21  ;;  %v2491_v7 = vmax.f32 %v2475_v8, %v7650_v31  ;;  %v7698_v26 = vmax.f32 %v2435_v56, %v9968_v48  ;;  %v9972_v13 = vld [vmem:[#allocation185_spill] sm:$0xff]  ;;  %v9976_v6 = vld [vmem:[#allocation192_spill] sm:$0xff] }
 0x3a6   : > { %v7675_v3 = vpop.eup %4528  ;;  %9962 = vst [vmem:[#allocation131_spill] sm:$0xff] %v7683_v22  ;;  %9965 = vst [vmem:[#allocation305_spill] sm:$0xff] %v7691_v42  ;;  %v2454_v27 = vmax.f32 %v7542_v61, %v9970_v24  ;;  %v2453_v39 = vmax.f32 %v7535_v41, %v9971_v28 }
 0x3a7   : > { %v7685_v40 = vpop.eup %4530  ;;  %9967 = vst [vmem:[#allocation306_spill] sm:$0xff] %v7694_v50  ;;  %2419 = vadd.xlane.f32.xlu1 %v2418_v43  ;;  %9969 = vst [vmem:[#allocation307_spill] sm:$0xff] %v7698_v26  ;;  %v9974_v43 = vld [vmem:[#allocation189_spill] sm:$0xff]  ;;  %v2507_v48 = vmax.f32 %v2491_v7, %v2169_v51 }
 0x3a8   : > { %v2921_v53 = vadd.f32 %v7685_v40, %v7675_v3  ;;  %v7706_v11 = vpop.eup %4532  ;;  %v2461_v56 = vmax.f32 %v7662_v30, %v9974_v43 }
 0x3a9   : > { %v7721_v62 = vpop.eup %4534 }
 0x3aa   : > { %v2937_v9 = vadd.f32 %v7706_v11, %v2921_v53  ;;  %v2393_v49 = vpop.xlane.xlu0 %2392  ;;  %v7734_v53 = vmax.f32 %v2454_v27, %v7116_v5 }
 0x3ab   : > { %v2523_v23 = vmax.f32 %v2507_v48, %v2393_v49  ;;  %v7737_v15 = vpop.eup %4536 }
 0x3ac   : > { %v2953_v4 = vadd.f32 %v7721_v62, %v2937_v9  ;;  %v7748_v9 = vpop.eup %4538 }
 0x3ad   : > { %v2539_v8 = vsub.f32 %v9928_v37, %v2523_v23  ;;  %v2587_v30 = vsub.f32 %v9927_v34, %v2523_v23  ;;  %v2635_v61 = vsub.f32 %v9933_v32, %v2523_v23  ;;  %v2683_v48 = vsub.f32 %v6435_v0, %v2523_v23  ;;  %9983 = vst [vmem:[#allocation184_spill] sm:$0xff] %v7748_v9 }
 0x3ae   : > { %v2969_v41 = vadd.f32 %v7737_v15, %v2953_v4  ;;  %v2731_v59 = vsub.f32 %v7608_v12, %v2523_v23  ;;  %v2779_v2 = vsub.f32 %v7650_v31, %v2523_v23  ;;  %v2827_v27 = vsub.f32 %v2169_v51, %v2523_v23  ;;  %v7746_v20 = vpop.xlane.xlu0 %1726 }
 0x3af   : > { %v2561_v50 = vmul.f32 1.442695, %v2539_v8  ;;  %v2609_v42 = vmul.f32 1.442695, %v2587_v30  ;;  %v2657_v37 = vmul.f32 1.442695, %v2635_v61  ;;  %v2875_v21 = vsub.f32 %v2393_v49, %v2523_v23 }
 0x3b0   : > { %v4541_v34 = vpop.eup %4540  ;;  %v2985_v32 = vadd.f32 %v7748_v9, %v2969_v41  ;;  %v2705_v22 = vmul.f32 1.442695, %v2683_v48  ;;  %v2753_v0 = vmul.f32 1.442695, %v2731_v59  ;;  %v2801_v7 = vmul.f32 1.442695, %v2779_v2 }
 0x3b1   : > { %v7751_v4 = vpop.eup %4542  ;;  %4546 = vpow2.f32 %v2561_v50  ;;  %v2849_v12 = vmul.f32 1.442695, %v2827_v27  ;;  %v2897_v31 = vmul.f32 1.442695, %v2875_v21  ;;  %v7754_v51 = vmax.f32 %v2461_v56, %v7746_v20  ;;  %v9986_v61 = vld [vmem:[#allocation15_spill] sm:$0xff]  ;;  %v9989_v27 = vld [vmem:[#allocation152_spill] sm:$0xff] }
 0x3b2   : > { %9984 = vst [vmem:[#allocation183_spill] sm:$0xff] %v7751_v4  ;;  %v3001_v26 = vadd.f32 %v7751_v4, %v2985_v32  ;;  %4548 = vpow2.f32 %v2609_v42  ;;  %v3047_v8 = vmul.f32 %v4541_v34, %v7539_v54  ;;  %v3127_v49 = vmul.f32 %v4541_v34, %v7553_v25  ;;  %v7759_v23 = vpop.eup %4544  ;;  %v9987_v42 = vld [vmem:[#allocation18_spill] sm:$0xff]  ;;  %v9988_v25 = vld [vmem:[#allocation24_spill] sm:$0xff]  ;;  %v9990_v32 = vld [vmem:[#allocation203_spill] sm:$0xff] }
 0x3b3   : > { %9985 = vst [vmem:[#allocation185_spill] sm:$0xff] %v7759_v23  ;;  %4550 = vpow2.f32 %v2657_v37  ;;  %v3207_v59 = vmul.f32 %v4541_v34, %v7573_v44  ;;  %v3287_v2 = vmul.f32 %v4541_v34, %v7584_v33  ;;  %v3367_v50 = vmul.f32 %v4541_v34, %v7597_v18 }
 0x3b4   : > { %v3017_v21 = vadd.f32 %v7759_v23, %v3001_v26  ;;  %4552 = vpow2.f32 %v2705_v22  ;;  %v1703_v56 = vpop.xlane.xlu1 %1702  ;;  %v3066_v41 = vmul.f32 %v9986_v61, %v3047_v8  ;;  %v3146_v30 = vmul.f32 %v9987_v42, %v3127_v49 }
 0x3b5   : > { %4554 = vpow2.f32 %v2753_v0  ;;  %v2469_v54 = vmax.f32 %v2453_v39, %v1703_v56  ;;  %v3226_v48 = vmul.f32 %v9988_v25, %v3207_v59  ;;  %v3306_v37 = vmul.f32 %v9989_v27, %v3287_v2  ;;  %v9995_v27 = vld [vmem:[#allocation22_spill] sm:$0xff] }
 0x3b6   : > { %4556 = vrcp.f32 %v3017_v21  ;;  %v3178_v44 = vadd.f32 %v3146_v30, %v3066_v41  ;;  %v3386_v33 = vmul.f32 %v9990_v32, %v3367_v50  ;;  %v3447_v18 = vmul.f32 %v4541_v34, %v7610_v14  ;;  %v9991_v21 = vld [vmem:[#allocation207_spill] sm:$0xff]  ;;  %v9992_v30 = vld [vmem:[#allocation14_spill] sm:$0xff] }
 0x3b7   : > { %4558 = vpow2.f32 %v2801_v7  ;;  %v2485_v26 = vmax.f32 %v2469_v54, %v7134_v17  ;;  %v3527_v22 = vmul.f32 %v4541_v34, %v7624_v45  ;;  %v7774_v61 = vmul.f32 %v4541_v34, %v7639_v29  ;;  %v9993_v34 = vld [vmem:[#allocation209_spill] sm:$0xff] }
 0x3b8   : > { %4560 = vpow2.f32 %v2849_v12  ;;  %v7776_v39 = vpop.xlane.xlu1 %1929  ;;  %v7778_v0 = vpop.xlane.xlu0 %1950  ;;  %v3258_v42 = vadd.f32 %v3226_v48, %v3178_v44  ;;  %v3466_v41 = vmul.f32 %v9991_v21, %v3447_v18  ;;  %v3065_v25 = vmul.f32 %v9992_v30, %v3047_v8  ;;  %v9994_v54 = vld [vmem:[#allocation213_spill] sm:$0xff]  ;;  %v9996_v8 = vld [vmem:[#allocation20_spill] sm:$0xff] }
 0x3b9   : > { %4562 = vpow2.f32 %v2897_v31  ;;  %v2501_v14 = vmax.f32 %v2485_v26, %v7186_v60  ;;  %v2486_v7 = vmax.f32 %v7734_v53, %v7776_v39  ;;  %v2493_v45 = vmax.f32 %v7754_v51, %v7778_v0  ;;  %v9997_v53 = vld [vmem:[#allocation151_spill] sm:$0xff]  ;;  %v9998_v51 = vld [vmem:[#allocation202_spill] sm:$0xff] }
 0x3ba   : > { %v3338_v29 = vadd.f32 %v3306_v37, %v3258_v42  ;;  %v7788_v12 = vmul.f32 %v9993_v34, %v3527_v22  ;;  %v7792_v48 = vmul.f32 %v9994_v54, %v7774_v61  ;;  %v3145_v44 = vmul.f32 %v9995_v27, %v3127_v49  ;;  %v9999_v34 = vld [vmem:[#allocation206_spill] sm:$0xff]  ;;  %v10000_v49 = vld [vmem:[#allocation208_spill] sm:$0xff] }
 0x3bb   : > { %v7796_v31 = vmax.f32 %v2501_v14, %v7230_v55  ;;  %v7799_v32 = vmul.f32 %v9996_v8, %v3207_v59  ;;  %v7802_v26 = vmul.f32 %v9997_v53, %v3287_v2  ;;  %v7805_v37 = vmul.f32 %v9998_v51, %v3367_v50 }
 0x3bc   : > { %v7807_v42 = vpop.xlane.xlu1 %2153  ;;  %v3418_v21 = vadd.f32 %v3386_v33, %v3338_v29  ;;  %v7809_v30 = vadd.f32 %v3145_v44, %v3065_v25  ;;  %v7812_v54 = vmul.f32 %v9999_v34, %v3447_v18  ;;  %v7815_v14 = vmul.f32 %v10000_v49, %v3527_v22 }
 0x3bd   : > { %v2533_v59 = vsub.f32 %v9914_v35, %v7796_v31  ;;  %v2581_v2 = vsub.f32 %v9913_v47, %v7796_v31  ;;  %v2629_v50 = vsub.f32 %v9919_v63, %v7796_v31  ;;  %v2677_v33 = vsub.f32 %v9971_v28, %v7796_v31  ;;  %v7825_v25 = vpop.xlane.xlu0 %2174 }
 0x3be   : > { %v7827_v29 = vpop.eup %4546  ;;  %v2725_v18 = vsub.f32 %v1703_v56, %v7796_v31  ;;  %v2773_v22 = vsub.f32 %v7134_v17, %v7796_v31  ;;  %v2821_v35 = vsub.f32 %v7186_v60, %v7796_v31  ;;  %v2502_v47 = vmax.f32 %v2486_v7, %v7807_v42 }
 0x3bf   : > { %10001 = vst [vmem:[#allocation189_spill] sm:$0xff] %v7827_v29  ;;  %v7835_v27 = vpop.eup %4548  ;;  %v2549_v63 = vmul.f32 1.442695, %v2533_v59  ;;  %v2597_v44 = vmul.f32 1.442695, %v2581_v2  ;;  %v2509_v28 = vmax.f32 %v2493_v45, %v7825_v25 }
 0x3c0   : > { %10002 = vst [vmem:[#allocation192_spill] sm:$0xff] %v7835_v27  ;;  %v2645_v8 = vmul.f32 1.442695, %v2629_v50  ;;  %v7838_v53 = vpop.eup %4550  ;;  %v2923_v56 = vadd.f32 %v7835_v27, %v7827_v29  ;;  %v2693_v51 = vmul.f32 1.442695, %v2677_v33  ;;  %v2378_v49 = vpop.xlane.xlu1 %2377  ;;  %v7854_v33 = vadd.f32 %v3466_v41, %v3418_v21 }
 0x3c1   : > { %10003 = vst [vmem:[#allocation194_spill] sm:$0xff] %v7838_v53  ;;  %v2741_v34 = vmul.f32 1.442695, %v2725_v18  ;;  %v2789_v17 = vmul.f32 1.442695, %v2773_v22  ;;  %v7842_v23 = vpop.eup %4552  ;;  %4564 = vpow2.f32 %v2549_v63  ;;  %v2518_v7 = vmax.f32 %v2502_v47, %v2378_v49  ;;  %v7844_v4 = vpop.xlane.xlu0 %2398 }
 0x3c2   : > { %10004 = vst [vmem:[#allocation15_spill] sm:$0xff] %v7842_v23  ;;  %v2837_v60 = vmul.f32 1.442695, %v2821_v35  ;;  %v7848_v45 = vpop.eup %4554  ;;  %v2939_v2 = vadd.f32 %v7838_v53, %v2923_v56  ;;  %4566 = vpow2.f32 %v2597_v44  ;;  %v7852_v50 = vmax.f32 %v2509_v28, %v7844_v4 }
 0x3c3   : > { %10005 = vst [vmem:[#allocation18_spill] sm:$0xff] %v7848_v45  ;;  %v7856_v18 = vpop.eup %4556  ;;  %4568 = vpow2.f32 %v2645_v8  ;;  %v2534_v22 = vsub.f32 %v9916_v52, %v2518_v7  ;;  %v2582_v35 = vsub.f32 %v9915_v19, %v2518_v7  ;;  %v2630_v47 = vsub.f32 %v9920_v46, %v2518_v7 }
 0x3c4   : > { %10006 = vst [vmem:[#allocation24_spill] sm:$0xff] %v7856_v18  ;;  %v7861_v63 = vpop.eup %4558  ;;  %v2955_v59 = vadd.f32 %v7842_v23, %v2939_v2  ;;  %4570 = vpow2.f32 %v2693_v51  ;;  %v2678_v44 = vsub.f32 %v9970_v24, %v2518_v7  ;;  %v2726_v28 = vsub.f32 %v7116_v5, %v2518_v7  ;;  %v7866_v41 = vpop.xlane.xlu1 %1711 }
 0x3c5   : > { %10007 = vst [vmem:[#allocation152_spill] sm:$0xff] %v7861_v63  ;;  %v7868_v21 = vpop.eup %4560  ;;  %4572 = vpow2.f32 %v2741_v34  ;;  %v2551_v8 = vmul.f32 1.442695, %v2534_v22  ;;  %v2599_v52 = vmul.f32 1.442695, %v2582_v35  ;;  %v2774_v24 = vsub.f32 %v7776_v39, %v2518_v7 }
 0x3c6   : > { %10008 = vst [vmem:[#allocation203_spill] sm:$0xff] %v7868_v21  ;;  %v2647_v56 = vmul.f32 1.442695, %v2630_v47  ;;  %v7870_v19 = vpop.eup %4562  ;;  %v2971_v46 = vadd.f32 %v7848_v45, %v2955_v59  ;;  %4574 = vpow2.f32 %v2789_v17  ;;  %v2695_v53 = vmul.f32 1.442695, %v2678_v44 }
 0x3c7   : > { %10009 = vst [vmem:[#allocation207_spill] sm:$0xff] %v7870_v19  ;;  %v2743_v2 = vmul.f32 1.442695, %v2726_v28  ;;  %4576 = vpow2.f32 %v2837_v60  ;;  %v2822_v5 = vsub.f32 %v7807_v42, %v2518_v7  ;;  %v2870_v51 = vsub.f32 %v2378_v49, %v2518_v7 }
 0x3c8   : > { %v2987_v23 = vadd.f32 %v7861_v63, %v2971_v46  ;;  %4578 = vpow2.f32 %v2551_v8  ;;  %v2541_v34 = vsub.f32 %v9942_v16, %v7852_v50  ;;  %v2589_v22 = vsub.f32 %v9941_v36, %v7852_v50  ;;  %v7880_v35 = vpop.xlane.xlu1 %1935 }
 0x3c9   : > { %4580 = vpow2.f32 %v2599_v52  ;;  %v2791_v17 = vmul.f32 1.442695, %v2774_v24  ;;  %v2839_v59 = vmul.f32 1.442695, %v2822_v5  ;;  %v2887_v60 = vmul.f32 1.442695, %v2870_v51 }
 0x3ca   : > { %v3003_v39 = vadd.f32 %v7868_v21, %v2987_v23  ;;  %4582 = vpow2.f32 %v2647_v56  ;;  %v2565_v42 = vmul.f32 1.442695, %v2541_v34  ;;  %v2613_v49 = vmul.f32 1.442695, %v2589_v22 }
 0x3cb   : > { %4584 = vpow2.f32 %v2695_v53  ;;  %v2637_v7 = vsub.f32 %v9949_v57, %v7852_v50  ;;  %v2685_v16 = vsub.f32 %v9974_v43, %v7852_v50  ;;  %v2733_v36 = vsub.f32 %v7746_v20, %v7852_v50  ;;  %v7889_v47 = vpop.xlane.xlu0 %1732 }
 0x3cc   : > { %v3019_v44 = vadd.f32 %v7870_v19, %v3003_v39  ;;  %4586 = vpow2.f32 %v2743_v2  ;;  %v2781_v23 = vsub.f32 %v7778_v0, %v7852_v50  ;;  %v2829_v53 = vsub.f32 %v7825_v25, %v7852_v50  ;;  %v7896_v28 = vpop.xlane.xlu1 %2159 }
 0x3cd   : > { %4588 = vpow2.f32 %v2791_v17  ;;  %v2661_v57 = vmul.f32 1.442695, %v2637_v7  ;;  %v2709_v8 = vmul.f32 1.442695, %v2685_v16  ;;  %v2757_v43 = vmul.f32 1.442695, %v2733_v36 }
 0x3ce   : > { %v7898_v52 = vpop.eup %4564  ;;  %4590 = vrcp.f32 %v3019_v44  ;;  %v2805_v20 = vmul.f32 1.442695, %v2781_v23  ;;  %v2853_v56 = vmul.f32 1.442695, %v2829_v53  ;;  %v2877_v46 = vsub.f32 %v7844_v4, %v7852_v50 }
 0x3cf   : > { %v7902_v2 = vpop.eup %4566  ;;  %4592 = vpow2.f32 %v2839_v59  ;;  %v10010_v0 = vmax.f32 %v7633_v38, %v9972_v13  ;;  %v10011_v24 = vmax.f32 %v7678_v1, %v9976_v6  ;;  %v10012_v51 = vsub.f32 %v7230_v55, %v7796_v31 }
 0x3d0   : > { %v7917_v22 = vpop.eup %4568  ;;  %v2917_v4 = vadd.f32 %v7902_v2, %v7898_v52  ;;  %4594 = vpow2.f32 %v2887_v60  ;;  %v2901_v50 = vmul.f32 1.442695, %v2877_v46  ;;  %v7921_v17 = vpop.xlane.xlu1 %2383  ;;  %v3578_v1 = vadd.f32 %v7788_v12, %v7854_v33  ;;  %v10014_v12 = vld [vmem:[#allocation212_spill] sm:$0xff] }
 0x3d1   : > { %v2472_v25 = vmax.f32 %v10010_v0, %v7866_v41  ;;  %v2479_v5 = vmax.f32 %v10011_v24, %v7889_v47  ;;  %v7915_v34 = vmul.f32 1.442695, %v10012_v51  ;;  %v7923_v38 = vpop.xlane.xlu0 %1956  ;;  %v7927_v59 = vpop.eup %4570  ;;  %4596 = vpow2.f32 %v2565_v42 }
 0x3d2   : > { %v3257_v39 = vadd.f32 %v7799_v32, %v7809_v30  ;;  %v7933_v7 = vpop.eup %4572  ;;  %v2933_v60 = vadd.f32 %v7917_v22, %v2917_v4  ;;  %4598 = vpow2.f32 %v2613_v49  ;;  %v7937_v16 = vadd.f32 %v7792_v48, %v3578_v1  ;;  %v10024_v1 = vld [vmem:[#allocation115_spill] sm:$0xff] }
 0x3d3   : > { %v2488_v55 = vmax.f32 %v2472_v25, %v7880_v35  ;;  %v2495_v31 = vmax.f32 %v2479_v5, %v7923_v38  ;;  %v7941_v33 = vmul.f32 %v10014_v12, %v7774_v61  ;;  %v7943_v42 = vpop.eup %4574  ;;  %4600 = vpow2.f32 %v2661_v57  ;;  %v10020_v57 = vld [vmem:[#allocation125_spill] sm:$0xff]  ;;  %v10023_v5 = vld [vmem:[#allocation23_spill] sm:$0xff] }
 0x3d4   : > { %10013 = vst [vmem:[#allocation14_spill] sm:$0xff] %v7937_v16  ;;  %10015 = vst [vmem:[#allocation209_spill] sm:$0xff] %v7943_v42  ;;  %v3337_v44 = vadd.f32 %v7802_v26, %v3257_v39  ;;  %v7949_v32 = vmul.f32 %v7856_v18, %v7675_v3  ;;  %v7951_v30 = vpop.eup %4576  ;;  %v2949_v48 = vadd.f32 %v7927_v59, %v2933_v60  ;;  %4602 = vpow2.f32 %v2709_v8  ;;  %v7954_v49 = vpop.xlane.xlu1 %1717  ;;  %v10021_v8 = vld [vmem:[#allocation186_spill] sm:$0xff]  ;;  %v10025_v39 = vld [vmem:[#allocation117_spill] sm:$0xff] }
 0x3d5   : > { %v2504_v36 = vmax.f32 %v2488_v55, %v7896_v28  ;;  %10017 = vst [vmem:[#allocation22_spill] sm:$0xff] %v7951_v30  ;;  %v7956_v61 = vpop.xlane.xlu0 %2180  ;;  %v7960_v23 = vmul.f32 %v7856_v18, %v7685_v40  ;;  %v7964_v26 = vmul.f32 %v7856_v18, %v7706_v11  ;;  %v7966_v53 = vpop.eup %4578  ;;  %4604 = vpow2.f32 %v2757_v43 }
 0x3d6   : > { %10016 = vst [vmem:[#allocation213_spill] sm:$0xff] %v7949_v32  ;;  %v10022_v46 = vmax.f32 %v10020_v57, %v10021_v8  ;;  %v2511_v25 = vmax.f32 %v2495_v31, %v7956_v61  ;;  %v7974_v24 = vpop.eup %4580  ;;  %v2965_v40 = vadd.f32 %v7933_v7, %v2949_v48  ;;  %4606 = vpow2.f32 %v2805_v20  ;;  %v10026_v20 = vld [vmem:[#allocation110_spill] sm:$0xff] }
 0x3d7   : > { %10018 = vst [vmem:[#allocation20_spill] sm:$0xff] %v7960_v23  ;;  %10019 = vst [vmem:[#allocation151_spill] sm:$0xff] %v7964_v26  ;;  %v2520_v3 = vmax.f32 %v2504_v36, %v7921_v17  ;;  %v3417_v11 = vadd.f32 %v7805_v37, %v3337_v44  ;;  %v3070_v51 = vmul.f32 %v10023_v5, %v7949_v32  ;;  %v7980_v43 = vpop.eup %4582  ;;  %4608 = vpow2.f32 %v2853_v56 }
 0x3d8   : > { %v2474_v0 = vmax.f32 %v10022_v46, %v7954_v49  ;;  %v2918_v4 = vadd.f32 %v7974_v24, %v7966_v53  ;;  %v7986_v60 = vpop.eup %4584  ;;  %v2981_v12 = vadd.f32 %v7943_v42, %v2965_v40  ;;  %4610 = vpow2.f32 %v2901_v50  ;;  %v7991_v44 = vpop.xlane.xlu1 %1941 }
 0x3d9   : > { %v2536_v55 = vsub.f32 %v10024_v1, %v2520_v3  ;;  %v2584_v31 = vsub.f32 %v10025_v39, %v2520_v3  ;;  %v2632_v37 = vsub.f32 %v10026_v20, %v2520_v3  ;;  %v2680_v36 = vsub.f32 %v9972_v13, %v2520_v3  ;;  %v7993_v48 = vpop.eup %4586 }
 0x3da   : > { %v2934_v57 = vadd.f32 %v7980_v43, %v2918_v4  ;;  %v2728_v5 = vsub.f32 %v7866_v41, %v2520_v3  ;;  %v7997_v1 = vpop.eup %4588  ;;  %v8000_v39 = vadd.f32 %v7951_v30, %v2981_v12  ;;  %v2776_v20 = vsub.f32 %v7880_v35, %v2520_v3 }
 0x3db   : > { %v2555_v56 = vmul.f32 1.442695, %v2536_v55  ;;  %v2603_v46 = vmul.f32 1.442695, %v2584_v31  ;;  %v2651_v50 = vmul.f32 1.442695, %v2632_v37  ;;  %v8003_v13 = vpop.eup %4590  ;;  %v2824_v4 = vsub.f32 %v7896_v28, %v2520_v3 }
 0x3dc   : > { %v2699_v40 = vmul.f32 1.442695, %v2680_v36  ;;  %10027 = vst [vmem:[#allocation202_spill] sm:$0xff] %v8003_v13  ;;  %v2950_v19 = vadd.f32 %v7986_v60, %v2934_v57  ;;  %v2747_v21 = vmul.f32 1.442695, %v2728_v5  ;;  %v8007_v55 = vpop.eup %4592  ;;  %v2872_v31 = vsub.f32 %v7921_v17, %v2520_v3  ;;  %v8011_v37 = vpop.xlane.xlu1 %2165  ;;  %v10029_v17 = vld [vmem:[#allocation26_spill] sm:$0xff] }
 0x3dd   : > { %4612 = vpow2.f32 %v2555_v56  ;;  %v2795_v41 = vmul.f32 1.442695, %v2776_v20  ;;  %v2490_v12 = vmax.f32 %v2474_v0, %v7991_v44  ;;  %v8013_v36 = vpop.eup %4594  ;;  %v2843_v57 = vmul.f32 1.442695, %v2824_v4 }
 0x3de   : > { %4614 = vpow2.f32 %v2603_v46  ;;  %v2966_v35 = vadd.f32 %v7993_v48, %v2950_v19  ;;  %v3497_v56 = vadd.f32 %v7812_v54, %v3417_v11  ;;  %v8017_v5 = vpop.eup %4596  ;;  %v2891_v28 = vmul.f32 1.442695, %v2872_v31  ;;  %v2405_v20 = vpop.xlane.xlu0 %2404  ;;  %v10032_v31 = vld [vmem:[#allocation39_spill] sm:$0xff] }
 0x3df   : > { %4616 = vpow2.f32 %v2651_v50  ;;  %10028 = vst [vmem:[#allocation206_spill] sm:$0xff] %v8017_v5  ;;  %v2506_v46 = vmax.f32 %v2490_v12, %v8011_v37  ;;  %v3150_v3 = vmul.f32 %v10029_v17, %v7960_v23  ;;  %v8022_v0 = vpop.eup %4598  ;;  %v2527_v19 = vmax.f32 %v2511_v25, %v2405_v20  ;;  %v10061_v23 = vld [vmem:[#allocation129_spill] sm:$0xff] }
 0x3e0   : > { %4618 = vpow2.f32 %v2699_v40  ;;  %10030 = vst [vmem:[#allocation208_spill] sm:$0xff] %v8022_v0  ;;  %v2982_v63 = vadd.f32 %v7997_v1, %v2966_v35  ;;  %v8026_v50 = vadd.f32 %v7815_v14, %v3497_v56  ;;  %v8028_v54 = vpop.eup %4600  ;;  %v2925_v11 = vadd.f32 %v8022_v0, %v8017_v5  ;;  %v8032_v40 = vpop.xlane.xlu1 %2389  ;;  %v10034_v14 = vld [vmem:[#allocation130_spill] sm:$0xff]  ;;  %v10035_v56 = vld [vmem:[#allocation132_spill] sm:$0xff] }
 0x3e1   : > { %4620 = vpow2.f32 %v2747_v21  ;;  %10031 = vst [vmem:[#allocation212_spill] sm:$0xff] %v8028_v54  ;;  %v8034_v4 = vadd.f32 %v3150_v3, %v3070_v51  ;;  %v8038_v12 = vmul.f32 %v10032_v31, %v7964_v26  ;;  %v8040_v35 = vpop.eup %4602  ;;  %v2543_v25 = vsub.f32 %v10034_v14, %v2527_v19  ;;  %v10037_v51 = vld [vmem:[#allocation137_spill] sm:$0xff] }
 0x3e2   : > { %4622 = vpow2.f32 %v2795_v41  ;;  %10033 = vst [vmem:[#allocation125_spill] sm:$0xff] %v8040_v35  ;;  %v2998_v21 = vadd.f32 %v8007_v55, %v2982_v63  ;;  %v2591_v17 = vsub.f32 %v10035_v56, %v2527_v19  ;;  %v8045_v45 = vpop.eup %4604  ;;  %v2941_v41 = vadd.f32 %v8028_v54, %v2925_v11 }
 0x3e3   : > { %4624 = vpow2.f32 %v2843_v57  ;;  %10036 = vst [vmem:[#allocation186_spill] sm:$0xff] %v8045_v45  ;;  %v2639_v3 = vsub.f32 %v10037_v51, %v2527_v19  ;;  %v2687_v0 = vsub.f32 %v9976_v6, %v2527_v19  ;;  %v8050_v31 = vpop.eup %4606  ;;  %v2569_v27 = vmul.f32 1.442695, %v2543_v25  ;;  %v8058_v11 = vpop.xlane.xlu0 %1738 }
 0x3e4   : > { %4626 = vpow2.f32 %v2891_v28  ;;  %10038 = vst [vmem:[#allocation23_spill] sm:$0xff] %v8050_v31  ;;  %v3014_v5 = vadd.f32 %v8013_v36, %v2998_v21  ;;  %v2617_v63 = vmul.f32 1.442695, %v2591_v17  ;;  %v2735_v57 = vsub.f32 %v7889_v47, %v2527_v19  ;;  %v8054_v14 = vpop.eup %4608  ;;  %v8060_v51 = vpop.xlane.xlu1 %1723 }
 0x3e5   : > { %10039 = vst [vmem:[#allocation115_spill] sm:$0xff] %v8054_v14  ;;  %v2957_v56 = vadd.f32 %v8040_v35, %v2941_v41  ;;  %v2665_v13 = vmul.f32 1.442695, %v2639_v3  ;;  %v2713_v29 = vmul.f32 1.442695, %v2687_v0  ;;  %v2783_v28 = vsub.f32 %v7923_v38, %v2527_v19  ;;  %v8062_v6 = vpop.eup %4610 }
 0x3e6   : > { %10040 = vst [vmem:[#allocation117_spill] sm:$0xff] %v8062_v6  ;;  %4628 = vrcp.f32 %v3014_v5  ;;  %v2761_v21 = vmul.f32 1.442695, %v2735_v57  ;;  %v2831_v25 = vsub.f32 %v7956_v61, %v2527_v19  ;;  %v2879_v17 = vsub.f32 %v2405_v20, %v2527_v19  ;;  %v10042_v61 = vld [vmem:[#allocation121_spill] sm:$0xff]  ;;  %v10043_v19 = vld [vmem:[#allocation123_spill] sm:$0xff] }
 0x3e7   : > { %v2973_v47 = vadd.f32 %v8045_v45, %v2957_v56  ;;  %4630 = vpow2.f32 %v2569_v27  ;;  %v2809_v54 = vmul.f32 1.442695, %v2783_v28  ;;  %v2522_v41 = vmax.f32 %v2506_v46, %v8032_v40 }
 0x3e8   : > { %4632 = vpow2.f32 %v2617_v63  ;;  %v2857_v0 = vmul.f32 1.442695, %v2831_v25  ;;  %v2905_v38 = vmul.f32 1.442695, %v2879_v17  ;;  %v10041_v3 = vmax.f32 %v7688_v10, %v9978_v58  ;;  %v8076_v57 = vpop.xlane.xlu1 %1947  ;;  %v10044_v63 = vld [vmem:[#allocation116_spill] sm:$0xff] }
 0x3e9   : > { %v2989_v5 = vadd.f32 %v8050_v31, %v2973_v47  ;;  %4634 = vpow2.f32 %v2665_v13  ;;  %v2538_v20 = vsub.f32 %v10042_v61, %v2522_v41  ;;  %v2586_v27 = vsub.f32 %v10043_v19, %v2522_v41 }
 0x3ea   : > { %v2481_v35 = vmax.f32 %v10041_v3, %v8058_v11  ;;  %v8071_v26 = vpop.eup %4612  ;;  %4636 = vpow2.f32 %v2713_v29  ;;  %v2634_v56 = vsub.f32 %v10044_v63, %v2522_v41  ;;  %v2682_v28 = vsub.f32 %v10021_v8, %v2522_v41  ;;  %v8090_v63 = vpop.xlane.xlu0 %1962 }
 0x3eb   : > { %v8078_v46 = vpop.eup %4614  ;;  %v2730_v10 = vsub.f32 %v7954_v49, %v2522_v41  ;;  %v3005_v17 = vadd.f32 %v8054_v14, %v2989_v5  ;;  %4638 = vpow2.f32 %v2761_v21  ;;  %v2559_v47 = vmul.f32 1.442695, %v2538_v20 }
 0x3ec   : > { %v8083_v25 = vpop.eup %4616  ;;  %v2920_v13 = vadd.f32 %v8078_v46, %v8071_v26  ;;  %4640 = vpow2.f32 %v2809_v54  ;;  %v2607_v61 = vmul.f32 1.442695, %v2586_v27  ;;  %v2655_v29 = vmul.f32 1.442695, %v2634_v56  ;;  %v8096_v14 = vpop.xlane.xlu1 %2171 }
 0x3ed   : > { %v8088_v3 = vpop.eup %4618  ;;  %v2703_v19 = vmul.f32 1.442695, %v2682_v28  ;;  %v3021_v49 = vadd.f32 %v8062_v6, %v3005_v17  ;;  %4642 = vpow2.f32 %v2857_v0  ;;  %v2751_v5 = vmul.f32 1.442695, %v2730_v10  ;;  %v10045_v17 = vld [vmem:[#allocation126_spill] sm:$0xff]  ;;  %v10046_v0 = vld [vmem:[#allocation187_spill] sm:$0xff] }
 0x3ee   : > { %v8092_v8 = vpop.eup %4620  ;;  %v2936_v31 = vadd.f32 %v8083_v25, %v2920_v13  ;;  %4644 = vpow2.f32 %v2905_v38  ;;  %v2778_v54 = vsub.f32 %v7991_v44, %v2522_v41  ;;  %v2826_v20 = vsub.f32 %v8011_v37, %v2522_v41 }
 0x3ef   : > { %v8098_v21 = vpop.eup %4622  ;;  %v2874_v27 = vsub.f32 %v8032_v40, %v2522_v41  ;;  %4646 = vrcp.f32 %v3021_v49  ;;  %v10047_v10 = vmax.f32 %v10045_v17, %v10046_v0  ;;  %v2497_v6 = vmax.f32 %v2481_v35, %v8090_v63 }
 0x3f0   : > { %v8103_v56 = vpop.eup %4624  ;;  %v2952_v28 = vadd.f32 %v8088_v3, %v2936_v31  ;;  %4648 = vpow2.f32 %v2559_v47  ;;  %v2799_v44 = vmul.f32 1.442695, %v2778_v54  ;;  %v2847_v38 = vmul.f32 1.442695, %v2826_v20  ;;  %v8115_v49 = vpop.xlane.xlu1 %2395 }
 0x3f1   : > { %v2476_v13 = vmax.f32 %v10047_v10, %v8060_v51  ;;  %v8111_v45 = vpop.eup %4626  ;;  %v2895_v37 = vmul.f32 1.442695, %v2874_v27  ;;  %4650 = vpow2.f32 %v2607_v61  ;;  %v8119_v31 = vadd.f32 %v7941_v33, %v8026_v50  ;;  %v8121_v17 = vpop.xlane.xlu0 %2186 }
 0x3f2   : > { %v2968_v40 = vadd.f32 %v8092_v8, %v2952_v28  ;;  %4652 = vpow2.f32 %v2655_v29  ;;  %v8125_v35 = vadd.f32 %v8038_v12, %v8034_v4  ;;  %v8129_v47 = vmul.f32 %v7856_v18, %v7721_v62  ;;  %v10056_v28 = vld [vmem:[#allocation188_spill] sm:$0xff] }
 0x3f3   : > { %v2492_v41 = vmax.f32 %v2476_v13, %v8076_v57  ;;  %10048 = vst [vmem:[#allocation110_spill] sm:$0xff] %v8119_v31  ;;  %v8133_v61 = vmul.f32 %v7856_v18, %v7737_v15  ;;  %v8135_v54 = vpop.eup %4628  ;;  %4654 = vpow2.f32 %v2703_v19  ;;  %v2513_v29 = vmax.f32 %v2497_v6, %v8121_v17 }
 0x3f4   : > { %10049 = vst [vmem:[#allocation26_spill] sm:$0xff] %v8125_v35  ;;  %10050 = vst [vmem:[#allocation39_spill] sm:$0xff] %v8129_v47  ;;  %v2984_v33 = vadd.f32 %v8098_v21, %v2968_v40  ;;  %v8140_v20 = vpop.eup %4630  ;;  %4656 = vpow2.f32 %v2751_v5  ;;  %v8144_v62 = vmul.f32 %v8135_v54, %v7966_v53  ;;  %v8148_v15 = vmul.f32 %v8135_v54, %v7974_v24  ;;  %v8158_v5 = vpop.xlane.xlu1 %1729 }
 0x3f5   : > { %10051 = vst [vmem:[#allocation130_spill] sm:$0xff] %v8133_v61  ;;  %v2508_v50 = vmax.f32 %v2492_v41, %v8096_v14  ;;  %10052 = vst [vmem:[#allocation132_spill] sm:$0xff] %v8140_v20  ;;  %v8152_v4 = vmul.f32 %v8135_v54, %v7980_v43  ;;  %v8154_v12 = vpop.eup %4632  ;;  %4658 = vpow2.f32 %v2799_v44  ;;  %v8162_v53 = vmul.f32 %v8135_v54, %v7986_v60  ;;  %v10055_v43 = vld [vmem:[#allocation124_spill] sm:$0xff]  ;;  %v10058_v44 = vld [vmem:[#allocation9_spill] sm:$0xff] }
 0x3f6   : > { %10053 = vst [vmem:[#allocation137_spill] sm:$0xff] %v8154_v12  ;;  %v3000_v19 = vadd.f32 %v8103_v56, %v2984_v33  ;;  %v8164_v27 = vpop.eup %4634  ;;  %v2927_v24 = vadd.f32 %v8154_v12, %v8140_v20  ;;  %4660 = vpow2.f32 %v2847_v38  ;;  %v10057_v10 = vmax.f32 %v10055_v43, %v10056_v28  ;;  %v10060_v33 = vld [vmem:[#allocation127_spill] sm:$0xff]  ;;  %v8183_v38 = vpop.xlane.xlu0 %2410 }
 0x3f7   : > { %v2524_v6 = vmax.f32 %v2508_v50, %v8115_v49  ;;  %10054 = vst [vmem:[#allocation121_spill] sm:$0xff] %v8164_v27  ;;  %v8176_v40 = vmul.f32 %v10058_v44, %v8144_v62  ;;  %v8178_v41 = vpop.eup %4636  ;;  %4662 = vpow2.f32 %v2895_v37 }
 0x3f8   : > { %v8172_v13 = vmax.f32 %v10057_v10, %v8158_v5  ;;  %10059 = vst [vmem:[#allocation123_spill] sm:$0xff] %v8178_v41  ;;  %v3016_v60 = vadd.f32 %v8111_v45, %v3000_v19  ;;  %v8185_v20 = vpop.eup %4638  ;;  %v2943_v43 = vadd.f32 %v8164_v27, %v2927_v24  ;;  %v10063_v10 = vld [vmem:[#allocation122_spill] sm:$0xff] }
 0x3f9   : > { %v2540_v50 = vsub.f32 %v10060_v33, %v2524_v6  ;;  %v2588_v12 = vsub.f32 %v10061_v23, %v2524_v6  ;;  %10062 = vst [vmem:[#allocation116_spill] sm:$0xff] %v8185_v20  ;;  %v2636_v32 = vsub.f32 %v10063_v10, %v2524_v6  ;;  %v2684_v44 = vsub.f32 %v10046_v0, %v2524_v6  ;;  %v8191_v9 = vpop.eup %4640  ;;  %v8194_v23 = vpop.xlane.xlu1 %1953 }
 0x3fa   : > { %v2732_v18 = vsub.f32 %v8060_v51, %v2524_v6  ;;  %10064 = vst [vmem:[#allocation126_spill] sm:$0xff] %v8191_v9  ;;  %4664 = vrcp.f32 %v3016_v60  ;;  %v2780_v33 = vsub.f32 %v8076_v57, %v2524_v6  ;;  %v8196_v61 = vpop.eup %4642  ;;  %v2959_v35 = vadd.f32 %v8178_v41, %v2943_v43 }
 0x3fb   : > { %v2563_v37 = vmul.f32 1.442695, %v2540_v50  ;;  %v2611_v19 = vmul.f32 1.442695, %v2588_v12  ;;  %10065 = vst [vmem:[#allocation187_spill] sm:$0xff] %v8196_v61  ;;  %v8199_v47 = vpop.eup %4644  ;;  %v2828_v0 = vsub.f32 %v8096_v14, %v2524_v6  ;;  %v2876_v60 = vsub.f32 %v8115_v49, %v2524_v6  ;;  %v8203_v12 = vpop.xlane.xlu0 %1744  ;;  %v10069_v14 = vld [vmem:[#allocation307_spill] sm:$0xff] }
 0x3fc   : > { %v2659_v24 = vmul.f32 1.442695, %v2636_v32  ;;  %v2707_v27 = vmul.f32 1.442695, %v2684_v44  ;;  %v2755_v10 = vmul.f32 1.442695, %v2732_v18  ;;  %v8205_v57 = vpop.eup %4646  ;;  %v2975_v50 = vadd.f32 %v8185_v20, %v2959_v35 }
 0x3fd   : > { %10066 = vst [vmem:[#allocation124_spill] sm:$0xff] %v8199_v47  ;;  %4666 = vpow2.f32 %v2563_v37  ;;  %v2803_v51 = vmul.f32 1.442695, %v2780_v33  ;;  %10067 = vst [vmem:[#allocation188_spill] sm:$0xff] %v8205_v57  ;;  %v2529_v43 = vmax.f32 %v2513_v29, %v8183_v38  ;;  %v2494_v18 = vmax.f32 %v8172_v13, %v8194_v23  ;;  %v8211_v32 = vpop.eup %4648  ;;  %v10070_v49 = vld [vmem:[#allocation197_spill] sm:$0xff]  ;;  %v8219_v41 = vpop.xlane.xlu1 %2177  ;;  %v10074_v20 = vld [vmem:[#allocation138_spill] sm:$0xff] }
 0x3fe   : > { %4668 = vpow2.f32 %v2611_v19  ;;  %10068 = vst [vmem:[#allocation9_spill] sm:$0xff] %v8211_v32  ;;  %v2851_v44 = vmul.f32 1.442695, %v2828_v0  ;;  %v2899_v37 = vmul.f32 1.442695, %v2876_v60  ;;  %v10071_v6 = vmax.f32 %v10069_v14, %v10070_v49  ;;  %v8221_v35 = vpop.eup %4650  ;;  %v10073_v19 = vld [vmem:[#allocation136_spill] sm:$0xff] }
 0x3ff   : > { %4670 = vpow2.f32 %v2659_v24  ;;  %10072 = vst [vmem:[#allocation127_spill] sm:$0xff] %v8221_v35  ;;  %v2991_v29 = vadd.f32 %v8191_v9, %v2975_v50  ;;  %v2545_v13 = vsub.f32 %v10073_v19, %v2529_v43  ;;  %v2593_v57 = vsub.f32 %v10074_v20, %v2529_v43  ;;  %v8226_v24 = vpop.eup %4652  ;;  %v10076_v60 = vld [vmem:[#allocation143_spill] sm:$0xff] }
 0x400   : > { %v8217_v33 = vmax.f32 %v10071_v6, %v8203_v12  ;;  %4672 = vpow2.f32 %v2707_v27  ;;  %10075 = vst [vmem:[#allocation129_spill] sm:$0xff] %v8226_v24  ;;  %v2922_v0 = vadd.f32 %v8221_v35, %v8211_v32  ;;  %v2641_v14 = vsub.f32 %v10076_v60, %v2529_v43  ;;  %v8232_v31 = vpop.eup %4654 }
 0x401   : > { %4674 = vpow2.f32 %v2755_v10  ;;  %v2689_v6 = vsub.f32 %v9978_v58, %v2529_v43  ;;  %10077 = vst [vmem:[#allocation122_spill] sm:$0xff] %v8232_v31  ;;  %v3007_v16 = vadd.f32 %v8196_v61, %v2991_v29  ;;  %v2573_v27 = vmul.f32 1.442695, %v2545_v13  ;;  %v8235_v19 = vpop.eup %4656  ;;  %v8238_v35 = vpop.xlane.xlu1 %2401 }
 0x402   : > { %4676 = vpow2.f32 %v2803_v51  ;;  %v2621_v50 = vmul.f32 1.442695, %v2593_v57  ;;  %10078 = vst [vmem:[#allocation307_spill] sm:$0xff] %v8235_v19  ;;  %v2938_v20 = vadd.f32 %v8226_v24, %v2922_v0  ;;  %v2669_v9 = vmul.f32 1.442695, %v2641_v14  ;;  %v8240_v10 = vpop.eup %4658 }
 0x403   : > { %4678 = vpow2.f32 %v2851_v44  ;;  %v2717_v30 = vmul.f32 1.442695, %v2689_v6  ;;  %10079 = vst [vmem:[#allocation197_spill] sm:$0xff] %v8240_v10  ;;  %v3023_v58 = vadd.f32 %v8199_v47, %v3007_v16  ;;  %v2737_v60 = vsub.f32 %v8058_v11, %v2529_v43  ;;  %v8245_v29 = vpop.eup %4660 }
 0x404   : > { %4680 = vpow2.f32 %v2899_v37  ;;  %v2785_v51 = vsub.f32 %v8090_v63, %v2529_v43  ;;  %10080 = vst [vmem:[#allocation136_spill] sm:$0xff] %v8245_v29  ;;  %v2954_v57 = vadd.f32 %v8232_v31, %v2938_v20  ;;  %v2833_v44 = vsub.f32 %v8121_v17, %v2529_v43  ;;  %v8250_v0 = vpop.eup %4662  ;;  %v8256_v20 = vpop.xlane.xlu0 %1968 }
 0x405   : > { %4682 = vpow2.f32 %v2573_v27  ;;  %v2881_v13 = vsub.f32 %v8183_v38, %v2529_v43  ;;  %v2765_v14 = vmul.f32 1.442695, %v2737_v60  ;;  %v2510_v16 = vmax.f32 %v2494_v18, %v8219_v41  ;;  %v8254_v47 = vpop.xlane.xlu1 %1735  ;;  %v10081_v38 = vld [vmem:[#allocation131_spill] sm:$0xff]  ;;  %v10082_v43 = vld [vmem:[#allocation190_spill] sm:$0xff] }
 0x406   : > { %4684 = vrcp.f32 %v3023_v58  ;;  %v2813_v6 = vmul.f32 1.442695, %v2785_v51  ;;  %v2970_v11 = vadd.f32 %v8235_v19, %v2954_v57  ;;  %v2861_v63 = vmul.f32 1.442695, %v2833_v44  ;;  %v10084_v51 = vld [vmem:[#allocation12_spill] sm:$0xff]  ;;  %v10085_v44 = vld [vmem:[#allocation10_spill] sm:$0xff] }
 0x407   : > { %4686 = vpow2.f32 %v2621_v50  ;;  %v2909_v37 = vmul.f32 1.442695, %v2881_v13  ;;  %v8258_v27 = vpop.eup %4664  ;;  %v2526_v17 = vmax.f32 %v2510_v16, %v8238_v35  ;;  %v10083_v58 = vmax.f32 %v10081_v38, %v10082_v43  ;;  %v10086_v16 = vld [vmem:[#allocation133_spill] sm:$0xff]  ;;  %v10087_v38 = vld [vmem:[#allocation135_spill] sm:$0xff]  ;;  %v10088_v19 = vld [vmem:[#allocation128_spill] sm:$0xff] }
 0x408   : > { %4688 = vpow2.f32 %v2669_v9  ;;  %v2986_v50 = vadd.f32 %v8240_v10, %v2970_v11  ;;  %v3144_v57 = vmul.f32 %v10084_v51, %v8148_v15  ;;  %v3224_v9 = vmul.f32 %v10085_v44, %v8152_v4 }
 0x409   : > { %v8265_v60 = vmax.f32 %v10083_v58, %v8254_v47  ;;  %4690 = vpow2.f32 %v2717_v30  ;;  %v2542_v61 = vsub.f32 %v10086_v16, %v2526_v17  ;;  %v2590_v58 = vsub.f32 %v10087_v38, %v2526_v17  ;;  %v8284_v18 = vpop.xlane.xlu1 %1959 }
 0x40a   : > { %v8274_v13 = vpop.eup %4666  ;;  %4692 = vpow2.f32 %v2765_v14  ;;  %v2638_v31 = vsub.f32 %v10088_v19, %v2526_v17  ;;  %v3002_v11 = vadd.f32 %v8245_v29, %v2986_v50  ;;  %v2686_v30 = vsub.f32 %v10056_v28, %v2526_v17 }
 0x40b   : > { %v8279_v24 = vpop.eup %4668  ;;  %4694 = vpow2.f32 %v2813_v6  ;;  %v2734_v51 = vsub.f32 %v8158_v5, %v2526_v17  ;;  %v2567_v16 = vmul.f32 1.442695, %v2542_v61  ;;  %v2615_v38 = vmul.f32 1.442695, %v2590_v58 }
 0x40c   : > { %v8286_v44 = vpop.eup %4670  ;;  %v2924_v14 = vadd.f32 %v8279_v24, %v8274_v13  ;;  %4696 = vpow2.f32 %v2861_v63  ;;  %v3018_v10 = vadd.f32 %v8250_v0, %v3002_v11  ;;  %v2663_v6 = vmul.f32 1.442695, %v2638_v31 }
 0x40d   : > { %10089 = vst [vmem:[#allocation138_spill] sm:$0xff] %v8286_v44  ;;  %v8290_v19 = vpop.eup %4672  ;;  %4698 = vpow2.f32 %v2909_v37  ;;  %v2711_v50 = vmul.f32 1.442695, %v2686_v30  ;;  %v2759_v29 = vmul.f32 1.442695, %v2734_v51  ;;  %v2782_v32 = vsub.f32 %v8194_v23, %v2526_v17  ;;  %v8302_v37 = vpop.xlane.xlu1 %2183  ;;  %v10094_v51 = vld [vmem:[#allocation149_spill] sm:$0xff] }
 0x40e   : > { %10090 = vst [vmem:[#allocation143_spill] sm:$0xff] %v8290_v19  ;;  %v8293_v28 = vpop.eup %4674  ;;  %v2940_v5 = vadd.f32 %v8286_v44, %v2924_v14  ;;  %4700 = vpow2.f32 %v2567_v16  ;;  %v2830_v61 = vsub.f32 %v8219_v41, %v2526_v17  ;;  %v2878_v63 = vsub.f32 %v8238_v35, %v2526_v17 }
 0x40f   : > { %10091 = vst [vmem:[#allocation131_spill] sm:$0xff] %v8293_v28  ;;  %v8297_v42 = vpop.eup %4676  ;;  %4702 = vrcp.f32 %v3018_v10  ;;  %v3176_v58 = vadd.f32 %v3144_v57, %v8176_v40  ;;  %v2807_v30 = vmul.f32 1.442695, %v2782_v32  ;;  %v3304_v23 = vmul.f32 %v10094_v51, %v8162_v53  ;;  %v10103_v51 = vld [vmem:[#allocation236_spill] sm:$0xff] }
 0x410   : > { %10092 = vst [vmem:[#allocation190_spill] sm:$0xff] %v8297_v42  ;;  %v8304_v31 = vpop.eup %4678  ;;  %v2956_v11 = vadd.f32 %v8290_v19, %v2940_v5  ;;  %4704 = vpow2.f32 %v2615_v38  ;;  %v2855_v10 = vmul.f32 1.442695, %v2830_v61  ;;  %v2903_v41 = vmul.f32 1.442695, %v2878_v63 }
 0x411   : > { %10093 = vst [vmem:[#allocation12_spill] sm:$0xff] %v8304_v31  ;;  %v8309_v14 = vpop.eup %4680  ;;  %4706 = vpow2.f32 %v2663_v6  ;;  %v3256_v16 = vadd.f32 %v3224_v9, %v3176_v58  ;;  %v3366_v17 = vmul.f32 %v8135_v54, %v7993_v48  ;;  %v3446_v32 = vmul.f32 %v8135_v54, %v7997_v1  ;;  %v8324_v5 = vpop.xlane.xlu1 %2407  ;;  %v10099_v48 = vld [vmem:[#allocation196_spill] sm:$0xff]  ;;  %v10100_v1 = vld [vmem:[#allocation230_spill] sm:$0xff] }
 0x412   : > { %10095 = vst [vmem:[#allocation10_spill] sm:$0xff] %v8309_v14  ;;  %v8311_v35 = vpop.eup %4682  ;;  %v2972_v40 = vadd.f32 %v8293_v28, %v2956_v11  ;;  %4708 = vpow2.f32 %v2711_v50  ;;  %v3526_v6 = vmul.f32 %v8135_v54, %v8007_v55  ;;  %v3606_v9 = vmul.f32 %v8135_v54, %v8013_v36  ;;  %v8331_v11 = vpop.xlane.xlu0 %2192  ;;  %v10102_v36 = vld [vmem:[#allocation232_spill] sm:$0xff] }
 0x413   : > { %10096 = vst [vmem:[#allocation133_spill] sm:$0xff] %v8311_v35  ;;  %v8318_v57 = vpop.eup %4684  ;;  %4710 = vpow2.f32 %v2759_v29  ;;  %v3336_v38 = vadd.f32 %v3304_v23, %v3256_v16  ;;  %v3384_v63 = vmul.f32 %v10099_v48, %v3366_v17  ;;  %v3464_v58 = vmul.f32 %v10100_v1, %v3446_v32  ;;  %v10105_v48 = vld [vmem:[#allocation7_spill] sm:$0xff] }
 0x414   : > { %10097 = vst [vmem:[#allocation135_spill] sm:$0xff] %v8318_v57  ;;  %v8326_v61 = vpop.eup %4686  ;;  %v2988_v50 = vadd.f32 %v8297_v42, %v2972_v40  ;;  %4712 = vpow2.f32 %v2807_v30  ;;  %v3544_v54 = vmul.f32 %v10102_v36, %v3526_v6  ;;  %v3624_v23 = vmul.f32 %v10103_v51, %v3606_v9  ;;  %v10108_v51 = vld [vmem:[#allocation11_spill] sm:$0xff] }
 0x415   : > { %10098 = vst [vmem:[#allocation128_spill] sm:$0xff] %v8326_v61  ;;  %v8333_v29 = vpop.eup %4688  ;;  %v2929_v55 = vadd.f32 %v8326_v61, %v8311_v35  ;;  %4714 = vpow2.f32 %v2855_v10  ;;  %v3416_v40 = vadd.f32 %v3384_v63, %v3336_v38  ;;  %v3063_v1 = vmul.f32 %v10105_v48, %v8144_v62  ;;  %v10107_v10 = vld [vmem:[#allocation13_spill] sm:$0xff]  ;;  %v10111_v63 = vld [vmem:[#allocation195_spill] sm:$0xff] }
 0x416   : > { %10101 = vst [vmem:[#allocation149_spill] sm:$0xff] %v8333_v29  ;;  %v8339_v16 = vpop.eup %4690  ;;  %v3004_v30 = vadd.f32 %v8304_v31, %v2988_v50  ;;  %4716 = vpow2.f32 %v2903_v41  ;;  %v3143_v36 = vmul.f32 %v10107_v10, %v8148_v15  ;;  %v3223_v61 = vmul.f32 %v10108_v51, %v8152_v4  ;;  %v10110_v50 = vld [vmem:[#allocation148_spill] sm:$0xff]  ;;  %v8358_v31 = vpop.xlane.xlu1 %1741  ;;  %v10113_v10 = vld [vmem:[#allocation229_spill] sm:$0xff]  ;;  %v10114_v4 = vld [vmem:[#allocation231_spill] sm:$0xff] }
 0x417   : > { %10104 = vst [vmem:[#allocation196_spill] sm:$0xff] %v8339_v16  ;;  %v8344_v57 = vpop.eup %4692  ;;  %v2945_v42 = vadd.f32 %v8333_v29, %v2929_v55  ;;  %4718 = vpow2.f32 %v7915_v34  ;;  %v3496_v38 = vadd.f32 %v3464_v58, %v3416_v40  ;;  %v3303_v62 = vmul.f32 %v10110_v50, %v8162_v53 }
 0x418   : > { %10106 = vst [vmem:[#allocation230_spill] sm:$0xff] %v8344_v57  ;;  %v8352_v35 = vpop.eup %4694  ;;  %v3020_v41 = vadd.f32 %v8309_v14, %v3004_v30  ;;  %v3383_v48 = vmul.f32 %v10111_v63, %v3366_v17  ;;  %v3175_v15 = vadd.f32 %v3143_v36, %v3063_v1  ;;  %v3463_v29 = vmul.f32 %v10113_v10, %v3446_v32  ;;  %v10116_v30 = vld [vmem:[#allocation235_spill] sm:$0xff]  ;;  %v2417_v17 = vpop.xlane.xlu0 %2416  ;;  %v10119_v1 = vld [vmem:[#allocation305_spill] sm:$0xff] }
 0x419   : > { %10109 = vst [vmem:[#allocation232_spill] sm:$0xff] %v8352_v35  ;;  %v8360_v55 = vpop.eup %4696  ;;  %v2961_v34 = vadd.f32 %v8339_v16, %v2945_v42  ;;  %v3543_v51 = vmul.f32 %v10114_v4, %v3526_v6  ;;  %v3576_v58 = vadd.f32 %v3544_v54, %v3496_v38  ;;  %v3623_v40 = vmul.f32 %v10116_v30, %v3606_v9  ;;  %v10120_v36 = vld [vmem:[#allocation191_spill] sm:$0xff]  ;;  %v10130_v16 = vld [vmem:[#allocation156_spill] sm:$0xff] }
 0x41a   : > { %10112 = vst [vmem:[#allocation236_spill] sm:$0xff] %v8360_v55  ;;  %v8365_v28 = vpop.eup %4698  ;;  %4720 = vrcp.f32 %v3020_v41  ;;  %v2496_v53 = vmax.f32 %v8265_v60, %v8284_v18  ;;  %v3255_v42 = vadd.f32 %v3223_v61, %v3175_v15  ;;  %v10118_v32 = vmax.f32 %v8217_v33, %v8256_v20 }
 0x41b   : > { %10115 = vst [vmem:[#allocation7_spill] sm:$0xff] %v8365_v28  ;;  %v8370_v50 = vpop.eup %4700  ;;  %v2977_v63 = vadd.f32 %v8344_v57, %v2961_v34  ;;  %v10121_v54 = vmax.f32 %v10119_v1, %v10120_v36  ;;  %v8385_v60 = vadd.f32 %v3624_v23, %v3576_v58  ;;  %v8390_v61 = vmul.f32 %v8258_v27, %v8071_v26 }
 0x41c   : > { %10117 = vst [vmem:[#allocation13_spill] sm:$0xff] %v8370_v50  ;;  %v2515_v6 = vmax.f32 %v10118_v32, %v8331_v11  ;;  %v8383_v9 = vpop.eup %4702  ;;  %v2512_v38 = vmax.f32 %v2496_v53, %v8302_v37  ;;  %v8394_v33 = vmul.f32 %v8258_v27, %v8078_v46  ;;  %v3335_v10 = vadd.f32 %v3303_v62, %v3255_v42  ;;  %v10124_v46 = vld [vmem:[#allocation30_spill] sm:$0xff] }
 0x41d   : > { %v8381_v41 = vmax.f32 %v10121_v54, %v8358_v31  ;;  %v8396_v34 = vpop.eup %4704  ;;  %v2993_v15 = vadd.f32 %v8352_v35, %v2977_v63  ;;  %v8401_v23 = vmul.f32 %v8258_v27, %v8083_v25  ;;  %v8412_v53 = vmul.f32 %v10124_v46, %v8390_v61  ;;  %v10125_v63 = vld [vmem:[#allocation35_spill] sm:$0xff]  ;;  %v10128_v54 = vld [vmem:[#allocation142_spill] sm:$0xff] }
 0x41e   : > { %10122 = vst [vmem:[#allocation11_spill] sm:$0xff] %v8396_v34  ;;  %v2531_v4 = vmax.f32 %v2515_v6, %v2417_v17  ;;  %v8403_v58 = vpop.eup %4706  ;;  %v2926_v26 = vadd.f32 %v8396_v34, %v8370_v50  ;;  %v8408_v30 = vmax.f32 %v2512_v38, %v8324_v5  ;;  %v3148_v62 = vmul.f32 %v10125_v63, %v8394_v33  ;;  %v10127_v6 = vld [vmem:[#allocation140_spill] sm:$0xff] }
 0x41f   : > { %10123 = vst [vmem:[#allocation148_spill] sm:$0xff] %v8403_v58  ;;  %v8416_v42 = vpop.eup %4708  ;;  %v3009_v25 = vadd.f32 %v8360_v55, %v2993_v15  ;;  %v3415_v32 = vadd.f32 %v3383_v48, %v3335_v10 }
 0x420   : > { %10126 = vst [vmem:[#allocation195_spill] sm:$0xff] %v8416_v42  ;;  %v2547_v1 = vsub.f32 %v10127_v6, %v2531_v4  ;;  %v2595_v35 = vsub.f32 %v10128_v54, %v2531_v4  ;;  %v8421_v57 = vpop.eup %4710  ;;  %v2942_v38 = vadd.f32 %v8403_v58, %v2926_v26  ;;  %v2643_v34 = vsub.f32 %v10130_v16, %v2531_v4 }
 0x421   : > { %10129 = vst [vmem:[#allocation229_spill] sm:$0xff] %v8421_v57  ;;  %v2691_v46 = vsub.f32 %v10070_v49, %v2531_v4  ;;  %v2739_v50 = vsub.f32 %v8203_v12, %v2531_v4  ;;  %v8427_v63 = vpop.eup %4712  ;;  %v3025_v14 = vadd.f32 %v8365_v28, %v3009_v25  ;;  %v3495_v15 = vadd.f32 %v3463_v29, %v3415_v32  ;;  %v10134_v25 = vld [vmem:[#allocation139_spill] sm:$0xff] }
 0x422   : > { %10131 = vst [vmem:[#allocation231_spill] sm:$0xff] %v8427_v63  ;;  %v2577_v48 = vmul.f32 1.442695, %v2547_v1  ;;  %v2625_v10 = vmul.f32 1.442695, %v2595_v35  ;;  %v8430_v6 = vpop.eup %4714  ;;  %v2958_v54 = vadd.f32 %v8416_v42, %v2942_v38  ;;  %v2787_v12 = vsub.f32 %v8256_v20, %v2531_v4 }
 0x423   : > { %10132 = vst [vmem:[#allocation235_spill] sm:$0xff] %v8430_v6  ;;  %v2673_v55 = vmul.f32 1.442695, %v2643_v34  ;;  %v2721_v19 = vmul.f32 1.442695, %v2691_v46  ;;  %v8433_v58 = vpop.eup %4716  ;;  %4722 = vrcp.f32 %v3025_v14  ;;  %v3575_v49 = vadd.f32 %v3543_v51, %v3495_v15  ;;  %v10136_v46 = vld [vmem:[#allocation134_spill] sm:$0xff] }
 0x424   : > { %v2769_v26 = vmul.f32 1.442695, %v2739_v50  ;;  %10133 = vst [vmem:[#allocation305_spill] sm:$0xff] %v8433_v58  ;;  %v2835_v16 = vsub.f32 %v8331_v11, %v2531_v4  ;;  %v8437_v44 = vpop.eup %4718  ;;  %v2974_v29 = vadd.f32 %v8421_v57, %v2958_v54  ;;  %4724 = vpow2.f32 %v2577_v48 }
 0x425   : > { %v2883_v35 = vsub.f32 %v2417_v17, %v2531_v4  ;;  %v2544_v32 = vsub.f32 %v10134_v25, %v8408_v30  ;;  %v3013_v50 = vadd.f32 %v8437_v44, %v8000_v39  ;;  %v8444_v34 = vadd.f32 %v3623_v40, %v3575_v49  ;;  %v10135_v17 = vld [vmem:[#allocation141_spill] sm:$0xff]  ;;  %v8460_v49 = vpop.xlane.xlu1 %1965 }
 0x426   : > { %4726 = vpow2.f32 %v2625_v10  ;;  %v2817_v14 = vmul.f32 1.442695, %v2787_v12  ;;  %v2990_v20 = vadd.f32 %v8427_v63, %v2974_v29  ;;  %v2865_v11 = vmul.f32 1.442695, %v2835_v16 }
 0x427   : > { %4728 = vpow2.f32 %v2673_v55  ;;  %v2913_v51 = vmul.f32 1.442695, %v2883_v35  ;;  %v8447_v1 = vpop.eup %4720  ;;  %v2571_v38 = vmul.f32 1.442695, %v2544_v32  ;;  %v2592_v4 = vsub.f32 %v10135_v17, %v8408_v30  ;;  %v10141_v17 = vld [vmem:[#allocation244_spill] sm:$0xff] }
 0x428   : > { %4730 = vrcp.f32 %v3013_v50  ;;  %v2640_v15 = vsub.f32 %v10136_v46, %v8408_v30  ;;  %v3006_v39 = vadd.f32 %v8430_v6, %v2990_v20  ;;  %v2688_v40 = vsub.f32 %v10082_v43, %v8408_v30  ;;  %v10138_v20 = vld [vmem:[#allocation162_spill] sm:$0xff] }
 0x429   : > { %4732 = vpow2.f32 %v2721_v19  ;;  %v2736_v55 = vsub.f32 %v8254_v47, %v8408_v30  ;;  %v2619_v48 = vmul.f32 1.442695, %v2592_v4  ;;  %v2784_v54 = vsub.f32 %v8284_v18, %v8408_v30  ;;  %v10137_v18 = vld [vmem:[#allocation17_spill] sm:$0xff] }
 0x42a   : > { %4734 = vpow2.f32 %v2769_v26  ;;  %v2667_v10 = vmul.f32 1.442695, %v2640_v15  ;;  %v3022_v12 = vadd.f32 %v8433_v58, %v3006_v39  ;;  %v2715_v16 = vmul.f32 1.442695, %v2688_v40  ;;  %v10144_v39 = vld [vmem:[#allocation246_spill] sm:$0xff]  ;;  %v10172_v58 = vld [vmem:[#allocation159_spill] sm:$0xff] }
 0x42b   : > { %4736 = vpow2.f32 %v2817_v14  ;;  %v2763_v29 = vmul.f32 1.442695, %v2736_v55  ;;  %v2811_v19 = vmul.f32 1.442695, %v2784_v54  ;;  %v2832_v43 = vsub.f32 %v8302_v37, %v8408_v30  ;;  %v10145_v40 = vld [vmem:[#allocation250_spill] sm:$0xff]  ;;  %v10148_v54 = vld [vmem:[#allocation16_spill] sm:$0xff] }
 0x42c   : > { %4738 = vpow2.f32 %v2865_v11  ;;  %v2880_v47 = vsub.f32 %v8324_v5, %v8408_v30  ;;  %v3180_v26 = vadd.f32 %v3148_v62, %v8412_v53  ;;  %v3228_v35 = vmul.f32 %v10137_v18, %v8401_v23  ;;  %v10139_v53 = vld [vmem:[#allocation242_spill] sm:$0xff]  ;;  %v10150_v18 = vld [vmem:[#allocation241_spill] sm:$0xff] }
 0x42d   : > { %4740 = vrcp.f32 %v3022_v12  ;;  %v3288_v25 = vmul.f32 %v8258_v27, %v8088_v3  ;;  %v2859_v32 = vmul.f32 1.442695, %v2832_v43  ;;  %v3368_v14 = vmul.f32 %v8258_v27, %v8092_v8 }
 0x42e   : > { %4742 = vpow2.f32 %v2913_v51  ;;  %v8472_v50 = vmul.f32 1.442695, %v2880_v47  ;;  %v3260_v37 = vadd.f32 %v3228_v35, %v3180_v26  ;;  %v3448_v30 = vmul.f32 %v8258_v27, %v8098_v21  ;;  %v8486_v51 = vpop.xlane.xlu1 %2189  ;;  %v10142_v21 = vld [vmem:[#allocation33_spill] sm:$0xff] }
 0x42f   : > { %4744 = vpow2.f32 %v2571_v38  ;;  %v3308_v5 = vmul.f32 %v10138_v20, %v3288_v25  ;;  %v3388_v62 = vmul.f32 %v10139_v53, %v3368_v14  ;;  %v3528_v3 = vmul.f32 %v8258_v27, %v8103_v56 }
 0x430   : > { %4746 = vpow2.f32 %v2619_v48  ;;  %v8484_v11 = vmul.f32 %v8258_v27, %v8111_v45  ;;  %v8488_v8 = vpop.eup %4722  ;;  %v3468_v4 = vmul.f32 %v10141_v17, %v3448_v30  ;;  %v3067_v46 = vmul.f32 %v10142_v21, %v8390_v61  ;;  %v10146_v27 = vld [vmem:[#allocation37_spill] sm:$0xff] }
 0x431   : > { %10140 = vst [vmem:[#allocation191_spill] sm:$0xff] %v8488_v8  ;;  %4748 = vpow2.f32 %v2667_v10  ;;  %v3340_v38 = vadd.f32 %v3308_v5, %v3260_v37  ;;  %v8493_v15 = vpop.eup %4724  ;;  %v3548_v56 = vmul.f32 %v10144_v39, %v3528_v3  ;;  %v3147_v55 = vmul.f32 %v10146_v27, %v8394_v33  ;;  %v10149_v61 = vld [vmem:[#allocation161_spill] sm:$0xff]  ;;  %v10160_v27 = vld [vmem:[#allocation3_spill] sm:$0xff] }
 0x432   : > { %10143 = vst [vmem:[#allocation30_spill] sm:$0xff] %v8493_v15  ;;  %4750 = vpow2.f32 %v2715_v16  ;;  %v8498_v45 = vmul.f32 %v10145_v40, %v8484_v11  ;;  %v3227_v12 = vmul.f32 %v10148_v54, %v8401_v23  ;;  %v3307_v43 = vmul.f32 %v10149_v61, %v3288_v25  ;;  %v10152_v5 = vld [vmem:[#allocation245_spill] sm:$0xff]  ;;  %v10159_v40 = vld [vmem:[#allocation6_spill] sm:$0xff]  ;;  %v10163_v61 = vld [vmem:[#allocation228_spill] sm:$0xff] }
 0x433   : > { %v8502_v48 = vpop.eup %4726  ;;  %4752 = vpow2.f32 %v2763_v29  ;;  %v3420_v10 = vadd.f32 %v3388_v62, %v3340_v38  ;;  %v3179_v26 = vadd.f32 %v3147_v55, %v3067_v46  ;;  %v8512_v35 = vmul.f32 %v10150_v18, %v3368_v14  ;;  %v10151_v29 = vld [vmem:[#allocation243_spill] sm:$0xff]  ;;  %v8526_v38 = vpop.xlane.xlu1 %2413  ;;  %v10155_v17 = vld [vmem:[#allocation209_spill] sm:$0xff]  ;;  %v10161_v55 = vld [vmem:[#allocation160_spill] sm:$0xff] }
 0x434   : > { %10147 = vst [vmem:[#allocation35_spill] sm:$0xff] %v8502_v48  ;;  %v8507_v47 = vpop.eup %4728  ;;  %v2931_v16 = vadd.f32 %v8502_v48, %v8493_v15  ;;  %4754 = vpow2.f32 %v2811_v19  ;;  %v8515_v20 = vmul.f32 %v10151_v29, %v3448_v30  ;;  %v8518_v23 = vmul.f32 %v10152_v5, %v3528_v3  ;;  %v10156_v3 = vld [vmem:[#allocation22_spill] sm:$0xff]  ;;  %v10164_v18 = vld [vmem:[#allocation201_spill] sm:$0xff]  ;;  %v10165_v5 = vld [vmem:[#allocation199_spill] sm:$0xff] }
 0x435   : > { %v4731_v33 = vpop.eup %4730  ;;  %4756 = vpow2.f32 %v2859_v32  ;;  %v3500_v37 = vadd.f32 %v3468_v4, %v3420_v10 }
 0x436   : > { %v8520_v25 = vpop.eup %4732  ;;  %v3045_v53 = vmul.f32 %v4731_v33, %v7898_v52  ;;  %v3125_v62 = vmul.f32 %v4731_v33, %v7902_v2  ;;  %v3205_v19 = vmul.f32 %v4731_v33, %v7917_v22  ;;  %v3285_v14 = vmul.f32 %v4731_v33, %v7927_v59  ;;  %v10158_v52 = vld [vmem:[#allocation5_spill] sm:$0xff] }
 0x437   : > { %10153 = vst [vmem:[#allocation140_spill] sm:$0xff] %v8520_v25  ;;  %v8528_v32 = vpop.eup %4734  ;;  %v3365_v30 = vmul.f32 %v4731_v33, %v7933_v7  ;;  %v3445_v4 = vmul.f32 %v4731_v33, %v10155_v17  ;;  %v3525_v21 = vmul.f32 %v4731_v33, %v10156_v3  ;;  %v3605_v46 = vmul.f32 %v4731_v33, %v8437_v44  ;;  %v10166_v3 = vld [vmem:[#allocation205_spill] sm:$0xff] }
 0x438   : > { %10154 = vst [vmem:[#allocation142_spill] sm:$0xff] %v8528_v32  ;;  %v8534_v39 = vpop.eup %4736  ;;  %v3062_v2 = vmul.f32 %v10158_v52, %v3045_v53  ;;  %v3142_v22 = vmul.f32 %v10159_v40, %v3125_v62  ;;  %v3222_v59 = vmul.f32 %v10160_v27, %v3205_v19  ;;  %v3302_v10 = vmul.f32 %v10161_v55, %v3285_v14  ;;  %v10168_v52 = vld [vmem:[#allocation4_spill] sm:$0xff]  ;;  %v10170_v27 = vld [vmem:[#allocation2_spill] sm:$0xff] }
 0x439   : > { %10157 = vst [vmem:[#allocation156_spill] sm:$0xff] %v8534_v39  ;;  %v8540_v54 = vpop.eup %4738  ;;  %v3382_v7 = vmul.f32 %v10163_v61, %v3365_v30  ;;  %v3462_v29 = vmul.f32 %v10164_v18, %v3445_v4  ;;  %v3542_v17 = vmul.f32 %v10165_v5, %v3525_v21  ;;  %v3622_v44 = vmul.f32 %v10166_v3, %v3605_v46  ;;  %v10169_v40 = vld [vmem:[#allocation8_spill] sm:$0xff]  ;;  %v10173_v61 = vld [vmem:[#allocation227_spill] sm:$0xff]  ;;  %v10175_v5 = vld [vmem:[#allocation198_spill] sm:$0xff] }
 0x43a   : > { %10162 = vst [vmem:[#allocation139_spill] sm:$0xff] %v8540_v54  ;;  %v8546_v33 = vpop.eup %4740  ;;  %v3174_v48 = vadd.f32 %v3142_v22, %v3062_v2  ;;  %v3061_v15 = vmul.f32 %v10168_v52, %v3045_v53  ;;  %v3141_v28 = vmul.f32 %v10169_v40, %v3125_v62  ;;  %v3221_v8 = vmul.f32 %v10170_v27, %v3205_v19  ;;  %v10174_v18 = vld [vmem:[#allocation200_spill] sm:$0xff]  ;;  %v8561_v52 = vpop.xlane.xlu1 %1747 }
 0x43b   : > { %10167 = vst [vmem:[#allocation141_spill] sm:$0xff] %v8546_v33  ;;  %v8551_v55 = vpop.eup %4742  ;;  %v3301_v6 = vmul.f32 %v10172_v58, %v3285_v14  ;;  %v3381_v63 = vmul.f32 %v10173_v61, %v3365_v30  ;;  %v3461_v57 = vmul.f32 %v10174_v18, %v3445_v4  ;;  %v3541_v42 = vmul.f32 %v10175_v5, %v3525_v21  ;;  %v10176_v22 = vld [vmem:[#allocation204_spill] sm:$0xff]  ;;  %v10177_v30 = vld [vmem:[#allocation249_spill] sm:$0xff] }
 0x43c   : > { %10171 = vst [vmem:[#allocation134_spill] sm:$0xff] %v8551_v55  ;;  %v8557_v3 = vpop.eup %4744  ;;  %v3254_v33 = vadd.f32 %v3222_v59, %v3174_v48  ;;  %v3173_v2 = vadd.f32 %v3141_v28, %v3061_v15  ;;  %v3621_v53 = vmul.f32 %v10176_v22, %v3605_v46  ;;  %v2947_v62 = vadd.f32 %v8507_v47, %v2931_v16  ;;  %v10182_v5 = vld [vmem:[#allocation9_spill] sm:$0xff] }
 0x43d   : > { %v8563_v19 = vpop.eup %4746  ;;  %4758 = vpow2.f32 %v8472_v50  ;;  %v3580_v58 = vadd.f32 %v3548_v56, %v3500_v37  ;;  %v3259_v14 = vadd.f32 %v3227_v12, %v3179_v26  ;;  %v3627_v4 = vmul.f32 %v10177_v30, %v8484_v11  ;;  %v10178_v11 = vld [vmem:[#allocation306_spill] sm:$0xff]  ;;  %v10179_v12 = vld [vmem:[#allocation193_spill] sm:$0xff] }
 0x43e   : > { %v8568_v21 = vpop.eup %4748  ;;  %v3334_v40 = vadd.f32 %v3302_v10, %v3254_v33  ;;  %v3253_v48 = vadd.f32 %v3221_v8, %v3173_v2  ;;  %v2963_v28 = vadd.f32 %v8520_v25, %v2947_v62  ;;  %v2928_v15 = vadd.f32 %v8563_v19, %v8557_v3  ;;  %v10325_v25 = vld [vmem:[#allocation73_spill] sm:$0xff] }
 0x43f   : > { %v8573_v16 = vpop.eup %4750  ;;  %v8576_v46 = vadd.f32 %v8498_v45, %v3580_v58  ;;  %v3339_v50 = vadd.f32 %v3307_v43, %v3259_v14  ;;  %v2498_v56 = vmax.f32 %v8381_v41, %v8460_v49  ;;  %v10180_v26 = vmax.f32 %v10178_v11, %v10179_v12  ;;  %v10181_v43 = vld [vmem:[#allocation14_spill] sm:$0xff] }
 0x440   : > { %v8586_v8 = vpop.eup %4752  ;;  %v3414_v59 = vadd.f32 %v3382_v7, %v3334_v40  ;;  %v3333_v10 = vadd.f32 %v3301_v6, %v3253_v48  ;;  %v2979_v33 = vadd.f32 %v8528_v32, %v2963_v28  ;;  %v2944_v27 = vadd.f32 %v8568_v21, %v2928_v15  ;;  %v10184_v48 = vld [vmem:[#allocation127_spill] sm:$0xff] }
 0x441   : > { %v8584_v37 = vmax.f32 %v10180_v26, %v8561_v52  ;;  %v8590_v45 = vpop.eup %4754  ;;  %v3688_v61 = vpack.c.bf16 %v8576_v46, %v10181_v43  ;;  %v3419_v41 = vadd.f32 %v8512_v35, %v3339_v50  ;;  %v2514_v18 = vmax.f32 %v2498_v56, %v8486_v51  ;;  %v10183_v35 = vld [vmem:[#allocation43_spill] sm:$0xff]  ;;  %v10185_v56 = vld [vmem:[#allocation145_spill] sm:$0xff] }
 0x442   : > { %v8598_v2 = vmul.f32 %v8383_v9, %v10182_v5  ;;  %v8600_v22 = vpop.eup %4756  ;;  %v3494_v6 = vadd.f32 %v3462_v29, %v3414_v59  ;;  %v3413_v7 = vadd.f32 %v3381_v63, %v3333_v10  ;;  %v2995_v62 = vadd.f32 %v8534_v39, %v2979_v33  ;;  %v10187_v59 = vld [vmem:[#allocation144_spill] sm:$0xff] }
 0x443   : > { %v2960_v58 = vadd.f32 %v8573_v16, %v2944_v27  ;;  %v3499_v14 = vadd.f32 %v8515_v20, %v3419_v41  ;;  %v2530_v30 = vmax.f32 %v2514_v18, %v8526_v38  ;;  %v8610_v28 = vmul.f32 %v8383_v9, %v10184_v48  ;;  %v10186_v20 = vld [vmem:[#allocation147_spill] sm:$0xff] }
 0x444   : > { %v3072_v40 = vmul.f32 %v10183_v35, %v8598_v2  ;;  %v3574_v15 = vadd.f32 %v3542_v17, %v3494_v6  ;;  %v3493_v46 = vadd.f32 %v3461_v57, %v3413_v7  ;;  %v3011_v29 = vadd.f32 %v8540_v54, %v2995_v62  ;;  %v10188_v62 = vld [vmem:[#allocation110_spill] sm:$0xff] }
 0x445   : > { %v2976_v63 = vadd.f32 %v8586_v8, %v2960_v58  ;;  %v3579_v50 = vadd.f32 %v8518_v23, %v3499_v14  ;;  %v2546_v11 = vsub.f32 %v10185_v56, %v2530_v30  ;;  %v2594_v26 = vsub.f32 %v10186_v20, %v2530_v30  ;;  %v10192_v56 = vld [vmem:[#allocation39_spill] sm:$0xff] }
 0x446   : > { %v2642_v10 = vsub.f32 %v10187_v59, %v2530_v30  ;;  %v3654_v33 = vadd.f32 %v3622_v44, %v3574_v15  ;;  %v3573_v27 = vadd.f32 %v3541_v42, %v3493_v46  ;;  %v3027_v43 = vadd.f32 %v8551_v55, %v3011_v29  ;;  %v10189_v29 = vld [vmem:[#allocation47_spill] sm:$0xff] }
 0x447   : > { %v2992_v41 = vadd.f32 %v8590_v45, %v2976_v63  ;;  %v3659_v17 = vadd.f32 %v3627_v4, %v3579_v50  ;;  %v2575_v57 = vmul.f32 1.442695, %v2546_v11  ;;  %v2623_v18 = vmul.f32 1.442695, %v2594_v26  ;;  %v10191_v50 = vld [vmem:[#allocation122_spill] sm:$0xff]  ;;  %v10193_v11 = vld [vmem:[#allocation155_spill] sm:$0xff] }
 0x448   : > { %v2671_v5 = vmul.f32 1.442695, %v2642_v10  ;;  %v3686_v6 = vpack.c.bf16 %v8385_v60, %v3654_v33  ;;  %v3653_v7 = vadd.f32 %v3621_v53, %v3573_v27  ;;  %4760 = vrcp.f32 %v3027_v43  ;;  %v10194_v10 = vld [vmem:[#allocation307_spill] sm:$0xff]  ;;  %v10196_v27 = vld [vmem:[#allocation164_spill] sm:$0xff]  ;;  %v10197_v43 = vld [vmem:[#allocation26_spill] sm:$0xff] }
 0x449   : > { %v3008_v23 = vadd.f32 %v8600_v22, %v2992_v41  ;;  %v3687_v58 = vpack.c.bf16 %v3659_v17, %v10188_v62  ;;  %4762 = vpow2.f32 %v2575_v57  ;;  %v2690_v44 = vsub.f32 %v10120_v36, %v2530_v30  ;;  %v10198_v17 = vld [vmem:[#allocation130_spill] sm:$0xff]  ;;  %v10199_v57 = vld [vmem:[#allocation211_spill] sm:$0xff] }
 0x44a   : > { %v2738_v42 = vsub.f32 %v8358_v31, %v2530_v30  ;;  %v8625_v14 = vpop.eup %4758  ;;  %3845 = vmatprep.mubr.bf16.mxu1 %v3686_v6  ;;  %v3685_v4 = vpack.c.bf16 %v8444_v34, %v3653_v7  ;;  %4764 = vpow2.f32 %v2623_v18  ;;  %v2786_v35 = vsub.f32 %v8460_v49, %v2530_v30  ;;  %v10190_v34 = vld [vmem:[#allocation129_spill] sm:$0xff]  ;;  %v10201_v7 = vld [vmem:[#allocation184_spill] sm:$0xff] }
 0x44b   : > { %v2834_v60 = vsub.f32 %v8486_v51, %v2530_v30  ;;  %v3024_v53 = vadd.f32 %v8625_v14, %v3008_v23  ;;  %4766 = vpow2.f32 %v2671_v5  ;;  %v2719_v48 = vmul.f32 1.442695, %v2690_v44  ;;  %v10200_v5 = vld [vmem:[#allocation254_spill] sm:$0xff]  ;;  %v10202_v23 = vld [vmem:[#allocation24_spill] sm:$0xff]  ;;  %v10203_v44 = vld [vmem:[#allocation197_spill] sm:$0xff] }
 0x44c   : > { %v2767_v15 = vmul.f32 1.442695, %v2738_v42  ;;  %3846 = vmatmul.mubr.bf16.vlgmr.msra.gmra.mxu1 %v3685_v4  ;;  %v2815_v46 = vmul.f32 1.442695, %v2786_v35  ;;  %v2882_v31 = vsub.f32 %v8526_v38, %v2530_v30  ;;  %v3152_v63 = vmul.f32 %v10189_v29, %v8610_v28  ;;  %v10195_v30 = vld [vmem:[#allocation31_spill] sm:$0xff] }
 0x44d   : > { %v2863_v36 = vmul.f32 1.442695, %v2834_v60  ;;  %4768 = vrcp.f32 %v3024_v53  ;;  %3853 = vmatprep.mubr.bf16.mxu1 %v3688_v61  ;;  %v3210_v49 = vmul.f32 %v8383_v9, %v10190_v34  ;;  %v3290_v51 = vmul.f32 %v8383_v9, %v10191_v50  ;;  %v10204_v4 = vld [vmem:[#allocation183_spill] sm:$0xff]  ;;  %v10205_v53 = vld [vmem:[#allocation214_spill] sm:$0xff] }
 0x44e   : > { %v3310_v20 = vmul.f32 %v10193_v11, %v10192_v56  ;;  %4770 = vpow2.f32 %v2719_v48  ;;  %v2911_v26 = vmul.f32 1.442695, %v2882_v31  ;;  %v3184_v59 = vadd.f32 %v3152_v63, %v3072_v40  ;;  %v8657_v31 = vpop.xlane.xlu1 %1971  ;;  %v10207_v63 = vld [vmem:[#allocation27_spill] sm:$0xff]  ;;  %v10209_v11 = vld [vmem:[#allocation185_spill] sm:$0xff] }
 0x44f   : > { %v3370_v38 = vmul.f32 %v8383_v9, %v10194_v10  ;;  %4772 = vpow2.f32 %v2767_v15  ;;  %v3232_v33 = vmul.f32 %v10195_v30, %v3210_v49  ;;  %v3312_v61 = vmul.f32 %v10196_v27, %v3290_v51  ;;  %v10206_v15 = vld [vmem:[#allocation136_spill] sm:$0xff]  ;;  %v10210_v10 = vld [vmem:[#allocation258_spill] sm:$0xff]  ;;  %v10212_v27 = vld [vmem:[#allocation19_spill] sm:$0xff] }
 0x450   : > { %v3342_v41 = vadd.f32 %v3310_v20, %v10197_v43  ;;  %4774 = vpow2.f32 %v2815_v46  ;;  %v3390_v18 = vmul.f32 %v10199_v57, %v10198_v17  ;;  %v3449_v62 = vmul.f32 %v10202_v23, %v10201_v7  ;;  %v10213_v57 = vld [vmem:[#allocation218_spill] sm:$0xff] }
 0x451   : > { %v3392_v6 = vmul.f32 %v10200_v5, %v3370_v38  ;;  %4776 = vpow2.f32 %v2863_v36  ;;  %v3264_v40 = vadd.f32 %v3232_v33, %v3184_v59  ;;  %v3450_v42 = vmul.f32 %v8383_v9, %v10203_v44  ;;  %v10208_v36 = vld [vmem:[#allocation216_spill] sm:$0xff]  ;;  %v10211_v33 = vld [vmem:[#allocation213_spill] sm:$0xff] }
 0x452   : > { %v3529_v35 = vmul.f32 %v10202_v23, %v10204_v4  ;;  %4778 = vpow2.f32 %v2911_v26  ;;  %v3422_v60 = vadd.f32 %v3390_v18, %v3342_v41  ;;  %v3470_v48 = vmul.f32 %v10205_v53, %v3449_v62  ;;  %v10214_v5 = vld [vmem:[#allocation45_spill] sm:$0xff] }
 0x453   : > { %v3530_v46 = vmul.f32 %v8383_v9, %v10206_v15  ;;  %v3344_v29 = vadd.f32 %v3312_v61, %v3264_v40  ;;  %v3472_v34 = vmul.f32 %v10207_v63, %v3450_v42  ;;  %v3609_v20 = vmul.f32 %v10202_v23, %v10209_v11  ;;  %v10215_v40 = vld [vmem:[#allocation20_spill] sm:$0xff]  ;;  %v10220_v15 = vld [vmem:[#allocation41_spill] sm:$0xff]  ;;  %v10221_v11 = vld [vmem:[#allocation34_spill] sm:$0xff] }
 0x454   : > { %v3550_v50 = vmul.f32 %v10208_v36, %v3529_v35  ;;  %3854 = vmatmul.mubr.bf16.gmra.mxu1 %v3687_v58  ;;  %v3502_v59 = vadd.f32 %v3470_v48, %v3422_v60  ;;  %v3610_v30 = vmul.f32 %v8383_v9, %v8250_v0  ;;  %v3069_v43 = vmul.f32 %v10212_v27, %v10211_v33  ;;  %v10216_v23 = vld [vmem:[#allocation28_spill] sm:$0xff]  ;;  %v10218_v0 = vld [vmem:[#allocation49_spill] sm:$0xff]  ;;  %v10219_v48 = vld [vmem:[#allocation151_spill] sm:$0xff] }
 0x455   : > { %v3552_v26 = vmul.f32 %v10210_v10, %v3530_v46  ;;  %v8668_v41 = vpop.eup %4760  ;;  %v3424_v61 = vadd.f32 %v3392_v6, %v3344_v29  ;;  %v3630_v18 = vmul.f32 %v10213_v57, %v3609_v20  ;;  %v3071_v7 = vmul.f32 %v10214_v5, %v8598_v2  ;;  %v10217_v60 = vld [vmem:[#allocation260_spill] sm:$0xff]  ;;  %v10222_v10 = vld [vmem:[#allocation154_spill] sm:$0xff] }
 0x456   : > { %v3149_v58 = vmul.f32 %v10216_v23, %v10215_v40  ;;  %v8675_v44 = vpop.eup %4762  ;;  %v3582_v4 = vadd.f32 %v3550_v50, %v3502_v59  ;;  %v3632_v53 = vmul.f32 %v10217_v60, %v3610_v30  ;;  %v3151_v9 = vmul.f32 %v10218_v0, %v8610_v28  ;;  %v10223_v28 = vld [vmem:[#allocation163_spill] sm:$0xff]  ;;  %v8692_v40 = vpop.xlane.xlu1 %2195 }
 0x457   : > { %v3229_v63 = vmul.f32 %v10220_v15, %v10219_v48  ;;  %v8682_v6 = vpop.eup %4764  ;;  %v3504_v29 = vadd.f32 %v3472_v34, %v3424_v61  ;;  %v3231_v2 = vmul.f32 %v10221_v11, %v3210_v49  ;;  %v3309_v33 = vmul.f32 %v10222_v10, %v10192_v56  ;;  %v10224_v34 = vld [vmem:[#allocation210_spill] sm:$0xff]  ;;  %v10225_v49 = vld [vmem:[#allocation253_spill] sm:$0xff] }
 0x458   : > { %v3181_v36 = vadd.f32 %v3149_v58, %v3069_v43  ;;  %v8687_v27 = vpop.eup %4766  ;;  %v2930_v50 = vadd.f32 %v8682_v6, %v8675_v44  ;;  %v3662_v59 = vadd.f32 %v3630_v18, %v3582_v4  ;;  %v3183_v57 = vadd.f32 %v3151_v9, %v3071_v7  ;;  %v10226_v48 = vld [vmem:[#allocation21_spill] sm:$0xff] }
 0x459   : > { %v3311_v5 = vmul.f32 %v10223_v28, %v3290_v51  ;;  %v3584_v23 = vadd.f32 %v3552_v26, %v3504_v29  ;;  %v3389_v43 = vmul.f32 %v10224_v34, %v10198_v17  ;;  %v3391_v61 = vmul.f32 %v10225_v49, %v3370_v38  ;;  %v10227_v18 = vld [vmem:[#allocation25_spill] sm:$0xff]  ;;  %v10228_v26 = vld [vmem:[#allocation215_spill] sm:$0xff] }
 0x45a   : > { %v3261_v60 = vadd.f32 %v3229_v63, %v3181_v36  ;;  %v8697_v58 = vpop.eup %4768  ;;  %v2946_v56 = vadd.f32 %v8687_v27, %v2930_v50  ;;  %v3263_v0 = vadd.f32 %v3231_v2, %v3183_v57  ;;  %v3469_v15 = vmul.f32 %v10226_v48, %v3449_v62  ;;  %v10229_v29 = vld [vmem:[#allocation257_spill] sm:$0xff]  ;;  %v10231_v2 = vld [vmem:[#allocation259_spill] sm:$0xff]  ;;  %v2420_v34 = vpop.xlane.xlu1 %2419 }
 0x45b   : > { %v3471_v7 = vmul.f32 %v10227_v18, %v3450_v42  ;;  %v8702_v4 = vpop.eup %4770  ;;  %v3664_v51 = vadd.f32 %v3632_v53, %v3584_v23  ;;  %v3549_v63 = vmul.f32 %v10228_v26, %v3529_v35  ;;  %v3551_v36 = vmul.f32 %v10229_v29, %v3530_v46  ;;  %v10230_v10 = vld [vmem:[#allocation217_spill] sm:$0xff]  ;;  %v10233_v35 = vld [vmem:[#allocation202_spill] sm:$0xff]  ;;  %v10236_v18 = vld [vmem:[#allocation55_spill] sm:$0xff] }
 0x45c   : > { %v3341_v9 = vadd.f32 %v3309_v33, %v3261_v60  ;;  %v8706_v17 = vpop.eup %4772  ;;  %v2962_v38 = vadd.f32 %v8702_v4, %v2946_v56  ;;  %v3343_v11 = vadd.f32 %v3311_v5, %v3263_v0  ;;  %v3629_v50 = vmul.f32 %v10230_v10, %v3609_v20  ;;  %v10232_v33 = vld [vmem:[#allocation189_spill] sm:$0xff]  ;;  %v10235_v56 = vld [vmem:[#allocation36_spill] sm:$0xff]  ;;  %v10239_v10 = vld [vmem:[#allocation194_spill] sm:$0xff] }
 0x45d   : > { %v3631_v57 = vmul.f32 %v10231_v2, %v3610_v30  ;;  %v8711_v62 = vpop.eup %4774  ;;  %v3690_v42 = vpack.c.bf16 %v3664_v51, %v3662_v59  ;;  %v2500_v53 = vmax.f32 %v8584_v37, %v8657_v31  ;;  %v8717_v23 = vmul.f32 %v10233_v35, %v10232_v33  ;;  %v10234_v30 = vld [vmem:[#allocation192_spill] sm:$0xff] }
 0x45e   : > { %v3421_v28 = vadd.f32 %v3389_v43, %v3341_v9  ;;  %v8719_v46 = vpop.eup %4776  ;;  %v2978_v60 = vadd.f32 %v8706_v17, %v2962_v38  ;;  %v3423_v5 = vadd.f32 %v3391_v61, %v3343_v11  ;;  %v8724_v20 = vmul.f32 %v8447_v1, %v8274_v13  ;;  %v10237_v9 = vld [vmem:[#allocation40_spill] sm:$0xff]  ;;  %v10238_v38 = vld [vmem:[#allocation59_spill] sm:$0xff] }
 0x45f   : > { %v8728_v59 = vmul.f32 %v10233_v35, %v10234_v30  ;;  %v8730_v43 = vpop.eup %4778  ;;  %3861 = vmatprep.mubr.bf16.mxu1 %v3690_v42  ;;  %v2516_v49 = vmax.f32 %v2500_v53, %v8692_v40  ;;  %v3074_v0 = vmul.f32 %v10235_v56, %v8717_v23  ;;  %v8737_v61 = vmul.f32 %v8447_v1, %v8279_v24 }
 0x460   : > { %v3501_v37 = vadd.f32 %v3469_v15, %v3421_v28  ;;  %v2994_v13 = vadd.f32 %v8711_v62, %v2978_v60  ;;  %v3503_v48 = vadd.f32 %v3471_v7, %v3423_v5  ;;  %v3076_v51 = vmul.f32 %v10236_v18, %v8724_v20  ;;  %v10240_v7 = vld [vmem:[#allocation138_spill] sm:$0xff] }
 0x461   : > { %v3154_v26 = vmul.f32 %v10237_v9, %v8728_v59  ;;  %v2532_v15 = vmax.f32 %v2516_v49, %v2420_v34  ;;  %v3156_v11 = vmul.f32 %v10238_v38, %v8737_v61  ;;  %v8748_v2 = vmul.f32 %v10233_v35, %v10239_v10  ;;  %v10241_v60 = vld [vmem:[#allocation150_spill] sm:$0xff] }
 0x462   : > { %v3581_v29 = vadd.f32 %v3549_v63, %v3501_v37  ;;  %v3010_v24 = vadd.f32 %v8719_v46, %v2994_v13  ;;  %v3583_v42 = vadd.f32 %v3551_v36, %v3503_v48  ;;  %v8753_v53 = vmul.f32 %v8447_v1, %v10240_v7  ;;  %v10242_v63 = vld [vmem:[#allocation153_spill] sm:$0xff]  ;;  %v10243_v37 = vld [vmem:[#allocation146_spill] sm:$0xff] }
 0x463   : > { %v3186_v28 = vadd.f32 %v3154_v26, %v3074_v0  ;;  %v2548_v5 = vsub.f32 %v10241_v60, %v2532_v15  ;;  %v2596_v30 = vsub.f32 %v10242_v63, %v2532_v15  ;;  %v2644_v49 = vsub.f32 %v10243_v37, %v2532_v15 }
 0x464   : > { %v3661_v33 = vadd.f32 %v3629_v50, %v3581_v29  ;;  %v3026_v56 = vadd.f32 %v8730_v43, %v3010_v24  ;;  %v3663_v18 = vadd.f32 %v3631_v57, %v3583_v42  ;;  %v2692_v9 = vsub.f32 %v10179_v12, %v2532_v15  ;;  %v10244_v12 = vld [vmem:[#allocation51_spill] sm:$0xff]  ;;  %v10245_v24 = vld [vmem:[#allocation44_spill] sm:$0xff] }
 0x465   : > { %v2740_v13 = vsub.f32 %v8561_v52, %v2532_v15  ;;  %v2579_v36 = vmul.f32 1.442695, %v2548_v5  ;;  %v2627_v0 = vmul.f32 1.442695, %v2596_v30  ;;  %v2675_v48 = vmul.f32 1.442695, %v2644_v49 }
 0x466   : > { %v2788_v26 = vsub.f32 %v8657_v31, %v2532_v15  ;;  %4780 = vrcp.f32 %v3026_v56  ;;  %v3689_v50 = vpack.c.bf16 %v3663_v18, %v3661_v33  ;;  %v2723_v29 = vmul.f32 1.442695, %v2692_v9  ;;  %v10246_v33 = vld [vmem:[#allocation15_spill] sm:$0xff]  ;;  %v10251_v9 = vld [vmem:[#allocation168_spill] sm:$0xff] }
 0x467   : > { %v2771_v38 = vmul.f32 1.442695, %v2740_v13  ;;  %4782 = vpow2.f32 %v2579_v36  ;;  %v2836_v7 = vsub.f32 %v8692_v40, %v2532_v15  ;;  %v2884_v60 = vsub.f32 %v2420_v34, %v2532_v15  ;;  %v10247_v40 = vld [vmem:[#allocation143_spill] sm:$0xff]  ;;  %v10252_v36 = vld [vmem:[#allocation152_spill] sm:$0xff] }
 0x468   : > { %v2819_v10 = vmul.f32 1.442695, %v2788_v26  ;;  %3862 = vmatmul.mubr.bf16.gmra.mxu1 %v3689_v50  ;;  %4784 = vpow2.f32 %v2627_v0  ;;  %v3188_v57 = vadd.f32 %v3156_v11, %v3076_v51  ;;  %v3234_v52 = vmul.f32 %v10244_v12, %v8748_v2  ;;  %v10248_v51 = vld [vmem:[#allocation158_spill] sm:$0xff]  ;;  %v10250_v56 = vld [vmem:[#allocation131_spill] sm:$0xff] }
 0x469   : > { %v3236_v42 = vmul.f32 %v10245_v24, %v8753_v53  ;;  %4786 = vpow2.f32 %v2675_v48  ;;  %v2867_v31 = vmul.f32 1.442695, %v2836_v7  ;;  %v2915_v5 = vmul.f32 1.442695, %v2884_v60  ;;  %v10249_v11 = vld [vmem:[#allocation18_spill] sm:$0xff] }
 0x46a   : > { %v3291_v63 = vmul.f32 %v10233_v35, %v10246_v33  ;;  %4788 = vpow2.f32 %v2723_v29  ;;  %v3266_v30 = vadd.f32 %v3234_v52, %v3186_v28  ;;  %v3292_v34 = vmul.f32 %v8447_v1, %v10247_v40  ;;  %v10253_v28 = vld [vmem:[#allocation190_spill] sm:$0xff]  ;;  %v10259_v40 = vld [vmem:[#allocation12_spill] sm:$0xff] }
 0x46b   : > { %v3268_v37 = vadd.f32 %v3236_v42, %v3188_v57  ;;  %4790 = vpow2.f32 %v2771_v38  ;;  %v3371_v49 = vmul.f32 %v10233_v35, %v10249_v11  ;;  %v3372_v18 = vmul.f32 %v8447_v1, %v10250_v56  ;;  %v10254_v50 = vld [vmem:[#allocation222_spill] sm:$0xff]  ;;  %v10255_v38 = vld [vmem:[#allocation264_spill] sm:$0xff]  ;;  %v10258_v42 = vld [vmem:[#allocation203_spill] sm:$0xff] }
 0x46c   : > { %v3314_v15 = vmul.f32 %v10248_v51, %v3291_v63  ;;  %4792 = vpow2.f32 %v2819_v10  ;;  %v3316_v13 = vmul.f32 %v10251_v9, %v3292_v34  ;;  %v3451_v0 = vmul.f32 %v10233_v35, %v10252_v36  ;;  %v10256_v57 = vld [vmem:[#allocation220_spill] sm:$0xff]  ;;  %v10257_v52 = vld [vmem:[#allocation270_spill] sm:$0xff]  ;;  %v10260_v11 = vld [vmem:[#allocation207_spill] sm:$0xff] }
 0x46d   : > { %v3452_v48 = vmul.f32 %v8447_v1, %v10253_v28  ;;  %4794 = vpow2.f32 %v2867_v31  ;;  %v3394_v29 = vmul.f32 %v10254_v50, %v3371_v49  ;;  %v3396_v7 = vmul.f32 %v10255_v38, %v3372_v18  ;;  %v10263_v9 = vld [vmem:[#allocation57_spill] sm:$0xff]  ;;  %v10264_v28 = vld [vmem:[#allocation32_spill] sm:$0xff]  ;;  %v10266_v38 = vld [vmem:[#allocation226_spill] sm:$0xff] }
 0x46e   : > { %v3346_v26 = vadd.f32 %v3314_v15, %v3266_v30  ;;  %4796 = vpow2.f32 %v2915_v5  ;;  %v3348_v60 = vadd.f32 %v3316_v13, %v3268_v37  ;;  %v3474_v12 = vmul.f32 %v10256_v57, %v3451_v0  ;;  %v10261_v15 = vld [vmem:[#allocation10_spill] sm:$0xff]  ;;  %v10265_v50 = vld [vmem:[#allocation272_spill] sm:$0xff] }
 0x46f   : > { %v3476_v10 = vmul.f32 %v10257_v52, %v3452_v48  ;;  %v3531_v33 = vmul.f32 %v10233_v35, %v10258_v42  ;;  %v3532_v51 = vmul.f32 %v8447_v1, %v10259_v40  ;;  %v3611_v31 = vmul.f32 %v10233_v35, %v10260_v11  ;;  %v10262_v5 = vld [vmem:[#allocation38_spill] sm:$0xff] }
 0x470   : > { %v3426_v24 = vadd.f32 %v3394_v29, %v3346_v26  ;;  %v3428_v30 = vadd.f32 %v3396_v7, %v3348_v60  ;;  %v3612_v56 = vmul.f32 %v8447_v1, %v10261_v15  ;;  %v3073_v37 = vmul.f32 %v10262_v5, %v8717_v23  ;;  %v10267_v42 = vld [vmem:[#allocation274_spill] sm:$0xff]  ;;  %v10269_v1 = vld [vmem:[#allocation61_spill] sm:$0xff] }
 0x471   : > { %v3075_v13 = vmul.f32 %v10263_v9, %v8724_v20  ;;  %v3554_v26 = vmul.f32 %v10264_v28, %v3531_v33  ;;  %v3556_v29 = vmul.f32 %v10265_v50, %v3532_v51  ;;  %v3634_v57 = vmul.f32 %v10266_v38, %v3611_v31  ;;  %v10268_v7 = vld [vmem:[#allocation42_spill] sm:$0xff]  ;;  %v10270_v20 = vld [vmem:[#allocation53_spill] sm:$0xff] }
 0x472   : > { %v3506_v36 = vadd.f32 %v3474_v12, %v3426_v24  ;;  %v3508_v52 = vadd.f32 %v3476_v10, %v3428_v30  ;;  %v3636_v35 = vmul.f32 %v10267_v42, %v3612_v56  ;;  %v3153_v60 = vmul.f32 %v10268_v7, %v8728_v59  ;;  %v10271_v24 = vld [vmem:[#allocation46_spill] sm:$0xff]  ;;  %v10272_v5 = vld [vmem:[#allocation157_spill] sm:$0xff]  ;;  %v10273_v59 = vld [vmem:[#allocation167_spill] sm:$0xff] }
 0x473   : > { %v3155_v40 = vmul.f32 %v10269_v1, %v8737_v61  ;;  %v8805_v23 = vpop.eup %4780  ;;  %v3233_v12 = vmul.f32 %v10270_v20, %v8748_v2  ;;  %v3235_v15 = vmul.f32 %v10271_v24, %v8753_v53  ;;  %v3313_v9 = vmul.f32 %v10272_v5, %v3291_v63  ;;  %v10274_v7 = vld [vmem:[#allocation221_spill] sm:$0xff]  ;;  %v10276_v2 = vld [vmem:[#allocation219_spill] sm:$0xff] }
 0x474   : > { %v3586_v11 = vadd.f32 %v3554_v26, %v3506_v36  ;;  %v8812_v10 = vpop.eup %4782  ;;  %v3588_v30 = vadd.f32 %v3556_v29, %v3508_v52  ;;  %v3185_v28 = vadd.f32 %v3153_v60, %v3073_v37  ;;  %v3315_v38 = vmul.f32 %v10273_v59, %v3292_v34  ;;  %v10275_v26 = vld [vmem:[#allocation263_spill] sm:$0xff]  ;;  %v10279_v34 = vld [vmem:[#allocation269_spill] sm:$0xff] }
 0x475   : > { %v3187_v50 = vadd.f32 %v3155_v40, %v3075_v13  ;;  %v8815_v42 = vpop.eup %4784  ;;  %v3393_v36 = vmul.f32 %v10274_v7, %v3371_v49  ;;  %v3395_v1 = vmul.f32 %v10275_v26, %v3372_v18  ;;  %v3473_v20 = vmul.f32 %v10276_v2, %v3451_v0  ;;  %v10280_v60 = vld [vmem:[#allocation29_spill] sm:$0xff]  ;;  %v10281_v40 = vld [vmem:[#allocation271_spill] sm:$0xff] }
 0x476   : > { %v3666_v61 = vadd.f32 %v3634_v57, %v3586_v11  ;;  %v8820_v55 = vpop.eup %4786  ;;  %v2932_v53 = vadd.f32 %v8815_v42, %v8812_v10  ;;  %v3668_v63 = vadd.f32 %v3636_v35, %v3588_v30  ;;  %v3265_v29 = vadd.f32 %v3233_v12, %v3185_v28  ;;  %v10282_v11 = vld [vmem:[#allocation225_spill] sm:$0xff]  ;;  %v10286_v30 = vld [vmem:[#allocation206_spill] sm:$0xff]  ;;  %v10287_v28 = vld [vmem:[#allocation188_spill] sm:$0xff] }
 0x477   : > { %10277 = vst [vmem:[#allocation17_spill] sm:$0xff] %v8820_v55  ;;  %v3267_v37 = vadd.f32 %v3235_v15, %v3187_v50  ;;  %v8824_v13 = vpop.eup %4788  ;;  %v3475_v52 = vmul.f32 %v10279_v34, %v3452_v48  ;;  %v3553_v57 = vmul.f32 %v10280_v60, %v3531_v33  ;;  %v3555_v49 = vmul.f32 %v10281_v40, %v3532_v51  ;;  %v10285_v12 = vld [vmem:[#allocation273_spill] sm:$0xff]  ;;  %v10290_v51 = vld [vmem:[#allocation208_spill] sm:$0xff]  ;;  %v10295_v34 = vld [vmem:[#allocation67_spill] sm:$0xff] }
 0x478   : > { %10278 = vst [vmem:[#allocation162_spill] sm:$0xff] %v8824_v13  ;;  %v3633_v18 = vmul.f32 %v10282_v11, %v3611_v31  ;;  %v8830_v24 = vpop.eup %4790  ;;  %v2948_v0 = vadd.f32 %v8820_v55, %v2932_v53  ;;  %v3692_v5 = vpack.c.bf16 %v3668_v63, %v3666_v61  ;;  %v3345_v59 = vadd.f32 %v3313_v9, %v3265_v29  ;;  %v10288_v50 = vld [vmem:[#allocation13_spill] sm:$0xff]  ;;  %v10292_v61 = vld [vmem:[#allocation11_spill] sm:$0xff]  ;;  %v10294_v29 = vld [vmem:[#allocation48_spill] sm:$0xff] }
 0x479   : > { %10283 = vst [vmem:[#allocation242_spill] sm:$0xff] %v8830_v24  ;;  %v3347_v7 = vadd.f32 %v3315_v38, %v3267_v37  ;;  %v8833_v35 = vpop.eup %4792  ;;  %v3635_v15 = vmul.f32 %v10285_v12, %v3612_v56  ;;  %v3053_v48 = vmul.f32 %v10287_v28, %v10286_v30  ;;  %v10289_v33 = vld [vmem:[#allocation141_spill] sm:$0xff]  ;;  %v3133_v31 = vmul.f32 %v10287_v28, %v10290_v51  ;;  %v10296_v40 = vld [vmem:[#allocation52_spill] sm:$0xff]  ;;  %v10327_v55 = vld [vmem:[#allocation58_spill] sm:$0xff] }
 0x47a   : > { %10284 = vst [vmem:[#allocation244_spill] sm:$0xff] %v8833_v35  ;;  %v3054_v26 = vmul.f32 %v10289_v33, %v10288_v50  ;;  %v8842_v2 = vpop.eup %4794  ;;  %v2964_v53 = vadd.f32 %v8824_v13, %v2948_v0  ;;  %3869 = vmatprep.mubr.bf16.mxu1 %v3692_v5  ;;  %v3425_v9 = vadd.f32 %v3393_v36, %v3345_v59  ;;  %v10297_v12 = vld [vmem:[#allocation212_spill] sm:$0xff]  ;;  %v10298_v36 = vld [vmem:[#allocation71_spill] sm:$0xff] }
 0x47b   : > { %10291 = vst [vmem:[#allocation33_spill] sm:$0xff] %v8842_v2  ;;  %v3427_v38 = vadd.f32 %v3395_v1, %v3347_v7  ;;  %v3134_v63 = vmul.f32 %v10289_v33, %v10292_v61  ;;  %v8847_v56 = vpop.eup %4796  ;;  %v3078_v37 = vmul.f32 %v10294_v29, %v3053_v48  ;;  %v3158_v11 = vmul.f32 %v10296_v40, %v3133_v31  ;;  %v10299_v7 = vld [vmem:[#allocation148_spill] sm:$0xff]  ;;  %v10300_v61 = vld [vmem:[#allocation63_spill] sm:$0xff]  ;;  %v10301_v29 = vld [vmem:[#allocation125_spill] sm:$0xff] }
 0x47c   : > { %10293 = vst [vmem:[#allocation246_spill] sm:$0xff] %v8847_v56  ;;  %v3080_v60 = vmul.f32 %v10295_v34, %v3054_v26  ;;  %v3213_v30 = vmul.f32 %v10287_v28, %v10297_v12  ;;  %v2980_v50 = vadd.f32 %v8830_v24, %v2964_v53  ;;  %v3505_v0 = vadd.f32 %v3473_v20, %v3425_v9  ;;  %v10302_v13 = vld [vmem:[#allocation56_spill] sm:$0xff] }
 0x47d   : > { %v3507_v5 = vadd.f32 %v3475_v52, %v3427_v38  ;;  %v3160_v1 = vmul.f32 %v10298_v36, %v3134_v63  ;;  %v3190_v59 = vadd.f32 %v3158_v11, %v3078_v37  ;;  %v3214_v51 = vmul.f32 %v10289_v33, %v10299_v7  ;;  %v10303_v52 = vld [vmem:[#allocation195_spill] sm:$0xff]  ;;  %v10304_v38 = vld [vmem:[#allocation166_spill] sm:$0xff] }
 0x47e   : > { %v3238_v54 = vmul.f32 %v10300_v61, %v3213_v30  ;;  %v3293_v34 = vmul.f32 %v10287_v28, %v10301_v29  ;;  %v2996_v40 = vadd.f32 %v8833_v35, %v2980_v50  ;;  %v3585_v39 = vadd.f32 %v3553_v57, %v3505_v0  ;;  %v10305_v61 = vld [vmem:[#allocation186_spill] sm:$0xff]  ;;  %v10306_v50 = vld [vmem:[#allocation172_spill] sm:$0xff] }
 0x47f   : > { %v3587_v32 = vadd.f32 %v3555_v49, %v3507_v5  ;;  %v3192_v12 = vadd.f32 %v3160_v1, %v3080_v60  ;;  %v3240_v53 = vmul.f32 %v10302_v13, %v3214_v51  ;;  %v3294_v9 = vmul.f32 %v10289_v33, %v10303_v52  ;;  %v10307_v60 = vld [vmem:[#allocation229_spill] sm:$0xff]  ;;  %v10308_v5 = vld [vmem:[#allocation224_spill] sm:$0xff] }
 0x480   : > { %v3270_v20 = vadd.f32 %v3238_v54, %v3190_v59  ;;  %v3318_v37 = vmul.f32 %v10304_v38, %v3293_v34  ;;  %v3012_v11 = vadd.f32 %v8842_v2, %v2996_v40  ;;  %v3665_v36 = vadd.f32 %v3633_v18, %v3585_v39  ;;  %v10309_v59 = vld [vmem:[#allocation23_spill] sm:$0xff]  ;;  %v10313_v38 = vld [vmem:[#allocation234_spill] sm:$0xff] }
 0x481   : > { %v3667_v7 = vadd.f32 %v3635_v15, %v3587_v32  ;;  %v3373_v29 = vmul.f32 %v10287_v28, %v10305_v61  ;;  %v3272_v24 = vadd.f32 %v3240_v53, %v3192_v12  ;;  %v3320_v57 = vmul.f32 %v10306_v50, %v3294_v9  ;;  %v10310_v32 = vld [vmem:[#allocation276_spill] sm:$0xff]  ;;  %v10311_v15 = vld [vmem:[#allocation231_spill] sm:$0xff]  ;;  %v10315_v61 = vld [vmem:[#allocation281_spill] sm:$0xff] }
 0x482   : > { %v3350_v49 = vadd.f32 %v3318_v37, %v3270_v20  ;;  %v3374_v13 = vmul.f32 %v10289_v33, %v10307_v60  ;;  %v3028_v54 = vadd.f32 %v8847_v56, %v3012_v11  ;;  %v3453_v40 = vmul.f32 %v10287_v28, %v10309_v59  ;;  %v10312_v53 = vld [vmem:[#allocation115_spill] sm:$0xff]  ;;  %v10317_v60 = vld [vmem:[#allocation117_spill] sm:$0xff] }
 0x483   : > { %v3691_v0 = vpack.c.bf16 %v3667_v7, %v3665_v36  ;;  %v3398_v1 = vmul.f32 %v10308_v5, %v3373_v29  ;;  %v3352_v39 = vadd.f32 %v3320_v57, %v3272_v24  ;;  %v3454_v12 = vmul.f32 %v10289_v33, %v10311_v15  ;;  %v10314_v11 = vld [vmem:[#allocation235_spill] sm:$0xff]  ;;  %v10316_v24 = vld [vmem:[#allocation240_spill] sm:$0xff] }
 0x484   : > { %v3400_v18 = vmul.f32 %v10310_v32, %v3374_v13  ;;  %v3533_v20 = vmul.f32 %v10287_v28, %v10312_v53  ;;  %4798 = vrcp.f32 %v3028_v54  ;;  %v3478_v37 = vmul.f32 %v10313_v38, %v3453_v40  ;;  %v10318_v32 = vld [vmem:[#allocation286_spill] sm:$0xff]  ;;  %v10319_v53 = vld [vmem:[#allocation305_spill] sm:$0xff] }
 0x485   : > { %3870 = vmatmul.mubr.bf16.gmra.mxu1 %v3691_v0  ;;  %v3430_v52 = vadd.f32 %v3398_v1, %v3350_v49  ;;  %v3534_v36 = vmul.f32 %v10289_v33, %v10314_v11  ;;  %v3480_v50 = vmul.f32 %v10315_v61, %v3454_v12  ;;  %v3613_v5 = vmul.f32 %v10287_v28, %v10317_v60  ;;  %v10320_v49 = vld [vmem:[#allocation50_spill] sm:$0xff]  ;;  %v10322_v11 = vld [vmem:[#allocation69_spill] sm:$0xff] }
 0x486   : > { %v3432_v7 = vadd.f32 %v3400_v18, %v3352_v39  ;;  %v3558_v57 = vmul.f32 %v10316_v24, %v3533_v20  ;;  %v3614_v54 = vmul.f32 %v10289_v33, %v10319_v53  ;;  %v3077_v0 = vmul.f32 %v10320_v49, %v3053_v48  ;;  %v10321_v38 = vld [vmem:[#allocation238_spill] sm:$0xff]  ;;  %v10328_v53 = vld [vmem:[#allocation165_spill] sm:$0xff]  ;;  %v10329_v49 = vld [vmem:[#allocation171_spill] sm:$0xff] }
 0x487   : > { %v3510_v59 = vadd.f32 %v3478_v37, %v3430_v52  ;;  %v3560_v15 = vmul.f32 %v10318_v32, %v3534_v36  ;;  %v3638_v56 = vmul.f32 %v10321_v38, %v3613_v5  ;;  %v3079_v39 = vmul.f32 %v10322_v11, %v3054_v26  ;;  %v10323_v18 = vld [vmem:[#allocation54_spill] sm:$0xff]  ;;  %v10326_v52 = vld [vmem:[#allocation65_spill] sm:$0xff]  ;;  %v10330_v26 = vld [vmem:[#allocation223_spill] sm:$0xff] }
 0x488   : > { %v3512_v1 = vadd.f32 %v3480_v50, %v3432_v7  ;;  %v3157_v61 = vmul.f32 %v10323_v18, %v3133_v31  ;;  %v10324_v24 = vld [vmem:[#allocation290_spill] sm:$0xff]  ;;  %v3159_v28 = vmul.f32 %v10325_v25, %v3134_v63  ;;  %v3237_v37 = vmul.f32 %v10326_v52, %v3213_v30  ;;  %v10333_v30 = vld [vmem:[#allocation279_spill] sm:$0xff] }
 0x489   : > { %v3590_v2 = vadd.f32 %v3558_v57, %v3510_v59  ;;  %v3640_v35 = vmul.f32 %v10324_v24, %v3614_v54  ;;  %v3239_v33 = vmul.f32 %v10327_v55, %v3214_v51  ;;  %v3317_v48 = vmul.f32 %v10328_v53, %v3293_v34  ;;  %v10331_v59 = vld [vmem:[#allocation275_spill] sm:$0xff]  ;;  %v10332_v24 = vld [vmem:[#allocation233_spill] sm:$0xff]  ;;  %v10343_v53 = vld [vmem:[#allocation80_spill] sm:$0xff] }
 0x48a   : > { %v3592_v60 = vadd.f32 %v3560_v15, %v3512_v1  ;;  %v3189_v32 = vadd.f32 %v3157_v61, %v3077_v0  ;;  %v3191_v50 = vadd.f32 %v3159_v28, %v3079_v39  ;;  %v3319_v38 = vmul.f32 %v10329_v49, %v3294_v9  ;;  %v10334_v0 = vld [vmem:[#allocation239_spill] sm:$0xff]  ;;  %v10335_v55 = vld [vmem:[#allocation285_spill] sm:$0xff] }
 0x48b   : > { %v3670_v7 = vadd.f32 %v3638_v56, %v3590_v2  ;;  %v3397_v11 = vmul.f32 %v10330_v26, %v3373_v29  ;;  %v3399_v18 = vmul.f32 %v10331_v59, %v3374_v13  ;;  %v3477_v25 = vmul.f32 %v10332_v24, %v3453_v40  ;;  %v10336_v56 = vld [vmem:[#allocation237_spill] sm:$0xff]  ;;  %v10339_v28 = vld [vmem:[#allocation135_spill] sm:$0xff] }
 0x48c   : > { %v3672_v31 = vadd.f32 %v3640_v35, %v3592_v60  ;;  %v3269_v57 = vadd.f32 %v3237_v37, %v3189_v32  ;;  %v3271_v63 = vadd.f32 %v3239_v33, %v3191_v50  ;;  %v3479_v15 = vmul.f32 %v10333_v30, %v3454_v12  ;;  %v10337_v9 = vld [vmem:[#allocation289_spill] sm:$0xff]  ;;  %v10338_v35 = vld [vmem:[#allocation132_spill] sm:$0xff] }
 0x48d   : > { %v3557_v1 = vmul.f32 %v10334_v0, %v3533_v20  ;;  %v3559_v51 = vmul.f32 %v10335_v55, %v3534_v36  ;;  %v3637_v39 = vmul.f32 %v10336_v56, %v3613_v5  ;;  %v3639_v61 = vmul.f32 %v10337_v9, %v3614_v54  ;;  %v10340_v40 = vld [vmem:[#allocation137_spill] sm:$0xff]  ;;  %v10342_v32 = vld [vmem:[#allocation60_spill] sm:$0xff]  ;;  %v10350_v9 = vld [vmem:[#allocation170_spill] sm:$0xff] }
 0x48e   : > { %v3694_v34 = vpack.c.bf16 %v3672_v31, %v3670_v7  ;;  %v3349_v2 = vadd.f32 %v3317_v48, %v3269_v57  ;;  %v3351_v29 = vadd.f32 %v3319_v38, %v3271_v63  ;;  %v3055_v52 = vmul.f32 %v10339_v28, %v10338_v35  ;;  %v10341_v37 = vld [vmem:[#allocation121_spill] sm:$0xff]  ;;  %v10345_v38 = vld [vmem:[#allocation84_spill] sm:$0xff]  ;;  %v10348_v63 = vld [vmem:[#allocation123_spill] sm:$0xff] }
 0x48f   : > { %v3056_v13 = vmul.f32 %v8697_v58, %v8557_v3  ;;  %v3135_v12 = vmul.f32 %v10339_v28, %v10340_v40  ;;  %v3136_v36 = vmul.f32 %v8697_v58, %v8563_v19  ;;  %v3215_v5 = vmul.f32 %v10339_v28, %v10341_v37  ;;  %v10344_v3 = vld [vmem:[#allocation64_spill] sm:$0xff] }
 0x490   : > { %3877 = vmatprep.mubr.bf16.mxu1 %v3694_v34  ;;  %v3429_v20 = vadd.f32 %v3397_v11, %v3349_v2  ;;  %v3216_v54 = vmul.f32 %v8697_v58, %v8568_v21  ;;  %v3431_v60 = vadd.f32 %v3399_v18, %v3351_v29  ;;  %v3082_v33 = vmul.f32 %v10342_v32, %v3055_v52  ;;  %v10346_v11 = vld [vmem:[#allocation75_spill] sm:$0xff]  ;;  %v10347_v31 = vld [vmem:[#allocation68_spill] sm:$0xff] }
 0x491   : > { %v3084_v48 = vmul.f32 %v10343_v53, %v3056_v13  ;;  %v3162_v7 = vmul.f32 %v10344_v3, %v3135_v12  ;;  %v8924_v50 = vpop.eup %4798  ;;  %v3164_v26 = vmul.f32 %v10345_v38, %v3136_v36  ;;  %v3242_v19 = vmul.f32 %v10346_v11, %v3215_v5  ;;  %v10349_v55 = vld [vmem:[#allocation116_spill] sm:$0xff]  ;;  %v10354_v53 = vld [vmem:[#allocation126_spill] sm:$0xff]  ;;  %v10355_v3 = vld [vmem:[#allocation187_spill] sm:$0xff] }
 0x492   : > { %v3509_v49 = vadd.f32 %v3477_v25, %v3429_v20  ;;  %v3244_v57 = vmul.f32 %v10347_v31, %v3216_v54  ;;  %v3511_v59 = vadd.f32 %v3479_v15, %v3431_v60  ;;  %v3295_v21 = vmul.f32 %v10339_v28, %v10348_v63  ;;  %v10351_v15 = vld [vmem:[#allocation176_spill] sm:$0xff]  ;;  %v10358_v31 = vld [vmem:[#allocation109_spill] sm:$0xff] }
 0x493   : > { %v3194_v24 = vadd.f32 %v3162_v7, %v3082_v33  ;;  %v3296_v18 = vmul.f32 %v8697_v58, %v8573_v16  ;;  %v3196_v0 = vadd.f32 %v3164_v26, %v3084_v48  ;;  %v3375_v34 = vmul.f32 %v10339_v28, %v10349_v55  ;;  %v10352_v37 = vld [vmem:[#allocation248_spill] sm:$0xff] }
 0x494   : > { %v3589_v30 = vadd.f32 %v3557_v1, %v3509_v49  ;;  %v3376_v25 = vmul.f32 %v8697_v58, %v8586_v8  ;;  %v3591_v2 = vadd.f32 %v3559_v51, %v3511_v59  ;;  %v3322_v29 = vmul.f32 %v10350_v9, %v3295_v21  ;;  %v10353_v32 = vld [vmem:[#allocation288_spill] sm:$0xff]  ;;  %v10363_v9 = vld [vmem:[#allocation82_spill] sm:$0xff] }
 0x495   : > { %v3274_v56 = vadd.f32 %v3242_v19, %v3194_v24  ;;  %v3324_v35 = vmul.f32 %v10351_v15, %v3296_v18  ;;  %v3276_v20 = vadd.f32 %v3244_v57, %v3196_v0  ;;  %v3402_v60 = vmul.f32 %v10352_v37, %v3375_v34  ;;  %v10356_v49 = vld [vmem:[#allocation124_spill] sm:$0xff] }
 0x496   : > { %v3669_v40 = vadd.f32 %v3637_v39, %v3589_v30  ;;  %v3404_v16 = vmul.f32 %v10353_v32, %v3376_v25  ;;  %v3671_v1 = vadd.f32 %v3639_v61, %v3591_v2  ;;  %v3455_v48 = vmul.f32 %v10339_v28, %v10354_v53  ;;  %v10357_v61 = vld [vmem:[#allocation256_spill] sm:$0xff]  ;;  %v10368_v53 = vld [vmem:[#allocation70_spill] sm:$0xff] }
 0x497   : > { %v3354_v33 = vadd.f32 %v3322_v29, %v3274_v56  ;;  %v3456_v8 = vmul.f32 %v8697_v58, %v8590_v45  ;;  %v3356_v51 = vadd.f32 %v3324_v35, %v3276_v20  ;;  %v3535_v7 = vmul.f32 %v10339_v28, %v10355_v3  ;;  %v10359_v24 = vld [vmem:[#allocation252_spill] sm:$0xff]  ;;  %v10362_v56 = vld [vmem:[#allocation62_spill] sm:$0xff]  ;;  %v10364_v35 = vld [vmem:[#allocation297_spill] sm:$0xff] }
 0x498   : > { %v3536_v39 = vmul.f32 %v8697_v58, %v8600_v22  ;;  %v3615_v38 = vmul.f32 %v10339_v28, %v10356_v49  ;;  %v3693_v26 = vpack.c.bf16 %v3671_v1, %v3669_v40  ;;  %v3482_v19 = vmul.f32 %v10357_v61, %v3455_v48  ;;  %v10360_v45 = vld [vmem:[#allocation296_spill] sm:$0xff]  ;;  %v10361_v22 = vld [vmem:[#allocation262_spill] sm:$0xff]  ;;  %v10367_v1 = vld [vmem:[#allocation77_spill] sm:$0xff] }
 0x499   : > { %v3434_v11 = vadd.f32 %v3402_v60, %v3354_v33  ;;  %v3484_v57 = vmul.f32 %v10358_v31, %v3456_v8  ;;  %v3436_v59 = vadd.f32 %v3404_v16, %v3356_v51  ;;  %v3562_v63 = vmul.f32 %v10359_v24, %v3535_v7  ;;  %v10365_v20 = vld [vmem:[#allocation66_spill] sm:$0xff]  ;;  %v10371_v61 = vld [vmem:[#allocation247_spill] sm:$0xff] }
 0x49a   : > { %v3564_v30 = vmul.f32 %v10360_v45, %v3536_v39  ;;  %v3616_v0 = vmul.f32 %v8697_v58, %v8625_v14  ;;  %3878 = vmatmul.mubr.bf16.gmra.mxu1 %v3693_v26  ;;  %v3642_v2 = vmul.f32 %v10361_v22, %v3615_v38  ;;  %v3081_v28 = vmul.f32 %v10362_v56, %v3055_v52  ;;  %v10366_v60 = vld [vmem:[#allocation86_spill] sm:$0xff]  ;;  %v10369_v58 = vld [vmem:[#allocation169_spill] sm:$0xff]  ;;  %v10370_v52 = vld [vmem:[#allocation175_spill] sm:$0xff] }
 0x49b   : > { %v3514_v55 = vadd.f32 %v3482_v19, %v3434_v11  ;;  %v3083_v29 = vmul.f32 %v10363_v9, %v3056_v13  ;;  %v3516_v15 = vadd.f32 %v3484_v57, %v3436_v59  ;;  %v3161_v37 = vmul.f32 %v10365_v20, %v3135_v12  ;;  %v10372_v31 = vld [vmem:[#allocation287_spill] sm:$0xff]  ;;  %v10377_v22 = vld [vmem:[#allocation261_spill] sm:$0xff]  ;;  %v10383_v20 = vld [vmem:[#allocation72_spill] sm:$0xff] }
 0x49c   : > { %v3644_v40 = vmul.f32 %v10364_v35, %v3616_v0  ;;  %v3163_v32 = vmul.f32 %v10366_v60, %v3136_v36  ;;  %v3241_v33 = vmul.f32 %v10367_v1, %v3215_v5  ;;  %v3243_v14 = vmul.f32 %v10368_v53, %v3216_v54  ;;  %v10373_v12 = vld [vmem:[#allocation255_spill] sm:$0xff]  ;;  %v10381_v35 = vld [vmem:[#allocation128_spill] sm:$0xff] }
 0x49d   : > { %v3594_v16 = vadd.f32 %v3562_v63, %v3514_v55  ;;  %v3321_v51 = vmul.f32 %v10369_v58, %v3295_v21  ;;  %v3596_v3 = vadd.f32 %v3564_v30, %v3516_v15  ;;  %v3193_v49 = vadd.f32 %v3161_v37, %v3081_v28  ;;  %v10374_v5 = vld [vmem:[#allocation111_spill] sm:$0xff]  ;;  %v10378_v28 = vld [vmem:[#allocation292_spill] sm:$0xff] }
 0x49e   : > { %v3195_v26 = vadd.f32 %v3163_v32, %v3083_v29  ;;  %v3323_v11 = vmul.f32 %v10370_v52, %v3296_v18  ;;  %v3401_v19 = vmul.f32 %v10371_v61, %v3375_v34  ;;  %v3403_v57 = vmul.f32 %v10372_v31, %v3376_v25  ;;  %v10375_v54 = vld [vmem:[#allocation251_spill] sm:$0xff]  ;;  %v10379_v29 = vld [vmem:[#allocation133_spill] sm:$0xff]  ;;  %v10384_v32 = vld [vmem:[#allocation92_spill] sm:$0xff] }
 0x49f   : > { %v3674_v13 = vadd.f32 %v3642_v2, %v3594_v16  ;;  %v3481_v59 = vmul.f32 %v10373_v12, %v3455_v48  ;;  %v3676_v36 = vadd.f32 %v3644_v40, %v3596_v3  ;;  %v3273_v24 = vadd.f32 %v3241_v33, %v3193_v49  ;;  %v10376_v21 = vld [vmem:[#allocation295_spill] sm:$0xff]  ;;  %v10390_v61 = vld [vmem:[#allocation230_spill] sm:$0xff] }
 0x4a0   : > { %v3275_v63 = vadd.f32 %v3243_v14, %v3195_v26  ;;  %v3483_v45 = vmul.f32 %v10374_v5, %v3456_v8  ;;  %v3561_v55 = vmul.f32 %v10375_v54, %v3535_v7  ;;  %v3563_v30 = vmul.f32 %v10376_v21, %v3536_v39  ;;  %v10380_v25 = vld [vmem:[#allocation191_spill] sm:$0xff]  ;;  %v10382_v39 = vld [vmem:[#allocation149_spill] sm:$0xff]  ;;  %v10387_v14 = vld [vmem:[#allocation88_spill] sm:$0xff] }
 0x4a1   : > { %v3641_v56 = vmul.f32 %v10377_v22, %v3615_v38  ;;  %v3643_v18 = vmul.f32 %v10378_v28, %v3616_v0  ;;  %v3696_v2 = vpack.c.bf16 %v3676_v36, %v3674_v13  ;;  %v3353_v9 = vadd.f32 %v3321_v51, %v3273_v24  ;;  %v10386_v33 = vld [vmem:[#allocation95_spill] sm:$0xff]  ;;  %v10389_v26 = vld [vmem:[#allocation196_spill] sm:$0xff]  ;;  %v10391_v12 = vld [vmem:[#allocation174_spill] sm:$0xff] }
 0x4a2   : > { %v3355_v34 = vadd.f32 %v3323_v11, %v3275_v63  ;;  %v3057_v15 = vmul.f32 %v10380_v25, %v10379_v29  ;;  %v3058_v48 = vmul.f32 %v8805_v23, %v8675_v44  ;;  %v3137_v8 = vmul.f32 %v10380_v25, %v10381_v35  ;;  %v10385_v44 = vld [vmem:[#allocation76_spill] sm:$0xff]  ;;  %v10388_v3 = vld [vmem:[#allocation87_spill] sm:$0xff] }
 0x4a3   : > { %v3138_v7 = vmul.f32 %v8805_v23, %v8682_v6  ;;  %v3217_v38 = vmul.f32 %v10380_v25, %v10382_v39  ;;  %3885 = vmatprep.mubr.bf16.mxu1 %v3696_v2  ;;  %v3433_v0 = vadd.f32 %v3401_v19, %v3353_v9  ;;  %v3218_v60 = vmul.f32 %v8805_v23, %v8687_v27  ;;  %v10392_v5 = vld [vmem:[#allocation180_spill] sm:$0xff] }
 0x4a4   : > { %v3435_v40 = vadd.f32 %v3403_v57, %v3355_v34  ;;  %v3086_v37 = vmul.f32 %v10383_v20, %v3057_v15  ;;  %v3088_v16 = vmul.f32 %v10384_v32, %v3058_v48  ;;  %v3166_v1 = vmul.f32 %v10385_v44, %v3137_v8  ;;  %v10393_v54 = vld [vmem:[#allocation268_spill] sm:$0xff] }
 0x4a5   : > { %v3168_v53 = vmul.f32 %v10386_v33, %v3138_v7  ;;  %v3246_v58 = vmul.f32 %v10387_v14, %v3217_v38  ;;  %v3513_v6 = vadd.f32 %v3481_v59, %v3433_v0  ;;  %v3248_v49 = vmul.f32 %v10388_v3, %v3218_v60  ;;  %v10394_v2 = vld [vmem:[#allocation112_spill] sm:$0xff]  ;;  %v10403_v3 = vld [vmem:[#allocation94_spill] sm:$0xff] }
 0x4a6   : > { %v3515_v51 = vadd.f32 %v3483_v45, %v3435_v40  ;;  %v3297_v52 = vmul.f32 %v10380_v25, %v10389_v26  ;;  %v3198_v11 = vadd.f32 %v3166_v1, %v3086_v37  ;;  %v3298_v27 = vmul.f32 %v8805_v23, %v8702_v4  ;;  %v10395_v9 = vld [vmem:[#allocation232_spill] sm:$0xff]  ;;  %v10397_v40 = vld [vmem:[#allocation7_spill] sm:$0xff]  ;;  %v10398_v37 = vld [vmem:[#allocation266_spill] sm:$0xff] }
 0x4a7   : > { %v3200_v13 = vadd.f32 %v3168_v53, %v3088_v16  ;;  %v3377_v19 = vmul.f32 %v10380_v25, %v10390_v61  ;;  %v3593_v31 = vadd.f32 %v3561_v55, %v3513_v6  ;;  %v3378_v59 = vmul.f32 %v8805_v23, %v8706_v17  ;;  %v10396_v35 = vld [vmem:[#allocation236_spill] sm:$0xff]  ;;  %v10399_v16 = vld [vmem:[#allocation301_spill] sm:$0xff]  ;;  %v10400_v1 = vld [vmem:[#allocation278_spill] sm:$0xff] }
 0x4a8   : > { %v3595_v57 = vadd.f32 %v3563_v30, %v3515_v51  ;;  %v3326_v36 = vmul.f32 %v10391_v12, %v3297_v52  ;;  %v3278_v24 = vadd.f32 %v3246_v58, %v3198_v11  ;;  %v3328_v45 = vmul.f32 %v10392_v5, %v3298_v27  ;;  %v10402_v58 = vld [vmem:[#allocation74_spill] sm:$0xff]  ;;  %v10405_v11 = vld [vmem:[#allocation284_spill] sm:$0xff] }
 0x4a9   : > { %v3280_v63 = vadd.f32 %v3248_v49, %v3200_v13  ;;  %v3406_v21 = vmul.f32 %v10393_v54, %v3377_v19  ;;  %v3673_v22 = vadd.f32 %v3641_v56, %v3593_v31  ;;  %v3408_v4 = vmul.f32 %v10394_v2, %v3378_v59  ;;  %v10404_v49 = vld [vmem:[#allocation78_spill] sm:$0xff]  ;;  %v10406_v61 = vld [vmem:[#allocation304_spill] sm:$0xff]  ;;  %v10410_v54 = vld [vmem:[#allocation173_spill] sm:$0xff] }
 0x4aa   : > { %v3675_v28 = vadd.f32 %v3643_v18, %v3595_v57  ;;  %v3457_v34 = vmul.f32 %v10380_v25, %v10395_v9  ;;  %v3358_v55 = vadd.f32 %v3326_v36, %v3278_v24  ;;  %v3458_v29 = vmul.f32 %v8805_v23, %v8711_v62  ;;  %v10401_v62 = vld [vmem:[#allocation302_spill] sm:$0xff]  ;;  %v10407_v57 = vld [vmem:[#allocation96_spill] sm:$0xff] }
 0x4ab   : > { %v3360_v30 = vadd.f32 %v3328_v45, %v3280_v63  ;;  %v3537_v17 = vmul.f32 %v10380_v25, %v10396_v35  ;;  %v3538_v0 = vmul.f32 %v8805_v23, %v8719_v46  ;;  %v3617_v56 = vmul.f32 %v10380_v25, %v10397_v40  ;;  %v10408_v36 = vld [vmem:[#allocation90_spill] sm:$0xff]  ;;  %v10414_v35 = vld [vmem:[#allocation265_spill] sm:$0xff] }
 0x4ac   : > { %v3695_v39 = vpack.c.bf16 %v3675_v28, %v3673_v22  ;;  %v3438_v18 = vadd.f32 %v3406_v21, %v3358_v55  ;;  %v3486_v32 = vmul.f32 %v10398_v37, %v3457_v34  ;;  %v3488_v44 = vmul.f32 %v10399_v16, %v3458_v29  ;;  %v10411_v22 = vld [vmem:[#allocation179_spill] sm:$0xff]  ;;  %v10413_v55 = vld [vmem:[#allocation114_spill] sm:$0xff] }
 0x4ad   : > { %v3440_v20 = vadd.f32 %v3408_v4, %v3360_v30  ;;  %v3566_v33 = vmul.f32 %v10400_v1, %v3537_v17  ;;  %v3568_v53 = vmul.f32 %v10401_v62, %v3538_v0  ;;  %v3618_v14 = vmul.f32 %v8805_v23, %v8730_v43  ;;  %v10409_v43 = vld [vmem:[#allocation89_spill] sm:$0xff]  ;;  %v10412_v28 = vld [vmem:[#allocation267_spill] sm:$0xff] }
 0x4ae   : > { %3886 = vmatmul.mubr.bf16.gmra.mxu1 %v3695_v39  ;;  %v3085_v6 = vmul.f32 %v10402_v58, %v3057_v15  ;;  %v3518_v46 = vadd.f32 %v3486_v32, %v3438_v18  ;;  %v3087_v25 = vmul.f32 %v10403_v3, %v3058_v48  ;;  %v3165_v26 = vmul.f32 %v10404_v49, %v3137_v8  ;;  %v10415_v39 = vld [vmem:[#allocation300_spill] sm:$0xff]  ;;  %v10416_v18 = vld [vmem:[#allocation277_spill] sm:$0xff]  ;;  %v10417_v32 = vld [vmem:[#allocation119_spill] sm:$0xff] }
 0x4af   : > { %v3520_v51 = vadd.f32 %v3488_v44, %v3440_v20  ;;  %v3646_v13 = vmul.f32 %v10405_v11, %v3617_v56  ;;  %v3648_v31 = vmul.f32 %v10406_v61, %v3618_v14  ;;  %v3167_v12 = vmul.f32 %v10407_v57, %v3138_v7  ;;  %v10418_v16 = vld [vmem:[#allocation283_spill] sm:$0xff]  ;;  %v10421_v62 = vld [vmem:[#allocation17_spill] sm:$0xff] }
 0x4b0   : > { %v3245_v24 = vmul.f32 %v10408_v36, %v3217_v38  ;;  %v3598_v63 = vadd.f32 %v3566_v33, %v3518_v46  ;;  %v3197_v45 = vadd.f32 %v3165_v26, %v3085_v6  ;;  %v3247_v23 = vmul.f32 %v10409_v43, %v3218_v60  ;;  %v10420_v33 = vld [vmem:[#allocation35_spill] sm:$0xff]  ;;  %v10423_v46 = vld [vmem:[#allocation97_spill] sm:$0xff]  ;;  %v10429_v36 = vld [vmem:[#allocation162_spill] sm:$0xff] }
 0x4b1   : > { %v3600_v5 = vadd.f32 %v3568_v53, %v3520_v51  ;;  %v3199_v15 = vadd.f32 %v3167_v12, %v3087_v25  ;;  %v3325_v21 = vmul.f32 %v10410_v54, %v3297_v52  ;;  %v3327_v48 = vmul.f32 %v10411_v22, %v3298_v27  ;;  %v10422_v58 = vld [vmem:[#allocation79_spill] sm:$0xff]  ;;  %v10426_v11 = vld [vmem:[#allocation101_spill] sm:$0xff] }
 0x4b2   : > { %v3405_v8 = vmul.f32 %v10412_v28, %v3377_v19  ;;  %v3678_v2 = vadd.f32 %v3646_v13, %v3598_v63  ;;  %v3277_v9 = vadd.f32 %v3245_v24, %v3197_v45  ;;  %v3407_v30 = vmul.f32 %v10413_v55, %v3378_v59  ;;  %v10419_v19 = vld [vmem:[#allocation30_spill] sm:$0xff]  ;;  %v10425_v49 = vld [vmem:[#allocation99_spill] sm:$0xff] }
 0x4b3   : > { %v3680_v4 = vadd.f32 %v3648_v31, %v3600_v5  ;;  %v3279_v7 = vadd.f32 %v3247_v23, %v3199_v15  ;;  %v3485_v38 = vmul.f32 %v10414_v35, %v3457_v34  ;;  %v3487_v40 = vmul.f32 %v10415_v39, %v3458_v29  ;;  %v10427_v61 = vld [vmem:[#allocation91_spill] sm:$0xff]  ;;  %v10430_v45 = vld [vmem:[#allocation142_spill] sm:$0xff]  ;;  %v10436_v39 = vld [vmem:[#allocation156_spill] sm:$0xff] }
 0x4b4   : > { %v3565_v20 = vmul.f32 %v10416_v18, %v3537_v17  ;;  %v3357_v37 = vadd.f32 %v3325_v21, %v3277_v9  ;;  %v3567_v52 = vmul.f32 %v10417_v32, %v3538_v0  ;;  %v3645_v27 = vmul.f32 %v10418_v16, %v3617_v56  ;;  %v10431_v23 = vld [vmem:[#allocation242_spill] sm:$0xff]  ;;  %v10432_v21 = vld [vmem:[#allocation303_spill] sm:$0xff]  ;;  %v10437_v18 = vld [vmem:[#allocation244_spill] sm:$0xff] }
 0x4b5   : > { %v3698_v60 = vpack.c.bf16 %v3680_v4, %v3678_v2  ;;  %v3359_v44 = vadd.f32 %v3327_v48, %v3279_v7  ;;  %v3059_v1 = vmul.f32 %v8668_v41, %v10419_v19  ;;  %v3060_v59 = vmul.f32 %v8924_v50, %v8812_v10  ;;  %v10424_v10 = vld [vmem:[#allocation83_spill] sm:$0xff]  ;;  %v10433_v28 = vld [vmem:[#allocation178_spill] sm:$0xff]  ;;  %v10440_v16 = vld [vmem:[#allocation33_spill] sm:$0xff] }
 0x4b6   : > { %v3139_v34 = vmul.f32 %v8668_v41, %v10420_v33  ;;  %v3437_v29 = vadd.f32 %v3405_v8, %v3357_v37  ;;  %v3140_v17 = vmul.f32 %v8924_v50, %v8815_v42  ;;  %v3219_v0 = vmul.f32 %v8668_v41, %v8507_v47  ;;  %v10428_v47 = vld [vmem:[#allocation140_spill] sm:$0xff]  ;;  %v10434_v9 = vld [vmem:[#allocation182_spill] sm:$0xff]  ;;  %v10439_v32 = vld [vmem:[#allocation139_spill] sm:$0xff] }
 0x4b7   : > { %3893 = vmatprep.mubr.bf16.mxu1 %v3698_v60  ;;  %v3220_v56 = vmul.f32 %v8924_v50, %v10421_v62  ;;  %v3439_v53 = vadd.f32 %v3407_v30, %v3359_v44  ;;  %v3090_v6 = vmul.f32 %v10422_v58, %v3059_v1  ;;  %v3092_v51 = vmul.f32 %v10423_v46, %v3060_v59  ;;  %v10435_v30 = vld [vmem:[#allocation282_spill] sm:$0xff]  ;;  %v10438_v37 = vld [vmem:[#allocation104_spill] sm:$0xff]  ;;  %v10441_v33 = vld [vmem:[#allocation291_spill] sm:$0xff] }
 0x4b8   : > { %v3170_v3 = vmul.f32 %v10424_v10, %v3139_v34  ;;  %v3517_v25 = vadd.f32 %v3485_v38, %v3437_v29  ;;  %v3172_v26 = vmul.f32 %v10425_v49, %v3140_v17  ;;  %v3250_v13 = vmul.f32 %v10426_v11, %v3219_v0  ;;  %v10442_v62 = vld [vmem:[#allocation134_spill] sm:$0xff] }
 0x4b9   : > { %v3252_v42 = vmul.f32 %v10427_v61, %v3220_v56  ;;  %v3519_v31 = vadd.f32 %v3487_v40, %v3439_v53  ;;  %v3299_v12 = vmul.f32 %v8668_v41, %v10428_v47  ;;  %v3300_v24 = vmul.f32 %v8924_v50, %v10429_v36  ;;  %v10449_v47 = vld [vmem:[#allocation85_spill] sm:$0xff] }
 0x4ba   : > { %v3202_v57 = vadd.f32 %v3170_v3, %v3090_v6  ;;  %v3597_v63 = vadd.f32 %v3565_v20, %v3517_v25  ;;  %v3204_v5 = vadd.f32 %v3172_v26, %v3092_v51  ;;  %v3379_v43 = vmul.f32 %v8668_v41, %v10430_v45  ;;  %v10443_v6 = vld [vmem:[#allocation106_spill] sm:$0xff]  ;;  %v10445_v25 = vld [vmem:[#allocation299_spill] sm:$0xff]  ;;  %v10446_v26 = vld [vmem:[#allocation81_spill] sm:$0xff] }
 0x4bb   : > { %v3380_v15 = vmul.f32 %v8924_v50, %v10431_v23  ;;  %v3599_v54 = vadd.f32 %v3567_v52, %v3519_v31  ;;  %v3647_v22 = vmul.f32 %v10432_v21, %v3618_v14  ;;  %v3330_v8 = vmul.f32 %v10433_v28, %v3299_v12  ;;  %v10444_v51 = vld [vmem:[#allocation246_spill] sm:$0xff]  ;;  %v10448_v31 = vld [vmem:[#allocation107_spill] sm:$0xff] }
 0x4bc   : > { %v3282_v48 = vadd.f32 %v3250_v13, %v3202_v57  ;;  %v3677_v2 = vadd.f32 %v3645_v27, %v3597_v63  ;;  %v3284_v4 = vadd.f32 %v3252_v42, %v3204_v5  ;;  %v3332_v55 = vmul.f32 %v10434_v9, %v3300_v24  ;;  %v10447_v13 = vld [vmem:[#allocation98_spill] sm:$0xff]  ;;  %v10456_v9 = vld [vmem:[#allocation181_spill] sm:$0xff] }
 0x4bd   : > { %v3410_v7 = vmul.f32 %v10435_v30, %v3379_v43  ;;  %v3679_v35 = vadd.f32 %v3647_v22, %v3599_v54  ;;  %v3459_v40 = vmul.f32 %v8668_v41, %v10436_v39  ;;  %v3460_v20 = vmul.f32 %v8924_v50, %v10437_v18  ;;  %v10451_v45 = vld [vmem:[#allocation294_spill] sm:$0xff] }
 0x4be   : > { %v3362_v38 = vadd.f32 %v3330_v8, %v3282_v48  ;;  %v3364_v60 = vadd.f32 %v3332_v55, %v3284_v4  ;;  %v3412_v14 = vmul.f32 %v10438_v37, %v3380_v15  ;;  %v3539_v52 = vmul.f32 %v8668_v41, %v10439_v32  ;;  %v10452_v54 = vld [vmem:[#allocation118_spill] sm:$0xff]  ;;  %v10458_v37 = vld [vmem:[#allocation105_spill] sm:$0xff] }
 0x4bf   : > { %v3540_v27 = vmul.f32 %v8924_v50, %v10440_v16  ;;  %v3697_v44 = vpack.c.bf16 %v3679_v35, %v3677_v2  ;;  %v3490_v29 = vmul.f32 %v10441_v33, %v3459_v40  ;;  %v3619_v53 = vmul.f32 %v8668_v41, %v10442_v62  ;;  %v10450_v41 = vld [vmem:[#allocation100_spill] sm:$0xff]  ;;  %v10453_v21 = vld [vmem:[#allocation102_spill] sm:$0xff]  ;;  %v10462_v62 = vld [vmem:[#allocation103_spill] sm:$0xff] }
 0x4c0   : > { %v3442_v19 = vadd.f32 %v3410_v7, %v3362_v38  ;;  %v3444_v58 = vadd.f32 %v3412_v14, %v3364_v60  ;;  %v3492_v46 = vmul.f32 %v10443_v6, %v3460_v20  ;;  %v3620_v10 = vmul.f32 %v8924_v50, %v10444_v51  ;;  %v10457_v35 = vld [vmem:[#allocation280_spill] sm:$0xff]  ;;  %v10461_v33 = vld [vmem:[#allocation298_spill] sm:$0xff] }
 0x4c1   : > { %3894 = vmatmul.mubr.bf16.gmra.mxu1 %v3697_v44  ;;  %v3570_v49 = vmul.f32 %v10445_v25, %v3539_v52  ;;  %v3089_v11 = vmul.f32 %v10446_v26, %v3059_v1  ;;  %v3091_v61 = vmul.f32 %v10447_v13, %v3060_v59  ;;  %v3572_v57 = vmul.f32 %v10448_v31, %v3540_v27  ;;  %v10454_v1 = vld [vmem:[#allocation93_spill] sm:$0xff] }
 0x4c2   : > { %v3522_v3 = vadd.f32 %v3490_v29, %v3442_v19  ;;  %v3524_v42 = vadd.f32 %v3492_v46, %v3444_v58  ;;  %v3169_v36 = vmul.f32 %v10449_v47, %v3139_v34  ;;  %v3171_v63 = vmul.f32 %v10450_v41, %v3140_v17  ;;  %v10455_v59 = vld [vmem:[#allocation177_spill] sm:$0xff] }
 0x4c3   : > { %v3650_v23 = vmul.f32 %v10451_v45, %v3619_v53  ;;  %v3652_v50 = vmul.f32 %v10452_v54, %v3620_v10  ;;  %v3249_v22 = vmul.f32 %v10453_v21, %v3219_v0  ;;  %v3251_v2 = vmul.f32 %v10454_v1, %v3220_v56  ;;  %v10459_v56 = vld [vmem:[#allocation113_spill] sm:$0xff]  ;;  %v3705_v21 = vld [vmem:[%s9107_s25 + $0x20] sm:$0xff]  ;;  %v3706_v1 = vld [vmem:[%s9107_s25 + $0x28] sm:$0xff] }
 0x4c4   : > { %v3602_v5 = vadd.f32 %v3570_v49, %v3522_v3  ;;  %v3604_v48 = vadd.f32 %v3572_v57, %v3524_v42  ;;  %v3201_v28 = vadd.f32 %v3169_v36, %v3089_v11  ;;  %v3203_v8 = vadd.f32 %v3171_v63, %v3091_v61  ;;  %v10463_v46 = vld [vmem:[#allocation293_spill] sm:$0xff]  ;;  %v3702_v11 = vld [vmem:[%s9107_s25 + $0x8] sm:$0xff]  ;;  %v3703_v57 = vld [vmem:[%s9107_s25 + $0x10] sm:$0xff] }
 0x4c5   : > { %v3329_v4 = vmul.f32 %v10455_v59, %v3299_v12  ;;  %v3331_v55 = vmul.f32 %v10456_v9, %v3300_v24  ;;  %v3409_v38 = vmul.f32 %v10457_v35, %v3379_v43  ;;  %v3411_v0 = vmul.f32 %v10458_v37, %v3380_v15  ;;  %v10460_v12 = vld [vmem:[#allocation108_spill] sm:$0xff]  ;;  %v3708_v35 = vld [vmem:[%s9107_s25 + $0x38] sm:$0xff]  ;;  %v3709_v37 = vld [vmem:[%s9107_s25 + $0x40] sm:$0xff] }
 0x4c6   : > { %v3682_v30 = vadd.f32 %v3650_v23, %v3602_v5  ;;  %v3684_v34 = vadd.f32 %v3652_v50, %v3604_v48  ;;  %v3281_v7 = vadd.f32 %v3249_v22, %v3201_v28  ;;  %v3283_v17 = vadd.f32 %v3251_v2, %v3203_v8  ;;  %v10464_v15 = vld [vmem:[#allocation120_spill] sm:$0xff]  ;;  %v3704_v5 = vld [vmem:[%s9107_s25 + $0x18] sm:$0xff] }
 0x4c7   : > { %v3489_v16 = vmul.f32 %v10459_v56, %v3459_v40  ;;  %v3491_v44 = vmul.f32 %v10460_v12, %v3460_v20  ;;  %v3569_v29 = vmul.f32 %v10461_v33, %v3539_v52  ;;  %v3571_v43 = vmul.f32 %v10462_v62, %v3540_v27  ;;  %v3701_v20 = vld [vmem:[%s9107_s25] sm:$0xff]  ;;  %v3711_v33 = vld [vmem:[%s9107_s25 + $0x50] sm:$0xff] }
 0x4c8   : > { %v3700_v39 = vpack.c.bf16 %v3684_v34, %v3682_v30  ;;  %v3361_v18 = vadd.f32 %v3329_v4, %v3281_v7  ;;  %v3363_v60 = vadd.f32 %v3331_v55, %v3283_v17  ;;  %v3649_v51 = vmul.f32 %v10463_v46, %v3619_v53  ;;  %v3707_v55 = vld [vmem:[%s9107_s25 + $0x30] sm:$0xff] }
 0x4c9   : > { %v3651_v3 = vmul.f32 %v10464_v15, %v3620_v10 }
 0x4ca   : > { %3901 = vmatprep.mubr.bf16.mxu1 %v3700_v39  ;;  %v3441_v14 = vadd.f32 %v3409_v38, %v3361_v18  ;;  %v3443_v32 = vadd.f32 %v3411_v0, %v3363_v60 }
 0x4cc   : > { %v3521_v24 = vadd.f32 %v3489_v16, %v3441_v14  ;;  %v3523_v19 = vadd.f32 %v3491_v44, %v3443_v32  ;;  %v3710_v16 = vld [vmem:[%s9107_s25 + $0x48] sm:$0xff] }
 0x4ce   : > { %v3601_v58 = vadd.f32 %v3569_v29, %v3521_v24  ;;  %v3603_v6 = vadd.f32 %v3571_v43, %v3523_v19 }
 0x4d0   : > { %v3681_v25 = vadd.f32 %v3649_v51, %v3601_v58  ;;  %v3683_v49 = vadd.f32 %v3651_v3, %v3603_v6  ;;  %v3712_v6 = vld [vmem:[%s9107_s25 + $0x58] sm:$0xff] }
 0x4d2   : > { %v3699_v26 = vpack.c.bf16 %v3683_v49, %v3681_v25  ;;  %v3713_v25 = vld [vmem:[%s9107_s25 + $0x60] sm:$0xff] }
 0x4d4   : > { %3902 = vmatmul.mubr.bf16.gmra.mxu1 %v3699_v26 }
 0x50c   : > { %v4365_v40 = vpop.f32.mrf.mxu1 }
 0x50e   : > { %v4366_v52 = vpop.f32.mrf.mxu1 }
 0x50f   : > { %v4367_v27 = vadd.f32 %v4366_v52, %v4365_v40  ;;  %v3714_v52 = vld [vmem:[%s9107_s25 + $0x68] sm:$0xff] }
 0x510   : > { %v4368_v53 = vpop.f32.mrf.mxu1 }
 0x511   : > { %v3848_v10 = vadd.f32 %v4367_v27, %v3701_v20 }
 0x512   : > { %v4369_v13 = vpop.f32.mrf.mxu1 }
 0x513   : > { %3910 = vst [vmem:[%s9114_s29] sm:$0xff] %v3848_v10  ;;  %v4370_v61 = vadd.f32 %v4369_v13, %v4368_v53  ;;  %v3715_v13 = vld [vmem:[%s9107_s25 + $0x70] sm:$0xff] }
 0x514   : > { %v4371_v42 = vpop.f32.mrf.mxu1 }
 0x515   : > { %v3851_v31 = vadd.f32 %v4370_v61, %v3702_v11 }
 0x516   : > { %v4372_v47 = vpop.f32.mrf.mxu1 }
 0x517   : > { %3911 = vst [vmem:[%s9114_s29 + $0x8] sm:$0xff] %v3851_v31  ;;  %v4373_v36 = vadd.f32 %v4372_v47, %v4371_v42  ;;  %v3716_v47 = vld [vmem:[%s9107_s25 + $0x78] sm:$0xff] }
 0x518   : > { %v4374_v41 = vpop.f32.mrf.mxu1 }
 0x519   : > { %v3856_v63 = vadd.f32 %v4373_v36, %v3703_v57 }
 0x51a   : > { %v4375_v45 = vpop.f32.mrf.mxu1 }
 0x51b   : > { %3912 = vst [vmem:[%s9114_s29 + $0x10] sm:$0xff] %v3856_v63  ;;  %v4376_v23 = vadd.f32 %v4375_v45, %v4374_v41 }
 0x51d   : > { %v3859_v54 = vadd.f32 %v4376_v23, %v3704_v5 }
 0x51f   : > { %3913 = vst [vmem:[%s9114_s29 + $0x18] sm:$0xff] %v3859_v54 }
 0x528   : > { %v4377_v50 = vpop.f32.mrf.mxu1 }
 0x52a   : > { %v4378_v22 = vpop.f32.mrf.mxu1 }
 0x52b   : > { %v4379_v48 = vadd.f32 %v4378_v22, %v4377_v50 }
 0x52c   : > { %v4380_v28 = vpop.f32.mrf.mxu1 }
 0x52d   : > { %v3864_v8 = vadd.f32 %v4379_v48, %v3705_v21 }
 0x52e   : > { %v4381_v2 = vpop.f32.mrf.mxu1 }
 0x52f   : > { %3914 = vst [vmem:[%s9114_s29 + $0x20] sm:$0xff] %v3864_v8  ;;  %v4382_v59 = vadd.f32 %v4381_v2, %v4380_v28 }
 0x531   : > { %v3867_v4 = vadd.f32 %v4382_v59, %v3706_v1 }
 0x533   : > { %3915 = vst [vmem:[%s9114_s29 + $0x28] sm:$0xff] %v3867_v4 }
 0x545   : > { %v4383_v9 = vpop.f32.mrf.mxu1 }
 0x547   : > { %v4384_v30 = vpop.f32.mrf.mxu1 }
 0x548   : > { %v4385_v34 = vadd.f32 %v4384_v30, %v4383_v9 }
 0x549   : > { %v4386_v7 = vpop.f32.mrf.mxu1 }
 0x54a   : > { %v3872_v17 = vadd.f32 %v4385_v34, %v3707_v55 }
 0x54b   : > { %v4387_v38 = vpop.f32.mrf.mxu1 }
 0x54c   : > { %3916 = vst [vmem:[%s9114_s29 + $0x30] sm:$0xff] %v3872_v17  ;;  %v4388_v39 = vadd.f32 %v4387_v38, %v4386_v7 }
 0x54e   : > { %v3875_v18 = vadd.f32 %v4388_v39, %v3708_v35 }
 0x550   : > { %3917 = vst [vmem:[%s9114_s29 + $0x38] sm:$0xff] %v3875_v18 }
 0x55a   : > { %v4389_v60 = vpop.f32.mrf.mxu1 }
 0x55c   : > { %v4390_v0 = vpop.f32.mrf.mxu1 }
 0x55d   : > { %v4391_v14 = vadd.f32 %v4390_v0, %v4389_v60 }
 0x55e   : > { %v4392_v32 = vpop.f32.mrf.mxu1 }
 0x55f   : > { %v3880_v56 = vadd.f32 %v4391_v14, %v3709_v37 }
 0x560   : > { %v4393_v12 = vpop.f32.mrf.mxu1 }
 0x561   : > { %3918 = vst [vmem:[%s9114_s29 + $0x40] sm:$0xff] %v3880_v56  ;;  %v4394_v44 = vadd.f32 %v4393_v12, %v4392_v32 }
 0x563   : > { %v3883_v24 = vadd.f32 %v4394_v44, %v3710_v16 }
 0x565   : > { %3919 = vst [vmem:[%s9114_s29 + $0x48] sm:$0xff] %v3883_v24 }
 0x56e   : > { %v4395_v19 = vpop.f32.mrf.mxu1 }
 0x570   : > { %v4396_v29 = vpop.f32.mrf.mxu1 }
 0x571   : > { %v4397_v62 = vadd.f32 %v4396_v29, %v4395_v19 }
 0x572   : > { %v4398_v43 = vpop.f32.mrf.mxu1 }
 0x573   : > { %v3888_v58 = vadd.f32 %v4397_v62, %v3711_v33 }
 0x574   : > { %v4399_v46 = vpop.f32.mrf.mxu1 }
 0x575   : > { %3920 = vst [vmem:[%s9114_s29 + $0x50] sm:$0xff] %v3888_v58  ;;  %v4400_v51 = vadd.f32 %v4399_v46, %v4398_v43 }
 0x577   : > { %v3891_v15 = vadd.f32 %v4400_v51, %v3712_v6 }
 0x579   : > { %3921 = vst [vmem:[%s9114_s29 + $0x58] sm:$0xff] %v3891_v15 }
 0x581   : > { %v4401_v3 = vpop.f32.mrf.mxu1 }
 0x583   : > { %v4402_v49 = vpop.f32.mrf.mxu1 }
 0x584   : > { %v4403_v26 = vadd.f32 %v4402_v49, %v4401_v3 }
 0x585   : > { %v4404_v40 = vpop.f32.mrf.mxu1 }
 0x586   : > { %v3896_v20 = vadd.f32 %v4403_v26, %v3713_v25 }
 0x587   : > { %v4405_v27 = vpop.f32.mrf.mxu1 }
 0x588   : > { %3922 = vst [vmem:[%s9114_s29 + $0x60] sm:$0xff] %v3896_v20  ;;  %v4406_v53 = vadd.f32 %v4405_v27, %v4404_v40 }
 0x58a   : > { %v3899_v10 = vadd.f32 %v4406_v53, %v3714_v52 }
 0x58c   : > { %3923 = vst [vmem:[%s9114_s29 + $0x68] sm:$0xff] %v3899_v10 }
 0x594   : > { %v4407_v11 = vpop.f32.mrf.mxu1 }
 0x596   : > { %v4408_v61 = vpop.f32.mrf.mxu1 }
 0x597   : > { %v4409_v42 = vadd.f32 %v4408_v61, %v4407_v11 }
 0x598   : > { %v4410_v31 = vpop.f32.mrf.mxu1 }
 0x599   : > { %v3904_v57 = vadd.f32 %v4409_v42, %v3715_v13 }
 0x59a   : > { %v4411_v36 = vpop.f32.mrf.mxu1 }
 0x59b   : > { %3924 = vst [vmem:[%s9114_s29 + $0x70] sm:$0xff] %v3904_v57  ;;  %v4412_v41 = vadd.f32 %v4411_v36, %v4410_v31 }
 0x59d   : > { %v3907_v63 = vadd.f32 %v4412_v41, %v3716_v47 }
 0x59f   : > { %3925 = vst [vmem:[%s9114_s29 + $0x78] sm:$0xff] %v3907_v63 }
 0x5a0 PF: > { %s15_s18 = sadd.s32 1, %s4822_s18  }
 0x5a1   : > { %p12_p4 = scmp.ge.s32.totalorder %s15_s18, 4  }
 0x5a3   :  { %14 = sbr.rel (!%p12_p4) target bundleno = 1 (0x1), region = 76 }

</bundles_post_ra>
